<compile_context>
chip_gen: v5e
topology: v5e:2x2
jax: 0.10.0
libtpu: 0.0.40
codegen_flags: <defaults>
</compile_context>

<pallas_src>
import jax
import jax.numpy as jnp
from jax.experimental import pallas as pl
from jax.experimental.pallas import tpu as pltpu

# Module-implied sizes: hidden=512 is hardcoded by the module; state_space /
# skill_num are free parameters of the original script -> small fixed values.
STATE_SPACE = 16
HIDDEN = 512
SKILL_NUM = 8
BATCH = 256
MAX_FUSED_BATCH = 4096   # single-block fused path; see TODO above for larger B


def _disc_fwd_kernel(obs_ref,
                     w1_ref, b1_ref,
                     w2_ref, b2_ref,
                     w3_ref, b3_ref,
                     wdt_ref, bd_ref,
                     out_ref):
    """Fused forward: 3x(Linear+ReLU) + Linear + log_softmax(dim=0) -> [B, S]."""
    x = obs_ref[...]                                            # (B, STATE) f32

    # Layer 1: K=16 — keep f32, no cast (tiny fraction of FLOPs).
    h = jnp.dot(x, w1_ref[...], preferred_element_type=jnp.float32) + b1_ref[...]
    h = jnp.maximum(h, 0.0)

    # Layers 2-3: bf16 weights / operands, f32 MXU accumulation.
    h = jnp.dot(h.astype(jnp.bfloat16), w2_ref[...],
                preferred_element_type=jnp.float32) + b2_ref[...]
    h = jnp.maximum(h, 0.0)

    h = jnp.dot(h.astype(jnp.bfloat16), w3_ref[...],
                preferred_element_type=jnp.float32) + b3_ref[...]
    h = jnp.maximum(h, 0.0)

    # Final projection: wdt stored [SKILL, HIDDEN] (torch layout); contract the
    # last dims of both operands -> logits [B, SKILL]. Bias applied in-kernel.
    logits = jax.lax.dot_general(
        h.astype(jnp.bfloat16), wdt_ref[...],
        dimension_numbers=(((1,), (1,)), ((), ())),
        preferred_element_type=jnp.float32) + bd_ref[...]

    # log_softmax over dim=0 (the batch axis), exactly as in the PyTorch module.
    m = jnp.max(logits, axis=0, keepdims=True)
    z = logits - m
    lse = jnp.log(jnp.sum(jnp.exp(z), axis=0, keepdims=True))
    out_ref[...] = z - lse


@jax.jit
def discriminator_forward(obs, params):
    w1, b1, w2, b2, w3, b3, wdt, bd = params
    B = obs.shape[0]
    assert B <= MAX_FUSED_BATCH, "single-block fused path; tile the batch for larger B"

    vmem = pl.BlockSpec(memory_space=pltpu.MemorySpace.VMEM)

    flops = 2 * B * (STATE_SPACE * HIDDEN + 2 * HIDDEN * HIDDEN + HIDDEN * SKILL_NUM)
    bytes_accessed = (
        sum(int(a.size) * a.dtype.itemsize for a in params)
        + int(obs.size) * obs.dtype.itemsize
        + B * SKILL_NUM * 4)

    return pl.pallas_call(
        _disc_fwd_kernel,
        out_shape=jax.ShapeDtypeStruct((B, SKILL_NUM), jnp.float32),
        in_specs=[vmem] * 9,
        out_specs=vmem,
        cost_estimate=pl.CostEstimate(flops=flops,
                                      transcendentals=2 * B * SKILL_NUM,
                                      bytes_accessed=bytes_accessed),
    )(obs, w1, b1, w2, b2, w3, b3, wdt, bd)


def init_params(key):
    """nn.Linear-style init: U(-1/sqrt(fan_in), +1/sqrt(fan_in)).

    w1 stays f32 (layer-1 matmul runs in f32); w2/w3/wdt are stored bf16 (the
    kernel accumulates in f32 on the MXU); biases stay f32.  w2/w3 are stored
    [in, out]; the final layer is stored [out, in] (torch layout).
    """
    def uniform(k, shape, fan_in, dtype):
        bound = float(fan_in) ** -0.5
        return jax.random.uniform(k, shape, jnp.float32, -bound, bound).astype(dtype)

    keys = jax.random.split(key, 8)
    w1 = uniform(keys[0], (STATE_SPACE, HIDDEN), STATE_SPACE, jnp.float32)
    b1 = uniform(keys[1], (1, HIDDEN), STATE_SPACE, jnp.float32)
    w2 = uniform(keys[2], (HIDDEN, HIDDEN), HIDDEN, jnp.bfloat16)
    b2 = uniform(keys[3], (1, HIDDEN), HIDDEN, jnp.float32)
    w3 = uniform(keys[4], (HIDDEN, HIDDEN), HIDDEN, jnp.bfloat16)
    b3 = uniform(keys[5], (1, HIDDEN), HIDDEN, jnp.float32)
    wdt = uniform(keys[6], (SKILL_NUM, HIDDEN), HIDDEN, jnp.bfloat16)
    bd = uniform(keys[7], (1, SKILL_NUM), HIDDEN, jnp.float32)
    return (w1, b1, w2, b2, w3, b3, wdt, bd)


def reference_forward(obs, params):
    """Pure-JAX f32 reference matching the PyTorch forward (bias + dim=0 softmax)."""
    w1, b1, w2, b2, w3, b3, wdt, bd = params
    f32 = lambda a: a.astype(jnp.float32)
    h = jnp.maximum(obs @ f32(w1) + b1, 0.0)
    h = jnp.maximum(h @ f32(w2) + b2, 0.0)
    h = jnp.maximum(h @ f32(w3) + b3, 0.0)
    logits = h @ f32(wdt).T + bd
    return jax.nn.log_softmax(logits, axis=0)      # dim=0, as in the PyTorch module


if __name__ == "__main__":
    key = jax.random.PRNGKey(0)
    k_params, k_obs = jax.random.split(key)
    params = init_params(k_params)
    obs = jax.random.normal(k_obs, (BATCH, STATE_SPACE), dtype=jnp.float32)

    out = jax.block_until_ready(discriminator_forward(obs, params))
    ref = reference_forward(obs, params)

    assert out.shape == (BATCH, SKILL_NUM), out.shape
    assert bool(jnp.all(jnp.isfinite(out)))
    # bf16 matmul operands through two 512-wide contractions -> loosened tolerance.
    err = float(jnp.max(jnp.abs(out - ref)))
    assert err < 5e-2, f"max abs err vs reference: {err}"

    print("KERNEL_OK")
</pallas_src>

<mosaic_0001>
module attributes {stable_mosaic.version = 11 : i64} {
  func.func @_disc_fwd_kernel(%arg0: memref<256x16xf32, #tpu.memory_space<vmem>>, %arg1: memref<16x512xf32, #tpu.memory_space<vmem>>, %arg2: memref<1x512xf32, #tpu.memory_space<vmem>>, %arg3: memref<512x512xbf16, #tpu.memory_space<vmem>>, %arg4: memref<1x512xf32, #tpu.memory_space<vmem>>, %arg5: memref<512x512xbf16, #tpu.memory_space<vmem>>, %arg6: memref<1x512xf32, #tpu.memory_space<vmem>>, %arg7: memref<8x512xbf16, #tpu.memory_space<vmem>>, %arg8: memref<1x8xf32, #tpu.memory_space<vmem>>, %arg9: memref<256x8xf32, #tpu.memory_space<vmem>>) attributes {dimension_semantics = [], scalar_prefetch = 0 : i64, scratch_operands = 0 : i64, tpu.core_type = #tpu.core_type<tc>} {
    %c0 = arith.constant 0 : index
    %c0_0 = arith.constant 0 : index
    %0 = vector.load %arg0[%c0, %c0_0] : memref<256x16xf32, #tpu.memory_space<vmem>>, vector<256x16xf32>
    %c0_1 = arith.constant 0 : index
    %c0_2 = arith.constant 0 : index
    %1 = vector.load %arg1[%c0_1, %c0_2] : memref<16x512xf32, #tpu.memory_space<vmem>>, vector<16x512xf32>
    %cst = arith.constant dense<0.000000e+00> : vector<256x512xf32>
    %2 = tpu.matmul %0, %1, %cst {dimension_numbers = #tpu.dot_dimension_numbers<[1], [0], [0], [1], [0, 0, 1, 1], [], []>} : vector<256x16xf32>, vector<16x512xf32>, vector<256x512xf32> -> vector<256x512xf32>
    %c0_3 = arith.constant 0 : index
    %c0_4 = arith.constant 0 : index
    %3 = vector.load %arg2[%c0_3, %c0_4] : memref<1x512xf32, #tpu.memory_space<vmem>>, vector<1x512xf32>
    %4 = vector.broadcast %3 : vector<1x512xf32> to vector<256x512xf32>
    %5 = arith.addf %2, %4 : vector<256x512xf32>
    %cst_5 = arith.constant 0.000000e+00 : f32
    %6 = vector.broadcast %cst_5 : f32 to vector<256x512xf32>
    %7 = arith.maximumf %5, %6 : vector<256x512xf32>
    %8 = arith.truncf %7 : vector<256x512xf32> to vector<256x512xbf16>
    %c0_6 = arith.constant 0 : index
    %c0_7 = arith.constant 0 : index
    %9 = vector.load %arg3[%c0_6, %c0_7] : memref<512x512xbf16, #tpu.memory_space<vmem>>, vector<512x512xbf16>
    %cst_8 = arith.constant dense<0.000000e+00> : vector<256x512xf32>
    %10 = tpu.matmul %8, %9, %cst_8 {dimension_numbers = #tpu.dot_dimension_numbers<[1], [0], [0], [1], [0, 0, 1, 1], [], []>} : vector<256x512xbf16>, vector<512x512xbf16>, vector<256x512xf32> -> vector<256x512xf32>
    %c0_9 = arith.constant 0 : index
    %c0_10 = arith.constant 0 : index
    %11 = vector.load %arg4[%c0_9, %c0_10] : memref<1x512xf32, #tpu.memory_space<vmem>>, vector<1x512xf32>
    %12 = vector.broadcast %11 : vector<1x512xf32> to vector<256x512xf32>
    %13 = arith.addf %10, %12 : vector<256x512xf32>
    %cst_11 = arith.constant 0.000000e+00 : f32
    %14 = vector.broadcast %cst_11 : f32 to vector<256x512xf32>
    %15 = arith.maximumf %13, %14 : vector<256x512xf32>
    %16 = arith.truncf %15 : vector<256x512xf32> to vector<256x512xbf16>
    %c0_12 = arith.constant 0 : index
    %c0_13 = arith.constant 0 : index
    %17 = vector.load %arg5[%c0_12, %c0_13] : memref<512x512xbf16, #tpu.memory_space<vmem>>, vector<512x512xbf16>
    %cst_14 = arith.constant dense<0.000000e+00> : vector<256x512xf32>
    %18 = tpu.matmul %16, %17, %cst_14 {dimension_numbers = #tpu.dot_dimension_numbers<[1], [0], [0], [1], [0, 0, 1, 1], [], []>} : vector<256x512xbf16>, vector<512x512xbf16>, vector<256x512xf32> -> vector<256x512xf32>
    %c0_15 = arith.constant 0 : index
    %c0_16 = arith.constant 0 : index
    %19 = vector.load %arg6[%c0_15, %c0_16] : memref<1x512xf32, #tpu.memory_space<vmem>>, vector<1x512xf32>
    %20 = vector.broadcast %19 : vector<1x512xf32> to vector<256x512xf32>
    %21 = arith.addf %18, %20 : vector<256x512xf32>
    %cst_17 = arith.constant 0.000000e+00 : f32
    %22 = vector.broadcast %cst_17 : f32 to vector<256x512xf32>
    %23 = arith.maximumf %21, %22 : vector<256x512xf32>
    %24 = arith.truncf %23 : vector<256x512xf32> to vector<256x512xbf16>
    %c0_18 = arith.constant 0 : index
    %c0_19 = arith.constant 0 : index
    %25 = vector.load %arg7[%c0_18, %c0_19] : memref<8x512xbf16, #tpu.memory_space<vmem>>, vector<8x512xbf16>
    %cst_20 = arith.constant dense<0.000000e+00> : vector<256x8xf32>
    %26 = tpu.matmul %24, %25, %cst_20 {dimension_numbers = #tpu.dot_dimension_numbers<[1], [1], [0], [0], [0, 0, 1, 0], [], []>} : vector<256x512xbf16>, vector<8x512xbf16>, vector<256x8xf32> -> vector<256x8xf32>
    %c0_21 = arith.constant 0 : index
    %c0_22 = arith.constant 0 : index
    %27 = vector.load %arg8[%c0_21, %c0_22] : memref<1x8xf32, #tpu.memory_space<vmem>>, vector<1x8xf32>
    %28 = vector.broadcast %27 : vector<1x8xf32> to vector<256x8xf32>
    %29 = arith.addf %26, %28 : vector<256x8xf32>
    %cst_23 = arith.constant dense<0xFF800000> : vector<8xf32>
    %30 = vector.multi_reduction <maximumf>, %29, %cst_23 [0] : vector<256x8xf32> to vector<8xf32>
    %31 = vector.shape_cast %30 : vector<8xf32> to vector<1x8xf32>
    %32 = vector.broadcast %31 : vector<1x8xf32> to vector<256x8xf32>
    %33 = arith.subf %29, %32 : vector<256x8xf32>
    %34 = math.exp %33 : vector<256x8xf32>
    %cst_24 = arith.constant dense<0.000000e+00> : vector<8xf32>
    %35 = vector.multi_reduction <add>, %34, %cst_24 [0] : vector<256x8xf32> to vector<8xf32>
    %36 = vector.shape_cast %35 : vector<8xf32> to vector<1x8xf32>
    %37 = math.log %36 : vector<1x8xf32>
    %38 = vector.broadcast %37 : vector<1x8xf32> to vector<256x8xf32>
    %39 = arith.subf %33, %38 : vector<256x8xf32>
    %c0_25 = arith.constant 0 : index
    %c0_26 = arith.constant 0 : index
    %40 = vector.load %arg9[%c0_25, %c0_26] : memref<256x8xf32, #tpu.memory_space<vmem>>, vector<256x8xf32>
    tpu.vector_store %arg9[%c0_25, %c0_26], %39 {strides = array<i32>} : memref<256x8xf32, #tpu.memory_space<vmem>>, vector<256x8xf32>,
    return
  }
}

</mosaic_0001>

<bundles_post_ra>
// kernel: discriminator_forward.1
= control target key start
LH: loop header
LB: loop body
LE: loop exit
PB: predicated region body
PF: predicated region fallthrough
CT: control target
= control target key end

     0   :  { %14 = vsyncpa [#allocation3], 0  ;;  %s10201_s0 = inlined_call_operand.vmem [shape: f32[256,16], index: 0, kind: input, shape index: {}]   ;;  %s10202_s1 = inlined_call_operand.vmem [shape: f32[16,512], index: 1, kind: input, shape index: {}]   ;;  %s10203_s2 = inlined_call_operand.vmem [shape: f32[1,512], index: 2, kind: input, shape index: {}]   ;;  %s10204_s3 = inlined_call_operand.hbm [shape: bf16[512,512], index: 3, kind: input, shape index: {}]   ;;  %s10205_s4 = inlined_call_operand.vmem [shape: f32[1,512], index: 4, kind: input, shape index: {}]   ;;  %s10206_s5 = inlined_call_operand.hbm [shape: bf16[512,512], index: 5, kind: input, shape index: {}]   ;;  %s10207_s6 = inlined_call_operand.vmem [shape: f32[1,512], index: 6, kind: input, shape index: {}]   ;;  %s10208_s7 = inlined_call_operand.vmem [shape: bf16[8,512], index: 7, kind: input, shape index: {}]   ;;  %s10209_s8 = inlined_call_operand.vmem [shape: f32[1,8], index: 8, kind: input, shape index: {}]   ;;  %s10210_s9 = inlined_call_operand.vmem [shape: f32[256,8], index: 9, kind: output, shape index: {}]  }
   0x1   :  { %s26_s11 = sshll.u32 %s10204_s3, 4  ;;  %s27_s11 = int_to_ptr.hbm [resolvable:$true] %s26_s11 }
   0x2   :  { %15 = vsyncpa [#allocation5], 0  ;;  %s7860_s12 = smov [#allocation2]   ;;  %s41_s16 = sshll.u32 %s10206_s5, 4  ;;  %s42_s16 = int_to_ptr.hbm [resolvable:$true] %s41_s16 }
   0x3   :  { %s28_s13 = sshll.u32 %s7860_s12, 4  ;;  %s7861_s17 = smov 256   ;;  %s29_s13 = int_to_ptr.vmem [resolvable:$true] %s28_s13 }
   0x4   :  { %s7862_s18 = smov 16   ;;  %s7863_s19 = smov [#allocation4]  }
   0x5   :  { %34 = dma.hbm_to_vmem [thread:$0]  %s27_s11, 16384, %s29_s13, [#allocation3], %s7861_s17, %s7861_s17, %s7862_s18  }
   0x6   :  { %s43_s20 = sshll.u32 %s7863_s19, 4  ;;  %s44_s20 = int_to_ptr.vmem [resolvable:$true] %s43_s20 }
   0x7   :  { %49 = dma.hbm_to_vmem [thread:$0]  %s42_s16, 16384, %s44_s20, [#allocation5], %s7861_s17, %s7861_s17, %s7862_s18  }
   0x8   :  { %7856 = dma.done.wait [#allocation3], 16384  }
   0x9   :  { %7857 = vsyncadd [#allocation3], 4294950912 }
   0xa   :  { %7858 = dma.done.wait [#allocation5], 16384  }
   0xb   :  { %7859 = vsyncadd [#allocation5], 4294950912  ;;  %v101_v0 = vld [vmem:[%s10202_s1 + $0x20] sm:$0xff]  ;;  %v102_v1 = vld [vmem:[%s10202_s1 + $0x28] sm:$0xff]  ;;  %vm115_vm0 = vcmask 130048   ;;  %vm6020_vm1 = vcmask 64512  }
   0xc   :  { %v103_v2 = vld [vmem:[%s10202_s1 + $0x30] sm:$0xff]  ;;  %226 = vmatpush.msra.mxu0 %v101_v0  ;;  %339 = vmatpush.msra.mxu1 %v102_v1  ;;  %v104_v3 = vld [vmem:[%s10202_s1 + $0x38] sm:$0xff]  ;;  %v97_v4 = vld [vmem:[%s10202_s1] sm:$0xff] }
   0xd   :  { %v98_v5 = vld [vmem:[%s10202_s1 + $0x8] sm:$0xff]  ;;  %452 = vmatpush.msra.mxu2 %v103_v2  ;;  %565 = vmatpush.msra.mxu3 %v104_v3  ;;  %v99_v6 = vld [vmem:[%s10202_s1 + $0x10] sm:$0xff]  ;;  %v100_v7 = vld [vmem:[%s10202_s1 + $0x18] sm:$0xff] }
   0xe   :  { %v65_v8 = vld [vmem:[%s10201_s0] sm:$0xff]  ;;  %227 = vmatpush.msra.mxu0 %v97_v4  ;;  %340 = vmatpush.msra.mxu1 %v98_v5  ;;  %v7573_v10 = vld [vmem:[#allocation2 + $0x2ec] sm:$0xf0]  ;;  %v66_v32 = vld [vmem:[%s10201_s0 + $0x8] sm:$0xff] }
   0xf   :  { %v6825_v9 = vld [vmem:[#allocation2 + $0x2e0] sm:$0xf]  ;;  %453 = vmatpush.msra.mxu2 %v99_v6  ;;  %566 = vmatpush.msra.mxu3 %v100_v7  ;;  %v7509_v13 = vld [vmem:[#allocation2 + $0xec] sm:$0xf0]  ;;  %v68_v35 = vld [vmem:[%s10201_s0 + $0x18] sm:$0xff] }
  0x10   :  { %v6569_v11 = vld [vmem:[#allocation2 + $0xe0] sm:$0xf]  ;;  %v6826_v12 = vor.u32 %v7573_v10, %v6825_v9  ;;  %v7605_v15 = vld [vmem:[#allocation2 + $0x3ec] sm:$0xf0]  ;;  %6327 = vmatmul.msk.f32.vlgmr.msra.gmra.mxu0 %vm115_vm0, %v65_v8  ;;  %6359 = vmatmul.msk.f32.vlgmr.msra.gmra.mxu1 %vm115_vm0, %v65_v8  ;;  %v70_v49 = vld [vmem:[%s10201_s0 + $0x28] sm:$0xff] }
  0x11   :  { %v6953_v14 = vld [vmem:[#allocation2 + $0x3e0] sm:$0xf]  ;;  %v6570_v16 = vor.u32 %v7509_v13, %v6569_v11  ;;  %v7541_v19 = vld [vmem:[#allocation2 + $0x1ec] sm:$0xf0]  ;;  %6391 = vmatmul.msk.f32.vlgmr.msra.gmra.mxu2 %vm115_vm0, %v65_v8  ;;  %6423 = vmatmul.msk.f32.vlgmr.msra.gmra.mxu3 %vm115_vm0, %v65_v8  ;;  %v72_v51 = vld [vmem:[%s10201_s0 + $0x38] sm:$0xff] }
  0x12   :  { %v6954_v17 = vor.u32 %v7605_v15, %v6953_v14  ;;  %v6697_v18 = vld [vmem:[#allocation2 + $0x1e0] sm:$0xf]  ;;  %1812 = vmatpush.bf16.msrb.mxu2 %v6826_v12  ;;  %v7569_v22 = vld [vmem:[#allocation2 + $0x2cc] sm:$0xf0]  ;;  %v74_v1 = vld [vmem:[%s10201_s0 + $0x48] sm:$0xff] }
  0x13   :  { %v6698_v20 = vor.u32 %v7541_v19, %v6697_v18  ;;  %1634 = vmatpush.bf16.msrb.mxu0 %v6570_v16  ;;  %v6809_v21 = vld [vmem:[#allocation2 + $0x2c0] sm:$0xf]  ;;  %v7505_v25 = vld [vmem:[#allocation2 + $0xcc] sm:$0xf0]  ;;  %v76_v3 = vld [vmem:[%s10201_s0 + $0x58] sm:$0xff] }
  0x14   :  { %v6553_v23 = vld [vmem:[#allocation2 + $0xc0] sm:$0xf]  ;;  %1901 = vmatpush.bf16.msrb.mxu3 %v6954_v17  ;;  %v6810_v24 = vor.u32 %v7569_v22, %v6809_v21  ;;  %v7601_v27 = vld [vmem:[#allocation2 + $0x3cc] sm:$0xf0]  ;;  %v78_v14 = vld [vmem:[%s10201_s0 + $0x68] sm:$0xff] }
  0x15   :  { %1723 = vmatpush.bf16.msrb.mxu1 %v6698_v20  ;;  %v6937_v26 = vld [vmem:[#allocation2 + $0x3c0] sm:$0xf]  ;;  %v6554_v28 = vor.u32 %v7505_v25, %v6553_v23  ;;  %v7537_v31 = vld [vmem:[#allocation2 + $0x1cc] sm:$0xf0]  ;;  %v80_v19 = vld [vmem:[%s10201_s0 + $0x78] sm:$0xff] }
  0x16   :  { %v6938_v29 = vor.u32 %v7601_v27, %v6937_v26  ;;  %v6681_v30 = vld [vmem:[#allocation2 + $0x1c0] sm:$0xf]  ;;  %1813 = vmatpush.bf16.msrb.mxu2 %v6810_v24  ;;  %v67_v34 = vld [vmem:[%s10201_s0 + $0x10] sm:$0xff] }
  0x17   :  { %v6682_v33 = vor.u32 %v7537_v31, %v6681_v30  ;;  %1635 = vmatpush.bf16.msrb.mxu0 %v6554_v28  ;;  %v69_v36 = vld [vmem:[%s10201_s0 + $0x20] sm:$0xff]  ;;  %v7565_v38 = vld [vmem:[#allocation2 + $0x2ac] sm:$0xf0] }
  0x18   :  { %1902 = vmatpush.bf16.msrb.mxu3 %v6938_v29  ;;  %6328 = vmatmul.msk.f32.gmra.mxu0 %vm115_vm0, %v66_v32  ;;  %v6793_v37 = vld [vmem:[#allocation2 + $0x2a0] sm:$0xf]  ;;  %v7501_v41 = vld [vmem:[#allocation2 + $0xac] sm:$0xf0] }
  0x19   :  { %1724 = vmatpush.bf16.msrb.mxu1 %v6682_v33  ;;  %6392 = vmatmul.msk.f32.gmra.mxu2 %vm115_vm0, %v66_v32  ;;  %v6537_v39 = vld [vmem:[#allocation2 + $0xa0] sm:$0xf]  ;;  %v6794_v40 = vor.u32 %v7565_v38, %v6793_v37  ;;  %v7597_v43 = vld [vmem:[#allocation2 + $0x3ac] sm:$0xf0] }
  0x1a   :  { %6360 = vmatmul.msk.f32.gmra.mxu1 %vm115_vm0, %v66_v32  ;;  %6424 = vmatmul.msk.f32.gmra.mxu3 %vm115_vm0, %v66_v32  ;;  %v6921_v42 = vld [vmem:[#allocation2 + $0x3a0] sm:$0xf]  ;;  %v6538_v44 = vor.u32 %v7501_v41, %v6537_v39  ;;  %v7533_v47 = vld [vmem:[#allocation2 + $0x1ac] sm:$0xf0] }
  0x1b   :  { %v6922_v45 = vor.u32 %v7597_v43, %v6921_v42  ;;  %v6665_v46 = vld [vmem:[#allocation2 + $0x1a0] sm:$0xf]  ;;  %1814 = vmatpush.bf16.msrb.mxu2 %v6794_v40  ;;  %v71_v50 = vld [vmem:[%s10201_s0 + $0x30] sm:$0xff] }
  0x1c   :  { %v6666_v48 = vor.u32 %v7533_v47, %v6665_v46  ;;  %1636 = vmatpush.bf16.msrb.mxu0 %v6538_v44  ;;  %v73_v52 = vld [vmem:[%s10201_s0 + $0x40] sm:$0xff]  ;;  %v7561_v54 = vld [vmem:[#allocation2 + $0x28c] sm:$0xf0] }
  0x1d   :  { %1903 = vmatpush.bf16.msrb.mxu3 %v6922_v45  ;;  %v6777_v53 = vld [vmem:[#allocation2 + $0x280] sm:$0xf]  ;;  %v7497_v57 = vld [vmem:[#allocation2 + $0x8c] sm:$0xf0] }
  0x1e   :  { %1725 = vmatpush.bf16.msrb.mxu1 %v6666_v48  ;;  %v6521_v55 = vld [vmem:[#allocation2 + $0x80] sm:$0xf]  ;;  %v6778_v56 = vor.u32 %v7561_v54, %v6777_v53  ;;  %v7593_v59 = vld [vmem:[#allocation2 + $0x38c] sm:$0xf0] }
  0x1f   :  { %v6905_v58 = vld [vmem:[#allocation2 + $0x380] sm:$0xf]  ;;  %v6522_v60 = vor.u32 %v7497_v57, %v6521_v55  ;;  %v7529_v63 = vld [vmem:[#allocation2 + $0x18c] sm:$0xf0] }
  0x20   :  { %6329 = vmatmul.msk.f32.gmra.mxu0 %vm115_vm0, %v67_v34  ;;  %v6906_v61 = vor.u32 %v7593_v59, %v6905_v58  ;;  %v6649_v62 = vld [vmem:[#allocation2 + $0x180] sm:$0xf]  ;;  %1815 = vmatpush.bf16.msrb.mxu2 %v6778_v56  ;;  %v75_v2 = vld [vmem:[%s10201_s0 + $0x50] sm:$0xff] }
  0x21   :  { %6393 = vmatmul.msk.f32.gmra.mxu2 %vm115_vm0, %v67_v34  ;;  %v6650_v0 = vor.u32 %v7529_v63, %v6649_v62  ;;  %1637 = vmatpush.bf16.msrb.mxu0 %v6522_v60  ;;  %v77_v4 = vld [vmem:[%s10201_s0 + $0x60] sm:$0xff]  ;;  %v7557_v6 = vld [vmem:[#allocation2 + $0x26c] sm:$0xf0]  ;;  %v84_v62 = vld [vmem:[%s10201_s0 + $0x98] sm:$0xff] }
  0x22   :  { %6361 = vmatmul.msk.f32.gmra.mxu1 %vm115_vm0, %v67_v34  ;;  %6425 = vmatmul.msk.f32.gmra.mxu3 %vm115_vm0, %v67_v34  ;;  %v6761_v5 = vld [vmem:[#allocation2 + $0x260] sm:$0xf]  ;;  %v7493_v9 = vld [vmem:[#allocation2 + $0x6c] sm:$0xf0] }
  0x23   :  { %1904 = vmatpush.bf16.msrb.mxu3 %v6906_v61  ;;  %1726 = vmatpush.bf16.msrb.mxu1 %v6650_v0  ;;  %v6505_v7 = vld [vmem:[#allocation2 + $0x60] sm:$0xf]  ;;  %v6762_v8 = vor.u32 %v7557_v6, %v6761_v5  ;;  %v7589_v11 = vld [vmem:[#allocation2 + $0x36c] sm:$0xf0] }
  0x24   :  { %v6889_v10 = vld [vmem:[#allocation2 + $0x360] sm:$0xf]  ;;  %v6506_v12 = vor.u32 %v7493_v9, %v6505_v7  ;;  %v7525_v16 = vld [vmem:[#allocation2 + $0x16c] sm:$0xf0] }
  0x25   :  { %v6890_v13 = vor.u32 %v7589_v11, %v6889_v10  ;;  %1816 = vmatpush.bf16.msrb.mxu2 %v6762_v8  ;;  %v6633_v15 = vld [vmem:[#allocation2 + $0x160] sm:$0xf]  ;;  %v79_v18 = vld [vmem:[%s10201_s0 + $0x70] sm:$0xff] }
  0x26   :  { %1638 = vmatpush.bf16.msrb.mxu0 %v6506_v12  ;;  %v6634_v17 = vor.u32 %v7525_v16, %v6633_v15  ;;  %v81_v22 = vld [vmem:[%s10201_s0 + $0x80] sm:$0xff]  ;;  %v7553_v24 = vld [vmem:[#allocation2 + $0x24c] sm:$0xf0] }
  0x27   :  { %1905 = vmatpush.bf16.msrb.mxu3 %v6890_v13  ;;  %v6745_v23 = vld [vmem:[#allocation2 + $0x240] sm:$0xf]  ;;  %v7489_v27 = vld [vmem:[#allocation2 + $0x4c] sm:$0xf0] }
  0x28   :  { %6330 = vmatmul.msk.f32.gmra.mxu0 %vm115_vm0, %v68_v35  ;;  %1727 = vmatpush.bf16.msrb.mxu1 %v6634_v17  ;;  %v6489_v25 = vld [vmem:[#allocation2 + $0x40] sm:$0xf]  ;;  %v6746_v26 = vor.u32 %v7553_v24, %v6745_v23  ;;  %v7585_v29 = vld [vmem:[#allocation2 + $0x34c] sm:$0xf0] }
  0x29   :  { %6394 = vmatmul.msk.f32.gmra.mxu2 %vm115_vm0, %v68_v35  ;;  %v6873_v28 = vld [vmem:[#allocation2 + $0x340] sm:$0xf]  ;;  %v6490_v30 = vor.u32 %v7489_v27, %v6489_v25  ;;  %v7521_v41 = vld [vmem:[#allocation2 + $0x14c] sm:$0xf0] }
  0x2a   :  { %6362 = vmatmul.msk.f32.gmra.mxu1 %vm115_vm0, %v68_v35  ;;  %6426 = vmatmul.msk.f32.gmra.mxu3 %vm115_vm0, %v68_v35  ;;  %v6874_v31 = vor.u32 %v7585_v29, %v6873_v28  ;;  %v8077_v37 = vld [vmem:[%s10203_s2] sm:$0xf]  ;;  %v7549_v15 = vld [vmem:[#allocation2 + $0x22c] sm:$0xf0]  ;;  %v86_v29 = vld [vmem:[%s10201_s0 + $0xa8] sm:$0xff] }
  0x2b   :  { %1817 = vmatpush.bf16.msrb.mxu2 %v6746_v26  ;;  %1639 = vmatpush.bf16.msrb.mxu0 %v6490_v30  ;;  %v8080_v38 = vperm.slane %v8077_v37, 2  ;;  %v8083_v39 = vperm.slane %v8077_v37, 3  ;;  %v6617_v40 = vld [vmem:[#allocation2 + $0x140] sm:$0xf] }
  0x2c   :  { %1906 = vmatpush.bf16.msrb.mxu3 %v6874_v31  ;;  %v6618_v42 = vor.u32 %v7521_v41, %v6617_v40  ;;  %v85_v7 = vld [vmem:[%s10201_s0 + $0xa0] sm:$0xff]  ;;  %v7517_v31 = vld [vmem:[#allocation2 + $0x12c] sm:$0xf0] }
  0x2d   :  { %v6473_v16 = vld [vmem:[#allocation2 + $0x20] sm:$0xf] }
  0x2e   :  { %1728 = vmatpush.bf16.msrb.mxu1 %v6618_v42  ;;  %v6601_v30 = vld [vmem:[#allocation2 + $0x120] sm:$0xf] }
  0x30   :  { %6331 = vmatmul.msk.f32.gmra.mxu0 %vm115_vm0, %v69_v36 }
  0x31   :  { %6395 = vmatmul.msk.f32.gmra.mxu2 %vm115_vm0, %v69_v36 }
  0x32   :  { %6363 = vmatmul.msk.f32.gmra.mxu1 %vm115_vm0, %v69_v36  ;;  %6427 = vmatmul.msk.f32.gmra.mxu3 %vm115_vm0, %v69_v36  ;;  %v82_v36 = vld [vmem:[%s10201_s0 + $0x88] sm:$0xff] }
  0x38   :  { %6332 = vmatmul.msk.f32.gmra.mxu0 %vm115_vm0, %v70_v49 }
  0x39   :  { %6396 = vmatmul.msk.f32.gmra.mxu2 %vm115_vm0, %v70_v49 }
  0x3a   :  { %6364 = vmatmul.msk.f32.gmra.mxu1 %vm115_vm0, %v70_v49  ;;  %6428 = vmatmul.msk.f32.gmra.mxu3 %vm115_vm0, %v70_v49 }
  0x40   :  { %6333 = vmatmul.msk.f32.gmra.mxu0 %vm115_vm0, %v71_v50 }
  0x41   :  { %6397 = vmatmul.msk.f32.gmra.mxu2 %vm115_vm0, %v71_v50 }
  0x42   :  { %6365 = vmatmul.msk.f32.gmra.mxu1 %vm115_vm0, %v71_v50  ;;  %6429 = vmatmul.msk.f32.gmra.mxu3 %vm115_vm0, %v71_v50 }
  0x48   :  { %6334 = vmatmul.msk.f32.gmra.mxu0 %vm115_vm0, %v72_v51 }
  0x49   :  { %6398 = vmatmul.msk.f32.gmra.mxu2 %vm115_vm0, %v72_v51 }
  0x4a   :  { %6366 = vmatmul.msk.f32.gmra.mxu1 %vm115_vm0, %v72_v51  ;;  %6430 = vmatmul.msk.f32.gmra.mxu3 %vm115_vm0, %v72_v51  ;;  %v83_v51 = vld [vmem:[%s10201_s0 + $0x90] sm:$0xff] }
  0x50   :  { %6335 = vmatmul.msk.f32.gmra.mxu0 %vm115_vm0, %v73_v52 }
  0x51   :  { %6399 = vmatmul.msk.f32.gmra.mxu2 %vm115_vm0, %v73_v52 }
  0x52   :  { %6367 = vmatmul.msk.f32.gmra.mxu1 %vm115_vm0, %v73_v52  ;;  %6431 = vmatmul.msk.f32.gmra.mxu3 %vm115_vm0, %v73_v52 }
  0x58   :  { %6336 = vmatmul.msk.f32.gmra.mxu0 %vm115_vm0, %v74_v1 }
  0x59   :  { %6400 = vmatmul.msk.f32.gmra.mxu2 %vm115_vm0, %v74_v1 }
  0x5a   :  { %6368 = vmatmul.msk.f32.gmra.mxu1 %vm115_vm0, %v74_v1  ;;  %6432 = vmatmul.msk.f32.gmra.mxu3 %vm115_vm0, %v74_v1 }
  0x60   :  { %6337 = vmatmul.msk.f32.gmra.mxu0 %vm115_vm0, %v75_v2 }
  0x61   :  { %6401 = vmatmul.msk.f32.gmra.mxu2 %vm115_vm0, %v75_v2 }
  0x62   :  { %6369 = vmatmul.msk.f32.gmra.mxu1 %vm115_vm0, %v75_v2  ;;  %6433 = vmatmul.msk.f32.gmra.mxu3 %vm115_vm0, %v75_v2 }
  0x68   :  { %6338 = vmatmul.msk.f32.gmra.mxu0 %vm115_vm0, %v76_v3 }
  0x69   :  { %6402 = vmatmul.msk.f32.gmra.mxu2 %vm115_vm0, %v76_v3 }
  0x6a   :  { %6370 = vmatmul.msk.f32.gmra.mxu1 %vm115_vm0, %v76_v3  ;;  %6434 = vmatmul.msk.f32.gmra.mxu3 %vm115_vm0, %v76_v3 }
  0x70   :  { %6339 = vmatmul.msk.f32.gmra.mxu0 %vm115_vm0, %v77_v4 }
  0x71   :  { %6403 = vmatmul.msk.f32.gmra.mxu2 %vm115_vm0, %v77_v4 }
  0x72   :  { %6371 = vmatmul.msk.f32.gmra.mxu1 %vm115_vm0, %v77_v4  ;;  %6435 = vmatmul.msk.f32.gmra.mxu3 %vm115_vm0, %v77_v4 }
  0x78   :  { %6340 = vmatmul.msk.f32.gmra.mxu0 %vm115_vm0, %v78_v14 }
  0x79   :  { %6404 = vmatmul.msk.f32.gmra.mxu2 %vm115_vm0, %v78_v14 }
  0x7a   :  { %6372 = vmatmul.msk.f32.gmra.mxu1 %vm115_vm0, %v78_v14  ;;  %6436 = vmatmul.msk.f32.gmra.mxu3 %vm115_vm0, %v78_v14  ;;  %v6729_v14 = vld [vmem:[#allocation2 + $0x220] sm:$0xf] }
  0x7b   :  { %v6730_v17 = vor.u32 %v7549_v15, %v6729_v14 }
  0x7d   :  { %1818 = vmatpush.bf16.msrb.mxu2 %v6730_v17  ;;  %v8187_v17 = vperm.slane %v8077_v37, 0 }
  0x80   :  { %6341 = vmatmul.msk.f32.gmra.mxu0 %vm115_vm0, %v79_v18 }
  0x81   :  { %6405 = vmatmul.msk.f32.gmra.mxu2 %vm115_vm0, %v79_v18 }
  0x82   :  { %6373 = vmatmul.msk.f32.gmra.mxu1 %vm115_vm0, %v79_v18  ;;  %6437 = vmatmul.msk.f32.gmra.mxu3 %vm115_vm0, %v79_v18  ;;  %v7485_v18 = vld [vmem:[#allocation2 + $0x2c] sm:$0xf0] }
  0x83   :  { %v6474_v23 = vor.u32 %v7485_v18, %v6473_v16  ;;  %v8190_v18 = vperm.slane %v8077_v37, 1  ;;  %v7577_v37 = vld [vmem:[#allocation2 + $0x30c] sm:$0xf0] }
  0x85   :  { %1640 = vmatpush.bf16.msrb.mxu0 %v6474_v23  ;;  %v6713_v23 = vld [vmem:[#allocation2 + $0x200] sm:$0xf] }
  0x88   :  { %6342 = vmatmul.msk.f32.gmra.mxu0 %vm115_vm0, %v80_v19 }
  0x89   :  { %6406 = vmatmul.msk.f32.gmra.mxu2 %vm115_vm0, %v80_v19 }
  0x8a   :  { %6374 = vmatmul.msk.f32.gmra.mxu1 %vm115_vm0, %v80_v19  ;;  %6438 = vmatmul.msk.f32.gmra.mxu3 %vm115_vm0, %v80_v19  ;;  %v6857_v19 = vld [vmem:[#allocation2 + $0x320] sm:$0xf] }
  0x8d   :  { %v8056_v20 = vpop.f32.mrf.mxu0  ;;  %v8058_v21 = vpop.f32.mrf.mxu1 }
  0x90   :  { %6343 = vmatmul.msk.f32.gmra.mxu0 %vm115_vm0, %v81_v22 }
  0x91   :  { %6407 = vmatmul.msk.f32.gmra.mxu2 %vm115_vm0, %v81_v22 }
  0x92   :  { %6375 = vmatmul.msk.f32.gmra.mxu1 %vm115_vm0, %v81_v22  ;;  %6439 = vmatmul.msk.f32.gmra.mxu3 %vm115_vm0, %v81_v22  ;;  %v7581_v22 = vld [vmem:[#allocation2 + $0x32c] sm:$0xf0] }
  0x93   :  { %v6858_v24 = vor.u32 %v7581_v22, %v6857_v19 }
  0x94   :  { %v455_v32 = vpop.f32.mrf.mxu2  ;;  %v568_v33 = vpop.f32.mrf.mxu3 }
  0x95   :  { %v8067_v34 = vpop.f32.mrf.mxu0  ;;  %v456_v43 = vadd.f32 %v455_v32, %v8080_v38  ;;  %v569_v44 = vadd.f32 %v568_v33, %v8083_v39  ;;  %1907 = vmatpush.bf16.msrb.mxu3 %v6858_v24  ;;  %v6602_v32 = vor.u32 %v7517_v31, %v6601_v30  ;;  %v7545_v24 = vld [vmem:[#allocation2 + $0x20c] sm:$0xf0]  ;;  %v6841_v30 = vld [vmem:[#allocation2 + $0x300] sm:$0xf] }
  0x97   :  { %v8069_v35 = vpop.f32.mrf.mxu1  ;;  %v666_v52 = vmax.f32 %v456_v43, 0.0  ;;  %v667_v53 = vmax.f32 %v569_v44, 0.0  ;;  %1729 = vmatpush.bf16.msrb.mxu1 %v6602_v32 }
  0x98   :  { %6344 = vmatmul.msk.f32.gmra.mxu0 %vm115_vm0, %v82_v36 }
  0x99   :  { %6408 = vmatmul.msk.f32.gmra.mxu2 %vm115_vm0, %v82_v36 }
  0x9a   :  { %6376 = vmatmul.msk.f32.gmra.mxu1 %vm115_vm0, %v82_v36  ;;  %6440 = vmatmul.msk.f32.gmra.mxu3 %vm115_vm0, %v82_v36 }
  0x9c   :  { %v458_v45 = vpop.f32.mrf.mxu2 }
  0x9d   :  { %v571_v46 = vpop.f32.mrf.mxu3  ;;  %v459_v47 = vadd.f32 %v458_v45, %v8080_v38  ;;  %v8093_v49 = vpop.f32.mrf.mxu0 }
  0x9e   :  { %v572_v48 = vadd.f32 %v571_v46, %v8083_v39  ;;  %v87_v46 = vld [vmem:[%s10201_s0 + $0xb0] sm:$0xff] }
  0x9f   :  { %v8095_v50 = vpop.f32.mrf.mxu1  ;;  %v670_v54 = vmax.f32 %v459_v47, 0.0 }
  0xa0   :  { %v671_v55 = vmax.f32 %v572_v48, 0.0  ;;  %6345 = vmatmul.msk.f32.gmra.mxu0 %vm115_vm0, %v83_v51 }
  0xa1   :  { %v8102_v56 = vpack.c.bf16 %v670_v54, %v666_v52  ;;  %6409 = vmatmul.msk.f32.gmra.mxu2 %vm115_vm0, %v83_v51 }
  0xa2   :  { %6377 = vmatmul.msk.f32.gmra.mxu1 %vm115_vm0, %v83_v51  ;;  %v8104_v57 = vpack.c.bf16 %v671_v55, %v667_v53  ;;  %6441 = vmatmul.msk.f32.gmra.mxu3 %vm115_vm0, %v83_v51 }
  0xa4   :  { %v461_v58 = vpop.f32.mrf.mxu2 }
  0xa5   :  { %v574_v59 = vpop.f32.mrf.mxu3  ;;  %v8108_v60 = vpop.f32.mrf.mxu0  ;;  %v462_v63 = vadd.f32 %v461_v58, %v8080_v38 }
  0xa6   :  { %v575_v0 = vadd.f32 %v574_v59, %v8083_v39 }
  0xa7   :  { %v8110_v61 = vpop.f32.mrf.mxu1  ;;  %v674_v8 = vmax.f32 %v462_v63, 0.0  ;;  %v88_v63 = vld [vmem:[%s10201_s0 + $0xb8] sm:$0xff] }
  0xa8   :  { %6346 = vmatmul.msk.f32.gmra.mxu0 %vm115_vm0, %v84_v62  ;;  %v675_v9 = vmax.f32 %v575_v0, 0.0 }
  0xa9   :  { %6410 = vmatmul.msk.f32.gmra.mxu2 %vm115_vm0, %v84_v62 }
  0xaa   :  { %6378 = vmatmul.msk.f32.gmra.mxu1 %vm115_vm0, %v84_v62  ;;  %6442 = vmatmul.msk.f32.gmra.mxu3 %vm115_vm0, %v84_v62 }
  0xac   :  { %v464_v1 = vpop.f32.mrf.mxu2 }
  0xad   :  { %v577_v2 = vpop.f32.mrf.mxu3  ;;  %v465_v3 = vadd.f32 %v464_v1, %v8080_v38  ;;  %v8123_v5 = vpop.f32.mrf.mxu0 }
  0xae   :  { %v578_v4 = vadd.f32 %v577_v2, %v8083_v39 }
  0xaf   :  { %v8125_v6 = vpop.f32.mrf.mxu1  ;;  %v678_v10 = vmax.f32 %v465_v3, 0.0 }
  0xb0   :  { %v679_v11 = vmax.f32 %v578_v4, 0.0  ;;  %6347 = vmatmul.msk.f32.gmra.mxu0 %vm115_vm0, %v85_v7 }
  0xb1   :  { %v8132_v12 = vpack.c.bf16 %v678_v10, %v674_v8  ;;  %6411 = vmatmul.msk.f32.gmra.mxu2 %vm115_vm0, %v85_v7  ;;  %v89_v10 = vld [vmem:[%s10201_s0 + $0xc0] sm:$0xff] }
  0xb2   :  { %6379 = vmatmul.msk.f32.gmra.mxu1 %vm115_vm0, %v85_v7  ;;  %v8134_v13 = vpack.c.bf16 %v679_v11, %v675_v9  ;;  %6443 = vmatmul.msk.f32.gmra.mxu3 %vm115_vm0, %v85_v7 }
  0xb4   :  { %10332 = vst [vmem:[#allocation8_spill] sm:$0xff] %v8134_v13  ;;  %v467_v25 = vpop.f32.mrf.mxu2 }
  0xb5   :  { %v580_v26 = vpop.f32.mrf.mxu3  ;;  %v8138_v27 = vpop.f32.mrf.mxu0  ;;  %v468_v33 = vadd.f32 %v467_v25, %v8080_v38  ;;  %v6457_v25 = vld [vmem:[#allocation2] sm:$0xf] }
  0xb6   :  { %v581_v36 = vadd.f32 %v580_v26, %v8083_v39  ;;  %v6714_v26 = vor.u32 %v7545_v24, %v6713_v23 }
  0xb7   :  { %v8140_v28 = vpop.f32.mrf.mxu1  ;;  %v682_v47 = vmax.f32 %v468_v33, 0.0  ;;  %v6842_v33 = vor.u32 %v7577_v37, %v6841_v30 }
  0xb8   :  { %6348 = vmatmul.msk.f32.gmra.mxu0 %vm115_vm0, %v86_v29  ;;  %v683_v48 = vmax.f32 %v581_v36, 0.0  ;;  %1819 = vmatpush.bf16.msrb.mxu2 %v6714_v26 }
  0xb9   :  { %6412 = vmatmul.msk.f32.gmra.mxu2 %vm115_vm0, %v86_v29  ;;  %1908 = vmatpush.bf16.msrb.mxu3 %v6842_v33 }
  0xba   :  { %6380 = vmatmul.msk.f32.gmra.mxu1 %vm115_vm0, %v86_v29  ;;  %6444 = vmatmul.msk.f32.gmra.mxu3 %vm115_vm0, %v86_v29  ;;  %v7481_v29 = vld [vmem:[#allocation2 + $0xc] sm:$0xf0] }
  0xbb   :  { %v6458_v32 = vor.u32 %v7481_v29, %v6457_v25 }
  0xbc   :  { %v470_v40 = vpop.f32.mrf.mxu2 }
  0xbd   :  { %v583_v41 = vpop.f32.mrf.mxu3  ;;  %v471_v42 = vadd.f32 %v470_v40, %v8080_v38  ;;  %v8153_v44 = vpop.f32.mrf.mxu0  ;;  %1641 = vmatpush.bf16.msrb.mxu0 %v6458_v32 }
  0xbe   :  { %v584_v43 = vadd.f32 %v583_v41, %v8083_v39 }
  0xbf   :  { %v8155_v45 = vpop.f32.mrf.mxu1  ;;  %v686_v51 = vmax.f32 %v471_v42, 0.0 }
  0xc0   :  { %v687_v52 = vmax.f32 %v584_v43, 0.0  ;;  %6349 = vmatmul.msk.f32.gmra.mxu0 %vm115_vm0, %v87_v46 }
  0xc1   :  { %v8162_v53 = vpack.c.bf16 %v686_v51, %v682_v47  ;;  %6413 = vmatmul.msk.f32.gmra.mxu2 %vm115_vm0, %v87_v46 }
  0xc2   :  { %6381 = vmatmul.msk.f32.gmra.mxu1 %vm115_vm0, %v87_v46  ;;  %v8164_v54 = vpack.c.bf16 %v687_v52, %v683_v48  ;;  %6445 = vmatmul.msk.f32.gmra.mxu3 %vm115_vm0, %v87_v46  ;;  %v90_v46 = vld [vmem:[%s10201_s0 + $0xc8] sm:$0xff]  ;;  %v6585_v52 = vld [vmem:[#allocation2 + $0x100] sm:$0xf] }
  0xc3   :  { %10333 = vst [vmem:[#allocation9_spill] sm:$0xff] %v8162_v53 }
  0xc4   :  { %10334 = vst [vmem:[#allocation10_spill] sm:$0xff] %v8164_v54  ;;  %v473_v55 = vpop.f32.mrf.mxu2 }
  0xc5   :  { %v586_v58 = vpop.f32.mrf.mxu3  ;;  %v8168_v59 = vpop.f32.mrf.mxu0  ;;  %v474_v0 = vadd.f32 %v473_v55, %v8080_v38  ;;  %v7513_v55 = vld [vmem:[#allocation2 + $0x10c] sm:$0xf0] }
  0xc6   :  { %v587_v1 = vadd.f32 %v586_v58, %v8083_v39 }
  0xc7   :  { %v8170_v62 = vpop.f32.mrf.mxu1  ;;  %v690_v11 = vmax.f32 %v474_v0, 0.0 }
  0xc8   :  { %6350 = vmatmul.msk.f32.gmra.mxu0 %vm115_vm0, %v88_v63  ;;  %v691_v14 = vmax.f32 %v587_v1, 0.0  ;;  %v6586_v1 = vor.u32 %v7513_v55, %v6585_v52 }
  0xc9   :  { %6414 = vmatmul.msk.f32.gmra.mxu2 %vm115_vm0, %v88_v63 }
  0xca   :  { %6382 = vmatmul.msk.f32.gmra.mxu1 %vm115_vm0, %v88_v63  ;;  %6446 = vmatmul.msk.f32.gmra.mxu3 %vm115_vm0, %v88_v63 }
  0xcb   :  { %1730 = vmatpush.bf16.msrb.mxu1 %v6586_v1 }
  0xcc   :  { %v476_v2 = vpop.f32.mrf.mxu2 }
  0xcd   :  { %v589_v3 = vpop.f32.mrf.mxu3  ;;  %v477_v4 = vadd.f32 %v476_v2, %v8080_v38  ;;  %v253_v8 = vpop.f32.mrf.mxu0 }
  0xce   :  { %v590_v7 = vadd.f32 %v589_v3, %v8083_v39  ;;  %v254_v31 = vadd.f32 %v253_v8, %v8187_v17 }
  0xcf   :  { %v366_v9 = vpop.f32.mrf.mxu1  ;;  %v694_v15 = vmax.f32 %v477_v4, 0.0 }
  0xd0   :  { %v695_v16 = vmax.f32 %v590_v7, 0.0  ;;  %6351 = vmatmul.msk.f32.gmra.mxu0 %vm115_vm0, %v89_v10  ;;  %v367_v36 = vadd.f32 %v366_v9, %v8190_v18  ;;  %v696_v51 = vmax.f32 %v254_v31, 0.0 }
  0xd1   :  { %v8194_v19 = vpack.c.bf16 %v694_v15, %v690_v11  ;;  %6415 = vmatmul.msk.f32.gmra.mxu2 %vm115_vm0, %v89_v10 }
  0xd2   :  { %6383 = vmatmul.msk.f32.gmra.mxu1 %vm115_vm0, %v89_v10  ;;  %v8196_v22 = vpack.c.bf16 %v695_v16, %v691_v14  ;;  %6447 = vmatmul.msk.f32.gmra.mxu3 %vm115_vm0, %v89_v10  ;;  %v697_v58 = vmax.f32 %v367_v36, 0.0  ;;  %v91_v16 = vld [vmem:[%s10201_s0 + $0xd0] sm:$0xff] }
  0xd4   :  { %10335 = vst [vmem:[#allocation11_spill] sm:$0xff] %v8196_v22  ;;  %v479_v40 = vpop.f32.mrf.mxu2 }
  0xd5   :  { %v592_v41 = vpop.f32.mrf.mxu3  ;;  %v256_v42 = vpop.f32.mrf.mxu0  ;;  %v480_v4 = vadd.f32 %v479_v40, %v8080_v38 }
  0xd6   :  { %v257_v47 = vadd.f32 %v256_v42, %v8187_v17  ;;  %v593_v7 = vadd.f32 %v592_v41, %v8083_v39  ;;  %v92_v41 = vld [vmem:[%s10201_s0 + $0xd8] sm:$0xff] }
  0xd7   :  { %v369_v43 = vpop.f32.mrf.mxu1  ;;  %v698_v23 = vmax.f32 %v480_v4, 0.0 }
  0xd8   :  { %v370_v48 = vadd.f32 %v369_v43, %v8190_v18  ;;  %v700_v63 = vmax.f32 %v257_v47, 0.0  ;;  %6352 = vmatmul.msk.f32.gmra.mxu0 %vm115_vm0, %v90_v46  ;;  %v699_v24 = vmax.f32 %v593_v7, 0.0 }
  0xd9   :  { %6416 = vmatmul.msk.f32.gmra.mxu2 %vm115_vm0, %v90_v46 }
  0xda   :  { %v701_v0 = vmax.f32 %v370_v48, 0.0  ;;  %6384 = vmatmul.msk.f32.gmra.mxu1 %vm115_vm0, %v90_v46  ;;  %6448 = vmatmul.msk.f32.gmra.mxu3 %vm115_vm0, %v90_v46  ;;  %v8211_v2 = vpack.c.bf16 %v700_v63, %v696_v51 }
  0xdc   :  { %10336 = vst [vmem:[#allocation12_spill] sm:$0xff] %v8211_v2  ;;  %v8213_v3 = vpack.c.bf16 %v701_v0, %v697_v58  ;;  %v482_v8 = vpop.f32.mrf.mxu2 }
  0xdd   :  { %v595_v9 = vpop.f32.mrf.mxu3  ;;  %v483_v10 = vadd.f32 %v482_v8, %v8080_v38  ;;  %v259_v14 = vpop.f32.mrf.mxu0 }
  0xde   :  { %10337 = vst [vmem:[#allocation13_spill] sm:$0xff] %v8213_v3  ;;  %v596_v11 = vadd.f32 %v595_v9, %v8083_v39  ;;  %v260_v37 = vadd.f32 %v259_v14, %v8187_v17 }
  0xdf   :  { %v372_v15 = vpop.f32.mrf.mxu1  ;;  %v702_v25 = vmax.f32 %v483_v10, 0.0  ;;  %v93_v10 = vld [vmem:[%s10201_s0 + $0xe0] sm:$0xff] }
  0xe0   :  { %v703_v26 = vmax.f32 %v596_v11, 0.0  ;;  %6353 = vmatmul.msk.f32.gmra.mxu0 %vm115_vm0, %v91_v16  ;;  %v373_v31 = vadd.f32 %v372_v15, %v8190_v18  ;;  %v704_v46 = vmax.f32 %v260_v37, 0.0  ;;  %v7507_v37 = vld [vmem:[#allocation2 + $0xe4] sm:$0xf] }
  0xe1   :  { %v8224_v29 = vpack.c.bf16 %v702_v25, %v698_v23  ;;  %6417 = vmatmul.msk.f32.gmra.mxu2 %vm115_vm0, %v91_v16  ;;  %v7571_v25 = vld [vmem:[#allocation2 + $0x2e4] sm:$0xf] }
  0xe2   :  { %6385 = vmatmul.msk.f32.gmra.mxu1 %vm115_vm0, %v91_v16  ;;  %v8226_v30 = vpack.c.bf16 %v703_v26, %v699_v24  ;;  %6449 = vmatmul.msk.f32.gmra.mxu3 %vm115_vm0, %v91_v16  ;;  %v705_v47 = vmax.f32 %v373_v31, 0.0  ;;  %v6827_v26 = vld [vmem:[#allocation2 + $0x2f0] sm:$0xf0] }
  0xe3   :  { %10338 = vst [vmem:[#allocation14_spill] sm:$0xff] %v8224_v29  ;;  %v6830_v31 = vor.u32 %v7571_v25, %v6827_v26 }
  0xe4   :  { %10339 = vst [vmem:[#allocation15_spill] sm:$0xff] %v8226_v30  ;;  %v485_v32 = vpop.f32.mrf.mxu2 }
  0xe5   :  { %v598_v33 = vpop.f32.mrf.mxu3  ;;  %v262_v36 = vpop.f32.mrf.mxu0  ;;  %v486_v58 = vadd.f32 %v485_v32, %v8080_v38  ;;  %v6571_v32 = vld [vmem:[#allocation2 + $0xf0] sm:$0xf0]  ;;  %2168 = vmatpush.bf16.msra.mxu2 %v6830_v31 }
  0xe6   :  { %v263_v42 = vadd.f32 %v262_v36, %v8187_v17  ;;  %v599_v63 = vadd.f32 %v598_v33, %v8083_v39  ;;  %v7603_v33 = vld [vmem:[#allocation2 + $0x3e4] sm:$0xf]  ;;  %v6955_v36 = vld [vmem:[#allocation2 + $0x3f0] sm:$0xf0] }
  0xe7   :  { %v375_v40 = vpop.f32.mrf.mxu1  ;;  %v706_v11 = vmax.f32 %v486_v58, 0.0  ;;  %v94_v58 = vld [vmem:[%s10201_s0 + $0xe8] sm:$0xff] }
  0xe8   :  { %v376_v43 = vadd.f32 %v375_v40, %v8190_v18  ;;  %v708_v48 = vmax.f32 %v263_v42, 0.0  ;;  %6354 = vmatmul.msk.f32.gmra.mxu0 %vm115_vm0, %v92_v41  ;;  %v707_v14 = vmax.f32 %v599_v63, 0.0  ;;  %v6958_v42 = vor.u32 %v7603_v33, %v6955_v36 }
  0xe9   :  { %6418 = vmatmul.msk.f32.gmra.mxu2 %vm115_vm0, %v92_v41 }
  0xea   :  { %v709_v51 = vmax.f32 %v376_v43, 0.0  ;;  %6386 = vmatmul.msk.f32.gmra.mxu1 %vm115_vm0, %v92_v41  ;;  %6450 = vmatmul.msk.f32.gmra.mxu3 %vm115_vm0, %v92_v41  ;;  %v8241_v52 = vpack.c.bf16 %v708_v48, %v704_v46  ;;  %v6574_v41 = vor.u32 %v7507_v37, %v6571_v32 }
  0xeb   :  { %2257 = vmatpush.bf16.msra.mxu3 %v6958_v42 }
  0xec   :  { %10340 = vst [vmem:[#allocation16_spill] sm:$0xff] %v8241_v52  ;;  %v8243_v55 = vpack.c.bf16 %v709_v51, %v705_v47  ;;  %v488_v0 = vpop.f32.mrf.mxu2  ;;  %1990 = vmatpush.bf16.msra.mxu0 %v6574_v41 }
  0xed   :  { %v601_v1 = vpop.f32.mrf.mxu3  ;;  %v489_v4 = vadd.f32 %v488_v0, %v8080_v38  ;;  %v265_v8 = vpop.f32.mrf.mxu0 }
  0xee   :  { %10341 = vst [vmem:[#allocation17_spill] sm:$0xff] %v8243_v55  ;;  %v602_v7 = vadd.f32 %v601_v1, %v8083_v39  ;;  %v266_v40 = vadd.f32 %v265_v8, %v8187_v17 }
  0xef   :  { %v378_v9 = vpop.f32.mrf.mxu1  ;;  %v710_v15 = vmax.f32 %v489_v4, 0.0  ;;  %v7539_v4 = vld [vmem:[#allocation2 + $0x1e4] sm:$0xf] }
  0xf0   :  { %v711_v16 = vmax.f32 %v602_v7, 0.0  ;;  %6355 = vmatmul.msk.f32.gmra.mxu0 %vm115_vm0, %v93_v10  ;;  %v379_v43 = vadd.f32 %v378_v9, %v8190_v18  ;;  %v712_v1 = vmax.f32 %v266_v40, 0.0  ;;  %v6699_v7 = vld [vmem:[#allocation2 + $0x1f0] sm:$0xf0] }
  0xf1   :  { %v8254_v23 = vpack.c.bf16 %v710_v15, %v706_v11  ;;  %6419 = vmatmul.msk.f32.gmra.mxu2 %vm115_vm0, %v93_v10  ;;  %v6702_v11 = vor.u32 %v7539_v4, %v6699_v7  ;;  %v95_v40 = vld [vmem:[%s10201_s0 + $0xf0] sm:$0xff]  ;;  %v96_v7 = vld [vmem:[%s10201_s0 + $0xf8] sm:$0xff] }
  0xf2   :  { %6387 = vmatmul.msk.f32.gmra.mxu1 %vm115_vm0, %v93_v10  ;;  %v8256_v24 = vpack.c.bf16 %v711_v16, %v707_v14  ;;  %6451 = vmatmul.msk.f32.gmra.mxu3 %vm115_vm0, %v93_v10  ;;  %v713_v8 = vmax.f32 %v379_v43, 0.0 }
  0xf3   :  { %10342 = vst [vmem:[#allocation18_spill] sm:$0xff] %v8254_v23  ;;  %2079 = vmatpush.bf16.msra.mxu1 %v6702_v11 }
  0xf4   :  { %10343 = vst [vmem:[#allocation19_spill] sm:$0xff] %v8256_v24  ;;  %v491_v46 = vpop.f32.mrf.mxu2 }
  0xf5   :  { %v604_v47 = vpop.f32.mrf.mxu3  ;;  %v268_v48 = vpop.f32.mrf.mxu0  ;;  %v492_v16 = vadd.f32 %v491_v46, %v8080_v38 }
  0xf6   :  { %v269_v63 = vadd.f32 %v268_v48, %v8187_v17  ;;  %v605_v25 = vadd.f32 %v604_v47, %v8083_v39 }
  0xf7   :  { %v381_v51 = vpop.f32.mrf.mxu1  ;;  %v714_v41 = vmax.f32 %v492_v16, 0.0  ;;  %v230_v16 = vadd.f32 %v8056_v20, %v8187_v17 }
  0xf8   :  { %v382_v0 = vadd.f32 %v381_v51, %v8190_v18  ;;  %v716_v9 = vmax.f32 %v269_v63, 0.0  ;;  %6356 = vmatmul.msk.f32.gmra.mxu0 %vm115_vm0, %v94_v58  ;;  %v715_v42 = vmax.f32 %v605_v25, 0.0  ;;  %v343_v25 = vadd.f32 %v8058_v21, %v8190_v18 }
  0xf9   :  { %6420 = vmatmul.msk.f32.gmra.mxu2 %vm115_vm0, %v94_v58 }
  0xfa   :  { %v717_v10 = vmax.f32 %v382_v0, 0.0  ;;  %6388 = vmatmul.msk.f32.gmra.mxu1 %vm115_vm0, %v94_v58  ;;  %6452 = vmatmul.msk.f32.gmra.mxu3 %vm115_vm0, %v94_v58  ;;  %v8271_v14 = vpack.c.bf16 %v716_v9, %v712_v1  ;;  %v346_v9 = vadd.f32 %v8069_v35, %v8190_v18 }
  0xfc   :  { %10344 = vst [vmem:[#allocation20_spill] sm:$0xff] %v8271_v14  ;;  %v8273_v15 = vpack.c.bf16 %v717_v10, %v713_v8  ;;  %v494_v26 = vpop.f32.mrf.mxu2  ;;  %v233_v8 = vadd.f32 %v8067_v34, %v8187_v17  ;;  %v669_v35 = vmax.f32 %v346_v9, 0.0 }
  0xfd   :  { %v607_v37 = vpop.f32.mrf.mxu3  ;;  %v495_v31 = vadd.f32 %v494_v26, %v8080_v38  ;;  %v271_v33 = vpop.f32.mrf.mxu0 }
  0xfe   :  { %10345 = vst [vmem:[#allocation21_spill] sm:$0xff] %v8273_v15  ;;  %v608_v32 = vadd.f32 %v607_v37, %v8083_v39  ;;  %v272_v51 = vadd.f32 %v271_v33, %v8187_v17  ;;  %v668_v34 = vmax.f32 %v233_v8, 0.0 }
  0xff   :  { %v384_v36 = vpop.f32.mrf.mxu1  ;;  %v718_v43 = vmax.f32 %v495_v31, 0.0 }
 0x100   :  { %v719_v48 = vmax.f32 %v608_v32, 0.0  ;;  %6357 = vmatmul.msk.f32.gmra.mxu0 %vm115_vm0, %v95_v40  ;;  %v385_v58 = vadd.f32 %v384_v36, %v8190_v18  ;;  %v720_v26 = vmax.f32 %v272_v51, 0.0 }
 0x101   :  { %v8284_v46 = vpack.c.bf16 %v718_v43, %v714_v41  ;;  %6421 = vmatmul.msk.f32.gmra.mxu2 %vm115_vm0, %v95_v40  ;;  %v665_v41 = vmax.f32 %v343_v25, 0.0  ;;  %v6811_v25 = vld [vmem:[#allocation2 + $0x2d0] sm:$0xf0] }
 0x102   :  { %6389 = vmatmul.msk.f32.gmra.mxu1 %vm115_vm0, %v95_v40  ;;  %v8286_v47 = vpack.c.bf16 %v719_v48, %v715_v42  ;;  %6453 = vmatmul.msk.f32.gmra.mxu3 %vm115_vm0, %v95_v40  ;;  %v721_v37 = vmax.f32 %v385_v58, 0.0  ;;  %v664_v40 = vmax.f32 %v230_v16, 0.0  ;;  %v7567_v16 = vld [vmem:[#allocation2 + $0x2c4] sm:$0xf] }
 0x103   :  { %10346 = vst [vmem:[#allocation22_spill] sm:$0xff] %v8284_v46 }
 0x104   :  { %10347 = vst [vmem:[#allocation23_spill] sm:$0xff] %v8286_v47  ;;  %v497_v63 = vpop.f32.mrf.mxu2 }
 0x105   :  { %v610_v0 = vpop.f32.mrf.mxu3  ;;  %v274_v1 = vpop.f32.mrf.mxu0  ;;  %v498_v21 = vadd.f32 %v497_v63, %v8080_v38 }
 0x106   :  { %v275_v10 = vadd.f32 %v274_v1, %v8187_v17  ;;  %v611_v36 = vadd.f32 %v610_v0, %v8083_v39 }
 0x107   :  { %v387_v4 = vpop.f32.mrf.mxu1  ;;  %v722_v8 = vmax.f32 %v498_v21, 0.0 }
 0x108   :  { %v388_v11 = vadd.f32 %v387_v4, %v8190_v18  ;;  %v724_v31 = vmax.f32 %v275_v10, 0.0  ;;  %6358 = vmatmul.msk.f32.gmra.mxu0 %vm115_vm0, %v96_v7  ;;  %v8317_v4 = vpack.c.bf16 %v668_v34, %v664_v40  ;;  %v723_v9 = vmax.f32 %v611_v36, 0.0  ;;  %v6939_v34 = vld [vmem:[#allocation2 + $0x3d0] sm:$0xf0] }
 0x109   :  { %6422 = vmatmul.msk.f32.gmra.mxu2 %vm115_vm0, %v96_v7 }
 0x10a   :  { %v725_v32 = vmax.f32 %v388_v11, 0.0  ;;  %6390 = vmatmul.msk.f32.gmra.mxu1 %vm115_vm0, %v96_v7  ;;  %6454 = vmatmul.msk.f32.gmra.mxu3 %vm115_vm0, %v96_v7  ;;  %v8309_v33 = vpack.c.bf16 %v724_v31, %v720_v26  ;;  %v8319_v7 = vpack.c.bf16 %v669_v35, %v665_v41  ;;  %v7503_v26 = vld [vmem:[#allocation2 + $0xc4] sm:$0xf]  ;;  %v6555_v31 = vld [vmem:[#allocation2 + $0xd0] sm:$0xf0] }
 0x10b   :  { %v6558_v21 = vor.u32 %v7503_v26, %v6555_v31 }
 0x10c   :  { %v8311_v20 = vpack.c.bf16 %v725_v32, %v721_v37  ;;  %v500_v42 = vpop.f32.mrf.mxu2  ;;  %v6814_v37 = vor.u32 %v7567_v16, %v6811_v25  ;;  %v7599_v32 = vld [vmem:[#allocation2 + $0x3c4] sm:$0xf]  ;;  %v6683_v25 = vld [vmem:[#allocation2 + $0x1d0] sm:$0xf0] }
 0x10d   :  { %v613_v43 = vpop.f32.mrf.mxu3  ;;  %v501_v48 = vadd.f32 %v500_v42, %v8080_v38  ;;  %v277_v58 = vpop.f32.mrf.mxu0  ;;  %v6942_v36 = vor.u32 %v7599_v32, %v6939_v34  ;;  %1991 = vmatpush.bf16.msra.mxu0 %v6558_v21  ;;  %v7535_v16 = vld [vmem:[#allocation2 + $0x1c4] sm:$0xf] }
 0x10e   :  { %10348 = vst [vmem:[#allocation24_spill] sm:$0xff] %v8311_v20  ;;  %v614_v51 = vadd.f32 %v613_v43, %v8083_v39  ;;  %v278_v35 = vadd.f32 %v277_v58, %v8187_v17  ;;  %2169 = vmatpush.bf16.msra.mxu2 %v6814_v37 }
 0x10f   :  { %v390_v1 = vpop.f32.mrf.mxu1  ;;  %v726_v10 = vmax.f32 %v501_v48, 0.0  ;;  %2258 = vmatpush.bf16.msra.mxu3 %v6942_v36 }
 0x110   :  { %v727_v63 = vmax.f32 %v614_v51, 0.0  ;;  %1642 = vmatmul.bf16.vlgmr.msrb.gmra.mxu0 %v8317_v4  ;;  %v391_v40 = vadd.f32 %v390_v1, %v8190_v18  ;;  %v239_v51 = vadd.f32 %v8108_v60, %v8187_v17  ;;  %v236_v1 = vadd.f32 %v8093_v49, %v8187_v17 }
 0x111   :  { %v8323_v0 = vpack.c.bf16 %v726_v10, %v722_v8  ;;  %1820 = vmatmul.bf16.vlgmr.msrb.gmra.mxu2 %v8102_v56  ;;  %v352_v8 = vadd.f32 %v8110_v61, %v8190_v18  ;;  %v349_v10 = vadd.f32 %v8095_v50, %v8190_v18  ;;  %v6686_v60 = vor.u32 %v7535_v16, %v6683_v25 }
 0x112   :  { %1731 = vmatmul.bf16.vlgmr.msrb.gmra.mxu1 %v8319_v7  ;;  %v8325_v11 = vpack.c.bf16 %v727_v63, %v723_v9  ;;  %1909 = vmatmul.bf16.vlgmr.msrb.gmra.mxu3 %v8104_v57  ;;  %v728_v63 = vmax.f32 %v278_v35, 0.0  ;;  %v729_v26 = vmax.f32 %v391_v40, 0.0  ;;  %v676_v32 = vmax.f32 %v239_v51, 0.0 }
 0x113   :  { %10349 = vst [vmem:[#allocation25_spill] sm:$0xff] %v8323_v0  ;;  %v677_v34 = vmax.f32 %v352_v8, 0.0  ;;  %2080 = vmatpush.bf16.msra.mxu1 %v6686_v60  ;;  %v673_v50 = vmax.f32 %v349_v10, 0.0 }
 0x114   :  { %10350 = vst [vmem:[#allocation26_spill] sm:$0xff] %v8325_v11  ;;  %v503_v41 = vpop.f32.mrf.mxu2 }
 0x115   :  { %v616_v42 = vpop.f32.mrf.mxu3  ;;  %v280_v43 = vpop.f32.mrf.mxu0  ;;  %v504_v36 = vadd.f32 %v503_v41, %v8080_v38 }
 0x116   :  { %v281_v9 = vadd.f32 %v280_v43, %v8187_v17  ;;  %v617_v49 = vadd.f32 %v616_v42, %v8083_v39  ;;  %v672_v43 = vmax.f32 %v236_v1, 0.0 }
 0x117   :  { %v393_v48 = vpop.f32.mrf.mxu1  ;;  %v730_v16 = vmax.f32 %v504_v36, 0.0  ;;  %v245_v36 = vadd.f32 %v8138_v27, %v8187_v17 }
 0x118   :  { %v394_v58 = vadd.f32 %v393_v48, %v8190_v18  ;;  %v732_v37 = vmax.f32 %v281_v9, 0.0  ;;  %v8349_v8 = vpack.c.bf16 %v676_v32, %v672_v43  ;;  %v731_v25 = vmax.f32 %v617_v49, 0.0 }
 0x119   :  { %v358_v49 = vadd.f32 %v8140_v28, %v8190_v18 }
 0x11a   :  { %v733_v31 = vmax.f32 %v394_v58, 0.0  ;;  %v8341_v61 = vpack.c.bf16 %v732_v37, %v728_v63  ;;  %v8351_v63 = vpack.c.bf16 %v677_v34, %v673_v50 }
 0x11c   :  { %10351 = vst [vmem:[#allocation27_spill] sm:$0xff] %v8341_v61  ;;  %v8343_v21 = vpack.c.bf16 %v733_v31, %v729_v26  ;;  %v506_v35 = vpop.f32.mrf.mxu2 }
 0x11d   :  { %v619_v48 = vpop.f32.mrf.mxu3  ;;  %v507_v40 = vadd.f32 %v506_v35, %v8080_v38  ;;  %v283_v58 = vpop.f32.mrf.mxu0  ;;  %v242_v35 = vadd.f32 %v8123_v5, %v8187_v17 }
 0x11e   :  { %10352 = vst [vmem:[#allocation28_spill] sm:$0xff] %v8343_v21  ;;  %v620_v9 = vadd.f32 %v619_v48, %v8083_v39  ;;  %v284_v10 = vadd.f32 %v283_v58, %v8187_v17  ;;  %v355_v48 = vadd.f32 %v8125_v6, %v8190_v18 }
 0x11f   :  { %v396_v51 = vpop.f32.mrf.mxu1  ;;  %v734_v26 = vmax.f32 %v507_v40, 0.0 }
 0x120   :  { %v735_v41 = vmax.f32 %v620_v9, 0.0  ;;  %1647 = vmatmul.bf16.gmra.mxu0 %v8349_v8  ;;  %v397_v37 = vadd.f32 %v396_v51, %v8190_v18  ;;  %v736_v40 = vmax.f32 %v284_v10, 0.0 }
 0x121   :  { %v8355_v42 = vpack.c.bf16 %v734_v26, %v730_v16  ;;  %1825 = vmatmul.bf16.gmra.mxu2 %v8132_v12  ;;  %v684_v16 = vmax.f32 %v245_v36, 0.0 }
 0x122   :  { %1736 = vmatmul.bf16.gmra.mxu1 %v8351_v63  ;;  %v8357_v1 = vpack.c.bf16 %v735_v41, %v731_v25  ;;  %1914 = vmatmul.bf16.gmra.mxu3 %v8134_v13  ;;  %v737_v9 = vmax.f32 %v397_v37, 0.0  ;;  %v685_v25 = vmax.f32 %v358_v49, 0.0 }
 0x123   :  { %10353 = vst [vmem:[#allocation29_spill] sm:$0xff] %v8355_v42 }
 0x124   :  { %10354 = vst [vmem:[#allocation30_spill] sm:$0xff] %v8357_v1  ;;  %v509_v31 = vpop.f32.mrf.mxu2 }
 0x125   :  { %v622_v60 = vpop.f32.mrf.mxu3  ;;  %v286_v32 = vpop.f32.mrf.mxu0  ;;  %v510_v28 = vadd.f32 %v509_v31, %v8080_v38 }
 0x126   :  { %v287_v43 = vadd.f32 %v286_v32, %v8187_v17  ;;  %v623_v41 = vadd.f32 %v622_v60, %v8083_v39  ;;  %v680_v32 = vmax.f32 %v242_v35, 0.0 }
 0x127   :  { %v399_v34 = vpop.f32.mrf.mxu1 }
 0x128   :  { %v400_v50 = vadd.f32 %v399_v34, %v8190_v18  ;;  %v740_v58 = vmax.f32 %v287_v43, 0.0  ;;  %v681_v34 = vmax.f32 %v355_v48, 0.0  ;;  %v8381_v36 = vpack.c.bf16 %v684_v16, %v680_v32  ;;  %v6795_v48 = vld [vmem:[#allocation2 + $0x2b0] sm:$0xf0] }
 0x129   :  { %v6539_v16 = vld [vmem:[#allocation2 + $0xb0] sm:$0xf0] }
 0x12a   :  { %v741_v51 = vmax.f32 %v400_v50, 0.0  ;;  %v8373_v27 = vpack.c.bf16 %v740_v58, %v736_v40  ;;  %10355 = vst [vmem:[#allocation31_spill] sm:$0xff] %v8381_v36  ;;  %v8383_v49 = vpack.c.bf16 %v685_v25, %v681_v34  ;;  %v738_v50 = vmax.f32 %v510_v28, 0.0  ;;  %v7499_v58 = vld [vmem:[#allocation2 + $0xa4] sm:$0xf] }
 0x12b   :  { %v739_v40 = vmax.f32 %v623_v41, 0.0  ;;  %v7595_v25 = vld [vmem:[#allocation2 + $0x3a4] sm:$0xf]  ;;  %v6923_v28 = vld [vmem:[#allocation2 + $0x3b0] sm:$0xf0]  ;;  %v6542_v32 = vor.u32 %v7499_v58, %v6539_v16 }
 0x12c   :  { %v8375_v26 = vpack.c.bf16 %v741_v51, %v737_v9  ;;  %v512_v5 = vpop.f32.mrf.mxu2  ;;  %10356 = vst [vmem:[#allocation32_spill] sm:$0xff] %v8383_v49  ;;  %v6926_v34 = vor.u32 %v7595_v25, %v6923_v28  ;;  %v6667_v16 = vld [vmem:[#allocation2 + $0x1b0] sm:$0xf0] }
 0x12d   :  { %v625_v13 = vpop.f32.mrf.mxu3  ;;  %v513_v6 = vadd.f32 %v512_v5, %v8080_v38  ;;  %v289_v37 = vpop.f32.mrf.mxu0  ;;  %1992 = vmatpush.bf16.msra.mxu0 %v6542_v32 }
 0x12e   :  { %v626_v10 = vadd.f32 %v625_v13, %v8083_v39  ;;  %v7563_v13 = vld [vmem:[#allocation2 + $0x2a4] sm:$0xf]  ;;  %v290_v41 = vadd.f32 %v289_v37, %v8187_v17  ;;  %2259 = vmatpush.bf16.msra.mxu3 %v6926_v34 }
 0x12f   :  { %v402_v43 = vpop.f32.mrf.mxu1  ;;  %v742_v9 = vmax.f32 %v513_v6, 0.0  ;;  %v6798_v51 = vor.u32 %v7563_v13, %v6795_v48  ;;  %v361_v48 = vadd.f32 %v8155_v45, %v8190_v18 }
 0x130   :  { %v743_v31 = vmax.f32 %v626_v10, 0.0  ;;  %1652 = vmatmul.bf16.gmra.mxu0 %v8381_v36  ;;  %v403_v5 = vadd.f32 %v402_v43, %v8190_v18  ;;  %v248_v43 = vadd.f32 %v8153_v44, %v8187_v17  ;;  %v744_v58 = vmax.f32 %v290_v41, 0.0 }
 0x131   :  { %v8387_v60 = vpack.c.bf16 %v742_v9, %v738_v50  ;;  %1830 = vmatmul.bf16.gmra.mxu2 %v8162_v53  ;;  %v251_v9 = vadd.f32 %v8168_v59, %v8187_v17  ;;  %v689_v45 = vmax.f32 %v361_v48, 0.0 }
 0x132   :  { %1741 = vmatmul.bf16.gmra.mxu1 %v8383_v49  ;;  %v8389_v35 = vpack.c.bf16 %v743_v31, %v739_v40  ;;  %1919 = vmatmul.bf16.gmra.mxu3 %v8164_v54  ;;  %v364_v31 = vadd.f32 %v8170_v62, %v8190_v18  ;;  %v745_v25 = vmax.f32 %v403_v5, 0.0  ;;  %v688_v53 = vmax.f32 %v248_v43, 0.0 }
 0x133   :  { %2170 = vmatpush.bf16.msra.mxu2 %v6798_v51  ;;  %v7531_v51 = vld [vmem:[#allocation2 + $0x1a4] sm:$0xf]  ;;  %v692_v34 = vmax.f32 %v251_v9, 0.0 }
 0x134   :  { %v515_v6 = vpop.f32.mrf.mxu2  ;;  %v6670_v59 = vor.u32 %v7531_v51, %v6667_v16  ;;  %v693_v54 = vmax.f32 %v364_v31, 0.0 }
 0x135   :  { %v628_v10 = vpop.f32.mrf.mxu3  ;;  %v292_v50 = vpop.f32.mrf.mxu0  ;;  %v8413_v31 = vpack.c.bf16 %v692_v34, %v688_v53 }
 0x136   :  { %v293_v13 = vadd.f32 %v292_v50, %v8187_v17  ;;  %2081 = vmatpush.bf16.msra.mxu1 %v6670_v59  ;;  %v629_v44 = vadd.f32 %v628_v10, %v8083_v39 }
 0x137   :  { %v405_v40 = vpop.f32.mrf.mxu1 }
 0x138   :  { %v406_v37 = vadd.f32 %v405_v40, %v8190_v18  ;;  %v748_v28 = vmax.f32 %v293_v13, 0.0  ;;  %v516_v40 = vadd.f32 %v515_v6, %v8080_v38  ;;  %v747_v16 = vmax.f32 %v629_v44, 0.0 }
 0x13a   :  { %v749_v32 = vmax.f32 %v406_v37, 0.0  ;;  %v8405_v62 = vpack.c.bf16 %v748_v28, %v744_v58  ;;  %v8415_v58 = vpack.c.bf16 %v693_v54, %v689_v45  ;;  %v746_v51 = vmax.f32 %v516_v40, 0.0 }
 0x13c   :  { %v8407_v50 = vpack.c.bf16 %v749_v32, %v745_v25  ;;  %v518_v41 = vpop.f32.mrf.mxu2 }
 0x13d   :  { %v631_v49 = vpop.f32.mrf.mxu3  ;;  %v519_v5 = vadd.f32 %v518_v41, %v8080_v38  ;;  %v295_v37 = vpop.f32.mrf.mxu0 }
 0x13e   :  { %v632_v13 = vadd.f32 %v631_v49, %v8083_v39  ;;  %v296_v53 = vadd.f32 %v295_v37, %v8187_v17 }
 0x13f   :  { %v408_v9 = vpop.f32.mrf.mxu1  ;;  %v750_v25 = vmax.f32 %v519_v5, 0.0 }
 0x140   :  { %v751_v6 = vmax.f32 %v632_v13, 0.0  ;;  %1657 = vmatmul.bf16.gmra.mxu0 %v8413_v31  ;;  %v409_v54 = vadd.f32 %v408_v9, %v8190_v18  ;;  %v752_v40 = vmax.f32 %v296_v53, 0.0 }
 0x141   :  { %v8419_v10 = vpack.c.bf16 %v750_v25, %v746_v51  ;;  %1835 = vmatmul.bf16.gmra.mxu2 %v8194_v19 }
 0x142   :  { %1746 = vmatmul.bf16.gmra.mxu1 %v8415_v58  ;;  %v8421_v43 = vpack.c.bf16 %v751_v6, %v747_v16  ;;  %1924 = vmatmul.bf16.gmra.mxu3 %v8196_v22  ;;  %v753_v44 = vmax.f32 %v409_v54, 0.0 }
 0x144   :  { %v521_v49 = vpop.f32.mrf.mxu2 }
 0x145   :  { %v634_v48 = vpop.f32.mrf.mxu3  ;;  %v298_v28 = vpop.f32.mrf.mxu0  ;;  %v522_v37 = vadd.f32 %v521_v49, %v8080_v38 }
 0x146   :  { %v299_v59 = vadd.f32 %v298_v28, %v8187_v17  ;;  %v635_v9 = vadd.f32 %v634_v48, %v8083_v39  ;;  %v7559_v48 = vld [vmem:[#allocation2 + $0x284] sm:$0xf] }
 0x147   :  { %v411_v32 = vpop.f32.mrf.mxu1  ;;  %v754_v53 = vmax.f32 %v522_v37, 0.0  ;;  %v6523_v37 = vld [vmem:[#allocation2 + $0x90] sm:$0xf0] }
 0x148   :  { %v412_v34 = vadd.f32 %v411_v32, %v8190_v18  ;;  %v756_v45 = vmax.f32 %v299_v59, 0.0  ;;  %v755_v54 = vmax.f32 %v635_v9, 0.0  ;;  %v7591_v9 = vld [vmem:[#allocation2 + $0x384] sm:$0xf] }
 0x14a   :  { %v757_v41 = vmax.f32 %v412_v34, 0.0  ;;  %v8429_v5 = vpack.c.bf16 %v756_v45, %v752_v40  ;;  %v7495_v45 = vld [vmem:[#allocation2 + $0x84] sm:$0xf] }
 0x14c   :  { %v8431_v13 = vpack.c.bf16 %v757_v41, %v753_v44  ;;  %v524_v51 = vpop.f32.mrf.mxu2  ;;  %v6779_v44 = vld [vmem:[#allocation2 + $0x290] sm:$0xf0] }
 0x14d   :  { %v637_v16 = vpop.f32.mrf.mxu3  ;;  %v525_v25 = vadd.f32 %v524_v51, %v8080_v38  ;;  %v301_v28 = vpop.f32.mrf.mxu0  ;;  %v6782_v41 = vor.u32 %v7559_v48, %v6779_v44  ;;  %v6907_v51 = vld [vmem:[#allocation2 + $0x390] sm:$0xf0] }
 0x14e   :  { %v638_v6 = vadd.f32 %v637_v16, %v8083_v39  ;;  %v302_v16 = vadd.f32 %v301_v28, %v8187_v17 }
 0x14f   :  { %v414_v32 = vpop.f32.mrf.mxu1  ;;  %v758_v59 = vmax.f32 %v525_v25, 0.0  ;;  %v6526_v25 = vor.u32 %v7495_v45, %v6523_v37  ;;  %2171 = vmatpush.bf16.msra.mxu2 %v6782_v41 }
 0x150   :  { %v759_v34 = vmax.f32 %v638_v6, 0.0  ;;  %1662 = vmatmul.bf16.gmra.mxu0 %v8211_v2  ;;  %v6910_v6 = vor.u32 %v7591_v9, %v6907_v51  ;;  %v760_v44 = vmax.f32 %v302_v16, 0.0  ;;  %v6651_v2 = vld [vmem:[#allocation2 + $0x190] sm:$0xf0] }
 0x151   :  { %v8439_v40 = vpack.c.bf16 %v758_v59, %v754_v53  ;;  %1840 = vmatmul.bf16.gmra.mxu2 %v8224_v29  ;;  %v415_v53 = vadd.f32 %v414_v32, %v8190_v18  ;;  %1993 = vmatpush.bf16.msra.mxu0 %v6526_v25 }
 0x152   :  { %1751 = vmatmul.bf16.gmra.mxu1 %v8213_v3  ;;  %v8441_v49 = vpack.c.bf16 %v759_v34, %v755_v54  ;;  %1929 = vmatmul.bf16.gmra.mxu3 %v8226_v30  ;;  %v7527_v3 = vld [vmem:[#allocation2 + $0x184] sm:$0xf] }
 0x153   :  { %2260 = vmatpush.bf16.msra.mxu3 %v6910_v6  ;;  %v761_v22 = vmax.f32 %v415_v53, 0.0  ;;  %v6654_v37 = vor.u32 %v7527_v3, %v6651_v2 }
 0x154   :  { %v527_v59 = vpop.f32.mrf.mxu2 }
 0x155   :  { %v640_v54 = vpop.f32.mrf.mxu3  ;;  %v304_v34 = vpop.f32.mrf.mxu0  ;;  %2082 = vmatpush.bf16.msra.mxu1 %v6654_v37  ;;  %v528_v41 = vadd.f32 %v527_v59, %v8080_v38 }
 0x156   :  { %v305_v30 = vadd.f32 %v304_v34, %v8187_v17  ;;  %v641_v51 = vadd.f32 %v640_v54, %v8083_v39 }
 0x157   :  { %v417_v29 = vpop.f32.mrf.mxu1 }
 0x158   :  { %v418_v48 = vadd.f32 %v417_v29, %v8190_v18  ;;  %v764_v28 = vmax.f32 %v305_v30, 0.0  ;;  %v762_v30 = vmax.f32 %v528_v41, 0.0 }
 0x15a   :  { %v765_v45 = vmax.f32 %v418_v48, 0.0  ;;  %v8449_v9 = vpack.c.bf16 %v764_v28, %v760_v44  ;;  %v763_v48 = vmax.f32 %v641_v51, 0.0 }
 0x15c   :  { %v8451_v32 = vpack.c.bf16 %v765_v45, %v761_v22  ;;  %v530_v25 = vpop.f32.mrf.mxu2 }
 0x15d   :  { %v643_v6 = vpop.f32.mrf.mxu3  ;;  %v531_v29 = vadd.f32 %v530_v25, %v8080_v38  ;;  %v307_v34 = vpop.f32.mrf.mxu0 }
 0x15e   :  { %v644_v16 = vadd.f32 %v643_v6, %v8083_v39  ;;  %v308_v54 = vadd.f32 %v307_v34, %v8187_v17 }
 0x15f   :  { %v420_v53 = vpop.f32.mrf.mxu1  ;;  %v766_v2 = vmax.f32 %v531_v29, 0.0 }
 0x160   :  { %v767_v3 = vmax.f32 %v644_v16, 0.0  ;;  %1667 = vmatmul.bf16.gmra.mxu0 %v8241_v52  ;;  %v421_v44 = vadd.f32 %v420_v53, %v8190_v18  ;;  %v768_v6 = vmax.f32 %v308_v54, 0.0 }
 0x161   :  { %v8459_v22 = vpack.c.bf16 %v766_v2, %v762_v30  ;;  %1845 = vmatmul.bf16.gmra.mxu2 %v8254_v23 }
 0x162   :  { %1756 = vmatmul.bf16.gmra.mxu1 %v8243_v55  ;;  %v8461_v59 = vpack.c.bf16 %v767_v3, %v763_v48  ;;  %1934 = vmatmul.bf16.gmra.mxu3 %v8256_v24  ;;  %v769_v29 = vmax.f32 %v421_v44, 0.0 }
 0x164   :  { %v533_v28 = vpop.f32.mrf.mxu2 }
 0x165   :  { %v646_v45 = vpop.f32.mrf.mxu3  ;;  %v310_v37 = vpop.f32.mrf.mxu0  ;;  %v534_v34 = vadd.f32 %v533_v28, %v8080_v38 }
 0x166   :  { %v311_v51 = vadd.f32 %v310_v37, %v8187_v17  ;;  %v647_v53 = vadd.f32 %v646_v45, %v8083_v39  ;;  %v7555_v45 = vld [vmem:[#allocation2 + $0x264] sm:$0xf] }
 0x167   :  { %v423_v41 = vpop.f32.mrf.mxu1  ;;  %v770_v54 = vmax.f32 %v534_v34, 0.0  ;;  %v7587_v34 = vld [vmem:[#allocation2 + $0x364] sm:$0xf] }
 0x168   :  { %v424_v25 = vadd.f32 %v423_v41, %v8190_v18  ;;  %v772_v16 = vmax.f32 %v311_v51, 0.0  ;;  %v771_v44 = vmax.f32 %v647_v53, 0.0 }
 0x16a   :  { %v773_v30 = vmax.f32 %v424_v25, 0.0  ;;  %v8469_v48 = vpack.c.bf16 %v772_v16, %v768_v6 }
 0x16c   :  { %v8471_v2 = vpack.c.bf16 %v773_v30, %v769_v29  ;;  %v536_v3 = vpop.f32.mrf.mxu2  ;;  %v7491_v29 = vld [vmem:[#allocation2 + $0x64] sm:$0xf]  ;;  %v6507_v30 = vld [vmem:[#allocation2 + $0x70] sm:$0xf0] }
 0x16d   :  { %v649_v24 = vpop.f32.mrf.mxu3  ;;  %v537_v23 = vadd.f32 %v536_v3, %v8080_v38  ;;  %v313_v55 = vpop.f32.mrf.mxu0  ;;  %v6510_v53 = vor.u32 %v7491_v29, %v6507_v30  ;;  %v7523_v30 = vld [vmem:[#allocation2 + $0x164] sm:$0xf] }
 0x16e   :  { %v650_v37 = vadd.f32 %v649_v24, %v8083_v39  ;;  %v6763_v24 = vld [vmem:[#allocation2 + $0x270] sm:$0xf0] }
 0x16f   :  { %v426_v41 = vpop.f32.mrf.mxu1  ;;  %v774_v51 = vmax.f32 %v537_v23, 0.0  ;;  %v6766_v16 = vor.u32 %v7555_v45, %v6763_v24  ;;  %v6891_v23 = vld [vmem:[#allocation2 + $0x370] sm:$0xf0]  ;;  %1994 = vmatpush.bf16.msra.mxu0 %v6510_v53 }
 0x170   :  { %v775_v25 = vmax.f32 %v650_v37, 0.0  ;;  %1672 = vmatmul.bf16.gmra.mxu0 %v8271_v14  ;;  %v6894_v3 = vor.u32 %v7587_v34, %v6891_v23  ;;  %v314_v37 = vadd.f32 %v313_v55, %v8187_v17  ;;  %v6635_v34 = vld [vmem:[#allocation2 + $0x170] sm:$0xf0] }
 0x171   :  { %v8479_v6 = vpack.c.bf16 %v774_v51, %v770_v54  ;;  %1850 = vmatmul.bf16.gmra.mxu2 %v8284_v46  ;;  %v427_v54 = vadd.f32 %v426_v41, %v8190_v18  ;;  %v6638_v23 = vor.u32 %v7523_v30, %v6635_v34 }
 0x172   :  { %1761 = vmatmul.bf16.gmra.mxu1 %v8273_v15  ;;  %v8481_v28 = vpack.c.bf16 %v775_v25, %v771_v44  ;;  %1939 = vmatmul.bf16.gmra.mxu3 %v8286_v47  ;;  %v776_v24 = vmax.f32 %v314_v37, 0.0 }
 0x173   :  { %2172 = vmatpush.bf16.msra.mxu2 %v6766_v16  ;;  %2261 = vmatpush.bf16.msra.mxu3 %v6894_v3  ;;  %v777_v15 = vmax.f32 %v427_v54, 0.0 }
 0x174   :  { %v539_v51 = vpop.f32.mrf.mxu2  ;;  %2083 = vmatpush.bf16.msra.mxu1 %v6638_v23 }
 0x175   :  { %v652_v44 = vpop.f32.mrf.mxu3  ;;  %v316_v25 = vpop.f32.mrf.mxu0  ;;  %v540_v16 = vadd.f32 %v539_v51, %v8080_v38 }
 0x176   :  { %v317_v47 = vadd.f32 %v316_v25, %v8187_v17  ;;  %v653_v53 = vadd.f32 %v652_v44, %v8083_v39 }
 0x177   :  { %v429_v46 = vpop.f32.mrf.mxu1  ;;  %v778_v25 = vmax.f32 %v540_v16, 0.0 }
 0x178   :  { %v430_v45 = vadd.f32 %v429_v46, %v8190_v18  ;;  %v780_v14 = vmax.f32 %v317_v47, 0.0 }
 0x17a   :  { %v781_v29 = vmax.f32 %v430_v45, 0.0  ;;  %v8489_v55 = vpack.c.bf16 %v780_v14, %v776_v24  ;;  %v779_v45 = vmax.f32 %v653_v53, 0.0 }
 0x17c   :  { %v8491_v41 = vpack.c.bf16 %v781_v29, %v777_v15  ;;  %v542_v3 = vpop.f32.mrf.mxu2 }
 0x17d   :  { %v655_v52 = vpop.f32.mrf.mxu3  ;;  %v543_v46 = vadd.f32 %v542_v3, %v8080_v38  ;;  %v319_v47 = vpop.f32.mrf.mxu0  ;;  %v8512_v3 = vld [vmem:[%s10205_s4] sm:$0xf] }
 0x17e   :  { %v656_v37 = vadd.f32 %v655_v52, %v8083_v39  ;;  %v320_v52 = vadd.f32 %v319_v47, %v8187_v17  ;;  %10357 = vst [vmem:[#allocation33_spill] sm:$0xff] %v8512_v3 }
 0x17f   :  { %v432_v54 = vpop.f32.mrf.mxu1  ;;  %v782_v14 = vmax.f32 %v543_v46, 0.0 }
 0x180   :  { %v783_v24 = vmax.f32 %v656_v37, 0.0  ;;  %1677 = vmatmul.bf16.gmra.mxu0 %v8309_v33  ;;  %v433_v44 = vadd.f32 %v432_v54, %v8190_v18  ;;  %v784_v46 = vmax.f32 %v320_v52, 0.0 }
 0x181   :  { %v8499_v15 = vpack.c.bf16 %v782_v14, %v778_v25  ;;  %1855 = vmatmul.bf16.gmra.mxu2 %v8323_v0  ;;  %v8519_v14 = vperm.slane %v8512_v3, 0 }
 0x182   :  { %1766 = vmatmul.bf16.gmra.mxu1 %v8311_v20  ;;  %v8501_v51 = vpack.c.bf16 %v783_v24, %v779_v45  ;;  %1944 = vmatmul.bf16.gmra.mxu3 %v8325_v11  ;;  %v785_v37 = vmax.f32 %v433_v44, 0.0 }
 0x184   :  { %v545_v29 = vpop.f32.mrf.mxu2 }
 0x185   :  { %v658_v30 = vpop.f32.mrf.mxu3  ;;  %v322_v34 = vpop.f32.mrf.mxu0 }
 0x186   :  { %v323_v16 = vadd.f32 %v322_v34, %v8187_v17  ;;  %v546_v17 = vadd.f32 %v545_v29, %v8080_v38 }
 0x187   :  { %v435_v23 = vpop.f32.mrf.mxu1 }
 0x188   :  { %v436_v53 = vadd.f32 %v435_v23, %v8190_v18  ;;  %v788_v25 = vmax.f32 %v323_v16, 0.0  ;;  %v659_v18 = vadd.f32 %v658_v30, %v8083_v39 }
 0x18a   :  { %v789_v45 = vmax.f32 %v436_v53, 0.0  ;;  %v8514_v47 = vpack.c.bf16 %v788_v25, %v784_v46  ;;  %v786_v46 = vmax.f32 %v546_v17, 0.0 }
 0x18c   :  { %v8516_v54 = vpack.c.bf16 %v789_v45, %v785_v37  ;;  %v548_v24 = vpop.f32.mrf.mxu2  ;;  %v787_v37 = vmax.f32 %v659_v18, 0.0 }
 0x18d   :  { %v661_v34 = vpop.f32.mrf.mxu3  ;;  %v549_v23 = vadd.f32 %v548_v24, %v8080_v38  ;;  %v1643_v44 = vpop.f32.mrf.mxu0  ;;  %v7551_v38 = vld [vmem:[#allocation2 + $0x244] sm:$0xf] }
 0x18e   :  { %v662_v52 = vadd.f32 %v661_v34, %v8083_v39  ;;  %v1644_v53 = vadd.f32 %v1643_v44, %v8519_v14  ;;  %v6747_v39 = vld [vmem:[#allocation2 + $0x250] sm:$0xf0]  ;;  %v7487_v24 = vld [vmem:[#allocation2 + $0x44] sm:$0xf] }
 0x18f   :  { %v1732_v16 = vpop.f32.mrf.mxu1  ;;  %v790_v25 = vmax.f32 %v549_v23, 0.0  ;;  %v6750_v34 = vor.u32 %v7551_v38, %v6747_v39  ;;  %v6491_v23 = vld [vmem:[#allocation2 + $0x50] sm:$0xf0] }
 0x190   :  { %v791_v45 = vmax.f32 %v662_v52, 0.0  ;;  %v1733_v3 = vadd.f32 %v1732_v16, %v1644_v53  ;;  %1682 = vmatmul.bf16.gmra.mxu0 %v8341_v61  ;;  %v7583_v52 = vld [vmem:[#allocation2 + $0x344] sm:$0xf]  ;;  %v6875_v44 = vld [vmem:[#allocation2 + $0x350] sm:$0xf0] }
 0x191   :  { %v8528_v29 = vpack.c.bf16 %v790_v25, %v786_v46  ;;  %1860 = vmatmul.bf16.gmra.mxu2 %v8355_v42  ;;  %v6494_v46 = vor.u32 %v7487_v24, %v6491_v23  ;;  %v6878_v25 = vor.u32 %v7583_v52, %v6875_v44  ;;  %v7519_v42 = vld [vmem:[#allocation2 + $0x144] sm:$0xf]  ;;  %v6619_v61 = vld [vmem:[#allocation2 + $0x150] sm:$0xf0] }
 0x192   :  { %1771 = vmatmul.bf16.gmra.mxu1 %v8343_v21  ;;  %v8530_v30 = vpack.c.bf16 %v791_v45, %v787_v37  ;;  %1949 = vmatmul.bf16.gmra.mxu3 %v8357_v1  ;;  %v6622_v11 = vor.u32 %v7519_v42, %v6619_v61 }
 0x193   :  { %2173 = vmatpush.bf16.msra.mxu2 %v6750_v34  ;;  %1995 = vmatpush.bf16.msra.mxu0 %v6494_v46 }
 0x194   :  { %v1821_v17 = vpop.f32.mrf.mxu2  ;;  %2262 = vmatpush.bf16.msra.mxu3 %v6878_v25  ;;  %2084 = vmatpush.bf16.msra.mxu1 %v6622_v11 }
 0x195   :  { %v1910_v18 = vpop.f32.mrf.mxu3  ;;  %v1822_v16 = vadd.f32 %v1821_v17, %v1733_v3  ;;  %v1645_v53 = vpop.f32.mrf.mxu0 }
 0x196   :  { %v1646_v37 = vadd.f32 %v1645_v53, %v8519_v14 }
 0x197   :  { %v1734_v21 = vpop.f32.mrf.mxu1  ;;  %v1911_v45 = vadd.f32 %v1910_v18, %v1822_v16 }
 0x198   :  { %v1735_v1 = vadd.f32 %v1734_v21, %v1646_v37 }
 0x199   :  { %v3058_v18 = vmax.f32 %v1911_v45, 0.0 }
 0x19c   :  { %v1823_v0 = vpop.f32.mrf.mxu2 }
 0x19d   :  { %v1912_v38 = vpop.f32.mrf.mxu3  ;;  %v1824_v39 = vadd.f32 %v1823_v0, %v1735_v1  ;;  %v1648_v20 = vpop.f32.mrf.mxu0 }
 0x19e   :  { %v1649_v17 = vadd.f32 %v1648_v20, %v8519_v14 }
 0x19f   :  { %v1737_v3 = vpop.f32.mrf.mxu1  ;;  %v1913_v24 = vadd.f32 %v1912_v38, %v1824_v39 }
 0x1a0   :  { %v1738_v23 = vadd.f32 %v1737_v3, %v1649_v17  ;;  %1687 = vmatmul.bf16.gmra.mxu0 %v8373_v27 }
 0x1a1   :  { %v3062_v34 = vmax.f32 %v1913_v24, 0.0  ;;  %1865 = vmatmul.bf16.gmra.mxu2 %v8387_v60 }
 0x1a2   :  { %1776 = vmatmul.bf16.gmra.mxu1 %v8375_v26  ;;  %1954 = vmatmul.bf16.gmra.mxu3 %v8389_v35 }
 0x1a3   :  { %v8540_v61 = vpack.c.bf16 %v3062_v34, %v3058_v18  ;;  %v6731_v18 = vld [vmem:[#allocation2 + $0x230] sm:$0xf0]  ;;  %v7483_v34 = vld [vmem:[#allocation2 + $0x24] sm:$0xf] }
 0x1a4   :  { %v1826_v11 = vpop.f32.mrf.mxu2 }
 0x1a5   :  { %10358 = vst [vmem:[#allocation34_spill] sm:$0xff] %v8540_v61  ;;  %v1915_v0 = vpop.f32.mrf.mxu3  ;;  %v1827_v21 = vadd.f32 %v1826_v11, %v1738_v23  ;;  %v1650_v42 = vpop.f32.mrf.mxu0  ;;  %v7547_v23 = vld [vmem:[#allocation2 + $0x224] sm:$0xf] }
 0x1a6   :  { %v1651_v20 = vadd.f32 %v1650_v42, %v8519_v14  ;;  %v6475_v42 = vld [vmem:[#allocation2 + $0x30] sm:$0xf0] }
 0x1a7   :  { %v1739_v1 = vpop.f32.mrf.mxu1  ;;  %v1916_v52 = vadd.f32 %v1915_v0, %v1827_v21  ;;  %v6734_v21 = vor.u32 %v7547_v23, %v6731_v18 }
 0x1a8   :  { %v1740_v44 = vadd.f32 %v1739_v1, %v1651_v20  ;;  %v7579_v1 = vld [vmem:[#allocation2 + $0x324] sm:$0xf]  ;;  %v6859_v20 = vld [vmem:[#allocation2 + $0x330] sm:$0xf0] }
 0x1a9   :  { %v3066_v3 = vmax.f32 %v1916_v52, 0.0  ;;  %v6478_v52 = vor.u32 %v7483_v34, %v6475_v42  ;;  %2174 = vmatpush.bf16.msra.mxu2 %v6734_v21 }
 0x1ab   :  { %1996 = vmatpush.bf16.msra.mxu0 %v6478_v52 }
 0x1ac   :  { %v1828_v16 = vpop.f32.mrf.mxu2 }
 0x1ad   :  { %v1917_v53 = vpop.f32.mrf.mxu3  ;;  %v1829_v46 = vadd.f32 %v1828_v16, %v1740_v44  ;;  %v1653_v25 = vpop.f32.mrf.mxu0 }
 0x1ae   :  { %v1654_v45 = vadd.f32 %v1653_v25, %v8519_v14 }
 0x1af   :  { %v1742_v37 = vpop.f32.mrf.mxu1  ;;  %v1918_v38 = vadd.f32 %v1917_v53, %v1829_v46  ;;  %v6862_v46 = vor.u32 %v7579_v1, %v6859_v20 }
 0x1b0   :  { %v1743_v39 = vadd.f32 %v1742_v37, %v1654_v45  ;;  %1692 = vmatmul.bf16.gmra.mxu0 %v8405_v62 }
 0x1b1   :  { %v3070_v17 = vmax.f32 %v1918_v38, 0.0  ;;  %1870 = vmatmul.bf16.gmra.mxu2 %v8419_v10  ;;  %2263 = vmatpush.bf16.msra.mxu3 %v6862_v46  ;;  %v7515_v38 = vld [vmem:[#allocation2 + $0x124] sm:$0xf] }
 0x1b2   :  { %1781 = vmatmul.bf16.gmra.mxu1 %v8407_v50  ;;  %1959 = vmatmul.bf16.gmra.mxu3 %v8421_v43 }
 0x1b3   :  { %v8548_v24 = vpack.c.bf16 %v3070_v17, %v3066_v3  ;;  %v6603_v3 = vld [vmem:[#allocation2 + $0x130] sm:$0xf0] }
 0x1b4   :  { %v1831_v11 = vpop.f32.mrf.mxu2  ;;  %v6606_v17 = vor.u32 %v7515_v38, %v6603_v3 }
 0x1b5   :  { %10359 = vst [vmem:[#allocation35_spill] sm:$0xff] %v8548_v24  ;;  %v1920_v0 = vpop.f32.mrf.mxu3  ;;  %v1832_v44 = vadd.f32 %v1831_v11, %v1743_v39  ;;  %v1655_v16 = vpop.f32.mrf.mxu0 }
 0x1b6   :  { %v1656_v25 = vadd.f32 %v1655_v16, %v8519_v14  ;;  %2085 = vmatpush.bf16.msra.mxu1 %v6606_v17 }
 0x1b7   :  { %v1744_v53 = vpop.f32.mrf.mxu1  ;;  %v1921_v37 = vadd.f32 %v1920_v0, %v1832_v44 }
 0x1b8   :  { %v1745_v45 = vadd.f32 %v1744_v53, %v1656_v25 }
 0x1b9   :  { %v3074_v0 = vmax.f32 %v1921_v37, 0.0 }
 0x1bc   :  { %v1833_v24 = vpop.f32.mrf.mxu2 }
 0x1bd   :  { %v1922_v23 = vpop.f32.mrf.mxu3  ;;  %v1834_v18 = vadd.f32 %v1833_v24, %v1745_v45  ;;  %v1658_v61 = vpop.f32.mrf.mxu0 }
 0x1be   :  { %v1659_v11 = vadd.f32 %v1658_v61, %v8519_v14 }
 0x1bf   :  { %v1747_v39 = vpop.f32.mrf.mxu1  ;;  %v1923_v34 = vadd.f32 %v1922_v23, %v1834_v18 }
 0x1c0   :  { %v1748_v42 = vadd.f32 %v1747_v39, %v1659_v11  ;;  %1697 = vmatmul.bf16.gmra.mxu0 %v8429_v5 }
 0x1c1   :  { %v3078_v21 = vmax.f32 %v1923_v34, 0.0  ;;  %1875 = vmatmul.bf16.gmra.mxu2 %v8439_v40 }
 0x1c2   :  { %1786 = vmatmul.bf16.gmra.mxu1 %v8431_v13  ;;  %1964 = vmatmul.bf16.gmra.mxu3 %v8441_v49 }
 0x1c3   :  { %v8556_v1 = vpack.c.bf16 %v3078_v21, %v3074_v0  ;;  %v6715_v0 = vld [vmem:[#allocation2 + $0x210] sm:$0xf0]  ;;  %v7479_v21 = vld [vmem:[#allocation2 + $0x4] sm:$0xf] }
 0x1c4   :  { %v1836_v20 = vpop.f32.mrf.mxu2 }
 0x1c5   :  { %10360 = vst [vmem:[#allocation36_spill] sm:$0xff] %v8556_v1  ;;  %v1925_v24 = vpop.f32.mrf.mxu3  ;;  %v1837_v44 = vadd.f32 %v1836_v20, %v1748_v42  ;;  %v1660_v16 = vpop.f32.mrf.mxu0  ;;  %v7543_v42 = vld [vmem:[#allocation2 + $0x204] sm:$0xf] }
 0x1c6   :  { %v1661_v61 = vadd.f32 %v1660_v16, %v8519_v14  ;;  %v6459_v16 = vld [vmem:[#allocation2 + $0x10] sm:$0xf0] }
 0x1c7   :  { %v1749_v53 = vpop.f32.mrf.mxu1  ;;  %v1926_v52 = vadd.f32 %v1925_v24, %v1837_v44  ;;  %v6718_v44 = vor.u32 %v7543_v42, %v6715_v0 }
 0x1c8   :  { %v1750_v46 = vadd.f32 %v1749_v53, %v1661_v61  ;;  %v7575_v53 = vld [vmem:[#allocation2 + $0x304] sm:$0xf]  ;;  %v6843_v61 = vld [vmem:[#allocation2 + $0x310] sm:$0xf0] }
 0x1c9   :  { %v3082_v39 = vmax.f32 %v1926_v52, 0.0  ;;  %v6462_v52 = vor.u32 %v7479_v21, %v6459_v16  ;;  %2175 = vmatpush.bf16.msra.mxu2 %v6718_v44 }
 0x1cb   :  { %1997 = vmatpush.bf16.msra.mxu0 %v6462_v52 }
 0x1cc   :  { %v1838_v25 = vpop.f32.mrf.mxu2 }
 0x1cd   :  { %v1927_v45 = vpop.f32.mrf.mxu3  ;;  %v1839_v38 = vadd.f32 %v1838_v25, %v1750_v46  ;;  %v1663_v37 = vpop.f32.mrf.mxu0 }
 0x1ce   :  { %v1664_v17 = vadd.f32 %v1663_v37, %v8519_v14 }
 0x1cf   :  { %v1752_v3 = vpop.f32.mrf.mxu1  ;;  %v1928_v23 = vadd.f32 %v1927_v45, %v1839_v38  ;;  %v6846_v38 = vor.u32 %v7575_v53, %v6843_v61 }
 0x1d0   :  { %v1753_v18 = vadd.f32 %v1752_v3, %v1664_v17  ;;  %1702 = vmatmul.bf16.gmra.mxu0 %v8449_v9 }
 0x1d1   :  { %v3086_v11 = vmax.f32 %v1928_v23, 0.0  ;;  %1880 = vmatmul.bf16.gmra.mxu2 %v8459_v22  ;;  %2264 = vmatpush.bf16.msra.mxu3 %v6846_v38  ;;  %v7511_v23 = vld [vmem:[#allocation2 + $0x104] sm:$0xf] }
 0x1d2   :  { %1791 = vmatmul.bf16.gmra.mxu1 %v8451_v32  ;;  %1969 = vmatmul.bf16.gmra.mxu3 %v8461_v59 }
 0x1d3   :  { %v8564_v34 = vpack.c.bf16 %v3086_v11, %v3082_v39  ;;  %v6587_v39 = vld [vmem:[#allocation2 + $0x110] sm:$0xf0] }
 0x1d4   :  { %v1841_v20 = vpop.f32.mrf.mxu2  ;;  %v6590_v11 = vor.u32 %v7511_v23, %v6587_v39 }
 0x1d5   :  { %10361 = vst [vmem:[#allocation37_spill] sm:$0xff] %v8564_v34  ;;  %v1930_v24 = vpop.f32.mrf.mxu3  ;;  %v1842_v46 = vadd.f32 %v1841_v20, %v1753_v18  ;;  %v1665_v25 = vpop.f32.mrf.mxu0 }
 0x1d6   :  { %v1666_v37 = vadd.f32 %v1665_v25, %v8519_v14  ;;  %2086 = vmatpush.bf16.msra.mxu1 %v6590_v11 }
 0x1d7   :  { %v1754_v45 = vpop.f32.mrf.mxu1  ;;  %v1931_v3 = vadd.f32 %v1930_v24, %v1842_v46 }
 0x1d8   :  { %v1755_v17 = vadd.f32 %v1754_v45, %v1666_v37 }
 0x1d9   :  { %v3090_v24 = vmax.f32 %v1931_v3, 0.0 }
 0x1dc   :  { %v1843_v34 = vpop.f32.mrf.mxu2 }
 0x1dd   :  { %v1932_v42 = vpop.f32.mrf.mxu3  ;;  %v1844_v0 = vadd.f32 %v1843_v34, %v1755_v17  ;;  %v1668_v1 = vpop.f32.mrf.mxu0 }
 0x1de   :  { %v1669_v20 = vadd.f32 %v1668_v1, %v8519_v14 }
 0x1df   :  { %v1757_v18 = vpop.f32.mrf.mxu1  ;;  %v1933_v21 = vadd.f32 %v1932_v42, %v1844_v0 }
 0x1e0   :  { %v1758_v16 = vadd.f32 %v1757_v18, %v1669_v20  ;;  %1707 = vmatmul.bf16.gmra.mxu0 %v8469_v48 }
 0x1e1   :  { %v3094_v44 = vmax.f32 %v1933_v21, 0.0  ;;  %1885 = vmatmul.bf16.gmra.mxu2 %v8479_v6 }
 0x1e2   :  { %1796 = vmatmul.bf16.gmra.mxu1 %v8471_v2  ;;  %1974 = vmatmul.bf16.gmra.mxu3 %v8481_v28 }
 0x1e3   :  { %v8572_v53 = vpack.c.bf16 %v3094_v44, %v3090_v24  ;;  %v7574_v24 = vld [vmem:[#allocation2 + $0x2f4] sm:$0xf0]  ;;  %v6577_v44 = vld [vmem:[#allocation2 + $0xe8] sm:$0xf] }
 0x1e4   :  { %v1846_v61 = vpop.f32.mrf.mxu2 }
 0x1e5   :  { %10362 = vst [vmem:[#allocation38_spill] sm:$0xff] %v8572_v53  ;;  %v1935_v34 = vpop.f32.mrf.mxu3  ;;  %v1847_v46 = vadd.f32 %v1846_v61, %v1758_v16  ;;  %v1670_v25 = vpop.f32.mrf.mxu0  ;;  %v6833_v16 = vld [vmem:[#allocation2 + $0x2e8] sm:$0xf] }
 0x1e6   :  { %v1671_v1 = vadd.f32 %v1670_v25, %v8519_v14  ;;  %v7510_v25 = vld [vmem:[#allocation2 + $0xf4] sm:$0xf0] }
 0x1e7   :  { %v1759_v45 = vpop.f32.mrf.mxu1  ;;  %v1936_v52 = vadd.f32 %v1935_v34, %v1847_v46  ;;  %v6834_v46 = vor.u32 %v7574_v24, %v6833_v16 }
 0x1e8   :  { %v1760_v38 = vadd.f32 %v1759_v45, %v1671_v1  ;;  %v6961_v45 = vld [vmem:[#allocation2 + $0x3e8] sm:$0xf]  ;;  %v7606_v1 = vld [vmem:[#allocation2 + $0x3f4] sm:$0xf0] }
 0x1e9   :  { %v3098_v18 = vmax.f32 %v1936_v52, 0.0  ;;  %v6578_v52 = vor.u32 %v7510_v25, %v6577_v44  ;;  %2524 = vmatpush.bf16.msrb.mxu2 %v6834_v46 }
 0x1eb   :  { %2346 = vmatpush.bf16.msrb.mxu0 %v6578_v52 }
 0x1ec   :  { %v1848_v37 = vpop.f32.mrf.mxu2 }
 0x1ed   :  { %v1937_v17 = vpop.f32.mrf.mxu3  ;;  %v1849_v23 = vadd.f32 %v1848_v37, %v1760_v38  ;;  %v1673_v3 = vpop.f32.mrf.mxu0 }
 0x1ee   :  { %v1674_v11 = vadd.f32 %v1673_v3, %v8519_v14 }
 0x1ef   :  { %v1762_v39 = vpop.f32.mrf.mxu1  ;;  %v1938_v42 = vadd.f32 %v1937_v17, %v1849_v23  ;;  %v6962_v23 = vor.u32 %v7606_v1, %v6961_v45 }
 0x1f0   :  { %v1763_v0 = vadd.f32 %v1762_v39, %v1674_v11  ;;  %1712 = vmatmul.bf16.gmra.mxu0 %v8489_v55 }
 0x1f1   :  { %v3102_v20 = vmax.f32 %v1938_v42, 0.0  ;;  %1890 = vmatmul.bf16.gmra.mxu2 %v8499_v15  ;;  %2613 = vmatpush.bf16.msrb.mxu3 %v6962_v23  ;;  %v6705_v42 = vld [vmem:[#allocation2 + $0x1e8] sm:$0xf] }
 0x1f2   :  { %1801 = vmatmul.bf16.gmra.mxu1 %v8491_v41  ;;  %1979 = vmatmul.bf16.gmra.mxu3 %v8501_v51 }
 0x1f3   :  { %v8580_v21 = vpack.c.bf16 %v3102_v20, %v3098_v18  ;;  %v7542_v18 = vld [vmem:[#allocation2 + $0x1f4] sm:$0xf0] }
 0x1f4   :  { %v1851_v61 = vpop.f32.mrf.mxu2  ;;  %v6706_v20 = vor.u32 %v7542_v18, %v6705_v42 }
 0x1f5   :  { %10363 = vst [vmem:[#allocation39_spill] sm:$0xff] %v8580_v21  ;;  %v1940_v34 = vpop.f32.mrf.mxu3  ;;  %v1852_v38 = vadd.f32 %v1851_v61, %v1763_v0  ;;  %v1675_v37 = vpop.f32.mrf.mxu0 }
 0x1f6   :  { %v1676_v3 = vadd.f32 %v1675_v37, %v8519_v14  ;;  %2435 = vmatpush.bf16.msrb.mxu1 %v6706_v20 }
 0x1f7   :  { %v1764_v17 = vpop.f32.mrf.mxu1  ;;  %v1941_v39 = vadd.f32 %v1940_v34, %v1852_v38 }
 0x1f8   :  { %v1765_v11 = vadd.f32 %v1764_v17, %v1676_v3 }
 0x1f9   :  { %v3106_v34 = vmax.f32 %v1941_v39, 0.0 }
 0x1fc   :  { %v1853_v21 = vpop.f32.mrf.mxu2 }
 0x1fd   :  { %v1942_v16 = vpop.f32.mrf.mxu3  ;;  %v1854_v24 = vadd.f32 %v1853_v21, %v1765_v11  ;;  %v1678_v53 = vpop.f32.mrf.mxu0 }
 0x1fe   :  { %v1679_v61 = vadd.f32 %v1678_v53, %v8519_v14 }
 0x1ff   :  { %v1767_v0 = vpop.f32.mrf.mxu1  ;;  %v1943_v44 = vadd.f32 %v1942_v16, %v1854_v24 }
 0x200   :  { %v1768_v25 = vadd.f32 %v1767_v0, %v1679_v61  ;;  %1717 = vmatmul.bf16.gmra.mxu0 %v8514_v47 }
 0x201   :  { %v3110_v46 = vmax.f32 %v1943_v44, 0.0  ;;  %1895 = vmatmul.bf16.gmra.mxu2 %v8528_v29 }
 0x202   :  { %1806 = vmatmul.bf16.gmra.mxu1 %v8516_v54  ;;  %1984 = vmatmul.bf16.gmra.mxu3 %v8530_v30 }
 0x203   :  { %v8588_v45 = vpack.c.bf16 %v3110_v46, %v3106_v34  ;;  %v7570_v34 = vld [vmem:[#allocation2 + $0x2d4] sm:$0xf0]  ;;  %v6561_v46 = vld [vmem:[#allocation2 + $0xc8] sm:$0xf] }
 0x204   :  { %v1856_v1 = vpop.f32.mrf.mxu2 }
 0x205   :  { %10364 = vst [vmem:[#allocation40_spill] sm:$0xff] %v8588_v45  ;;  %v1945_v21 = vpop.f32.mrf.mxu3  ;;  %v1857_v38 = vadd.f32 %v1856_v1, %v1768_v25  ;;  %v1680_v37 = vpop.f32.mrf.mxu0  ;;  %v6817_v25 = vld [vmem:[#allocation2 + $0x2c8] sm:$0xf] }
 0x206   :  { %v1681_v53 = vadd.f32 %v1680_v37, %v8519_v14  ;;  %v7506_v37 = vld [vmem:[#allocation2 + $0xd4] sm:$0xf0] }
 0x207   :  { %v1769_v17 = vpop.f32.mrf.mxu1  ;;  %v1946_v52 = vadd.f32 %v1945_v21, %v1857_v38  ;;  %v6818_v38 = vor.u32 %v7570_v34, %v6817_v25 }
 0x208   :  { %v1770_v23 = vadd.f32 %v1769_v17, %v1681_v53  ;;  %v6945_v17 = vld [vmem:[#allocation2 + $0x3c8] sm:$0xf]  ;;  %v7602_v53 = vld [vmem:[#allocation2 + $0x3d4] sm:$0xf0] }
 0x209   :  { %v3114_v0 = vmax.f32 %v1946_v52, 0.0  ;;  %v6562_v52 = vor.u32 %v7506_v37, %v6561_v46  ;;  %2525 = vmatpush.bf16.msrb.mxu2 %v6818_v38 }
 0x20b   :  { %2347 = vmatpush.bf16.msrb.mxu0 %v6562_v52 }
 0x20c   :  { %v1858_v3 = vpop.f32.mrf.mxu2 }
 0x20d   :  { %v1947_v11 = vpop.f32.mrf.mxu3  ;;  %v1859_v42 = vadd.f32 %v1858_v3, %v1770_v23  ;;  %v1683_v39 = vpop.f32.mrf.mxu0 }
 0x20e   :  { %v1684_v20 = vadd.f32 %v1683_v39, %v8519_v14 }
 0x20f   :  { %v1772_v18 = vpop.f32.mrf.mxu1  ;;  %v1948_v16 = vadd.f32 %v1947_v11, %v1859_v42  ;;  %v6946_v42 = vor.u32 %v7602_v53, %v6945_v17  ;;  %v10366_v17 = vld [vmem:[#allocation8_spill] sm:$0xff] }
 0x210   :  { %v1773_v24 = vadd.f32 %v1772_v18, %v1684_v20  ;;  %1998 = vmatmul.bf16.vlgmr.msra.gmra.mxu0 %v8317_v4 }
 0x211   :  { %v3118_v61 = vmax.f32 %v1948_v16, 0.0  ;;  %2176 = vmatmul.bf16.vlgmr.msra.gmra.mxu2 %v8102_v56  ;;  %2614 = vmatpush.bf16.msrb.mxu3 %v6946_v42  ;;  %v6689_v16 = vld [vmem:[#allocation2 + $0x1c8] sm:$0xf] }
 0x212   :  { %2087 = vmatmul.bf16.vlgmr.msra.gmra.mxu1 %v8319_v7  ;;  %2265 = vmatmul.bf16.vlgmr.msra.gmra.mxu3 %v8104_v57 }
 0x213   :  { %v8596_v44 = vpack.c.bf16 %v3118_v61, %v3114_v0  ;;  %v7538_v0 = vld [vmem:[#allocation2 + $0x1d4] sm:$0xf0] }
 0x214   :  { %v1861_v1 = vpop.f32.mrf.mxu2  ;;  %v6690_v61 = vor.u32 %v7538_v0, %v6689_v16 }
 0x215   :  { %10365 = vst [vmem:[#allocation41_spill] sm:$0xff] %v8596_v44  ;;  %v1950_v21 = vpop.f32.mrf.mxu3  ;;  %v1862_v23 = vadd.f32 %v1861_v1, %v1773_v24  ;;  %v1685_v3 = vpop.f32.mrf.mxu0 }
 0x216   :  { %v1686_v39 = vadd.f32 %v1685_v3, %v8519_v14  ;;  %2436 = vmatpush.bf16.msrb.mxu1 %v6690_v61 }
 0x217   :  { %v1774_v11 = vpop.f32.mrf.mxu1  ;;  %v1951_v18 = vadd.f32 %v1950_v21, %v1862_v23 }
 0x218   :  { %v1775_v20 = vadd.f32 %v1774_v11, %v1686_v39 }
 0x219   :  { %v3122_v21 = vmax.f32 %v1951_v18, 0.0 }
 0x21c   :  { %v1863_v44 = vpop.f32.mrf.mxu2 }
 0x21d   :  { %v1952_v25 = vpop.f32.mrf.mxu3  ;;  %v1864_v34 = vadd.f32 %v1863_v44, %v1775_v20  ;;  %v1688_v45 = vpop.f32.mrf.mxu0 }
 0x21e   :  { %v1689_v1 = vadd.f32 %v1688_v45, %v8519_v14 }
 0x21f   :  { %v1777_v24 = vpop.f32.mrf.mxu1  ;;  %v1953_v46 = vadd.f32 %v1952_v25, %v1864_v34 }
 0x220   :  { %v1778_v37 = vadd.f32 %v1777_v24, %v1689_v1  ;;  %2003 = vmatmul.bf16.gmra.mxu0 %v8349_v8  ;;  %v10368_v1 = vld [vmem:[#allocation32_spill] sm:$0xff] }
 0x221   :  { %v3126_v38 = vmax.f32 %v1953_v46, 0.0  ;;  %2181 = vmatmul.bf16.gmra.mxu2 %v8132_v12 }
 0x222   :  { %2092 = vmatmul.bf16.gmra.mxu1 %v8351_v63  ;;  %2270 = vmatmul.bf16.gmra.mxu3 %v10366_v17 }
 0x223   :  { %v8604_v53 = vpack.c.bf16 %v3126_v38, %v3122_v21  ;;  %v10369_v21 = vld [vmem:[#allocation9_spill] sm:$0xff]  ;;  %v10370_v38 = vld [vmem:[#allocation10_spill] sm:$0xff] }
 0x224   :  { %v1866_v23 = vpop.f32.mrf.mxu2 }
 0x225   :  { %10367 = vst [vmem:[#allocation8_spill] sm:$0xff] %v8604_v53  ;;  %v1955_v44 = vpop.f32.mrf.mxu3  ;;  %v1867_v3 = vadd.f32 %v1866_v23, %v1778_v37  ;;  %v1690_v11 = vpop.f32.mrf.mxu0 }
 0x226   :  { %v1691_v45 = vadd.f32 %v1690_v11, %v8519_v14  ;;  %v6545_v11 = vld [vmem:[#allocation2 + $0xa8] sm:$0xf] }
 0x227   :  { %v1779_v52 = vpop.f32.mrf.mxu1  ;;  %v1956_v42 = vadd.f32 %v1955_v44, %v1867_v3  ;;  %v6801_v44 = vld [vmem:[#allocation2 + $0x2a8] sm:$0xf]  ;;  %v7566_v3 = vld [vmem:[#allocation2 + $0x2b4] sm:$0xf0] }
 0x228   :  { %v1780_v39 = vadd.f32 %v1779_v52, %v1691_v45 }
 0x229   :  { %v3130_v46 = vmax.f32 %v1956_v42, 0.0 }
 0x22c   :  { %v1868_v20 = vpop.f32.mrf.mxu2 }
 0x22d   :  { %v1957_v16 = vpop.f32.mrf.mxu3  ;;  %v1869_v0 = vadd.f32 %v1868_v20, %v1780_v39  ;;  %v1693_v18 = vpop.f32.mrf.mxu0  ;;  %v6802_v39 = vor.u32 %v7566_v3, %v6801_v44  ;;  %v7502_v20 = vld [vmem:[#allocation2 + $0xb4] sm:$0xf0] }
 0x22e   :  { %v1694_v25 = vadd.f32 %v1693_v18, %v8519_v14  ;;  %v6546_v42 = vor.u32 %v7502_v20, %v6545_v11 }
 0x22f   :  { %v1782_v61 = vpop.f32.mrf.mxu1  ;;  %v1958_v34 = vadd.f32 %v1957_v16, %v1869_v0  ;;  %v6929_v16 = vld [vmem:[#allocation2 + $0x3a8] sm:$0xf]  ;;  %v7598_v0 = vld [vmem:[#allocation2 + $0x3b4] sm:$0xf0]  ;;  %2526 = vmatpush.bf16.msrb.mxu2 %v6802_v39 }
 0x230   :  { %v1783_v24 = vadd.f32 %v1782_v61, %v1694_v25  ;;  %2008 = vmatmul.bf16.gmra.mxu0 %v8381_v36 }
 0x231   :  { %v3134_v37 = vmax.f32 %v1958_v34, 0.0  ;;  %2186 = vmatmul.bf16.gmra.mxu2 %v10369_v21  ;;  %v6930_v34 = vor.u32 %v7598_v0, %v6929_v16  ;;  %2348 = vmatpush.bf16.msrb.mxu0 %v6546_v42 }
 0x232   :  { %2097 = vmatmul.bf16.gmra.mxu1 %v10368_v1  ;;  %2275 = vmatmul.bf16.gmra.mxu3 %v10370_v38 }
 0x233   :  { %v8612_v23 = vpack.c.bf16 %v3134_v37, %v3130_v46  ;;  %2615 = vmatpush.bf16.msrb.mxu3 %v6930_v34  ;;  %v6673_v37 = vld [vmem:[#allocation2 + $0x1a8] sm:$0xf] }
 0x234   :  { %v1871_v52 = vpop.f32.mrf.mxu2 }
 0x235   :  { %10371 = vst [vmem:[#allocation42_spill] sm:$0xff] %v8612_v23  ;;  %v1960_v45 = vpop.f32.mrf.mxu3  ;;  %v1872_v18 = vadd.f32 %v1871_v52, %v1783_v24  ;;  %v1695_v61 = vpop.f32.mrf.mxu0  ;;  %v7534_v23 = vld [vmem:[#allocation2 + $0x1b4] sm:$0xf0] }
 0x236   :  { %v1696_v53 = vadd.f32 %v1695_v61, %v8519_v14  ;;  %v6674_v21 = vor.u32 %v7534_v23, %v6673_v37 }
 0x237   :  { %v1784_v25 = vpop.f32.mrf.mxu1  ;;  %v1961_v38 = vadd.f32 %v1960_v45, %v1872_v18 }
 0x238   :  { %v1785_v46 = vadd.f32 %v1784_v25, %v1696_v53  ;;  %2437 = vmatpush.bf16.msrb.mxu1 %v6674_v21  ;;  %v10372_v53 = vld [vmem:[#allocation11_spill] sm:$0xff] }
 0x239   :  { %v3138_v45 = vmax.f32 %v1961_v38, 0.0 }
 0x23c   :  { %v1873_v1 = vpop.f32.mrf.mxu2 }
 0x23d   :  { %v1962_v44 = vpop.f32.mrf.mxu3  ;;  %v1874_v3 = vadd.f32 %v1873_v1, %v1785_v46  ;;  %v1698_v36 = vpop.f32.mrf.mxu0 }
 0x23e   :  { %v1699_v52 = vadd.f32 %v1698_v36, %v8519_v14 }
 0x23f   :  { %v1787_v24 = vpop.f32.mrf.mxu1  ;;  %v1963_v11 = vadd.f32 %v1962_v44, %v1874_v3 }
 0x240   :  { %v1788_v20 = vadd.f32 %v1787_v24, %v1699_v52  ;;  %2013 = vmatmul.bf16.gmra.mxu0 %v8413_v31  ;;  %v10374_v52 = vld [vmem:[#allocation12_spill] sm:$0xff] }
 0x241   :  { %v3142_v39 = vmax.f32 %v1963_v11, 0.0  ;;  %2191 = vmatmul.bf16.gmra.mxu2 %v8194_v19  ;;  %v10375_v11 = vld [vmem:[#allocation13_spill] sm:$0xff] }
 0x242   :  { %2102 = vmatmul.bf16.gmra.mxu1 %v8415_v58  ;;  %2280 = vmatmul.bf16.gmra.mxu3 %v10372_v53 }
 0x243   :  { %v8620_v23 = vpack.c.bf16 %v3142_v39, %v3138_v45  ;;  %v10376_v39 = vld [vmem:[#allocation14_spill] sm:$0xff] }
 0x244   :  { %v1876_v21 = vpop.f32.mrf.mxu2 }
 0x245   :  { %10373 = vst [vmem:[#allocation43_spill] sm:$0xff] %v8620_v23  ;;  %v1965_v1 = vpop.f32.mrf.mxu3  ;;  %v1877_v16 = vadd.f32 %v1876_v21, %v1788_v20  ;;  %v1700_v0 = vpop.f32.mrf.mxu0  ;;  %v10377_v21 = vld [vmem:[#allocation15_spill] sm:$0xff] }
 0x246   :  { %v1701_v36 = vadd.f32 %v1700_v0, %v8519_v14  ;;  %v7562_v0 = vld [vmem:[#allocation2 + $0x294] sm:$0xf0] }
 0x247   :  { %v1789_v18 = vpop.f32.mrf.mxu1  ;;  %v1966_v61 = vadd.f32 %v1965_v1, %v1877_v16  ;;  %v6785_v16 = vld [vmem:[#allocation2 + $0x288] sm:$0xf] }
 0x248   :  { %v1790_v25 = vadd.f32 %v1789_v18, %v1701_v36  ;;  %v6529_v18 = vld [vmem:[#allocation2 + $0x88] sm:$0xf] }
 0x249   :  { %v3146_v20 = vmax.f32 %v1966_v61, 0.0 }
 0x24c   :  { %v1878_v42 = vpop.f32.mrf.mxu2 }
 0x24d   :  { %v1967_v34 = vpop.f32.mrf.mxu3  ;;  %v1879_v46 = vadd.f32 %v1878_v42, %v1790_v25  ;;  %v1703_v38 = vpop.f32.mrf.mxu0  ;;  %v6786_v42 = vor.u32 %v7562_v0, %v6785_v16 }
 0x24e   :  { %v1704_v44 = vadd.f32 %v1703_v38, %v8519_v14  ;;  %v7594_v38 = vld [vmem:[#allocation2 + $0x394] sm:$0xf0] }
 0x24f   :  { %v1792_v37 = vpop.f32.mrf.mxu1  ;;  %v1968_v3 = vadd.f32 %v1967_v34, %v1879_v46  ;;  %v7498_v34 = vld [vmem:[#allocation2 + $0x94] sm:$0xf0]  ;;  %v6913_v46 = vld [vmem:[#allocation2 + $0x388] sm:$0xf]  ;;  %2527 = vmatpush.bf16.msrb.mxu2 %v6786_v42 }
 0x250   :  { %v1793_v24 = vadd.f32 %v1792_v37, %v1704_v44  ;;  %2018 = vmatmul.bf16.gmra.mxu0 %v10374_v52  ;;  %v6530_v61 = vor.u32 %v7498_v34, %v6529_v18  ;;  %v10380_v42 = vld [vmem:[#allocation17_spill] sm:$0xff] }
 0x251   :  { %v3150_v45 = vmax.f32 %v1968_v3, 0.0  ;;  %2196 = vmatmul.bf16.gmra.mxu2 %v10376_v39  ;;  %v6914_v3 = vor.u32 %v7594_v38, %v6913_v46  ;;  %v10379_v46 = vld [vmem:[#allocation16_spill] sm:$0xff] }
 0x252   :  { %2107 = vmatmul.bf16.gmra.mxu1 %v10375_v11  ;;  %2285 = vmatmul.bf16.gmra.mxu3 %v10377_v21 }
 0x253   :  { %v8628_v1 = vpack.c.bf16 %v3150_v45, %v3146_v20  ;;  %2349 = vmatpush.bf16.msrb.mxu0 %v6530_v61  ;;  %2616 = vmatpush.bf16.msrb.mxu3 %v6914_v3  ;;  %v6657_v45 = vld [vmem:[#allocation2 + $0x188] sm:$0xf] }
 0x254   :  { %v1881_v36 = vpop.f32.mrf.mxu2 }
 0x255   :  { %10378 = vst [vmem:[#allocation44_spill] sm:$0xff] %v8628_v1  ;;  %v1970_v25 = vpop.f32.mrf.mxu3  ;;  %v1882_v37 = vadd.f32 %v1881_v36, %v1793_v24  ;;  %v1705_v44 = vpop.f32.mrf.mxu0  ;;  %v7530_v1 = vld [vmem:[#allocation2 + $0x194] sm:$0xf0] }
 0x256   :  { %v1706_v39 = vadd.f32 %v1705_v44, %v8519_v14  ;;  %v6658_v11 = vor.u32 %v7530_v1, %v6657_v45 }
 0x257   :  { %v1794_v23 = vpop.f32.mrf.mxu1  ;;  %v1971_v21 = vadd.f32 %v1970_v25, %v1882_v37 }
 0x258   :  { %v1795_v20 = vadd.f32 %v1794_v23, %v1706_v39  ;;  %2438 = vmatpush.bf16.msrb.mxu1 %v6658_v11  ;;  %v10381_v23 = vld [vmem:[#allocation18_spill] sm:$0xff]  ;;  %v10382_v39 = vld [vmem:[#allocation19_spill] sm:$0xff] }
 0x259   :  { %v3154_v25 = vmax.f32 %v1971_v21, 0.0 }
 0x25c   :  { %v1883_v52 = vpop.f32.mrf.mxu2 }
 0x25d   :  { %v1972_v16 = vpop.f32.mrf.mxu3  ;;  %v1884_v0 = vadd.f32 %v1883_v52, %v1795_v20  ;;  %v1708_v53 = vpop.f32.mrf.mxu0 }
 0x25e   :  { %v1709_v36 = vadd.f32 %v1708_v53, %v8519_v14 }
 0x25f   :  { %v1797_v24 = vpop.f32.mrf.mxu1  ;;  %v1973_v18 = vadd.f32 %v1972_v16, %v1884_v0 }
 0x260   :  { %v1798_v34 = vadd.f32 %v1797_v24, %v1709_v36  ;;  %2023 = vmatmul.bf16.gmra.mxu0 %v10379_v46 }
 0x261   :  { %v3158_v38 = vmax.f32 %v1973_v18, 0.0  ;;  %2201 = vmatmul.bf16.gmra.mxu2 %v10381_v23 }
 0x262   :  { %2112 = vmatmul.bf16.gmra.mxu1 %v10380_v42  ;;  %2290 = vmatmul.bf16.gmra.mxu3 %v10382_v39 }
 0x263   :  { %v8636_v1 = vpack.c.bf16 %v3158_v38, %v3154_v25  ;;  %v10384_v25 = vld [vmem:[#allocation20_spill] sm:$0xff]  ;;  %v10385_v38 = vld [vmem:[#allocation21_spill] sm:$0xff] }
 0x264   :  { %v1886_v11 = vpop.f32.mrf.mxu2 }
 0x265   :  { %10383 = vst [vmem:[#allocation45_spill] sm:$0xff] %v8636_v1  ;;  %v1975_v52 = vpop.f32.mrf.mxu3  ;;  %v1887_v37 = vadd.f32 %v1886_v11, %v1798_v34  ;;  %v1710_v44 = vpop.f32.mrf.mxu0  ;;  %v10386_v1 = vld [vmem:[#allocation22_spill] sm:$0xff] }
 0x266   :  { %v1711_v53 = vadd.f32 %v1710_v44, %v8519_v14  ;;  %v10387_v44 = vld [vmem:[#allocation23_spill] sm:$0xff] }
 0x267   :  { %v1799_v61 = vpop.f32.mrf.mxu1  ;;  %v1976_v3 = vadd.f32 %v1975_v52, %v1887_v37  ;;  %v6769_v37 = vld [vmem:[#allocation2 + $0x268] sm:$0xf] }
 0x268   :  { %v1800_v20 = vadd.f32 %v1799_v61, %v1711_v53  ;;  %v7558_v61 = vld [vmem:[#allocation2 + $0x274] sm:$0xf0]  ;;  %v6513_v53 = vld [vmem:[#allocation2 + $0x68] sm:$0xf] }
 0x269   :  { %v3162_v34 = vmax.f32 %v1976_v3, 0.0 }
 0x26c   :  { %v1888_v45 = vpop.f32.mrf.mxu2 }
 0x26d   :  { %v1977_v16 = vpop.f32.mrf.mxu3  ;;  %v1889_v0 = vadd.f32 %v1888_v45, %v1800_v20  ;;  %v1713_v21 = vpop.f32.mrf.mxu0 }
 0x26e   :  { %v1714_v36 = vadd.f32 %v1713_v21, %v8519_v14  ;;  %v6770_v21 = vor.u32 %v7558_v61, %v6769_v37 }
 0x26f   :  { %v1802_v24 = vpop.f32.mrf.mxu1  ;;  %v1978_v18 = vadd.f32 %v1977_v16, %v1889_v0  ;;  %v7494_v16 = vld [vmem:[#allocation2 + $0x74] sm:$0xf0]  ;;  %v6897_v0 = vld [vmem:[#allocation2 + $0x368] sm:$0xf] }
 0x270   :  { %v1803_v39 = vadd.f32 %v1802_v24, %v1714_v36  ;;  %2028 = vmatmul.bf16.gmra.mxu0 %v10384_v25  ;;  %v7590_v24 = vld [vmem:[#allocation2 + $0x374] sm:$0xf0]  ;;  %v6514_v3 = vor.u32 %v7494_v16, %v6513_v53  ;;  %2528 = vmatpush.bf16.msrb.mxu2 %v6770_v21 }
 0x271   :  { %v3166_v11 = vmax.f32 %v1978_v18, 0.0  ;;  %2206 = vmatmul.bf16.gmra.mxu2 %v10386_v1  ;;  %v6898_v18 = vor.u32 %v7590_v24, %v6897_v0 }
 0x272   :  { %2117 = vmatmul.bf16.gmra.mxu1 %v10385_v38  ;;  %2295 = vmatmul.bf16.gmra.mxu3 %v10387_v44 }
 0x273   :  { %v8644_v52 = vpack.c.bf16 %v3166_v11, %v3162_v34  ;;  %2350 = vmatpush.bf16.msrb.mxu0 %v6514_v3  ;;  %2617 = vmatpush.bf16.msrb.mxu3 %v6898_v18  ;;  %v6641_v11 = vld [vmem:[#allocation2 + $0x168] sm:$0xf] }
 0x274   :  { %v1891_v20 = vpop.f32.mrf.mxu2 }
 0x275   :  { %10388 = vst [vmem:[#allocation46_spill] sm:$0xff] %v8644_v52  ;;  %v1980_v45 = vpop.f32.mrf.mxu3  ;;  %v1892_v36 = vadd.f32 %v1891_v20, %v1803_v39  ;;  %v1715_v25 = vpop.f32.mrf.mxu0  ;;  %v7526_v52 = vld [vmem:[#allocation2 + $0x174] sm:$0xf0] }
 0x276   :  { %v1716_v1 = vadd.f32 %v1715_v25, %v8519_v14  ;;  %v6642_v23 = vor.u32 %v7526_v52, %v6641_v11  ;;  %v10389_v25 = vld [vmem:[#allocation24_spill] sm:$0xff] }
 0x277   :  { %v1804_v38 = vpop.f32.mrf.mxu1  ;;  %v1981_v44 = vadd.f32 %v1980_v45, %v1892_v36 }
 0x278   :  { %v1805_v34 = vadd.f32 %v1804_v38, %v1716_v1  ;;  %2439 = vmatpush.bf16.msrb.mxu1 %v6642_v23  ;;  %v10390_v1 = vld [vmem:[#allocation25_spill] sm:$0xff]  ;;  %v10391_v38 = vld [vmem:[#allocation26_spill] sm:$0xff] }
 0x279   :  { %v3170_v45 = vmax.f32 %v1981_v44, 0.0 }
 0x27c   :  { %v1893_v42 = vpop.f32.mrf.mxu2 }
 0x27d   :  { %v1982_v37 = vpop.f32.mrf.mxu3  ;;  %v1894_v61 = vadd.f32 %v1893_v42, %v1805_v34  ;;  %v1718_v46 = vpop.f32.mrf.mxu0  ;;  %v10393_v34 = vld [vmem:[#allocation33_spill] sm:$0xff] }
 0x27e   :  { %v1719_v20 = vadd.f32 %v1718_v46, %v8519_v14  ;;  %v8656_v11 = vperm.slane %v10393_v34, 1 }
 0x27f   :  { %v1807_v39 = vpop.f32.mrf.mxu1  ;;  %v1983_v53 = vadd.f32 %v1982_v37, %v1894_v61 }
 0x280   :  { %v1808_v16 = vadd.f32 %v1807_v39, %v1719_v20  ;;  %2033 = vmatmul.bf16.gmra.mxu0 %v8309_v33 }
 0x281   :  { %v3174_v21 = vmax.f32 %v1983_v53, 0.0  ;;  %2211 = vmatmul.bf16.gmra.mxu2 %v10390_v1 }
 0x282   :  { %2122 = vmatmul.bf16.gmra.mxu1 %v10389_v25  ;;  %2300 = vmatmul.bf16.gmra.mxu3 %v10391_v38 }
 0x283   :  { %v8652_v52 = vpack.c.bf16 %v3174_v21, %v3170_v45 }
 0x284   :  { %v1896_v23 = vpop.f32.mrf.mxu2 }
 0x285   :  { %10392 = vst [vmem:[#allocation47_spill] sm:$0xff] %v8652_v52  ;;  %v1985_v42 = vpop.f32.mrf.mxu3  ;;  %v1897_v0 = vadd.f32 %v1896_v23, %v1808_v16  ;;  %v1720_v24 = vpop.f32.mrf.mxu0  ;;  %v10394_v52 = vld [vmem:[#allocation27_spill] sm:$0xff]  ;;  %v10395_v16 = vld [vmem:[#allocation28_spill] sm:$0xff] }
 0x286   :  { %v1721_v46 = vadd.f32 %v1720_v24, %v8519_v14 }
 0x287   :  { %v1809_v36 = vpop.f32.mrf.mxu1  ;;  %v1986_v3 = vadd.f32 %v1985_v42, %v1897_v0  ;;  %v10396_v42 = vld [vmem:[#allocation29_spill] sm:$0xff]  ;;  %v10397_v0 = vld [vmem:[#allocation30_spill] sm:$0xff] }
 0x288   :  { %v1810_v18 = vadd.f32 %v1809_v36, %v1721_v46  ;;  %v6753_v36 = vld [vmem:[#allocation2 + $0x248] sm:$0xf]  ;;  %v7554_v46 = vld [vmem:[#allocation2 + $0x254] sm:$0xf0] }
 0x289   :  { %v3178_v23 = vmax.f32 %v1986_v3, 0.0 }
 0x28c   :  { %v1898_v44 = vpop.f32.mrf.mxu2 }
 0x28d   :  { %v1987_v37 = vpop.f32.mrf.mxu3  ;;  %v1899_v61 = vadd.f32 %v1898_v44, %v1810_v18  ;;  %v1999_v39 = vpop.f32.mrf.mxu0  ;;  %v6497_v18 = vld [vmem:[#allocation2 + $0x48] sm:$0xf] }
 0x28e   :  { %v2000_v53 = vadd.f32 %v1999_v39, %v8656_v11  ;;  %v6754_v39 = vor.u32 %v7554_v46, %v6753_v36 }
 0x28f   :  { %v2088_v20 = vpop.f32.mrf.mxu1  ;;  %v1988_v45 = vadd.f32 %v1987_v37, %v1899_v61  ;;  %v7490_v37 = vld [vmem:[#allocation2 + $0x54] sm:$0xf0]  ;;  %v6881_v61 = vld [vmem:[#allocation2 + $0x348] sm:$0xf] }
 0x290   :  { %v2089_v21 = vadd.f32 %v2088_v20, %v2000_v53  ;;  %2038 = vmatmul.bf16.gmra.mxu0 %v10394_v52  ;;  %v7586_v20 = vld [vmem:[#allocation2 + $0x354] sm:$0xf0]  ;;  %v6498_v3 = vor.u32 %v7490_v37, %v6497_v18  ;;  %2529 = vmatpush.bf16.msrb.mxu2 %v6754_v39 }
 0x291   :  { %v3182_v14 = vmax.f32 %v1988_v45, 0.0  ;;  %2216 = vmatmul.bf16.gmra.mxu2 %v10396_v42  ;;  %v6882_v45 = vor.u32 %v7586_v20, %v6881_v61 }
 0x292   :  { %2127 = vmatmul.bf16.gmra.mxu1 %v10395_v16  ;;  %2305 = vmatmul.bf16.gmra.mxu3 %v10397_v0 }
 0x293   :  { %v8663_v24 = vpack.c.bf16 %v3182_v14, %v3178_v23  ;;  %2351 = vmatpush.bf16.msrb.mxu0 %v6498_v3  ;;  %2618 = vmatpush.bf16.msrb.mxu3 %v6882_v45  ;;  %v6625_v14 = vld [vmem:[#allocation2 + $0x148] sm:$0xf] }
 0x294   :  { %v2177_v34 = vpop.f32.mrf.mxu2 }
 0x295   :  { %10398 = vst [vmem:[#allocation33_spill] sm:$0xff] %v8663_v24  ;;  %v2266_v44 = vpop.f32.mrf.mxu3  ;;  %v2178_v53 = vadd.f32 %v2177_v34, %v2089_v21  ;;  %v2001_v52 = vpop.f32.mrf.mxu0  ;;  %v7522_v24 = vld [vmem:[#allocation2 + $0x154] sm:$0xf0] }
 0x296   :  { %v2002_v42 = vadd.f32 %v2001_v52, %v8656_v11  ;;  %v6626_v38 = vor.u32 %v7522_v24, %v6625_v14 }
 0x297   :  { %v2090_v16 = vpop.f32.mrf.mxu1  ;;  %v2267_v0 = vadd.f32 %v2266_v44, %v2178_v53 }
 0x298   :  { %v2091_v23 = vadd.f32 %v2090_v16, %v2002_v42  ;;  %2440 = vmatpush.bf16.msrb.mxu1 %v6626_v38 }
 0x299   :  { %v3059_v52 = vmax.f32 %v2267_v0, 0.0 }
 0x29c   :  { %v2179_v1 = vpop.f32.mrf.mxu2 }
 0x29d   :  { %v2268_v36 = vpop.f32.mrf.mxu3  ;;  %v2180_v46 = vadd.f32 %v2179_v1, %v2091_v23  ;;  %v2004_v25 = vpop.f32.mrf.mxu0 }
 0x29e   :  { %v2005_v34 = vadd.f32 %v2004_v25, %v8656_v11 }
 0x29f   :  { %v2093_v21 = vpop.f32.mrf.mxu1  ;;  %v2269_v18 = vadd.f32 %v2268_v36, %v2180_v46 }
 0x2a0   :  { %v2094_v37 = vadd.f32 %v2093_v21, %v2005_v34  ;;  %2043 = vmatmul.bf16.gmra.mxu0 %v8373_v27 }
 0x2a1   :  { %v3063_v44 = vmax.f32 %v2269_v18, 0.0  ;;  %2221 = vmatmul.bf16.gmra.mxu2 %v8387_v60 }
 0x2a2   :  { %2132 = vmatmul.bf16.gmra.mxu1 %v8375_v26  ;;  %2310 = vmatmul.bf16.gmra.mxu3 %v8389_v35 }
 0x2a3   :  { %v8671_v16 = vpack.c.bf16 %v3063_v44, %v3059_v52  ;;  %v7550_v52 = vld [vmem:[#allocation2 + $0x234] sm:$0xf0]  ;;  %v6481_v44 = vld [vmem:[#allocation2 + $0x28] sm:$0xf] }
 0x2a4   :  { %v2182_v38 = vpop.f32.mrf.mxu2 }
 0x2a5   :  { %10399 = vst [vmem:[#allocation48_spill] sm:$0xff] %v8671_v16  ;;  %v2271_v1 = vpop.f32.mrf.mxu3  ;;  %v2183_v42 = vadd.f32 %v2182_v38, %v2094_v37  ;;  %v2006_v24 = vpop.f32.mrf.mxu0  ;;  %v6737_v37 = vld [vmem:[#allocation2 + $0x228] sm:$0xf] }
 0x2a6   :  { %v2007_v25 = vadd.f32 %v2006_v24, %v8656_v11  ;;  %v7486_v24 = vld [vmem:[#allocation2 + $0x34] sm:$0xf0] }
 0x2a7   :  { %v2095_v39 = vpop.f32.mrf.mxu1  ;;  %v2272_v61 = vadd.f32 %v2271_v1, %v2183_v42  ;;  %v6738_v42 = vor.u32 %v7550_v52, %v6737_v37 }
 0x2a8   :  { %v2096_v20 = vadd.f32 %v2095_v39, %v2007_v25  ;;  %v6865_v39 = vld [vmem:[#allocation2 + $0x328] sm:$0xf]  ;;  %v7582_v25 = vld [vmem:[#allocation2 + $0x334] sm:$0xf0] }
 0x2a9   :  { %v3067_v21 = vmax.f32 %v2272_v61, 0.0  ;;  %v6482_v61 = vor.u32 %v7486_v24, %v6481_v44  ;;  %2530 = vmatpush.bf16.msrb.mxu2 %v6738_v42 }
 0x2ab   :  { %2352 = vmatpush.bf16.msrb.mxu0 %v6482_v61 }
 0x2ac   :  { %v2184_v53 = vpop.f32.mrf.mxu2 }
 0x2ad   :  { %v2273_v3 = vpop.f32.mrf.mxu3  ;;  %v2185_v45 = vadd.f32 %v2184_v53, %v2096_v20  ;;  %v2009_v0 = vpop.f32.mrf.mxu0 }
 0x2ae   :  { %v2010_v14 = vadd.f32 %v2009_v0, %v8656_v11 }
 0x2af   :  { %v2098_v23 = vpop.f32.mrf.mxu1  ;;  %v2274_v36 = vadd.f32 %v2273_v3, %v2185_v45  ;;  %v6866_v45 = vor.u32 %v7582_v25, %v6865_v39 }
 0x2b0   :  { %v2099_v46 = vadd.f32 %v2098_v23, %v2010_v14  ;;  %2048 = vmatmul.bf16.gmra.mxu0 %v8405_v62 }
 0x2b1   :  { %v3071_v34 = vmax.f32 %v2274_v36, 0.0  ;;  %2226 = vmatmul.bf16.gmra.mxu2 %v8419_v10  ;;  %2619 = vmatpush.bf16.msrb.mxu3 %v6866_v45  ;;  %v6609_v36 = vld [vmem:[#allocation2 + $0x128] sm:$0xf] }
 0x2b2   :  { %2137 = vmatmul.bf16.gmra.mxu1 %v8407_v50  ;;  %2315 = vmatmul.bf16.gmra.mxu3 %v8421_v43 }
 0x2b3   :  { %v8679_v18 = vpack.c.bf16 %v3071_v34, %v3067_v21  ;;  %v7518_v21 = vld [vmem:[#allocation2 + $0x134] sm:$0xf0] }
 0x2b4   :  { %v2187_v38 = vpop.f32.mrf.mxu2  ;;  %v6610_v34 = vor.u32 %v7518_v21, %v6609_v36 }
 0x2b5   :  { %10400 = vst [vmem:[#allocation49_spill] sm:$0xff] %v8679_v18  ;;  %v2276_v1 = vpop.f32.mrf.mxu3  ;;  %v2188_v20 = vadd.f32 %v2187_v38, %v2099_v46  ;;  %v2011_v53 = vpop.f32.mrf.mxu0 }
 0x2b6   :  { %v2012_v0 = vadd.f32 %v2011_v53, %v8656_v11  ;;  %2441 = vmatpush.bf16.msrb.mxu1 %v6610_v34 }
 0x2b7   :  { %v2100_v3 = vpop.f32.mrf.mxu1  ;;  %v2277_v23 = vadd.f32 %v2276_v1, %v2188_v20 }
 0x2b8   :  { %v2101_v14 = vadd.f32 %v2100_v3, %v2012_v0 }
 0x2b9   :  { %v3075_v1 = vmax.f32 %v2277_v23, 0.0 }
 0x2bc   :  { %v2189_v18 = vpop.f32.mrf.mxu2 }
 0x2bd   :  { %v2278_v37 = vpop.f32.mrf.mxu3  ;;  %v2190_v52 = vadd.f32 %v2189_v18, %v2101_v14  ;;  %v2014_v16 = vpop.f32.mrf.mxu0 }
 0x2be   :  { %v2015_v38 = vadd.f32 %v2014_v16, %v8656_v11 }
 0x2bf   :  { %v2103_v46 = vpop.f32.mrf.mxu1  ;;  %v2279_v44 = vadd.f32 %v2278_v37, %v2190_v52 }
 0x2c0   :  { %v2104_v24 = vadd.f32 %v2103_v46, %v2015_v38  ;;  %2053 = vmatmul.bf16.gmra.mxu0 %v8429_v5 }
 0x2c1   :  { %v3079_v42 = vmax.f32 %v2279_v44, 0.0  ;;  %2231 = vmatmul.bf16.gmra.mxu2 %v8439_v40 }
 0x2c2   :  { %2142 = vmatmul.bf16.gmra.mxu1 %v8431_v13  ;;  %2320 = vmatmul.bf16.gmra.mxu3 %v8441_v49 }
 0x2c3   :  { %v8687_v39 = vpack.c.bf16 %v3079_v42, %v3075_v1  ;;  %v7546_v1 = vld [vmem:[#allocation2 + $0x214] sm:$0xf0]  ;;  %v6465_v42 = vld [vmem:[#allocation2 + $0x8] sm:$0xf] }
 0x2c4   :  { %v2192_v25 = vpop.f32.mrf.mxu2 }
 0x2c5   :  { %10401 = vst [vmem:[#allocation50_spill] sm:$0xff] %v8687_v39  ;;  %v2281_v18 = vpop.f32.mrf.mxu3  ;;  %v2193_v20 = vadd.f32 %v2192_v25, %v2104_v24  ;;  %v2016_v53 = vpop.f32.mrf.mxu0  ;;  %v6721_v24 = vld [vmem:[#allocation2 + $0x208] sm:$0xf] }
 0x2c6   :  { %v2017_v16 = vadd.f32 %v2016_v53, %v8656_v11  ;;  %v7482_v53 = vld [vmem:[#allocation2 + $0x14] sm:$0xf0] }
 0x2c7   :  { %v2105_v3 = vpop.f32.mrf.mxu1  ;;  %v2282_v61 = vadd.f32 %v2281_v18, %v2193_v20  ;;  %v6722_v20 = vor.u32 %v7546_v1, %v6721_v24 }
 0x2c8   :  { %v2106_v45 = vadd.f32 %v2105_v3, %v2017_v16  ;;  %v6849_v3 = vld [vmem:[#allocation2 + $0x308] sm:$0xf]  ;;  %v7578_v16 = vld [vmem:[#allocation2 + $0x314] sm:$0xf0] }
 0x2c9   :  { %v3083_v46 = vmax.f32 %v2282_v61, 0.0  ;;  %v6466_v61 = vor.u32 %v7482_v53, %v6465_v42  ;;  %2531 = vmatpush.bf16.msrb.mxu2 %v6722_v20 }
 0x2cb   :  { %2353 = vmatpush.bf16.msrb.mxu0 %v6466_v61 }
 0x2cc   :  { %v2194_v0 = vpop.f32.mrf.mxu2 }
 0x2cd   :  { %v2283_v14 = vpop.f32.mrf.mxu3  ;;  %v2195_v36 = vadd.f32 %v2194_v0, %v2106_v45  ;;  %v2019_v23 = vpop.f32.mrf.mxu0 }
 0x2ce   :  { %v2020_v34 = vadd.f32 %v2019_v23, %v8656_v11 }
 0x2cf   :  { %v2108_v21 = vpop.f32.mrf.mxu1  ;;  %v2284_v37 = vadd.f32 %v2283_v14, %v2195_v36  ;;  %v6850_v36 = vor.u32 %v7578_v16, %v6849_v3 }
 0x2d0   :  { %v2109_v52 = vadd.f32 %v2108_v21, %v2020_v34  ;;  %2058 = vmatmul.bf16.gmra.mxu0 %v8449_v9 }
 0x2d1   :  { %v3087_v38 = vmax.f32 %v2284_v37, 0.0  ;;  %2236 = vmatmul.bf16.gmra.mxu2 %v8459_v22  ;;  %2620 = vmatpush.bf16.msrb.mxu3 %v6850_v36  ;;  %v6593_v37 = vld [vmem:[#allocation2 + $0x108] sm:$0xf] }
 0x2d2   :  { %2147 = vmatmul.bf16.gmra.mxu1 %v8451_v32  ;;  %2325 = vmatmul.bf16.gmra.mxu3 %v8461_v59 }
 0x2d3   :  { %v8695_v44 = vpack.c.bf16 %v3087_v38, %v3083_v46  ;;  %v7514_v46 = vld [vmem:[#allocation2 + $0x114] sm:$0xf0] }
 0x2d4   :  { %v2197_v25 = vpop.f32.mrf.mxu2  ;;  %v6594_v38 = vor.u32 %v7514_v46, %v6593_v37 }
 0x2d5   :  { %10402 = vst [vmem:[#allocation51_spill] sm:$0xff] %v8695_v44  ;;  %v2286_v18 = vpop.f32.mrf.mxu3  ;;  %v2198_v45 = vadd.f32 %v2197_v25, %v2109_v52  ;;  %v2021_v0 = vpop.f32.mrf.mxu0 }
 0x2d6   :  { %v2022_v23 = vadd.f32 %v2021_v0, %v8656_v11  ;;  %2442 = vmatpush.bf16.msrb.mxu1 %v6594_v38 }
 0x2d7   :  { %v2110_v14 = vpop.f32.mrf.mxu1  ;;  %v2287_v21 = vadd.f32 %v2286_v18, %v2198_v45 }
 0x2d8   :  { %v2111_v34 = vadd.f32 %v2110_v14, %v2022_v23 }
 0x2d9   :  { %v3091_v18 = vmax.f32 %v2287_v21, 0.0 }
 0x2dc   :  { %v2199_v44 = vpop.f32.mrf.mxu2 }
 0x2dd   :  { %v2288_v24 = vpop.f32.mrf.mxu3  ;;  %v2200_v1 = vadd.f32 %v2199_v44, %v2111_v34  ;;  %v2024_v39 = vpop.f32.mrf.mxu0 }
 0x2de   :  { %v2025_v25 = vadd.f32 %v2024_v39, %v8656_v11 }
 0x2df   :  { %v2113_v52 = vpop.f32.mrf.mxu1  ;;  %v2289_v42 = vadd.f32 %v2288_v24, %v2200_v1 }
 0x2e0   :  { %v2114_v53 = vadd.f32 %v2113_v52, %v2025_v25  ;;  %2063 = vmatmul.bf16.gmra.mxu0 %v8469_v48 }
 0x2e1   :  { %v3095_v20 = vmax.f32 %v2289_v42, 0.0  ;;  %2241 = vmatmul.bf16.gmra.mxu2 %v8479_v6 }
 0x2e2   :  { %2152 = vmatmul.bf16.gmra.mxu1 %v8471_v2  ;;  %2330 = vmatmul.bf16.gmra.mxu3 %v8481_v28 }
 0x2e3   :  { %v8703_v3 = vpack.c.bf16 %v3095_v20, %v3091_v18  ;;  %v6835_v18 = vld [vmem:[#allocation2 + $0x2f8] sm:$0xf0]  ;;  %v7508_v20 = vld [vmem:[#allocation2 + $0xec] sm:$0xf] }
 0x2e4   :  { %v2202_v16 = vpop.f32.mrf.mxu2 }
 0x2e5   :  { %10403 = vst [vmem:[#allocation52_spill] sm:$0xff] %v8703_v3  ;;  %v2291_v44 = vpop.f32.mrf.mxu3  ;;  %v2203_v45 = vadd.f32 %v2202_v16, %v2114_v53  ;;  %v2026_v0 = vpop.f32.mrf.mxu0  ;;  %v7572_v53 = vld [vmem:[#allocation2 + $0x2ec] sm:$0xf] }
 0x2e6   :  { %v2027_v39 = vadd.f32 %v2026_v0, %v8656_v11  ;;  %v6579_v0 = vld [vmem:[#allocation2 + $0xf8] sm:$0xf0] }
 0x2e7   :  { %v2115_v14 = vpop.f32.mrf.mxu1  ;;  %v2292_v61 = vadd.f32 %v2291_v44, %v2203_v45  ;;  %v6838_v45 = vor.u32 %v7572_v53, %v6835_v18 }
 0x2e8   :  { %v2116_v36 = vadd.f32 %v2115_v14, %v2027_v39  ;;  %v7604_v14 = vld [vmem:[#allocation2 + $0x3ec] sm:$0xf]  ;;  %v6963_v39 = vld [vmem:[#allocation2 + $0x3f8] sm:$0xf0] }
 0x2e9   :  { %v3099_v52 = vmax.f32 %v2292_v61, 0.0  ;;  %v6582_v61 = vor.u32 %v7508_v20, %v6579_v0  ;;  %2880 = vmatpush.bf16.msra.mxu2 %v6838_v45 }
 0x2eb   :  { %2702 = vmatpush.bf16.msra.mxu0 %v6582_v61 }
 0x2ec   :  { %v2204_v23 = vpop.f32.mrf.mxu2 }
 0x2ed   :  { %v2293_v34 = vpop.f32.mrf.mxu3  ;;  %v2205_v37 = vadd.f32 %v2204_v23, %v2116_v36  ;;  %v2029_v21 = vpop.f32.mrf.mxu0 }
 0x2ee   :  { %v2030_v38 = vadd.f32 %v2029_v21, %v8656_v11 }
 0x2ef   :  { %v2118_v46 = vpop.f32.mrf.mxu1  ;;  %v2294_v24 = vadd.f32 %v2293_v34, %v2205_v37  ;;  %v6966_v37 = vor.u32 %v7604_v14, %v6963_v39 }
 0x2f0   :  { %v2119_v1 = vadd.f32 %v2118_v46, %v2030_v38  ;;  %2068 = vmatmul.bf16.gmra.mxu0 %v8489_v55 }
 0x2f1   :  { %v3103_v25 = vmax.f32 %v2294_v24, 0.0  ;;  %2246 = vmatmul.bf16.gmra.mxu2 %v8499_v15  ;;  %2969 = vmatpush.bf16.msra.mxu3 %v6966_v37  ;;  %v7540_v24 = vld [vmem:[#allocation2 + $0x1ec] sm:$0xf] }
 0x2f2   :  { %2157 = vmatmul.bf16.gmra.mxu1 %v8491_v41  ;;  %2335 = vmatmul.bf16.gmra.mxu3 %v8501_v51 }
 0x2f3   :  { %v8711_v42 = vpack.c.bf16 %v3103_v25, %v3099_v52  ;;  %v6707_v52 = vld [vmem:[#allocation2 + $0x1f8] sm:$0xf0] }
 0x2f4   :  { %v2207_v16 = vpop.f32.mrf.mxu2  ;;  %v6710_v25 = vor.u32 %v7540_v24, %v6707_v52 }
 0x2f5   :  { %10404 = vst [vmem:[#allocation53_spill] sm:$0xff] %v8711_v42  ;;  %v2296_v44 = vpop.f32.mrf.mxu3  ;;  %v2208_v36 = vadd.f32 %v2207_v16, %v2119_v1  ;;  %v2031_v23 = vpop.f32.mrf.mxu0 }
 0x2f6   :  { %v2032_v21 = vadd.f32 %v2031_v23, %v8656_v11  ;;  %2791 = vmatpush.bf16.msra.mxu1 %v6710_v25 }
 0x2f7   :  { %v2120_v34 = vpop.f32.mrf.mxu1  ;;  %v2297_v46 = vadd.f32 %v2296_v44, %v2208_v36 }
 0x2f8   :  { %v2121_v38 = vadd.f32 %v2120_v34, %v2032_v21 }
 0x2f9   :  { %v3107_v44 = vmax.f32 %v2297_v46, 0.0 }
 0x2fc   :  { %v2209_v42 = vpop.f32.mrf.mxu2 }
 0x2fd   :  { %v2298_v53 = vpop.f32.mrf.mxu3  ;;  %v2210_v18 = vadd.f32 %v2209_v42, %v2121_v38  ;;  %v2034_v3 = vpop.f32.mrf.mxu0 }
 0x2fe   :  { %v2035_v16 = vadd.f32 %v2034_v3, %v8656_v11 }
 0x2ff   :  { %v2123_v1 = vpop.f32.mrf.mxu1  ;;  %v2299_v20 = vadd.f32 %v2298_v53, %v2210_v18 }
 0x300   :  { %v2124_v0 = vadd.f32 %v2123_v1, %v2035_v16  ;;  %2073 = vmatmul.bf16.gmra.mxu0 %v8514_v47 }
 0x301   :  { %v3111_v45 = vmax.f32 %v2299_v20, 0.0  ;;  %2251 = vmatmul.bf16.gmra.mxu2 %v8528_v29 }
 0x302   :  { %2162 = vmatmul.bf16.gmra.mxu1 %v8516_v54  ;;  %2340 = vmatmul.bf16.gmra.mxu3 %v8530_v30 }
 0x303   :  { %v8719_v14 = vpack.c.bf16 %v3111_v45, %v3107_v44  ;;  %v6819_v44 = vld [vmem:[#allocation2 + $0x2d8] sm:$0xf0]  ;;  %v7504_v45 = vld [vmem:[#allocation2 + $0xcc] sm:$0xf] }
 0x304   :  { %v2212_v39 = vpop.f32.mrf.mxu2 }
 0x305   :  { %10405 = vst [vmem:[#allocation54_spill] sm:$0xff] %v8719_v14  ;;  %v2301_v42 = vpop.f32.mrf.mxu3  ;;  %v2213_v36 = vadd.f32 %v2212_v39, %v2124_v0  ;;  %v2036_v23 = vpop.f32.mrf.mxu0  ;;  %v7568_v0 = vld [vmem:[#allocation2 + $0x2cc] sm:$0xf] }
 0x306   :  { %v2037_v3 = vadd.f32 %v2036_v23, %v8656_v11  ;;  %v6563_v23 = vld [vmem:[#allocation2 + $0xd8] sm:$0xf0] }
 0x307   :  { %v2125_v34 = vpop.f32.mrf.mxu1  ;;  %v2302_v61 = vadd.f32 %v2301_v42, %v2213_v36  ;;  %v6822_v36 = vor.u32 %v7568_v0, %v6819_v44 }
 0x308   :  { %v2126_v37 = vadd.f32 %v2125_v34, %v2037_v3  ;;  %v7600_v34 = vld [vmem:[#allocation2 + $0x3cc] sm:$0xf]  ;;  %v6947_v3 = vld [vmem:[#allocation2 + $0x3d8] sm:$0xf0] }
 0x309   :  { %v3115_v1 = vmax.f32 %v2302_v61, 0.0  ;;  %v6566_v61 = vor.u32 %v7504_v45, %v6563_v23  ;;  %2881 = vmatpush.bf16.msra.mxu2 %v6822_v36 }
 0x30b   :  { %2703 = vmatpush.bf16.msra.mxu0 %v6566_v61 }
 0x30c   :  { %v2214_v21 = vpop.f32.mrf.mxu2 }
 0x30d   :  { %v2303_v38 = vpop.f32.mrf.mxu3  ;;  %v2215_v24 = vadd.f32 %v2214_v21, %v2126_v37  ;;  %v2039_v46 = vpop.f32.mrf.mxu0 }
 0x30e   :  { %v2040_v25 = vadd.f32 %v2039_v46, %v8656_v11 }
 0x30f   :  { %v2128_v52 = vpop.f32.mrf.mxu1  ;;  %v2304_v53 = vadd.f32 %v2303_v38, %v2215_v24  ;;  %v6950_v24 = vor.u32 %v7600_v34, %v6947_v3 }
 0x310   :  { %v2129_v18 = vadd.f32 %v2128_v52, %v2040_v25  ;;  %2354 = vmatmul.bf16.vlgmr.msrb.gmra.mxu0 %v8317_v4 }
 0x311   :  { %v3119_v16 = vmax.f32 %v2304_v53, 0.0  ;;  %2532 = vmatmul.bf16.vlgmr.msrb.gmra.mxu2 %v8102_v56  ;;  %2970 = vmatpush.bf16.msra.mxu3 %v6950_v24  ;;  %v7536_v53 = vld [vmem:[#allocation2 + $0x1cc] sm:$0xf] }
 0x312   :  { %2443 = vmatmul.bf16.vlgmr.msrb.gmra.mxu1 %v8319_v7  ;;  %2621 = vmatmul.bf16.vlgmr.msrb.gmra.mxu3 %v8104_v57 }
 0x313   :  { %v8727_v20 = vpack.c.bf16 %v3119_v16, %v3115_v1  ;;  %v6691_v1 = vld [vmem:[#allocation2 + $0x1d8] sm:$0xf0] }
 0x314   :  { %v2217_v39 = vpop.f32.mrf.mxu2  ;;  %v6694_v16 = vor.u32 %v7536_v53, %v6691_v1 }
 0x315   :  { %10406 = vst [vmem:[#allocation55_spill] sm:$0xff] %v8727_v20  ;;  %v2306_v42 = vpop.f32.mrf.mxu3  ;;  %v2218_v37 = vadd.f32 %v2217_v39, %v2129_v18  ;;  %v2041_v21 = vpop.f32.mrf.mxu0 }
 0x316   :  { %v2042_v46 = vadd.f32 %v2041_v21, %v8656_v11  ;;  %2792 = vmatpush.bf16.msra.mxu1 %v6694_v16 }
 0x317   :  { %v2130_v38 = vpop.f32.mrf.mxu1  ;;  %v2307_v52 = vadd.f32 %v2306_v42, %v2218_v37 }
 0x318   :  { %v2131_v25 = vadd.f32 %v2130_v38, %v2042_v46 }
 0x319   :  { %v3123_v42 = vmax.f32 %v2307_v52, 0.0 }
 0x31c   :  { %v2219_v20 = vpop.f32.mrf.mxu2 }
 0x31d   :  { %v2308_v0 = vpop.f32.mrf.mxu3  ;;  %v2220_v44 = vadd.f32 %v2219_v20, %v2131_v25  ;;  %v2044_v14 = vpop.f32.mrf.mxu0 }
 0x31e   :  { %v2045_v39 = vadd.f32 %v2044_v14, %v8656_v11 }
 0x31f   :  { %v2133_v18 = vpop.f32.mrf.mxu1  ;;  %v2309_v45 = vadd.f32 %v2308_v0, %v2220_v44 }
 0x320   :  { %v2134_v23 = vadd.f32 %v2133_v18, %v2045_v39  ;;  %2359 = vmatmul.bf16.gmra.mxu0 %v8349_v8  ;;  %v10408_v18 = vld [vmem:[#allocation31_spill] sm:$0xff]  ;;  %v10409_v39 = vld [vmem:[#allocation32_spill] sm:$0xff] }
 0x321   :  { %v3127_v36 = vmax.f32 %v2309_v45, 0.0  ;;  %2537 = vmatmul.bf16.gmra.mxu2 %v8132_v12 }
 0x322   :  { %2448 = vmatmul.bf16.gmra.mxu1 %v8351_v63  ;;  %2626 = vmatmul.bf16.gmra.mxu3 %v10366_v17 }
 0x323   :  { %v8735_v34 = vpack.c.bf16 %v3127_v36, %v3123_v42  ;;  %v10410_v42 = vld [vmem:[#allocation9_spill] sm:$0xff]  ;;  %v10411_v36 = vld [vmem:[#allocation10_spill] sm:$0xff] }
 0x324   :  { %v2222_v3 = vpop.f32.mrf.mxu2 }
 0x325   :  { %10407 = vst [vmem:[#allocation56_spill] sm:$0xff] %v8735_v34  ;;  %v2311_v20 = vpop.f32.mrf.mxu3  ;;  %v2223_v37 = vadd.f32 %v2222_v3, %v2134_v23  ;;  %v2046_v21 = vpop.f32.mrf.mxu0 }
 0x326   :  { %v2047_v14 = vadd.f32 %v2046_v21, %v8656_v11  ;;  %v7500_v21 = vld [vmem:[#allocation2 + $0xac] sm:$0xf] }
 0x327   :  { %v2135_v38 = vpop.f32.mrf.mxu1  ;;  %v2312_v61 = vadd.f32 %v2311_v20, %v2223_v37  ;;  %v7564_v20 = vld [vmem:[#allocation2 + $0x2ac] sm:$0xf]  ;;  %v6803_v37 = vld [vmem:[#allocation2 + $0x2b8] sm:$0xf0] }
 0x328   :  { %v2136_v24 = vadd.f32 %v2135_v38, %v2047_v14 }
 0x329   :  { %v3131_v45 = vmax.f32 %v2312_v61, 0.0 }
 0x32c   :  { %v2224_v46 = vpop.f32.mrf.mxu2 }
 0x32d   :  { %v2313_v25 = vpop.f32.mrf.mxu3  ;;  %v2225_v53 = vadd.f32 %v2224_v46, %v2136_v24  ;;  %v2049_v52 = vpop.f32.mrf.mxu0  ;;  %v6806_v24 = vor.u32 %v7564_v20, %v6803_v37  ;;  %v6547_v46 = vld [vmem:[#allocation2 + $0xb8] sm:$0xf0] }
 0x32e   :  { %v2050_v16 = vadd.f32 %v2049_v52, %v8656_v11  ;;  %v6550_v61 = vor.u32 %v7500_v21, %v6547_v46 }
 0x32f   :  { %v2138_v1 = vpop.f32.mrf.mxu1  ;;  %v2314_v0 = vadd.f32 %v2313_v25, %v2225_v53  ;;  %v7596_v25 = vld [vmem:[#allocation2 + $0x3ac] sm:$0xf]  ;;  %v6931_v53 = vld [vmem:[#allocation2 + $0x3b8] sm:$0xf0]  ;;  %2882 = vmatpush.bf16.msra.mxu2 %v6806_v24 }
 0x330   :  { %v2139_v44 = vadd.f32 %v2138_v1, %v2050_v16  ;;  %2364 = vmatmul.bf16.gmra.mxu0 %v10408_v18 }
 0x331   :  { %v3135_v23 = vmax.f32 %v2314_v0, 0.0  ;;  %2542 = vmatmul.bf16.gmra.mxu2 %v10410_v42  ;;  %v6934_v0 = vor.u32 %v7596_v25, %v6931_v53  ;;  %2704 = vmatpush.bf16.msra.mxu0 %v6550_v61 }
 0x332   :  { %2453 = vmatmul.bf16.gmra.mxu1 %v10409_v39  ;;  %2631 = vmatmul.bf16.gmra.mxu3 %v10411_v36 }
 0x333   :  { %v8743_v3 = vpack.c.bf16 %v3135_v23, %v3131_v45  ;;  %2971 = vmatpush.bf16.msra.mxu3 %v6934_v0  ;;  %v7532_v23 = vld [vmem:[#allocation2 + $0x1ac] sm:$0xf] }
 0x334   :  { %v2227_v38 = vpop.f32.mrf.mxu2 }
 0x335   :  { %10412 = vst [vmem:[#allocation57_spill] sm:$0xff] %v8743_v3  ;;  %v2316_v14 = vpop.f32.mrf.mxu3  ;;  %v2228_v52 = vadd.f32 %v2227_v38, %v2139_v44  ;;  %v2051_v1 = vpop.f32.mrf.mxu0  ;;  %v6675_v3 = vld [vmem:[#allocation2 + $0x1b8] sm:$0xf0] }
 0x336   :  { %v2052_v34 = vadd.f32 %v2051_v1, %v8656_v11  ;;  %v6678_v42 = vor.u32 %v7532_v23, %v6675_v3 }
 0x337   :  { %v2140_v16 = vpop.f32.mrf.mxu1  ;;  %v2317_v36 = vadd.f32 %v2316_v14, %v2228_v52 }
 0x338   :  { %v2141_v45 = vadd.f32 %v2140_v16, %v2052_v34  ;;  %2793 = vmatpush.bf16.msra.mxu1 %v6678_v42  ;;  %v10413_v34 = vld [vmem:[#allocation11_spill] sm:$0xff] }
 0x339   :  { %v3139_v14 = vmax.f32 %v2317_v36, 0.0 }
 0x33c   :  { %v2229_v39 = vpop.f32.mrf.mxu2 }
 0x33d   :  { %v2318_v20 = vpop.f32.mrf.mxu3  ;;  %v2230_v37 = vadd.f32 %v2229_v39, %v2141_v45  ;;  %v2054_v18 = vpop.f32.mrf.mxu0 }
 0x33e   :  { %v2055_v38 = vadd.f32 %v2054_v18, %v8656_v11 }
 0x33f   :  { %v2143_v44 = vpop.f32.mrf.mxu1  ;;  %v2319_v21 = vadd.f32 %v2318_v20, %v2230_v37 }
 0x340   :  { %v2144_v46 = vadd.f32 %v2143_v44, %v2055_v38  ;;  %2369 = vmatmul.bf16.gmra.mxu0 %v8413_v31  ;;  %v10415_v38 = vld [vmem:[#allocation12_spill] sm:$0xff] }
 0x341   :  { %v3143_v24 = vmax.f32 %v2319_v21, 0.0  ;;  %2547 = vmatmul.bf16.gmra.mxu2 %v8194_v19  ;;  %v10416_v21 = vld [vmem:[#allocation13_spill] sm:$0xff] }
 0x342   :  { %2458 = vmatmul.bf16.gmra.mxu1 %v8415_v58  ;;  %2636 = vmatmul.bf16.gmra.mxu3 %v10413_v34 }
 0x343   :  { %v8751_v3 = vpack.c.bf16 %v3143_v24, %v3139_v14  ;;  %v10417_v24 = vld [vmem:[#allocation14_spill] sm:$0xff] }
 0x344   :  { %v2232_v42 = vpop.f32.mrf.mxu2 }
 0x345   :  { %10414 = vst [vmem:[#allocation58_spill] sm:$0xff] %v8751_v3  ;;  %v2321_v39 = vpop.f32.mrf.mxu3  ;;  %v2233_v25 = vadd.f32 %v2232_v42, %v2144_v46  ;;  %v2056_v53 = vpop.f32.mrf.mxu0  ;;  %v10418_v42 = vld [vmem:[#allocation15_spill] sm:$0xff] }
 0x346   :  { %v2057_v18 = vadd.f32 %v2056_v53, %v8656_v11  ;;  %v6787_v53 = vld [vmem:[#allocation2 + $0x298] sm:$0xf0] }
 0x347   :  { %v2145_v52 = vpop.f32.mrf.mxu1  ;;  %v2322_v1 = vadd.f32 %v2321_v39, %v2233_v25  ;;  %v7560_v25 = vld [vmem:[#allocation2 + $0x28c] sm:$0xf] }
 0x348   :  { %v2146_v16 = vadd.f32 %v2145_v52, %v2057_v18  ;;  %v7496_v52 = vld [vmem:[#allocation2 + $0x8c] sm:$0xf] }
 0x349   :  { %v3147_v46 = vmax.f32 %v2322_v1, 0.0 }
 0x34c   :  { %v2234_v61 = vpop.f32.mrf.mxu2 }
 0x34d   :  { %v2323_v0 = vpop.f32.mrf.mxu3  ;;  %v2235_v45 = vadd.f32 %v2234_v61, %v2146_v16  ;;  %v2059_v36 = vpop.f32.mrf.mxu0  ;;  %v6790_v61 = vor.u32 %v7560_v25, %v6787_v53 }
 0x34e   :  { %v2060_v20 = vadd.f32 %v2059_v36, %v8656_v11  ;;  %v6915_v36 = vld [vmem:[#allocation2 + $0x398] sm:$0xf0] }
 0x34f   :  { %v2148_v23 = vpop.f32.mrf.mxu1  ;;  %v2324_v37 = vadd.f32 %v2323_v0, %v2235_v45  ;;  %v6531_v0 = vld [vmem:[#allocation2 + $0x98] sm:$0xf0]  ;;  %v7592_v45 = vld [vmem:[#allocation2 + $0x38c] sm:$0xf]  ;;  %2883 = vmatpush.bf16.msra.mxu2 %v6790_v61 }
 0x350   :  { %v2149_v44 = vadd.f32 %v2148_v23, %v2060_v20  ;;  %2374 = vmatmul.bf16.gmra.mxu0 %v10415_v38  ;;  %v6534_v1 = vor.u32 %v7496_v52, %v6531_v0  ;;  %v10421_v61 = vld [vmem:[#allocation17_spill] sm:$0xff] }
 0x351   :  { %v3151_v14 = vmax.f32 %v2324_v37, 0.0  ;;  %2552 = vmatmul.bf16.gmra.mxu2 %v10417_v24  ;;  %v6918_v37 = vor.u32 %v7592_v45, %v6915_v36  ;;  %v10420_v45 = vld [vmem:[#allocation16_spill] sm:$0xff] }
 0x352   :  { %2463 = vmatmul.bf16.gmra.mxu1 %v10416_v21  ;;  %2641 = vmatmul.bf16.gmra.mxu3 %v10418_v42 }
 0x353   :  { %v8759_v39 = vpack.c.bf16 %v3151_v14, %v3147_v46  ;;  %2705 = vmatpush.bf16.msra.mxu0 %v6534_v1  ;;  %2972 = vmatpush.bf16.msra.mxu3 %v6918_v37  ;;  %v7528_v14 = vld [vmem:[#allocation2 + $0x18c] sm:$0xf] }
 0x354   :  { %v2237_v18 = vpop.f32.mrf.mxu2 }
 0x355   :  { %10419 = vst [vmem:[#allocation59_spill] sm:$0xff] %v8759_v39  ;;  %v2326_v16 = vpop.f32.mrf.mxu3  ;;  %v2238_v23 = vadd.f32 %v2237_v18, %v2149_v44  ;;  %v2061_v20 = vpop.f32.mrf.mxu0  ;;  %v6659_v39 = vld [vmem:[#allocation2 + $0x198] sm:$0xf0] }
 0x356   :  { %v2062_v24 = vadd.f32 %v2061_v20, %v8656_v11  ;;  %v6662_v21 = vor.u32 %v7528_v14, %v6659_v39 }
 0x357   :  { %v2150_v3 = vpop.f32.mrf.mxu1  ;;  %v2327_v42 = vadd.f32 %v2326_v16, %v2238_v23 }
 0x358   :  { %v2151_v46 = vadd.f32 %v2150_v3, %v2062_v24  ;;  %2794 = vmatpush.bf16.msra.mxu1 %v6662_v21  ;;  %v10422_v3 = vld [vmem:[#allocation18_spill] sm:$0xff]  ;;  %v10423_v24 = vld [vmem:[#allocation19_spill] sm:$0xff] }
 0x359   :  { %v3155_v16 = vmax.f32 %v2327_v42, 0.0 }
 0x35c   :  { %v2239_v38 = vpop.f32.mrf.mxu2 }
 0x35d   :  { %v2328_v25 = vpop.f32.mrf.mxu3  ;;  %v2240_v53 = vadd.f32 %v2239_v38, %v2151_v46  ;;  %v2064_v34 = vpop.f32.mrf.mxu0 }
 0x35e   :  { %v2065_v18 = vadd.f32 %v2064_v34, %v8656_v11 }
 0x35f   :  { %v2153_v44 = vpop.f32.mrf.mxu1  ;;  %v2329_v52 = vadd.f32 %v2328_v25, %v2240_v53 }
 0x360   :  { %v2154_v0 = vadd.f32 %v2153_v44, %v2065_v18  ;;  %2379 = vmatmul.bf16.gmra.mxu0 %v10420_v45 }
 0x361   :  { %v3159_v36 = vmax.f32 %v2329_v52, 0.0  ;;  %2557 = vmatmul.bf16.gmra.mxu2 %v10422_v3 }
 0x362   :  { %2468 = vmatmul.bf16.gmra.mxu1 %v10421_v61  ;;  %2646 = vmatmul.bf16.gmra.mxu3 %v10423_v24 }
 0x363   :  { %v8767_v39 = vpack.c.bf16 %v3159_v36, %v3155_v16  ;;  %v10425_v16 = vld [vmem:[#allocation20_spill] sm:$0xff]  ;;  %v10426_v36 = vld [vmem:[#allocation21_spill] sm:$0xff] }
 0x364   :  { %v2242_v21 = vpop.f32.mrf.mxu2 }
 0x365   :  { %10424 = vst [vmem:[#allocation60_spill] sm:$0xff] %v8767_v39  ;;  %v2331_v38 = vpop.f32.mrf.mxu3  ;;  %v2243_v23 = vadd.f32 %v2242_v21, %v2154_v0  ;;  %v2066_v20 = vpop.f32.mrf.mxu0  ;;  %v10427_v39 = vld [vmem:[#allocation22_spill] sm:$0xff] }
 0x366   :  { %v2067_v34 = vadd.f32 %v2066_v20, %v8656_v11  ;;  %v10428_v20 = vld [vmem:[#allocation23_spill] sm:$0xff] }
 0x367   :  { %v2155_v1 = vpop.f32.mrf.mxu1  ;;  %v2332_v37 = vadd.f32 %v2331_v38, %v2243_v23  ;;  %v7556_v23 = vld [vmem:[#allocation2 + $0x26c] sm:$0xf] }
 0x368   :  { %v2156_v46 = vadd.f32 %v2155_v1, %v2067_v34  ;;  %v6771_v1 = vld [vmem:[#allocation2 + $0x278] sm:$0xf0]  ;;  %v7492_v34 = vld [vmem:[#allocation2 + $0x6c] sm:$0xf] }
 0x369   :  { %v3163_v0 = vmax.f32 %v2332_v37, 0.0 }
 0x36c   :  { %v2244_v14 = vpop.f32.mrf.mxu2 }
 0x36d   :  { %v2333_v25 = vpop.f32.mrf.mxu3  ;;  %v2245_v53 = vadd.f32 %v2244_v14, %v2156_v46  ;;  %v2069_v42 = vpop.f32.mrf.mxu0 }
 0x36e   :  { %v2070_v18 = vadd.f32 %v2069_v42, %v8656_v11  ;;  %v6774_v42 = vor.u32 %v7556_v23, %v6771_v1 }
 0x36f   :  { %v2158_v44 = vpop.f32.mrf.mxu1  ;;  %v2334_v52 = vadd.f32 %v2333_v25, %v2245_v53  ;;  %v6515_v25 = vld [vmem:[#allocation2 + $0x78] sm:$0xf0]  ;;  %v7588_v53 = vld [vmem:[#allocation2 + $0x36c] sm:$0xf] }
 0x370   :  { %v2159_v24 = vadd.f32 %v2158_v44, %v2070_v18  ;;  %2384 = vmatmul.bf16.gmra.mxu0 %v10425_v16  ;;  %v6899_v44 = vld [vmem:[#allocation2 + $0x378] sm:$0xf0]  ;;  %v6518_v37 = vor.u32 %v7492_v34, %v6515_v25  ;;  %2884 = vmatpush.bf16.msra.mxu2 %v6774_v42 }
 0x371   :  { %v3167_v21 = vmax.f32 %v2334_v52, 0.0  ;;  %2562 = vmatmul.bf16.gmra.mxu2 %v10427_v39  ;;  %v6902_v52 = vor.u32 %v7588_v53, %v6899_v44 }
 0x372   :  { %2473 = vmatmul.bf16.gmra.mxu1 %v10426_v36  ;;  %2651 = vmatmul.bf16.gmra.mxu3 %v10428_v20 }
 0x373   :  { %v8775_v38 = vpack.c.bf16 %v3167_v21, %v3163_v0  ;;  %2706 = vmatpush.bf16.msra.mxu0 %v6518_v37  ;;  %2973 = vmatpush.bf16.msra.mxu3 %v6902_v52  ;;  %v7524_v21 = vld [vmem:[#allocation2 + $0x16c] sm:$0xf] }
 0x374   :  { %v2247_v46 = vpop.f32.mrf.mxu2 }
 0x375   :  { %10429 = vst [vmem:[#allocation61_spill] sm:$0xff] %v8775_v38  ;;  %v2336_v14 = vpop.f32.mrf.mxu3  ;;  %v2248_v18 = vadd.f32 %v2247_v46, %v2159_v24  ;;  %v2071_v16 = vpop.f32.mrf.mxu0  ;;  %v6643_v38 = vld [vmem:[#allocation2 + $0x178] sm:$0xf0] }
 0x376   :  { %v2072_v39 = vadd.f32 %v2071_v16, %v8656_v11  ;;  %v6646_v3 = vor.u32 %v7524_v21, %v6643_v38  ;;  %v10430_v16 = vld [vmem:[#allocation24_spill] sm:$0xff] }
 0x377   :  { %v2160_v36 = vpop.f32.mrf.mxu1  ;;  %v2337_v20 = vadd.f32 %v2336_v14, %v2248_v18 }
 0x378   :  { %v2161_v0 = vadd.f32 %v2160_v36, %v2072_v39  ;;  %2795 = vmatpush.bf16.msra.mxu1 %v6646_v3  ;;  %v10431_v39 = vld [vmem:[#allocation25_spill] sm:$0xff]  ;;  %v10432_v36 = vld [vmem:[#allocation26_spill] sm:$0xff] }
 0x379   :  { %v3171_v14 = vmax.f32 %v2337_v20, 0.0  ;;  %v8789_v20 = vld [vmem:[%s10205_s4] sm:$0xf] }
 0x37a   :  { %10434 = vst [vmem:[#allocation63_spill] sm:$0xff] %v8789_v20 }
 0x37c   :  { %v2249_v61 = vpop.f32.mrf.mxu2 }
 0x37d   :  { %v2338_v23 = vpop.f32.mrf.mxu3  ;;  %v2250_v1 = vadd.f32 %v2249_v61, %v2161_v0  ;;  %v2074_v45 = vpop.f32.mrf.mxu0  ;;  %v8792_v0 = vperm.slane %v8789_v20, 2 }
 0x37e   :  { %v2075_v46 = vadd.f32 %v2074_v45, %v8656_v11 }
 0x37f   :  { %v2163_v24 = vpop.f32.mrf.mxu1  ;;  %v2339_v34 = vadd.f32 %v2338_v23, %v2250_v1 }
 0x380   :  { %v2164_v25 = vadd.f32 %v2163_v24, %v2075_v46  ;;  %2389 = vmatmul.bf16.gmra.mxu0 %v8309_v33 }
 0x381   :  { %v3175_v42 = vmax.f32 %v2339_v34, 0.0  ;;  %2567 = vmatmul.bf16.gmra.mxu2 %v10431_v39 }
 0x382   :  { %2478 = vmatmul.bf16.gmra.mxu1 %v10430_v16  ;;  %2656 = vmatmul.bf16.gmra.mxu3 %v10432_v36 }
 0x383   :  { %v8783_v38 = vpack.c.bf16 %v3175_v42, %v3171_v14  ;;  %v10436_v42 = vld [vmem:[#allocation28_spill] sm:$0xff] }
 0x384   :  { %v2252_v3 = vpop.f32.mrf.mxu2 }
 0x385   :  { %10433 = vst [vmem:[#allocation62_spill] sm:$0xff] %v8783_v38  ;;  %v2341_v61 = vpop.f32.mrf.mxu3  ;;  %v2253_v53 = vadd.f32 %v2252_v3, %v2164_v25  ;;  %v2076_v44 = vpop.f32.mrf.mxu0 }
 0x386   :  { %v2077_v45 = vadd.f32 %v2076_v44, %v8656_v11  ;;  %v10435_v11 = vld [vmem:[#allocation27_spill] sm:$0xff]  ;;  %v10438_v44 = vld [vmem:[#allocation30_spill] sm:$0xff] }
 0x387   :  { %v2165_v18 = vpop.f32.mrf.mxu1  ;;  %v2342_v37 = vadd.f32 %v2341_v61, %v2253_v53  ;;  %v10437_v53 = vld [vmem:[#allocation29_spill] sm:$0xff] }
 0x388   :  { %v2166_v52 = vadd.f32 %v2165_v18, %v2077_v45  ;;  %v7552_v45 = vld [vmem:[#allocation2 + $0x24c] sm:$0xf] }
 0x389   :  { %v3179_v3 = vmax.f32 %v2342_v37, 0.0 }
 0x38c   :  { %v2254_v21 = vpop.f32.mrf.mxu2 }
 0x38d   :  { %v2343_v23 = vpop.f32.mrf.mxu3  ;;  %v2255_v1 = vadd.f32 %v2254_v21, %v2166_v52  ;;  %v2355_v24 = vpop.f32.mrf.mxu0  ;;  %v6755_v52 = vld [vmem:[#allocation2 + $0x258] sm:$0xf0]  ;;  %v7488_v21 = vld [vmem:[#allocation2 + $0x4c] sm:$0xf] }
 0x38e   :  { %v2356_v34 = vadd.f32 %v2355_v24, %v8792_v0  ;;  %v6758_v24 = vor.u32 %v7552_v45, %v6755_v52 }
 0x38f   :  { %v2444_v46 = vpop.f32.mrf.mxu1  ;;  %v2344_v25 = vadd.f32 %v2343_v23, %v2255_v1  ;;  %v6499_v23 = vld [vmem:[#allocation2 + $0x58] sm:$0xf0]  ;;  %v7584_v1 = vld [vmem:[#allocation2 + $0x34c] sm:$0xf] }
 0x390   :  { %v2445_v14 = vadd.f32 %v2444_v46, %v2356_v34  ;;  %2394 = vmatmul.bf16.gmra.mxu0 %v10435_v11  ;;  %v6883_v46 = vld [vmem:[#allocation2 + $0x358] sm:$0xf0]  ;;  %v6502_v37 = vor.u32 %v7488_v21, %v6499_v23  ;;  %2885 = vmatpush.bf16.msra.mxu2 %v6758_v24 }
 0x391   :  { %v3183_v61 = vmax.f32 %v2344_v25, 0.0  ;;  %2572 = vmatmul.bf16.gmra.mxu2 %v10437_v53  ;;  %v6886_v25 = vor.u32 %v7584_v1, %v6883_v46 }
 0x392   :  { %2483 = vmatmul.bf16.gmra.mxu1 %v10436_v42  ;;  %2661 = vmatmul.bf16.gmra.mxu3 %v10438_v44 }
 0x393   :  { %v8799_v18 = vpack.c.bf16 %v3183_v61, %v3179_v3  ;;  %2707 = vmatpush.bf16.msra.mxu0 %v6502_v37  ;;  %2974 = vmatpush.bf16.msra.mxu3 %v6886_v25  ;;  %v7520_v61 = vld [vmem:[#allocation2 + $0x14c] sm:$0xf] }
 0x394   :  { %v2533_v38 = vpop.f32.mrf.mxu2 }
 0x395   :  { %10439 = vst [vmem:[#allocation64_spill] sm:$0xff] %v8799_v18  ;;  %v2622_v20 = vpop.f32.mrf.mxu3  ;;  %v2534_v34 = vadd.f32 %v2533_v38, %v2445_v14  ;;  %v2357_v11 = vpop.f32.mrf.mxu0  ;;  %v6627_v18 = vld [vmem:[#allocation2 + $0x158] sm:$0xf0] }
 0x396   :  { %v2358_v53 = vadd.f32 %v2357_v11, %v8792_v0  ;;  %v6630_v36 = vor.u32 %v7520_v61, %v6627_v18 }
 0x397   :  { %v2446_v42 = vpop.f32.mrf.mxu1  ;;  %v2623_v44 = vadd.f32 %v2622_v20, %v2534_v34 }
 0x398   :  { %v2447_v3 = vadd.f32 %v2446_v42, %v2358_v53  ;;  %2796 = vmatpush.bf16.msra.mxu1 %v6630_v36 }
 0x399   :  { %v3060_v20 = vmax.f32 %v2623_v44, 0.0 }
 0x39c   :  { %v2535_v39 = vpop.f32.mrf.mxu2 }
 0x39d   :  { %v2624_v45 = vpop.f32.mrf.mxu3  ;;  %v2536_v52 = vadd.f32 %v2535_v39, %v2447_v3  ;;  %v2360_v16 = vpop.f32.mrf.mxu0 }
 0x39e   :  { %v2361_v14 = vadd.f32 %v2360_v16, %v8792_v0 }
 0x39f   :  { %v2449_v38 = vpop.f32.mrf.mxu1  ;;  %v2625_v21 = vadd.f32 %v2624_v45, %v2536_v52 }
 0x3a0   :  { %v2450_v23 = vadd.f32 %v2449_v38, %v2361_v14  ;;  %2399 = vmatmul.bf16.gmra.mxu0 %v8373_v27 }
 0x3a1   :  { %v3064_v11 = vmax.f32 %v2625_v21, 0.0  ;;  %2577 = vmatmul.bf16.gmra.mxu2 %v8387_v60 }
 0x3a2   :  { %2488 = vmatmul.bf16.gmra.mxu1 %v8375_v26  ;;  %2666 = vmatmul.bf16.gmra.mxu3 %v8389_v35 }
 0x3a3   :  { %v8807_v42 = vpack.c.bf16 %v3064_v11, %v3060_v20  ;;  %v6739_v20 = vld [vmem:[#allocation2 + $0x238] sm:$0xf0]  ;;  %v7484_v11 = vld [vmem:[#allocation2 + $0x2c] sm:$0xf] }
 0x3a4   :  { %v2538_v36 = vpop.f32.mrf.mxu2 }
 0x3a5   :  { %10440 = vst [vmem:[#allocation65_spill] sm:$0xff] %v8807_v42  ;;  %v2627_v39 = vpop.f32.mrf.mxu3  ;;  %v2539_v53 = vadd.f32 %v2538_v36, %v2450_v23  ;;  %v2362_v18 = vpop.f32.mrf.mxu0  ;;  %v7548_v23 = vld [vmem:[#allocation2 + $0x22c] sm:$0xf] }
 0x3a6   :  { %v2363_v16 = vadd.f32 %v2362_v18, %v8792_v0  ;;  %v6483_v18 = vld [vmem:[#allocation2 + $0x38] sm:$0xf0] }
 0x3a7   :  { %v2451_v24 = vpop.f32.mrf.mxu1  ;;  %v2628_v1 = vadd.f32 %v2627_v39, %v2539_v53  ;;  %v6742_v53 = vor.u32 %v7548_v23, %v6739_v20 }
 0x3a8   :  { %v2452_v46 = vadd.f32 %v2451_v24, %v2363_v16  ;;  %v7580_v24 = vld [vmem:[#allocation2 + $0x32c] sm:$0xf]  ;;  %v6867_v16 = vld [vmem:[#allocation2 + $0x338] sm:$0xf0] }
 0x3a9   :  { %v3068_v38 = vmax.f32 %v2628_v1, 0.0  ;;  %v6486_v1 = vor.u32 %v7484_v11, %v6483_v18  ;;  %2886 = vmatpush.bf16.msra.mxu2 %v6742_v53 }
 0x3ab   :  { %2708 = vmatpush.bf16.msra.mxu0 %v6486_v1 }
 0x3ac   :  { %v2540_v34 = vpop.f32.mrf.mxu2 }
 0x3ad   :  { %v2629_v37 = vpop.f32.mrf.mxu3  ;;  %v2541_v25 = vadd.f32 %v2540_v34, %v2452_v46  ;;  %v2365_v44 = vpop.f32.mrf.mxu0 }
 0x3ae   :  { %v2366_v61 = vadd.f32 %v2365_v44, %v8792_v0 }
 0x3af   :  { %v2454_v3 = vpop.f32.mrf.mxu1  ;;  %v2630_v45 = vadd.f32 %v2629_v37, %v2541_v25  ;;  %v6870_v25 = vor.u32 %v7580_v24, %v6867_v16 }
 0x3b0   :  { %v2455_v52 = vadd.f32 %v2454_v3, %v2366_v61  ;;  %2404 = vmatmul.bf16.gmra.mxu0 %v8405_v62 }
 0x3b1   :  { %v3072_v14 = vmax.f32 %v2630_v45, 0.0  ;;  %2582 = vmatmul.bf16.gmra.mxu2 %v8419_v10  ;;  %2975 = vmatpush.bf16.msra.mxu3 %v6870_v25  ;;  %v7516_v45 = vld [vmem:[#allocation2 + $0x12c] sm:$0xf] }
 0x3b2   :  { %2493 = vmatmul.bf16.gmra.mxu1 %v8407_v50  ;;  %2671 = vmatmul.bf16.gmra.mxu3 %v8421_v43 }
 0x3b3   :  { %v8815_v21 = vpack.c.bf16 %v3072_v14, %v3068_v38  ;;  %v6611_v38 = vld [vmem:[#allocation2 + $0x138] sm:$0xf0] }
 0x3b4   :  { %v2543_v36 = vpop.f32.mrf.mxu2  ;;  %v6614_v14 = vor.u32 %v7516_v45, %v6611_v38 }
 0x3b5   :  { %10441 = vst [vmem:[#allocation66_spill] sm:$0xff] %v8815_v21  ;;  %v2632_v39 = vpop.f32.mrf.mxu3  ;;  %v2544_v46 = vadd.f32 %v2543_v36, %v2455_v52  ;;  %v2367_v34 = vpop.f32.mrf.mxu0 }
 0x3b6   :  { %v2368_v44 = vadd.f32 %v2367_v34, %v8792_v0  ;;  %2797 = vmatpush.bf16.msra.mxu1 %v6614_v14 }
 0x3b7   :  { %v2456_v37 = vpop.f32.mrf.mxu1  ;;  %v2633_v3 = vadd.f32 %v2632_v39, %v2544_v46 }
 0x3b8   :  { %v2457_v61 = vadd.f32 %v2456_v37, %v2368_v44 }
 0x3b9   :  { %v3076_v39 = vmax.f32 %v2633_v3, 0.0 }
 0x3bc   :  { %v2545_v21 = vpop.f32.mrf.mxu2 }
 0x3bd   :  { %v2634_v23 = vpop.f32.mrf.mxu3  ;;  %v2546_v20 = vadd.f32 %v2545_v21, %v2457_v61  ;;  %v2370_v42 = vpop.f32.mrf.mxu0 }
 0x3be   :  { %v2371_v36 = vadd.f32 %v2370_v42, %v8792_v0 }
 0x3bf   :  { %v2459_v52 = vpop.f32.mrf.mxu1  ;;  %v2635_v11 = vadd.f32 %v2634_v23, %v2546_v20 }
 0x3c0   :  { %v2460_v18 = vadd.f32 %v2459_v52, %v2371_v36  ;;  %2409 = vmatmul.bf16.gmra.mxu0 %v8429_v5 }
 0x3c1   :  { %v3080_v53 = vmax.f32 %v2635_v11, 0.0  ;;  %2587 = vmatmul.bf16.gmra.mxu2 %v8439_v40 }
 0x3c2   :  { %2498 = vmatmul.bf16.gmra.mxu1 %v8431_v13  ;;  %2676 = vmatmul.bf16.gmra.mxu3 %v8441_v49 }
 0x3c3   :  { %v8823_v24 = vpack.c.bf16 %v3080_v53, %v3076_v39  ;;  %v6723_v39 = vld [vmem:[#allocation2 + $0x218] sm:$0xf0]  ;;  %v7480_v53 = vld [vmem:[#allocation2 + $0xc] sm:$0xf] }
 0x3c4   :  { %v2548_v16 = vpop.f32.mrf.mxu2 }
 0x3c5   :  { %10442 = vst [vmem:[#allocation67_spill] sm:$0xff] %v8823_v24  ;;  %v2637_v21 = vpop.f32.mrf.mxu3  ;;  %v2549_v46 = vadd.f32 %v2548_v16, %v2460_v18  ;;  %v2372_v34 = vpop.f32.mrf.mxu0  ;;  %v7544_v18 = vld [vmem:[#allocation2 + $0x20c] sm:$0xf] }
 0x3c6   :  { %v2373_v42 = vadd.f32 %v2372_v34, %v8792_v0  ;;  %v6467_v34 = vld [vmem:[#allocation2 + $0x18] sm:$0xf0] }
 0x3c7   :  { %v2461_v37 = vpop.f32.mrf.mxu1  ;;  %v2638_v1 = vadd.f32 %v2637_v21, %v2549_v46  ;;  %v6726_v46 = vor.u32 %v7544_v18, %v6723_v39 }
 0x3c8   :  { %v2462_v25 = vadd.f32 %v2461_v37, %v2373_v42  ;;  %v7576_v37 = vld [vmem:[#allocation2 + $0x30c] sm:$0xf]  ;;  %v6851_v42 = vld [vmem:[#allocation2 + $0x318] sm:$0xf0] }
 0x3c9   :  { %v3084_v52 = vmax.f32 %v2638_v1, 0.0  ;;  %v6470_v1 = vor.u32 %v7480_v53, %v6467_v34  ;;  %2887 = vmatpush.bf16.msra.mxu2 %v6726_v46 }
 0x3cb   :  { %2709 = vmatpush.bf16.msra.mxu0 %v6470_v1 }
 0x3cc   :  { %v2550_v44 = vpop.f32.mrf.mxu2 }
 0x3cd   :  { %v2639_v61 = vpop.f32.mrf.mxu3  ;;  %v2551_v45 = vadd.f32 %v2550_v44, %v2462_v25  ;;  %v2375_v3 = vpop.f32.mrf.mxu0 }
 0x3ce   :  { %v2376_v14 = vadd.f32 %v2375_v3, %v8792_v0 }
 0x3cf   :  { %v2464_v38 = vpop.f32.mrf.mxu1  ;;  %v2640_v23 = vadd.f32 %v2639_v61, %v2551_v45  ;;  %v6854_v45 = vor.u32 %v7576_v37, %v6851_v42 }
 0x3d0   :  { %v2465_v20 = vadd.f32 %v2464_v38, %v2376_v14  ;;  %2414 = vmatmul.bf16.gmra.mxu0 %v8449_v9 }
 0x3d1   :  { %v3088_v36 = vmax.f32 %v2640_v23, 0.0  ;;  %2592 = vmatmul.bf16.gmra.mxu2 %v8459_v22  ;;  %2976 = vmatpush.bf16.msra.mxu3 %v6854_v45  ;;  %v7512_v23 = vld [vmem:[#allocation2 + $0x10c] sm:$0xf] }
 0x3d2   :  { %2503 = vmatmul.bf16.gmra.mxu1 %v8451_v32  ;;  %2681 = vmatmul.bf16.gmra.mxu3 %v8461_v59 }
 0x3d3   :  { %v8831_v11 = vpack.c.bf16 %v3088_v36, %v3084_v52  ;;  %v6595_v52 = vld [vmem:[#allocation2 + $0x118] sm:$0xf0] }
 0x3d4   :  { %v2553_v16 = vpop.f32.mrf.mxu2  ;;  %v6598_v36 = vor.u32 %v7512_v23, %v6595_v52 }
 0x3d5   :  { %10443 = vst [vmem:[#allocation68_spill] sm:$0xff] %v8831_v11  ;;  %v2642_v21 = vpop.f32.mrf.mxu3  ;;  %v2554_v25 = vadd.f32 %v2553_v16, %v2465_v20  ;;  %v2377_v44 = vpop.f32.mrf.mxu0 }
 0x3d6   :  { %v2378_v3 = vadd.f32 %v2377_v44, %v8792_v0  ;;  %2798 = vmatpush.bf16.msra.mxu1 %v6598_v36 }
 0x3d7   :  { %v2466_v61 = vpop.f32.mrf.mxu1  ;;  %v2643_v38 = vadd.f32 %v2642_v21, %v2554_v25 }
 0x3d8   :  { %v2467_v14 = vadd.f32 %v2466_v61, %v2378_v3 }
 0x3d9   :  { %v3092_v21 = vmax.f32 %v2643_v38, 0.0 }
 0x3dc   :  { %v2555_v11 = vpop.f32.mrf.mxu2 }
 0x3dd   :  { %v2644_v18 = vpop.f32.mrf.mxu3  ;;  %v2556_v39 = vadd.f32 %v2555_v11, %v2467_v14  ;;  %v2380_v24 = vpop.f32.mrf.mxu0 }
 0x3de   :  { %v2381_v16 = vadd.f32 %v2380_v24, %v8792_v0 }
 0x3df   :  { %v2469_v20 = vpop.f32.mrf.mxu1  ;;  %v2645_v53 = vadd.f32 %v2644_v18, %v2556_v39 }
 0x3e0   :  { %v2470_v34 = vadd.f32 %v2469_v20, %v2381_v16  ;;  %2419 = vmatmul.bf16.gmra.mxu0 %v8469_v48 }
 0x3e1   :  { %v3096_v46 = vmax.f32 %v2645_v53, 0.0  ;;  %2597 = vmatmul.bf16.gmra.mxu2 %v8479_v6 }
 0x3e2   :  { %2508 = vmatmul.bf16.gmra.mxu1 %v8471_v2  ;;  %2686 = vmatmul.bf16.gmra.mxu3 %v8481_v28 }
 0x3e3   :  { %v8839_v37 = vpack.c.bf16 %v3096_v46, %v3092_v21  ;;  %v7701_v21 = vld [vmem:[#allocation4 + $0x2ec] sm:$0xf0]  ;;  %v7081_v46 = vld [vmem:[#allocation4 + $0xe0] sm:$0xf] }
 0x3e4   :  { %v2558_v42 = vpop.f32.mrf.mxu2 }
 0x3e5   :  { %10444 = vst [vmem:[#allocation69_spill] sm:$0xff] %v8839_v37  ;;  %v2647_v11 = vpop.f32.mrf.mxu3  ;;  %v2559_v25 = vadd.f32 %v2558_v42, %v2470_v34  ;;  %v2382_v44 = vpop.f32.mrf.mxu0  ;;  %v7337_v34 = vld [vmem:[#allocation4 + $0x2e0] sm:$0xf] }
 0x3e6   :  { %v2383_v24 = vadd.f32 %v2382_v44, %v8792_v0  ;;  %v7637_v44 = vld [vmem:[#allocation4 + $0xec] sm:$0xf0] }
 0x3e7   :  { %v2471_v61 = vpop.f32.mrf.mxu1  ;;  %v2648_v1 = vadd.f32 %v2647_v11, %v2559_v25  ;;  %v7338_v25 = vor.u32 %v7701_v21, %v7337_v34 }
 0x3e8   :  { %v2472_v45 = vadd.f32 %v2471_v61, %v2383_v24  ;;  %v7465_v61 = vld [vmem:[#allocation4 + $0x3e0] sm:$0xf]  ;;  %v7733_v24 = vld [vmem:[#allocation4 + $0x3ec] sm:$0xf0] }
 0x3e9   :  { %v3100_v20 = vmax.f32 %v2648_v1, 0.0  ;;  %v7082_v1 = vor.u32 %v7637_v44, %v7081_v46  ;;  %4206 = vmatpush.bf16.msrb.mxu2 %v7338_v25 }
 0x3eb   :  { %4028 = vmatpush.bf16.msrb.mxu0 %v7082_v1 }
 0x3ec   :  { %v2560_v3 = vpop.f32.mrf.mxu2 }
 0x3ed   :  { %v2649_v14 = vpop.f32.mrf.mxu3  ;;  %v2561_v23 = vadd.f32 %v2560_v3, %v2472_v45  ;;  %v2385_v38 = vpop.f32.mrf.mxu0 }
 0x3ee   :  { %v2386_v36 = vadd.f32 %v2385_v38, %v8792_v0 }
 0x3ef   :  { %v2474_v52 = vpop.f32.mrf.mxu1  ;;  %v2650_v18 = vadd.f32 %v2649_v14, %v2561_v23  ;;  %v7466_v23 = vor.u32 %v7733_v24, %v7465_v61 }
 0x3f0   :  { %v2475_v39 = vadd.f32 %v2474_v52, %v2386_v36  ;;  %2424 = vmatmul.bf16.gmra.mxu0 %v8489_v55 }
 0x3f1   :  { %v3104_v16 = vmax.f32 %v2650_v18, 0.0  ;;  %2602 = vmatmul.bf16.gmra.mxu2 %v8499_v15  ;;  %4295 = vmatpush.bf16.msrb.mxu3 %v7466_v23  ;;  %v7209_v18 = vld [vmem:[#allocation4 + $0x1e0] sm:$0xf] }
 0x3f2   :  { %2513 = vmatmul.bf16.gmra.mxu1 %v8491_v41  ;;  %2691 = vmatmul.bf16.gmra.mxu3 %v8501_v51 }
 0x3f3   :  { %v8847_v53 = vpack.c.bf16 %v3104_v16, %v3100_v20  ;;  %v7669_v20 = vld [vmem:[#allocation4 + $0x1ec] sm:$0xf0] }
 0x3f4   :  { %v2563_v42 = vpop.f32.mrf.mxu2  ;;  %v7210_v16 = vor.u32 %v7669_v20, %v7209_v18 }
 0x3f5   :  { %10445 = vst [vmem:[#allocation70_spill] sm:$0xff] %v8847_v53  ;;  %v2652_v11 = vpop.f32.mrf.mxu3  ;;  %v2564_v45 = vadd.f32 %v2563_v42, %v2475_v39  ;;  %v2387_v3 = vpop.f32.mrf.mxu0 }
 0x3f6   :  { %v2388_v38 = vadd.f32 %v2387_v3, %v8792_v0  ;;  %4117 = vmatpush.bf16.msrb.mxu1 %v7210_v16 }
 0x3f7   :  { %v2476_v14 = vpop.f32.mrf.mxu1  ;;  %v2653_v52 = vadd.f32 %v2652_v11, %v2564_v45 }
 0x3f8   :  { %v2477_v36 = vadd.f32 %v2476_v14, %v2388_v38 }
 0x3f9   :  { %v3108_v11 = vmax.f32 %v2653_v52, 0.0 }
 0x3fc   :  { %v2565_v53 = vpop.f32.mrf.mxu2 }
 0x3fd   :  { %v2654_v34 = vpop.f32.mrf.mxu3  ;;  %v2566_v21 = vadd.f32 %v2565_v53, %v2477_v36  ;;  %v2390_v37 = vpop.f32.mrf.mxu0 }
 0x3fe   :  { %v2391_v42 = vadd.f32 %v2390_v37, %v8792_v0 }
 0x3ff   :  { %v2479_v39 = vpop.f32.mrf.mxu1  ;;  %v2655_v46 = vadd.f32 %v2654_v34, %v2566_v21 }
 0x400   :  { %v2480_v44 = vadd.f32 %v2479_v39, %v2391_v42  ;;  %2429 = vmatmul.bf16.gmra.mxu0 %v8514_v47 }
 0x401   :  { %v3112_v25 = vmax.f32 %v2655_v46, 0.0  ;;  %2607 = vmatmul.bf16.gmra.mxu2 %v8528_v29 }
 0x402   :  { %2518 = vmatmul.bf16.gmra.mxu1 %v8516_v54  ;;  %2696 = vmatmul.bf16.gmra.mxu3 %v8530_v30 }
 0x403   :  { %v8855_v61 = vpack.c.bf16 %v3112_v25, %v3108_v11  ;;  %v7697_v11 = vld [vmem:[#allocation4 + $0x2cc] sm:$0xf0]  ;;  %v7065_v25 = vld [vmem:[#allocation4 + $0xc0] sm:$0xf] }
 0x404   :  { %v2568_v24 = vpop.f32.mrf.mxu2 }
 0x405   :  { %10446 = vst [vmem:[#allocation71_spill] sm:$0xff] %v8855_v61  ;;  %v2657_v53 = vpop.f32.mrf.mxu3  ;;  %v2569_v45 = vadd.f32 %v2568_v24, %v2480_v44  ;;  %v2392_v3 = vpop.f32.mrf.mxu0  ;;  %v7321_v44 = vld [vmem:[#allocation4 + $0x2c0] sm:$0xf] }
 0x406   :  { %v2393_v37 = vadd.f32 %v2392_v3, %v8792_v0  ;;  %v7633_v3 = vld [vmem:[#allocation4 + $0xcc] sm:$0xf0] }
 0x407   :  { %v2481_v14 = vpop.f32.mrf.mxu1  ;;  %v2658_v1 = vadd.f32 %v2657_v53, %v2569_v45  ;;  %v7322_v45 = vor.u32 %v7697_v11, %v7321_v44 }
 0x408   :  { %v2482_v23 = vadd.f32 %v2481_v14, %v2393_v37  ;;  %v7449_v14 = vld [vmem:[#allocation4 + $0x3c0] sm:$0xf]  ;;  %v7729_v37 = vld [vmem:[#allocation4 + $0x3cc] sm:$0xf0] }
 0x409   :  { %v3116_v39 = vmax.f32 %v2658_v1, 0.0  ;;  %v7066_v1 = vor.u32 %v7633_v3, %v7065_v25  ;;  %4207 = vmatpush.bf16.msrb.mxu2 %v7322_v45 }
 0x40b   :  { %4029 = vmatpush.bf16.msrb.mxu0 %v7066_v1 }
 0x40c   :  { %v2570_v38 = vpop.f32.mrf.mxu2 }
 0x40d   :  { %v2659_v36 = vpop.f32.mrf.mxu3  ;;  %v2571_v18 = vadd.f32 %v2570_v38, %v2482_v23  ;;  %v2395_v52 = vpop.f32.mrf.mxu0  ;;  %v7450_v38 = vor.u32 %v7729_v37, %v7449_v14 }
 0x40e   :  { %v2396_v16 = vadd.f32 %v2395_v52, %v8792_v0  ;;  %v7665_v52 = vld [vmem:[#allocation4 + $0x1cc] sm:$0xf0] }
 0x40f   :  { %v2484_v20 = vpop.f32.mrf.mxu1  ;;  %v2660_v34 = vadd.f32 %v2659_v36, %v2571_v18  ;;  %4296 = vmatpush.bf16.msrb.mxu3 %v7450_v38  ;;  %v7193_v18 = vld [vmem:[#allocation4 + $0x1c0] sm:$0xf] }
 0x410   :  { %v2485_v21 = vadd.f32 %v2484_v20, %v2396_v16  ;;  %2710 = vmatmul.bf16.vlgmr.msra.gmra.mxu0 %v8317_v4  ;;  %v7194_v20 = vor.u32 %v7665_v52, %v7193_v18  ;;  %v10448_v52 = vld [vmem:[#allocation31_spill] sm:$0xff] }
 0x411   :  { %v3120_v42 = vmax.f32 %v2660_v34, 0.0  ;;  %2888 = vmatmul.bf16.vlgmr.msra.gmra.mxu2 %v8102_v56 }
 0x412   :  { %2799 = vmatmul.bf16.vlgmr.msra.gmra.mxu1 %v8319_v7  ;;  %2977 = vmatmul.bf16.vlgmr.msra.gmra.mxu3 %v8104_v57 }
 0x413   :  { %v8863_v46 = vpack.c.bf16 %v3120_v42, %v3116_v39  ;;  %4118 = vmatpush.bf16.msrb.mxu1 %v7194_v20  ;;  %v10449_v20 = vld [vmem:[#allocation32_spill] sm:$0xff] }
 0x414   :  { %v2573_v24 = vpop.f32.mrf.mxu2 }
 0x415   :  { %v2662_v53 = vpop.f32.mrf.mxu3  ;;  %v2574_v4 = vadd.f32 %v2573_v24, %v2485_v21  ;;  %v2397_v23 = vpop.f32.mrf.mxu0 }
 0x416   :  { %v2398_v56 = vadd.f32 %v2397_v23, %v8792_v0 }
 0x417   :  { %v2486_v7 = vpop.f32.mrf.mxu1  ;;  %v2663_v57 = vadd.f32 %v2662_v53, %v2574_v4 }
 0x418   :  { %v2487_v36 = vadd.f32 %v2486_v7, %v2398_v56 }
 0x419   :  { %v3124_v24 = vmax.f32 %v2663_v57, 0.0 }
 0x41c   :  { %v2575_v16 = vpop.f32.mrf.mxu2 }
 0x41d   :  { %v2664_v34 = vpop.f32.mrf.mxu3  ;;  %v2576_v39 = vadd.f32 %v2575_v16, %v2487_v36  ;;  %v2400_v42 = vpop.f32.mrf.mxu0 }
 0x41e   :  { %v2401_v44 = vadd.f32 %v2400_v42, %v8792_v0  ;;  %v10451_v42 = vld [vmem:[#allocation10_spill] sm:$0xff] }
 0x41f   :  { %v2489_v21 = vpop.f32.mrf.mxu1  ;;  %v2665_v11 = vadd.f32 %v2664_v34, %v2576_v39  ;;  %v10450_v39 = vld [vmem:[#allocation9_spill] sm:$0xff] }
 0x420   :  { %v2490_v25 = vadd.f32 %v2489_v21, %v2401_v44  ;;  %2715 = vmatmul.bf16.gmra.mxu0 %v8349_v8  ;;  %v7305_v44 = vld [vmem:[#allocation4 + $0x2a0] sm:$0xf] }
 0x421   :  { %v3128_v53 = vmax.f32 %v2665_v11, 0.0  ;;  %2893 = vmatmul.bf16.gmra.mxu2 %v8132_v12  ;;  %v7693_v11 = vld [vmem:[#allocation4 + $0x2ac] sm:$0xf0] }
 0x422   :  { %2804 = vmatmul.bf16.gmra.mxu1 %v8351_v63  ;;  %2982 = vmatmul.bf16.gmra.mxu3 %v10366_v17 }
 0x423   :  { %v8871_v45 = vpack.c.bf16 %v3128_v53, %v3124_v24 }
 0x424   :  { %v2578_v3 = vpop.f32.mrf.mxu2 }
 0x425   :  { %10447 = vst [vmem:[#allocation72_spill] sm:$0xff] %v8871_v45  ;;  %v2667_v14 = vpop.f32.mrf.mxu3  ;;  %v2579_v37 = vadd.f32 %v2578_v3, %v2490_v25  ;;  %v2402_v4 = vpop.f32.mrf.mxu0  ;;  %v7049_v25 = vld [vmem:[#allocation4 + $0xa0] sm:$0xf]  ;;  %v7306_v3 = vor.u32 %v7693_v11, %v7305_v44 }
 0x426   :  { %v2403_v7 = vadd.f32 %v2402_v4, %v8792_v0  ;;  %v7725_v4 = vld [vmem:[#allocation4 + $0x3ac] sm:$0xf0] }
 0x427   :  { %v2491_v23 = vpop.f32.mrf.mxu1  ;;  %v2668_v1 = vadd.f32 %v2667_v14, %v2579_v37  ;;  %v7629_v14 = vld [vmem:[#allocation4 + $0xac] sm:$0xf0]  ;;  %v7433_v37 = vld [vmem:[#allocation4 + $0x3a0] sm:$0xf]  ;;  %4208 = vmatpush.bf16.msrb.mxu2 %v7306_v3 }
 0x428   :  { %v2492_v38 = vadd.f32 %v2491_v23, %v2403_v7 }
 0x429   :  { %v3132_v16 = vmax.f32 %v2668_v1, 0.0  ;;  %v7050_v1 = vor.u32 %v7629_v14, %v7049_v25 }
 0x42b   :  { %4030 = vmatpush.bf16.msrb.mxu0 %v7050_v1 }
 0x42c   :  { %v2580_v8 = vpop.f32.mrf.mxu2 }
 0x42d   :  { %v2669_v56 = vpop.f32.mrf.mxu3  ;;  %v2581_v63 = vadd.f32 %v2580_v8, %v2492_v38  ;;  %v2405_v57 = vpop.f32.mrf.mxu0  ;;  %v7434_v8 = vor.u32 %v7725_v4, %v7433_v37 }
 0x42e   :  { %v2406_v12 = vadd.f32 %v2405_v57, %v8792_v0 }
 0x42f   :  { %v2494_v36 = vpop.f32.mrf.mxu1  ;;  %v2670_v18 = vadd.f32 %v2669_v56, %v2581_v63  ;;  %4297 = vmatpush.bf16.msrb.mxu3 %v7434_v8 }
 0x430   :  { %v2495_v17 = vadd.f32 %v2494_v36, %v2406_v12  ;;  %2720 = vmatmul.bf16.gmra.mxu0 %v10448_v52  ;;  %v7177_v36 = vld [vmem:[#allocation4 + $0x1a0] sm:$0xf]  ;;  %v7661_v12 = vld [vmem:[#allocation4 + $0x1ac] sm:$0xf0] }
 0x431   :  { %v3136_v34 = vmax.f32 %v2670_v18, 0.0  ;;  %2898 = vmatmul.bf16.gmra.mxu2 %v10450_v39  ;;  %v7178_v18 = vor.u32 %v7661_v12, %v7177_v36  ;;  %v10454_v12 = vld [vmem:[#allocation12_spill] sm:$0xff] }
 0x432   :  { %2809 = vmatmul.bf16.gmra.mxu1 %v10449_v20  ;;  %2987 = vmatmul.bf16.gmra.mxu3 %v10451_v42 }
 0x433   :  { %v8879_v21 = vpack.c.bf16 %v3136_v34, %v3132_v16  ;;  %4119 = vmatpush.bf16.msrb.mxu1 %v7178_v18  ;;  %v10455_v18 = vld [vmem:[#allocation13_spill] sm:$0xff] }
 0x434   :  { %v2583_v24 = vpop.f32.mrf.mxu2 }
 0x435   :  { %v2672_v53 = vpop.f32.mrf.mxu3  ;;  %v2584_v23 = vadd.f32 %v2583_v24, %v2495_v17  ;;  %v2407_v7 = vpop.f32.mrf.mxu0  ;;  %v10452_v24 = vld [vmem:[#allocation11_spill] sm:$0xff] }
 0x436   :  { %v2408_v56 = vadd.f32 %v2407_v7, %v8792_v0 }
 0x437   :  { %v2496_v38 = vpop.f32.mrf.mxu1  ;;  %v2673_v63 = vadd.f32 %v2672_v53, %v2584_v23 }
 0x438   :  { %v2497_v57 = vadd.f32 %v2496_v38, %v2408_v56 }
 0x439   :  { %v3140_v11 = vmax.f32 %v2673_v63, 0.0 }
 0x43c   :  { %v2585_v52 = vpop.f32.mrf.mxu2 }
 0x43d   :  { %v2674_v20 = vpop.f32.mrf.mxu3  ;;  %v2586_v16 = vadd.f32 %v2585_v52, %v2497_v57  ;;  %v2410_v34 = vpop.f32.mrf.mxu0 }
 0x43e   :  { %v2411_v39 = vadd.f32 %v2410_v34, %v8792_v0  ;;  %v10457_v34 = vld [vmem:[#allocation15_spill] sm:$0xff] }
 0x43f   :  { %v2499_v17 = vpop.f32.mrf.mxu1  ;;  %v2675_v42 = vadd.f32 %v2674_v20, %v2586_v16  ;;  %v10456_v16 = vld [vmem:[#allocation14_spill] sm:$0xff] }
 0x440   :  { %v2500_v44 = vadd.f32 %v2499_v17, %v2411_v39  ;;  %2725 = vmatmul.bf16.gmra.mxu0 %v8413_v31  ;;  %v7289_v39 = vld [vmem:[#allocation4 + $0x280] sm:$0xf] }
 0x441   :  { %v3144_v25 = vmax.f32 %v2675_v42, 0.0  ;;  %2903 = vmatmul.bf16.gmra.mxu2 %v8194_v19  ;;  %v7689_v42 = vld [vmem:[#allocation4 + $0x28c] sm:$0xf0] }
 0x442   :  { %2814 = vmatmul.bf16.gmra.mxu1 %v8415_v58  ;;  %2992 = vmatmul.bf16.gmra.mxu3 %v10452_v24  ;;  %v7290_v24 = vor.u32 %v7689_v42, %v7289_v39  ;;  %v10458_v39 = vld [vmem:[#allocation16_spill] sm:$0xff]  ;;  %v10459_v42 = vld [vmem:[#allocation17_spill] sm:$0xff] }
 0x443   :  { %v8887_v53 = vpack.c.bf16 %v3144_v25, %v3140_v11 }
 0x444   :  { %v2588_v3 = vpop.f32.mrf.mxu2  ;;  %4209 = vmatpush.bf16.msrb.mxu2 %v7290_v24  ;;  %v10461_v24 = vld [vmem:[#allocation19_spill] sm:$0xff] }
 0x445   :  { %10453 = vst [vmem:[#allocation31_spill] sm:$0xff] %v8887_v53  ;;  %v2677_v14 = vpop.f32.mrf.mxu3  ;;  %v2589_v37 = vadd.f32 %v2588_v3, %v2500_v44  ;;  %v2412_v4 = vpop.f32.mrf.mxu0  ;;  %v7033_v44 = vld [vmem:[#allocation4 + $0x80] sm:$0xf]  ;;  %v7625_v3 = vld [vmem:[#allocation4 + $0x8c] sm:$0xf0] }
 0x446   :  { %v2413_v7 = vadd.f32 %v2412_v4, %v8792_v0 }
 0x447   :  { %v2501_v23 = vpop.f32.mrf.mxu1  ;;  %v2678_v38 = vadd.f32 %v2677_v14, %v2589_v37  ;;  %v7417_v14 = vld [vmem:[#allocation4 + $0x380] sm:$0xf]  ;;  %v7721_v37 = vld [vmem:[#allocation4 + $0x38c] sm:$0xf0] }
 0x448   :  { %v2502_v1 = vadd.f32 %v2501_v23, %v2413_v7 }
 0x449   :  { %v3148_v52 = vmax.f32 %v2678_v38, 0.0  ;;  %v7034_v38 = vor.u32 %v7625_v3, %v7033_v44 }
 0x44b   :  { %4031 = vmatpush.bf16.msrb.mxu0 %v7034_v38 }
 0x44c   :  { %v2590_v31 = vpop.f32.mrf.mxu2 }
 0x44d   :  { %v2679_v8 = vpop.f32.mrf.mxu3  ;;  %v2591_v58 = vadd.f32 %v2590_v31, %v2502_v1  ;;  %v2415_v56 = vpop.f32.mrf.mxu0  ;;  %v7418_v1 = vor.u32 %v7721_v37, %v7417_v14 }
 0x44e   :  { %v2416_v19 = vadd.f32 %v2415_v56, %v8792_v0  ;;  %v7161_v56 = vld [vmem:[#allocation4 + $0x180] sm:$0xf] }
 0x44f   :  { %v2504_v63 = vpop.f32.mrf.mxu1  ;;  %v2680_v57 = vadd.f32 %v2679_v8, %v2591_v58  ;;  %4298 = vmatpush.bf16.msrb.mxu3 %v7418_v1 }
 0x450   :  { %v2505_v36 = vadd.f32 %v2504_v63, %v2416_v19  ;;  %2730 = vmatmul.bf16.gmra.mxu0 %v10454_v12  ;;  %v7657_v63 = vld [vmem:[#allocation4 + $0x18c] sm:$0xf0] }
 0x451   :  { %v3152_v20 = vmax.f32 %v2680_v57, 0.0  ;;  %2908 = vmatmul.bf16.gmra.mxu2 %v10456_v16  ;;  %v7162_v19 = vor.u32 %v7657_v63, %v7161_v56 }
 0x452   :  { %2819 = vmatmul.bf16.gmra.mxu1 %v10455_v18  ;;  %2997 = vmatmul.bf16.gmra.mxu3 %v10457_v34 }
 0x453   :  { %v8895_v17 = vpack.c.bf16 %v3152_v20, %v3148_v52  ;;  %4120 = vmatpush.bf16.msrb.mxu1 %v7162_v19 }
 0x454   :  { %v2593_v11 = vpop.f32.mrf.mxu2 }
 0x455   :  { %v2682_v25 = vpop.f32.mrf.mxu3  ;;  %v2594_v4 = vadd.f32 %v2593_v11, %v2505_v36  ;;  %v2417_v23 = vpop.f32.mrf.mxu0 }
 0x456   :  { %v2418_v31 = vadd.f32 %v2417_v23, %v8792_v0 }
 0x457   :  { %v2506_v7 = vpop.f32.mrf.mxu1  ;;  %v2683_v8 = vadd.f32 %v2682_v25, %v2594_v4  ;;  %v10460_v25 = vld [vmem:[#allocation18_spill] sm:$0xff] }
 0x458   :  { %v2507_v58 = vadd.f32 %v2506_v7, %v2418_v31 }
 0x459   :  { %v3156_v44 = vmax.f32 %v2683_v8, 0.0 }
 0x45c   :  { %v2595_v57 = vpop.f32.mrf.mxu2 }
 0x45d   :  { %v2684_v12 = vpop.f32.mrf.mxu3  ;;  %v2596_v18 = vadd.f32 %v2595_v57, %v2507_v58  ;;  %v2420_v52 = vpop.f32.mrf.mxu0 }
 0x45e   :  { %v2421_v20 = vadd.f32 %v2420_v52, %v8792_v0  ;;  %v10463_v52 = vld [vmem:[#allocation20_spill] sm:$0xff] }
 0x45f   :  { %v2509_v36 = vpop.f32.mrf.mxu1  ;;  %v2685_v16 = vadd.f32 %v2684_v12, %v2596_v18 }
 0x460   :  { %v2510_v34 = vadd.f32 %v2509_v36, %v2421_v20  ;;  %2735 = vmatmul.bf16.gmra.mxu0 %v10458_v39  ;;  %v10464_v36 = vld [vmem:[#allocation21_spill] sm:$0xff]  ;;  %v10466_v39 = vld [vmem:[#allocation23_spill] sm:$0xff] }
 0x461   :  { %v3160_v11 = vmax.f32 %v2685_v16, 0.0  ;;  %2913 = vmatmul.bf16.gmra.mxu2 %v10460_v25  ;;  %v7017_v25 = vld [vmem:[#allocation4 + $0x60] sm:$0xf] }
 0x462   :  { %2824 = vmatmul.bf16.gmra.mxu1 %v10459_v42  ;;  %3002 = vmatmul.bf16.gmra.mxu3 %v10461_v24 }
 0x463   :  { %v8903_v3 = vpack.c.bf16 %v3160_v11, %v3156_v44  ;;  %v7273_v44 = vld [vmem:[#allocation4 + $0x260] sm:$0xf]  ;;  %v7685_v11 = vld [vmem:[#allocation4 + $0x26c] sm:$0xf0] }
 0x464   :  { %v2598_v14 = vpop.f32.mrf.mxu2 }
 0x465   :  { %10462 = vst [vmem:[#allocation32_spill] sm:$0xff] %v8903_v3  ;;  %v2687_v37 = vpop.f32.mrf.mxu3  ;;  %v2599_v4 = vadd.f32 %v2598_v14, %v2510_v34  ;;  %v2422_v23 = vpop.f32.mrf.mxu0  ;;  %v10465_v34 = vld [vmem:[#allocation22_spill] sm:$0xff] }
 0x466   :  { %v2423_v38 = vadd.f32 %v2422_v23, %v8792_v0  ;;  %v7401_v23 = vld [vmem:[#allocation4 + $0x360] sm:$0xf] }
 0x467   :  { %v2511_v7 = vpop.f32.mrf.mxu1  ;;  %v2688_v1 = vadd.f32 %v2687_v37, %v2599_v4  ;;  %v7274_v37 = vor.u32 %v7685_v11, %v7273_v44  ;;  %v7621_v4 = vld [vmem:[#allocation4 + $0x6c] sm:$0xf0] }
 0x468   :  { %v2512_v31 = vadd.f32 %v2511_v7, %v2423_v38  ;;  %v7717_v7 = vld [vmem:[#allocation4 + $0x36c] sm:$0xf0] }
 0x469   :  { %v3164_v20 = vmax.f32 %v2688_v1, 0.0  ;;  %v7018_v1 = vor.u32 %v7621_v4, %v7017_v25  ;;  %4210 = vmatpush.bf16.msrb.mxu2 %v7274_v37  ;;  %v10467_v25 = vld [vmem:[#allocation24_spill] sm:$0xff]  ;;  %v10468_v37 = vld [vmem:[#allocation25_spill] sm:$0xff]  ;;  %v10469_v4 = vld [vmem:[#allocation26_spill] sm:$0xff] }
 0x46b   :  { %4032 = vmatpush.bf16.msrb.mxu0 %v7018_v1 }
 0x46c   :  { %v2600_v58 = vpop.f32.mrf.mxu2 }
 0x46d   :  { %v2689_v56 = vpop.f32.mrf.mxu3  ;;  %v2601_v63 = vadd.f32 %v2600_v58, %v2512_v31  ;;  %v2425_v8 = vpop.f32.mrf.mxu0 }
 0x46e   :  { %v2426_v57 = vadd.f32 %v2425_v8, %v8792_v0 }
 0x46f   :  { %v2514_v19 = vpop.f32.mrf.mxu1  ;;  %v2690_v12 = vadd.f32 %v2689_v56, %v2601_v63  ;;  %v7402_v56 = vor.u32 %v7717_v7, %v7401_v23 }
 0x470   :  { %v2515_v18 = vadd.f32 %v2514_v19, %v2426_v57  ;;  %2740 = vmatmul.bf16.gmra.mxu0 %v10463_v52  ;;  %v7145_v57 = vld [vmem:[#allocation4 + $0x160] sm:$0xf] }
 0x471   :  { %v3168_v16 = vmax.f32 %v2690_v12, 0.0  ;;  %2918 = vmatmul.bf16.gmra.mxu2 %v10465_v34  ;;  %4299 = vmatpush.bf16.msrb.mxu3 %v7402_v56  ;;  %v7653_v12 = vld [vmem:[#allocation4 + $0x16c] sm:$0xf0] }
 0x472   :  { %2829 = vmatmul.bf16.gmra.mxu1 %v10464_v36  ;;  %3007 = vmatmul.bf16.gmra.mxu3 %v10466_v39  ;;  %v7146_v52 = vor.u32 %v7653_v12, %v7145_v57 }
 0x473   :  { %v8911_v42 = vpack.c.bf16 %v3168_v16, %v3164_v20 }
 0x474   :  { %v2603_v24 = vpop.f32.mrf.mxu2  ;;  %4121 = vmatpush.bf16.msrb.mxu1 %v7146_v52 }
 0x475   :  { %v2692_v14 = vpop.f32.mrf.mxu3  ;;  %v2604_v38 = vadd.f32 %v2603_v24, %v2515_v18  ;;  %v2427_v31 = vpop.f32.mrf.mxu0 }
 0x476   :  { %v2428_v63 = vadd.f32 %v2427_v31, %v8792_v0 }
 0x477   :  { %v2516_v58 = vpop.f32.mrf.mxu1  ;;  %v2693_v8 = vadd.f32 %v2692_v14, %v2604_v38 }
 0x478   :  { %v2517_v19 = vadd.f32 %v2516_v58, %v2428_v63 }
 0x479   :  { %v3172_v24 = vmax.f32 %v2693_v8, 0.0 }
 0x47c   :  { %v2605_v36 = vpop.f32.mrf.mxu2 }
 0x47d   :  { %v2694_v20 = vpop.f32.mrf.mxu3  ;;  %v2606_v16 = vadd.f32 %v2605_v36, %v2517_v19  ;;  %v2430_v34 = vpop.f32.mrf.mxu0 }
 0x47e   :  { %v2431_v39 = vadd.f32 %v2430_v34, %v8792_v0 }
 0x47f   :  { %v2519_v18 = vpop.f32.mrf.mxu1  ;;  %v2695_v44 = vadd.f32 %v2694_v20, %v2606_v16 }
 0x480   :  { %v2520_v11 = vadd.f32 %v2519_v18, %v2431_v39  ;;  %2745 = vmatmul.bf16.gmra.mxu0 %v8309_v33  ;;  %v10471_v33 = vld [vmem:[#allocation63_spill] sm:$0xff] }
 0x481   :  { %v3176_v14 = vmax.f32 %v2695_v44, 0.0  ;;  %2923 = vmatmul.bf16.gmra.mxu2 %v10468_v37  ;;  %v8923_v57 = vperm.slane %v10471_v33, 3  ;;  %v10472_v39 = vld [vmem:[#allocation27_spill] sm:$0xff]  ;;  %v10473_v44 = vld [vmem:[#allocation28_spill] sm:$0xff] }
 0x482   :  { %2834 = vmatmul.bf16.gmra.mxu1 %v10467_v25  ;;  %3012 = vmatmul.bf16.gmra.mxu3 %v10469_v4  ;;  %v10474_v25 = vld [vmem:[#allocation29_spill] sm:$0xff]  ;;  %v7257_v37 = vld [vmem:[#allocation4 + $0x240] sm:$0xf]  ;;  %v7681_v4 = vld [vmem:[#allocation4 + $0x24c] sm:$0xf0] }
 0x483   :  { %v8919_v23 = vpack.c.bf16 %v3176_v14, %v3172_v24  ;;  %v10475_v24 = vld [vmem:[#allocation30_spill] sm:$0xff] }
 0x484   :  { %v2608_v7 = vpop.f32.mrf.mxu2 }
 0x485   :  { %10470 = vst [vmem:[#allocation9_spill] sm:$0xff] %v8919_v23  ;;  %v2697_v38 = vpop.f32.mrf.mxu3  ;;  %v2609_v31 = vadd.f32 %v2608_v7, %v2520_v11  ;;  %v2432_v58 = vpop.f32.mrf.mxu0  ;;  %v7001_v7 = vld [vmem:[#allocation4 + $0x40] sm:$0xf] }
 0x486   :  { %v2433_v56 = vadd.f32 %v2432_v58, %v8792_v0  ;;  %v7258_v58 = vor.u32 %v7681_v4, %v7257_v37 }
 0x487   :  { %v2521_v1 = vpop.f32.mrf.mxu1  ;;  %v2698_v63 = vadd.f32 %v2697_v38, %v2609_v31 }
 0x488   :  { %v2522_v19 = vadd.f32 %v2521_v1, %v2433_v56  ;;  %v7617_v1 = vld [vmem:[#allocation4 + $0x4c] sm:$0xf0]  ;;  %v7385_v56 = vld [vmem:[#allocation4 + $0x340] sm:$0xf]  ;;  %4211 = vmatpush.bf16.msrb.mxu2 %v7258_v58 }
 0x489   :  { %v3180_v11 = vmax.f32 %v2698_v63, 0.0  ;;  %v7002_v63 = vor.u32 %v7617_v1, %v7001_v7 }
 0x48b   :  { %4033 = vmatpush.bf16.msrb.mxu0 %v7002_v63 }
 0x48c   :  { %v2610_v8 = vpop.f32.mrf.mxu2 }
 0x48d   :  { %v2699_v12 = vpop.f32.mrf.mxu3  ;;  %v2611_v52 = vadd.f32 %v2610_v8, %v2522_v19  ;;  %v2711_v36 = vpop.f32.mrf.mxu0  ;;  %v7713_v19 = vld [vmem:[#allocation4 + $0x34c] sm:$0xf0] }
 0x48e   :  { %v2712_v16 = vadd.f32 %v2711_v36, %v8923_v57 }
 0x48f   :  { %v2800_v20 = vpop.f32.mrf.mxu1  ;;  %v2700_v34 = vadd.f32 %v2699_v12, %v2611_v52  ;;  %v7386_v52 = vor.u32 %v7713_v19, %v7385_v56 }
 0x490   :  { %v2801_v18 = vadd.f32 %v2800_v20, %v2712_v16  ;;  %2750 = vmatmul.bf16.gmra.mxu0 %v10472_v39  ;;  %v7649_v39 = vld [vmem:[#allocation4 + $0x14c] sm:$0xf0] }
 0x491   :  { %v3184_v0 = vmax.f32 %v2700_v34, 0.0  ;;  %2928 = vmatmul.bf16.gmra.mxu2 %v10474_v25  ;;  %4300 = vmatpush.bf16.msrb.mxu3 %v7386_v52  ;;  %v7129_v34 = vld [vmem:[#allocation4 + $0x140] sm:$0xf] }
 0x492   :  { %2839 = vmatmul.bf16.gmra.mxu1 %v10473_v44  ;;  %3017 = vmatmul.bf16.gmra.mxu3 %v10475_v24  ;;  %v7130_v44 = vor.u32 %v7649_v39, %v7129_v34 }
 0x493   :  { %v8930_v14 = vpack.c.bf16 %v3184_v0, %v3180_v11 }
 0x494   :  { %v2889_v38 = vpop.f32.mrf.mxu2  ;;  %4122 = vmatpush.bf16.msrb.mxu1 %v7130_v44 }
 0x495   :  { %v2978_v31 = vpop.f32.mrf.mxu3  ;;  %v2890_v33 = vadd.f32 %v2889_v38, %v2801_v18  ;;  %v2713_v8 = vpop.f32.mrf.mxu0 }
 0x496   :  { %v2714_v36 = vadd.f32 %v2713_v8, %v8923_v57 }
 0x497   :  { %v2802_v12 = vpop.f32.mrf.mxu1  ;;  %v2979_v20 = vadd.f32 %v2978_v31, %v2890_v33 }
 0x498   :  { %v2803_v16 = vadd.f32 %v2802_v12, %v2714_v36 }
 0x499   :  { %v3061_v38 = vmax.f32 %v2979_v20, 0.0 }
 0x49c   :  { %v2891_v11 = vpop.f32.mrf.mxu2 }
 0x49d   :  { %v2980_v0 = vpop.f32.mrf.mxu3  ;;  %v2892_v25 = vadd.f32 %v2891_v11, %v2803_v16  ;;  %v2716_v24 = vpop.f32.mrf.mxu0 }
 0x49e   :  { %v2717_v37 = vadd.f32 %v2716_v24, %v8923_v57  ;;  %v6985_v24 = vld [vmem:[#allocation4 + $0x20] sm:$0xf] }
 0x49f   :  { %v2805_v18 = vpop.f32.mrf.mxu1  ;;  %v2981_v4 = vadd.f32 %v2980_v0, %v2892_v25  ;;  %v7241_v0 = vld [vmem:[#allocation4 + $0x220] sm:$0xf]  ;;  %v7677_v25 = vld [vmem:[#allocation4 + $0x22c] sm:$0xf0] }
 0x4a0   :  { %v2806_v7 = vadd.f32 %v2805_v18, %v2717_v37  ;;  %2755 = vmatmul.bf16.gmra.mxu0 %v8373_v27 }
 0x4a1   :  { %v3065_v31 = vmax.f32 %v2981_v4, 0.0  ;;  %2933 = vmatmul.bf16.gmra.mxu2 %v8387_v60  ;;  %v7242_v4 = vor.u32 %v7677_v25, %v7241_v0 }
 0x4a2   :  { %2844 = vmatmul.bf16.gmra.mxu1 %v8375_v26  ;;  %3022 = vmatmul.bf16.gmra.mxu3 %v8389_v35 }
 0x4a3   :  { %v8938_v58 = vpack.c.bf16 %v3065_v31, %v3061_v38  ;;  %v7369_v38 = vld [vmem:[#allocation4 + $0x320] sm:$0xf]  ;;  %v7709_v31 = vld [vmem:[#allocation4 + $0x32c] sm:$0xf0]  ;;  %4212 = vmatpush.bf16.msrb.mxu2 %v7242_v4 }
 0x4a4   :  { %v2894_v1 = vpop.f32.mrf.mxu2 }
 0x4a5   :  { %10476 = vst [vmem:[#allocation10_spill] sm:$0xff] %v8938_v58  ;;  %v2983_v56 = vpop.f32.mrf.mxu3  ;;  %v2895_v19 = vadd.f32 %v2894_v1, %v2806_v7  ;;  %v2718_v33 = vpop.f32.mrf.mxu0  ;;  %v7613_v7 = vld [vmem:[#allocation4 + $0x2c] sm:$0xf0] }
 0x4a6   :  { %v2719_v12 = vadd.f32 %v2718_v33, %v8923_v57 }
 0x4a7   :  { %v2807_v8 = vpop.f32.mrf.mxu1  ;;  %v2984_v63 = vadd.f32 %v2983_v56, %v2895_v19  ;;  %v6986_v56 = vor.u32 %v7613_v7, %v6985_v24  ;;  %v7370_v19 = vor.u32 %v7709_v31, %v7369_v38 }
 0x4a8   :  { %v2808_v52 = vadd.f32 %v2807_v8, %v2719_v12  ;;  %v7113_v8 = vld [vmem:[#allocation4 + $0x120] sm:$0xf]  ;;  %v7645_v12 = vld [vmem:[#allocation4 + $0x12c] sm:$0xf0] }
 0x4a9   :  { %v3069_v39 = vmax.f32 %v2984_v63, 0.0  ;;  %4034 = vmatpush.bf16.msrb.mxu0 %v6986_v56  ;;  %4301 = vmatpush.bf16.msrb.mxu3 %v7370_v19  ;;  %v7114_v63 = vor.u32 %v7645_v12, %v7113_v8  ;;  %v6969_v8 = vld [vmem:[#allocation4] sm:$0xf] }
 0x4ab   :  { %4123 = vmatpush.bf16.msrb.mxu1 %v7114_v63 }
 0x4ac   :  { %v2896_v27 = vpop.f32.mrf.mxu2 }
 0x4ad   :  { %v2985_v36 = vpop.f32.mrf.mxu3  ;;  %v2897_v26 = vadd.f32 %v2896_v27, %v2808_v52  ;;  %v2721_v20 = vpop.f32.mrf.mxu0 }
 0x4ae   :  { %v2722_v60 = vadd.f32 %v2721_v20, %v8923_v57 }
 0x4af   :  { %v2810_v16 = vpop.f32.mrf.mxu1  ;;  %v2986_v34 = vadd.f32 %v2985_v36, %v2897_v26 }
 0x4b0   :  { %v2811_v35 = vadd.f32 %v2810_v16, %v2722_v60  ;;  %2760 = vmatmul.bf16.gmra.mxu0 %v8405_v62 }
 0x4b1   :  { %v3073_v44 = vmax.f32 %v2986_v34, 0.0  ;;  %2938 = vmatmul.bf16.gmra.mxu2 %v8419_v10 }
 0x4b2   :  { %2849 = vmatmul.bf16.gmra.mxu1 %v8407_v50  ;;  %3027 = vmatmul.bf16.gmra.mxu3 %v8421_v43 }
 0x4b3   :  { %v8946_v11 = vpack.c.bf16 %v3073_v44, %v3069_v39 }
 0x4b4   :  { %v2899_v18 = vpop.f32.mrf.mxu2 }
 0x4b5   :  { %v2988_v37 = vpop.f32.mrf.mxu3  ;;  %v2900_v62 = vadd.f32 %v2899_v18, %v2811_v35  ;;  %v2723_v1 = vpop.f32.mrf.mxu0 }
 0x4b6   :  { %v2724_v10 = vadd.f32 %v2723_v1, %v8923_v57 }
 0x4b7   :  { %v2812_v50 = vpop.f32.mrf.mxu1  ;;  %v2989_v43 = vadd.f32 %v2988_v37, %v2900_v62 }
 0x4b8   :  { %v2813_v33 = vadd.f32 %v2812_v50, %v2724_v10 }
 0x4b9   :  { %v3077_v35 = vmax.f32 %v2989_v43, 0.0  ;;  %v7225_v43 = vld [vmem:[#allocation4 + $0x200] sm:$0xf] }
 0x4bc   :  { %v2901_v52 = vpop.f32.mrf.mxu2 }
 0x4bd   :  { %v2990_v27 = vpop.f32.mrf.mxu3  ;;  %v2902_v36 = vadd.f32 %v2901_v52, %v2813_v33  ;;  %v2726_v26 = vpop.f32.mrf.mxu0  ;;  %v7673_v33 = vld [vmem:[#allocation4 + $0x20c] sm:$0xf0] }
 0x4be   :  { %v2727_v16 = vadd.f32 %v2726_v26, %v8923_v57  ;;  %v7226_v52 = vor.u32 %v7673_v33, %v7225_v43  ;;  %v7705_v26 = vld [vmem:[#allocation4 + $0x30c] sm:$0xf0] }
 0x4bf   :  { %v2815_v20 = vpop.f32.mrf.mxu1  ;;  %v2991_v60 = vadd.f32 %v2990_v27, %v2902_v36  ;;  %v7609_v27 = vld [vmem:[#allocation4 + $0xc] sm:$0xf0]  ;;  %v7353_v36 = vld [vmem:[#allocation4 + $0x300] sm:$0xf] }
 0x4c0   :  { %v2816_v34 = vadd.f32 %v2815_v20, %v2727_v16  ;;  %2765 = vmatmul.bf16.gmra.mxu0 %v8429_v5  ;;  %v6970_v16 = vor.u32 %v7609_v27, %v6969_v8  ;;  %4213 = vmatpush.bf16.msrb.mxu2 %v7226_v52 }
 0x4c1   :  { %v3081_v39 = vmax.f32 %v2991_v60, 0.0  ;;  %2943 = vmatmul.bf16.gmra.mxu2 %v8439_v40  ;;  %v7354_v60 = vor.u32 %v7705_v26, %v7353_v36 }
 0x4c2   :  { %2854 = vmatmul.bf16.gmra.mxu1 %v8431_v13  ;;  %3032 = vmatmul.bf16.gmra.mxu3 %v8441_v49 }
 0x4c3   :  { %v8954_v44 = vpack.c.bf16 %v3081_v39, %v3077_v35  ;;  %4035 = vmatpush.bf16.msrb.mxu0 %v6970_v16  ;;  %4302 = vmatpush.bf16.msrb.mxu3 %v7354_v60  ;;  %v7097_v35 = vld [vmem:[#allocation4 + $0x100] sm:$0xf]  ;;  %v7641_v39 = vld [vmem:[#allocation4 + $0x10c] sm:$0xf0] }
 0x4c4   :  { %v2904_v0 = vpop.f32.mrf.mxu2 }
 0x4c5   :  { %v2993_v25 = vpop.f32.mrf.mxu3  ;;  %v2905_v24 = vadd.f32 %v2904_v0, %v2816_v34  ;;  %v2728_v18 = vpop.f32.mrf.mxu0  ;;  %v7098_v0 = vor.u32 %v7641_v39, %v7097_v35  ;;  %v7467_v35 = vld [vmem:[#allocation4 + $0x3f0] sm:$0xf0] }
 0x4c6   :  { %v2729_v4 = vadd.f32 %v2728_v18, %v8923_v57 }
 0x4c7   :  { %v2817_v37 = vpop.f32.mrf.mxu1  ;;  %v2994_v7 = vadd.f32 %v2993_v25, %v2905_v24  ;;  %4124 = vmatpush.bf16.msrb.mxu1 %v7098_v0 }
 0x4c8   :  { %v2818_v38 = vadd.f32 %v2817_v37, %v2729_v4 }
 0x4c9   :  { %v3085_v56 = vmax.f32 %v2994_v7, 0.0 }
 0x4cc   :  { %v2906_v5 = vpop.f32.mrf.mxu2 }
 0x4cd   :  { %v2995_v31 = vpop.f32.mrf.mxu3  ;;  %v2907_v13 = vadd.f32 %v2906_v5, %v2818_v38  ;;  %v2731_v62 = vpop.f32.mrf.mxu0 }
 0x4ce   :  { %v2732_v40 = vadd.f32 %v2731_v62, %v8923_v57 }
 0x4cf   :  { %v2820_v1 = vpop.f32.mrf.mxu1  ;;  %v2996_v50 = vadd.f32 %v2995_v31, %v2907_v13 }
 0x4d0   :  { %v2821_v49 = vadd.f32 %v2820_v1, %v2732_v40  ;;  %2770 = vmatmul.bf16.gmra.mxu0 %v8449_v9 }
 0x4d1   :  { %v3089_v19 = vmax.f32 %v2996_v50, 0.0  ;;  %2948 = vmatmul.bf16.gmra.mxu2 %v8459_v22 }
 0x4d2   :  { %2859 = vmatmul.bf16.gmra.mxu1 %v8451_v32  ;;  %3037 = vmatmul.bf16.gmra.mxu3 %v8461_v59 }
 0x4d3   :  { %v8962_v10 = vpack.c.bf16 %v3089_v19, %v3085_v56 }
 0x4d4   :  { %v2909_v12 = vpop.f32.mrf.mxu2 }
 0x4d5   :  { %v2998_v63 = vpop.f32.mrf.mxu3  ;;  %v2910_v9 = vadd.f32 %v2909_v12, %v2821_v49  ;;  %v2733_v20 = vpop.f32.mrf.mxu0 }
 0x4d6   :  { %v2734_v22 = vadd.f32 %v2733_v20, %v8923_v57  ;;  %v7339_v20 = vld [vmem:[#allocation4 + $0x2f0] sm:$0xf0] }
 0x4d7   :  { %v2822_v32 = vpop.f32.mrf.mxu1  ;;  %v2999_v59 = vadd.f32 %v2998_v63, %v2910_v9  ;;  %v7699_v9 = vld [vmem:[#allocation4 + $0x2e4] sm:$0xf] }
 0x4d8   :  { %v2823_v34 = vadd.f32 %v2822_v32, %v2734_v22  ;;  %v7635_v32 = vld [vmem:[#allocation4 + $0xe4] sm:$0xf]  ;;  %v7342_v22 = vor.u32 %v7699_v9, %v7339_v20  ;;  %v10478_v9 = vld [vmem:[#allocation34_spill] sm:$0xff] }
 0x4d9   :  { %v3093_v31 = vmax.f32 %v2999_v59, 0.0  ;;  %v7083_v59 = vld [vmem:[#allocation4 + $0xf0] sm:$0xf0]  ;;  %v10479_v20 = vld [vmem:[#allocation48_spill] sm:$0xff] }
 0x4da   :  { %v7086_v0 = vor.u32 %v7635_v32, %v7083_v59  ;;  %4562 = vmatpush.bf16.msra.mxu2 %v7342_v22  ;;  %v7695_v59 = vld [vmem:[#allocation4 + $0x2c4] sm:$0xf] }
 0x4dc   :  { %v2911_v25 = vpop.f32.mrf.mxu2  ;;  %4384 = vmatpush.bf16.msra.mxu0 %v7086_v0  ;;  %v7067_v0 = vld [vmem:[#allocation4 + $0xd0] sm:$0xf0] }
 0x4dd   :  { %v3000_v24 = vpop.f32.mrf.mxu3  ;;  %v2912_v18 = vadd.f32 %v2911_v25, %v2823_v34  ;;  %v2736_v37 = vpop.f32.mrf.mxu0  ;;  %v7731_v34 = vld [vmem:[#allocation4 + $0x3e4] sm:$0xf] }
 0x4de   :  { %v2737_v7 = vadd.f32 %v2736_v37, %v8923_v57  ;;  %v7470_v25 = vor.u32 %v7731_v34, %v7467_v35  ;;  %v7211_v37 = vld [vmem:[#allocation4 + $0x1f0] sm:$0xf0]  ;;  %v7631_v35 = vld [vmem:[#allocation4 + $0xc4] sm:$0xf] }
 0x4df   :  { %v2825_v4 = vpop.f32.mrf.mxu1  ;;  %v3001_v38 = vadd.f32 %v3000_v24, %v2912_v18  ;;  %v7667_v18 = vld [vmem:[#allocation4 + $0x1e4] sm:$0xf]  ;;  %v7323_v34 = vld [vmem:[#allocation4 + $0x2d0] sm:$0xf0] }
 0x4e0   :  { %v2826_v5 = vadd.f32 %v2825_v4, %v2737_v7  ;;  %2775 = vmatmul.bf16.gmra.mxu0 %v8469_v48  ;;  %4651 = vmatpush.bf16.msra.mxu3 %v7470_v25  ;;  %v7214_v4 = vor.u32 %v7667_v18, %v7211_v37  ;;  %v7727_v25 = vld [vmem:[#allocation4 + $0x3c4] sm:$0xf]  ;;  %v7070_v37 = vor.u32 %v7631_v35, %v7067_v0 }
 0x4e1   :  { %v3097_v13 = vmax.f32 %v3001_v38, 0.0  ;;  %2953 = vmatmul.bf16.gmra.mxu2 %v8479_v6 }
 0x4e2   :  { %2864 = vmatmul.bf16.gmra.mxu1 %v8471_v2  ;;  %3042 = vmatmul.bf16.gmra.mxu3 %v8481_v28 }
 0x4e3   :  { %v8970_v62 = vpack.c.bf16 %v3097_v13, %v3093_v31  ;;  %4473 = vmatpush.bf16.msra.mxu1 %v7214_v4  ;;  %4385 = vmatpush.bf16.msra.mxu0 %v7070_v37  ;;  %v10488_v37 = vld [vmem:[#allocation67_spill] sm:$0xff] }
 0x4e4   :  { %v2914_v1 = vpop.f32.mrf.mxu2 }
 0x4e5   :  { %v3003_v40 = vpop.f32.mrf.mxu3  ;;  %v2915_v50 = vadd.f32 %v2914_v1, %v2826_v5  ;;  %v2738_v49 = vpop.f32.mrf.mxu0 }
 0x4e6   :  { %v2739_v19 = vadd.f32 %v2738_v49, %v8923_v57 }
 0x4e7   :  { %v2827_v56 = vpop.f32.mrf.mxu1  ;;  %v3004_v43 = vadd.f32 %v3003_v40, %v2915_v50 }
 0x4e8   :  { %v2828_v33 = vadd.f32 %v2827_v56, %v2739_v19 }
 0x4e9   :  { %v3101_v27 = vmax.f32 %v3004_v43, 0.0 }
 0x4ec   :  { %v2916_v48 = vpop.f32.mrf.mxu2 }
 0x4ed   :  { %v3005_v8 = vpop.f32.mrf.mxu3  ;;  %v2917_v2 = vadd.f32 %v2916_v48, %v2828_v33  ;;  %v2741_v12 = vpop.f32.mrf.mxu0 }
 0x4ee   :  { %v2742_v6 = vadd.f32 %v2741_v12, %v8923_v57 }
 0x4ef   :  { %v2830_v63 = vpop.f32.mrf.mxu1  ;;  %v3006_v52 = vadd.f32 %v3005_v8, %v2917_v2 }
 0x4f0   :  { %v2831_v28 = vadd.f32 %v2830_v63, %v2742_v6  ;;  %2780 = vmatmul.bf16.gmra.mxu0 %v8489_v55 }
 0x4f1   :  { %v3105_v36 = vmax.f32 %v3006_v52, 0.0  ;;  %2958 = vmatmul.bf16.gmra.mxu2 %v8499_v15 }
 0x4f2   :  { %2869 = vmatmul.bf16.gmra.mxu1 %v8491_v41  ;;  %3047 = vmatmul.bf16.gmra.mxu3 %v8501_v51 }
 0x4f3   :  { %v8978_v26 = vpack.c.bf16 %v3105_v36, %v3101_v27 }
 0x4f4   :  { %v2919_v16 = vpop.f32.mrf.mxu2 }
 0x4f5   :  { %v3008_v60 = vpop.f32.mrf.mxu3  ;;  %v2920_v55 = vadd.f32 %v2919_v16, %v2831_v28  ;;  %v2743_v39 = vpop.f32.mrf.mxu0 }
 0x4f6   :  { %v2744_v15 = vadd.f32 %v2743_v39, %v8923_v57 }
 0x4f7   :  { %v2832_v41 = vpop.f32.mrf.mxu1  ;;  %v3009_v51 = vadd.f32 %v3008_v60, %v2920_v55  ;;  %v10480_v60 = vld [vmem:[#allocation65_spill] sm:$0xff] }
 0x4f8   :  { %v2833_v24 = vadd.f32 %v2832_v41, %v2744_v15  ;;  %v7326_v41 = vor.u32 %v7695_v59, %v7323_v34  ;;  %v7451_v15 = vld [vmem:[#allocation4 + $0x3d0] sm:$0xf0] }
 0x4f9   :  { %v3109_v49 = vmax.f32 %v3009_v51, 0.0  ;;  %v7454_v4 = vor.u32 %v7727_v25, %v7451_v15  ;;  %v10486_v15 = vld [vmem:[#allocation36_spill] sm:$0xff] }
 0x4fa   :  { %4563 = vmatpush.bf16.msra.mxu2 %v7326_v41 }
 0x4fb   :  { %4652 = vmatpush.bf16.msra.mxu3 %v7454_v4 }
 0x4fc   :  { %v2921_v7 = vpop.f32.mrf.mxu2 }
 0x4fd   :  { %v3010_v38 = vpop.f32.mrf.mxu3  ;;  %v2922_v5 = vadd.f32 %v2921_v7, %v2833_v24  ;;  %v2746_v31 = vpop.f32.mrf.mxu0 }
 0x4fe   :  { %v2747_v1 = vadd.f32 %v2746_v31, %v8923_v57  ;;  %v7663_v31 = vld [vmem:[#allocation4 + $0x1c4] sm:$0xf] }
 0x4ff   :  { %v2835_v13 = vpop.f32.mrf.mxu1  ;;  %v3011_v40 = vadd.f32 %v3010_v38, %v2922_v5 }
 0x500   :  { %v2836_v50 = vadd.f32 %v2835_v13, %v2747_v1  ;;  %2785 = vmatmul.bf16.gmra.mxu0 %v8514_v47  ;;  %v7195_v13 = vld [vmem:[#allocation4 + $0x1d0] sm:$0xf0] }
 0x501   :  { %v3113_v56 = vmax.f32 %v3011_v40, 0.0  ;;  %2963 = vmatmul.bf16.gmra.mxu2 %v8528_v29  ;;  %v7198_v1 = vor.u32 %v7663_v31, %v7195_v13 }
 0x502   :  { %2874 = vmatmul.bf16.gmra.mxu1 %v8516_v54  ;;  %3052 = vmatmul.bf16.gmra.mxu3 %v8530_v30 }
 0x503   :  { %v8986_v19 = vpack.c.bf16 %v3113_v56, %v3109_v49  ;;  %4474 = vmatpush.bf16.msra.mxu1 %v7198_v1 }
 0x504   :  { %v2924_v43 = vpop.f32.mrf.mxu2 }
 0x505   :  { %10477 = vst [vmem:[#allocation11_spill] sm:$0xff] %v8986_v19  ;;  %v3013_v33 = vpop.f32.mrf.mxu3  ;;  %v2925_v48 = vadd.f32 %v2924_v43, %v2836_v50  ;;  %v2748_v8 = vpop.f32.mrf.mxu0 }
 0x506   :  { %v2749_v12 = vadd.f32 %v2748_v8, %v8923_v57 }
 0x507   :  { %v2837_v2 = vpop.f32.mrf.mxu1  ;;  %v3014_v63 = vadd.f32 %v3013_v33, %v2925_v48 }
 0x508   :  { %v2838_v6 = vadd.f32 %v2837_v2, %v2749_v12  ;;  %v10482_v2 = vld [vmem:[#allocation35_spill] sm:$0xff]  ;;  %v10483_v12 = vld [vmem:[#allocation49_spill] sm:$0xff] }
 0x509   :  { %v3117_v32 = vmax.f32 %v3014_v63, 0.0 }
 0x50c   :  { %v2926_v47 = vpop.f32.mrf.mxu2 }
 0x50d   :  { %v3015_v52 = vpop.f32.mrf.mxu3  ;;  %v2927_v54 = vadd.f32 %v2926_v47, %v2838_v6  ;;  %v2751_v28 = vpop.f32.mrf.mxu0  ;;  %v10484_v47 = vld [vmem:[#allocation66_spill] sm:$0xff] }
 0x50e   :  { %v2752_v29 = vadd.f32 %v2751_v28, %v8923_v57 }
 0x50f   :  { %v2840_v27 = vpop.f32.mrf.mxu1  ;;  %v3016_v36 = vadd.f32 %v3015_v52, %v2927_v54 }
 0x510   :  { %v2841_v30 = vadd.f32 %v2840_v27, %v2752_v29  ;;  %4036 = vmatmul.bf16.vlgmr.msrb.gmra.mxu0 %v10478_v9 }
 0x511   :  { %v3121_v16 = vmax.f32 %v3016_v36, 0.0  ;;  %4214 = vmatmul.bf16.vlgmr.msrb.gmra.mxu2 %v10480_v60 }
 0x512   :  { %4125 = vmatmul.bf16.vlgmr.msrb.gmra.mxu1 %v10479_v20  ;;  %4303 = vmatmul.bf16.vlgmr.msrb.gmra.mxu3 %v8938_v58 }
 0x513   :  { %v8994_v22 = vpack.c.bf16 %v3121_v16, %v3117_v32 }
 0x514   :  { %v2929_v55 = vpop.f32.mrf.mxu2 }
 0x515   :  { %10481 = vst [vmem:[#allocation12_spill] sm:$0xff] %v8994_v22  ;;  %v3018_v39 = vpop.f32.mrf.mxu3  ;;  %v2930_v51 = vadd.f32 %v2929_v55, %v2841_v30  ;;  %v2753_v24 = vpop.f32.mrf.mxu0 }
 0x516   :  { %v2754_v7 = vadd.f32 %v2753_v24, %v8923_v57 }
 0x517   :  { %v2842_v18 = vpop.f32.mrf.mxu1  ;;  %v3019_v38 = vadd.f32 %v3018_v39, %v2930_v51  ;;  %v10487_v51 = vld [vmem:[#allocation50_spill] sm:$0xff] }
 0x518   :  { %v2843_v5 = vadd.f32 %v2842_v18, %v2754_v7  ;;  %v7691_v7 = vld [vmem:[#allocation4 + $0x2a4] sm:$0xf] }
 0x519   :  { %v3125_v63 = vmax.f32 %v3019_v38, 0.0  ;;  %v7307_v38 = vld [vmem:[#allocation4 + $0x2b0] sm:$0xf0] }
 0x51a   :  { %v7310_v1 = vor.u32 %v7691_v7, %v7307_v38 }
 0x51c   :  { %v2931_v40 = vpop.f32.mrf.mxu2  ;;  %4564 = vmatpush.bf16.msra.mxu2 %v7310_v1 }
 0x51d   :  { %v3020_v50 = vpop.f32.mrf.mxu3  ;;  %v2932_v49 = vadd.f32 %v2931_v40, %v2843_v5  ;;  %v2756_v56 = vpop.f32.mrf.mxu0  ;;  %v7627_v5 = vld [vmem:[#allocation4 + $0xa4] sm:$0xf]  ;;  %v7051_v40 = vld [vmem:[#allocation4 + $0xb0] sm:$0xf0] }
 0x51e   :  { %v2757_v33 = vadd.f32 %v2756_v56, %v8923_v57 }
 0x51f   :  { %v2845_v43 = vpop.f32.mrf.mxu1  ;;  %v3021_v48 = vadd.f32 %v3020_v50, %v2932_v49  ;;  %v7723_v50 = vld [vmem:[#allocation4 + $0x3a4] sm:$0xf]  ;;  %v7435_v49 = vld [vmem:[#allocation4 + $0x3b0] sm:$0xf0] }
 0x520   :  { %v2846_v8 = vadd.f32 %v2845_v43, %v2757_v33  ;;  %4041 = vmatmul.bf16.gmra.mxu0 %v10482_v2 }
 0x521   :  { %v3129_v6 = vmax.f32 %v3021_v48, 0.0  ;;  %4219 = vmatmul.bf16.gmra.mxu2 %v10484_v47  ;;  %v7054_v48 = vor.u32 %v7627_v5, %v7051_v40 }
 0x522   :  { %4130 = vmatmul.bf16.gmra.mxu1 %v10483_v12  ;;  %4308 = vmatmul.bf16.gmra.mxu3 %v8946_v11 }
 0x523   :  { %v9002_v52 = vpack.c.bf16 %v3129_v6, %v3125_v63  ;;  %4386 = vmatpush.bf16.msra.mxu0 %v7054_v48 }
 0x524   :  { %v2934_v54 = vpop.f32.mrf.mxu2 }
 0x525   :  { %10485 = vst [vmem:[#allocation13_spill] sm:$0xff] %v9002_v52  ;;  %v3023_v28 = vpop.f32.mrf.mxu3  ;;  %v2935_v27 = vadd.f32 %v2934_v54, %v2846_v8  ;;  %v2758_v29 = vpop.f32.mrf.mxu0  ;;  %v7438_v8 = vor.u32 %v7723_v50, %v7435_v49 }
 0x526   :  { %v2759_v30 = vadd.f32 %v2758_v29, %v8923_v57 }
 0x527   :  { %v2847_v36 = vpop.f32.mrf.mxu1  ;;  %v3024_v32 = vadd.f32 %v3023_v28, %v2935_v27  ;;  %4653 = vmatpush.bf16.msra.mxu3 %v7438_v8  ;;  %v7659_v28 = vld [vmem:[#allocation4 + $0x1a4] sm:$0xf]  ;;  %v7179_v27 = vld [vmem:[#allocation4 + $0x1b0] sm:$0xf0] }
 0x528   :  { %v2848_v16 = vadd.f32 %v2847_v36, %v2759_v30  ;;  %v7182_v29 = vor.u32 %v7659_v28, %v7179_v27  ;;  %v10494_v28 = vld [vmem:[#allocation52_spill] sm:$0xff] }
 0x529   :  { %v3133_v24 = vmax.f32 %v3024_v32, 0.0 }
 0x52a   :  { %4475 = vmatpush.bf16.msra.mxu1 %v7182_v29 }
 0x52c   :  { %v2936_v59 = vpop.f32.mrf.mxu2 }
 0x52d   :  { %v3025_v34 = vpop.f32.mrf.mxu3  ;;  %v2937_v35 = vadd.f32 %v2936_v59, %v2848_v16  ;;  %v2761_v55 = vpop.f32.mrf.mxu0 }
 0x52e   :  { %v2762_v41 = vadd.f32 %v2761_v55, %v8923_v57 }
 0x52f   :  { %v2850_v39 = vpop.f32.mrf.mxu1  ;;  %v3026_v0 = vadd.f32 %v3025_v34, %v2937_v35 }
 0x530   :  { %v2851_v25 = vadd.f32 %v2850_v39, %v2762_v41  ;;  %4046 = vmatmul.bf16.gmra.mxu0 %v10486_v15  ;;  %v10489_v39 = vld [vmem:[#allocation37_spill] sm:$0xff]  ;;  %v10490_v41 = vld [vmem:[#allocation51_spill] sm:$0xff] }
 0x531   :  { %v3137_v18 = vmax.f32 %v3026_v0, 0.0  ;;  %4224 = vmatmul.bf16.gmra.mxu2 %v10488_v37 }
 0x532   :  { %4135 = vmatmul.bf16.gmra.mxu1 %v10487_v51  ;;  %4313 = vmatmul.bf16.gmra.mxu3 %v8954_v44 }
 0x533   :  { %v9010_v4 = vpack.c.bf16 %v3137_v18, %v3133_v24  ;;  %v10491_v24 = vld [vmem:[#allocation68_spill] sm:$0xff] }
 0x534   :  { %v2939_v31 = vpop.f32.mrf.mxu2 }
 0x535   :  { %v3028_v13 = vpop.f32.mrf.mxu3  ;;  %v2940_v56 = vadd.f32 %v2939_v31, %v2851_v25  ;;  %v2763_v43 = vpop.f32.mrf.mxu0 }
 0x536   :  { %v2764_v63 = vadd.f32 %v2763_v43, %v8923_v57 }
 0x537   :  { %v2852_v33 = vpop.f32.mrf.mxu1  ;;  %v3029_v6 = vadd.f32 %v3028_v13, %v2940_v56 }
 0x538   :  { %v2853_v54 = vadd.f32 %v2852_v33, %v2764_v63 }
 0x539   :  { %v3141_v0 = vmax.f32 %v3029_v6, 0.0 }
 0x53c   :  { %v2941_v36 = vpop.f32.mrf.mxu2 }
 0x53d   :  { %v3030_v30 = vpop.f32.mrf.mxu3  ;;  %v2942_v32 = vadd.f32 %v2941_v36, %v2853_v54  ;;  %v2766_v16 = vpop.f32.mrf.mxu0  ;;  %v10493_v54 = vld [vmem:[#allocation38_spill] sm:$0xff]  ;;  %v10495_v36 = vld [vmem:[#allocation69_spill] sm:$0xff] }
 0x53e   :  { %v2767_v34 = vadd.f32 %v2766_v16, %v8923_v57  ;;  %v7291_v16 = vld [vmem:[#allocation4 + $0x290] sm:$0xf0] }
 0x53f   :  { %v2855_v59 = vpop.f32.mrf.mxu1  ;;  %v3031_v35 = vadd.f32 %v3030_v30, %v2942_v32  ;;  %v7687_v32 = vld [vmem:[#allocation4 + $0x284] sm:$0xf] }
 0x540   :  { %v2856_v55 = vadd.f32 %v2855_v59, %v2767_v34  ;;  %4051 = vmatmul.bf16.gmra.mxu0 %v10489_v39  ;;  %v7623_v59 = vld [vmem:[#allocation4 + $0x84] sm:$0xf] }
 0x541   :  { %v3145_v25 = vmax.f32 %v3031_v35, 0.0  ;;  %4229 = vmatmul.bf16.gmra.mxu2 %v10491_v24 }
 0x542   :  { %4140 = vmatmul.bf16.gmra.mxu1 %v10490_v41  ;;  %4318 = vmatmul.bf16.gmra.mxu3 %v8962_v10 }
 0x543   :  { %v9018_v18 = vpack.c.bf16 %v3145_v25, %v3141_v0  ;;  %v7035_v0 = vld [vmem:[#allocation4 + $0x90] sm:$0xf0]  ;;  %v7719_v25 = vld [vmem:[#allocation4 + $0x384] sm:$0xf] }
 0x544   :  { %v2944_v7 = vpop.f32.mrf.mxu2 }
 0x545   :  { %10492 = vst [vmem:[#allocation14_spill] sm:$0xff] %v9018_v18  ;;  %v3033_v38 = vpop.f32.mrf.mxu3  ;;  %v2945_v5 = vadd.f32 %v2944_v7, %v2856_v55  ;;  %v2768_v31 = vpop.f32.mrf.mxu0  ;;  %v7294_v55 = vor.u32 %v7687_v32, %v7291_v16  ;;  %v7419_v7 = vld [vmem:[#allocation4 + $0x390] sm:$0xf0] }
 0x546   :  { %v2769_v1 = vadd.f32 %v2768_v31, %v8923_v57 }
 0x547   :  { %v2857_v13 = vpop.f32.mrf.mxu1  ;;  %v3034_v40 = vadd.f32 %v3033_v38, %v2945_v5  ;;  %4565 = vmatpush.bf16.msra.mxu2 %v7294_v55 }
 0x548   :  { %v2858_v50 = vadd.f32 %v2857_v13, %v2769_v1  ;;  %v7038_v13 = vor.u32 %v7623_v59, %v7035_v0  ;;  %v7422_v1 = vor.u32 %v7719_v25, %v7419_v7  ;;  %v10496_v59 = vld [vmem:[#allocation39_spill] sm:$0xff]  ;;  %v10498_v0 = vld [vmem:[#allocation70_spill] sm:$0xff] }
 0x549   :  { %v3149_v27 = vmax.f32 %v3034_v40, 0.0 }
 0x54a   :  { %4387 = vmatpush.bf16.msra.mxu0 %v7038_v13  ;;  %4654 = vmatpush.bf16.msra.mxu3 %v7422_v1 }
 0x54c   :  { %v2946_v49 = vpop.f32.mrf.mxu2 }
 0x54d   :  { %v3035_v56 = vpop.f32.mrf.mxu3  ;;  %v2947_v43 = vadd.f32 %v2946_v49, %v2858_v50  ;;  %v2771_v33 = vpop.f32.mrf.mxu0 }
 0x54e   :  { %v2772_v8 = vadd.f32 %v2771_v33, %v8923_v57 }
 0x54f   :  { %v2860_v48 = vpop.f32.mrf.mxu1  ;;  %v3036_v63 = vadd.f32 %v3035_v56, %v2947_v43  ;;  %v7655_v56 = vld [vmem:[#allocation4 + $0x184] sm:$0xf]  ;;  %v7163_v43 = vld [vmem:[#allocation4 + $0x190] sm:$0xf0] }
 0x550   :  { %v2861_v6 = vadd.f32 %v2860_v48, %v2772_v8  ;;  %4056 = vmatmul.bf16.gmra.mxu0 %v10493_v54  ;;  %v7166_v33 = vor.u32 %v7655_v56, %v7163_v43 }
 0x551   :  { %v3153_v29 = vmax.f32 %v3036_v63, 0.0  ;;  %4234 = vmatmul.bf16.gmra.mxu2 %v10495_v36 }
 0x552   :  { %4145 = vmatmul.bf16.gmra.mxu1 %v10494_v28  ;;  %4323 = vmatmul.bf16.gmra.mxu3 %v8970_v62 }
 0x553   :  { %v9026_v30 = vpack.c.bf16 %v3153_v29, %v3149_v27  ;;  %4476 = vmatpush.bf16.msra.mxu1 %v7166_v33 }
 0x554   :  { %v2949_v34 = vpop.f32.mrf.mxu2 }
 0x555   :  { %v3038_v35 = vpop.f32.mrf.mxu3  ;;  %v2950_v38 = vadd.f32 %v2949_v34, %v2861_v6  ;;  %v2773_v5 = vpop.f32.mrf.mxu0  ;;  %v10497_v34 = vld [vmem:[#allocation53_spill] sm:$0xff] }
 0x556   :  { %v2774_v40 = vadd.f32 %v2773_v5, %v8923_v57 }
 0x557   :  { %v2862_v31 = vpop.f32.mrf.mxu1  ;;  %v3039_v50 = vadd.f32 %v3038_v35, %v2950_v38 }
 0x558   :  { %v2863_v49 = vadd.f32 %v2862_v31, %v2774_v40 }
 0x559   :  { %v3157_v35 = vmax.f32 %v3039_v50, 0.0 }
 0x55c   :  { %v2951_v48 = vpop.f32.mrf.mxu2 }
 0x55d   :  { %v3040_v8 = vpop.f32.mrf.mxu3  ;;  %v2952_v63 = vadd.f32 %v2951_v48, %v2863_v49  ;;  %v2776_v27 = vpop.f32.mrf.mxu0 }
 0x55e   :  { %v2777_v29 = vadd.f32 %v2776_v27, %v8923_v57 }
 0x55f   :  { %v2865_v6 = vpop.f32.mrf.mxu1  ;;  %v3041_v32 = vadd.f32 %v3040_v8, %v2952_v63 }
 0x560   :  { %v2866_v16 = vadd.f32 %v2865_v6, %v2777_v29  ;;  %4061 = vmatmul.bf16.gmra.mxu0 %v10496_v59  ;;  %v10500_v6 = vld [vmem:[#allocation40_spill] sm:$0xff]  ;;  %v10501_v29 = vld [vmem:[#allocation54_spill] sm:$0xff] }
 0x561   :  { %v3161_v55 = vmax.f32 %v3041_v32, 0.0  ;;  %4239 = vmatmul.bf16.gmra.mxu2 %v10498_v0 }
 0x562   :  { %4150 = vmatmul.bf16.gmra.mxu1 %v10497_v34  ;;  %4328 = vmatmul.bf16.gmra.mxu3 %v8978_v26 }
 0x563   :  { %v9034_v25 = vpack.c.bf16 %v3161_v55, %v3157_v35  ;;  %v7683_v55 = vld [vmem:[#allocation4 + $0x264] sm:$0xf] }
 0x564   :  { %v2954_v7 = vpop.f32.mrf.mxu2 }
 0x565   :  { %10499 = vst [vmem:[#allocation15_spill] sm:$0xff] %v9034_v25  ;;  %v3043_v38 = vpop.f32.mrf.mxu3  ;;  %v2955_v5 = vadd.f32 %v2954_v7, %v2866_v16  ;;  %v2778_v31 = vpop.f32.mrf.mxu0  ;;  %v7275_v7 = vld [vmem:[#allocation4 + $0x270] sm:$0xf0] }
 0x566   :  { %v2779_v1 = vadd.f32 %v2778_v31, %v8923_v57 }
 0x567   :  { %v2867_v13 = vpop.f32.mrf.mxu1  ;;  %v3044_v40 = vadd.f32 %v3043_v38, %v2955_v5  ;;  %v7619_v38 = vld [vmem:[#allocation4 + $0x64] sm:$0xf] }
 0x568   :  { %v2868_v49 = vadd.f32 %v2867_v13, %v2779_v1  ;;  %v7278_v13 = vor.u32 %v7683_v55, %v7275_v7  ;;  %v7019_v1 = vld [vmem:[#allocation4 + $0x70] sm:$0xf0] }
 0x569   :  { %v3165_v32 = vmax.f32 %v3044_v40, 0.0  ;;  %v7022_v40 = vor.u32 %v7619_v38, %v7019_v1 }
 0x56a   :  { %4566 = vmatpush.bf16.msra.mxu2 %v7278_v13  ;;  %v10504_v13 = vld [vmem:[#allocation55_spill] sm:$0xff] }
 0x56b   :  { %4388 = vmatpush.bf16.msra.mxu0 %v7022_v40 }
 0x56c   :  { %v2956_v56 = vpop.f32.mrf.mxu2 }
 0x56d   :  { %v3045_v43 = vpop.f32.mrf.mxu3  ;;  %v2957_v33 = vadd.f32 %v2956_v56, %v2868_v49  ;;  %v2781_v50 = vpop.f32.mrf.mxu0  ;;  %v7715_v49 = vld [vmem:[#allocation4 + $0x364] sm:$0xf]  ;;  %v7403_v56 = vld [vmem:[#allocation4 + $0x370] sm:$0xf0] }
 0x56e   :  { %v2782_v8 = vadd.f32 %v2781_v50, %v8923_v57 }
 0x56f   :  { %v2870_v48 = vpop.f32.mrf.mxu1  ;;  %v3046_v63 = vadd.f32 %v3045_v43, %v2957_v33 }
 0x570   :  { %v2871_v27 = vadd.f32 %v2870_v48, %v2782_v8  ;;  %4066 = vmatmul.bf16.gmra.mxu0 %v10500_v6  ;;  %v7406_v48 = vor.u32 %v7715_v49, %v7403_v56  ;;  %v10503_v49 = vld [vmem:[#allocation41_spill] sm:$0xff] }
 0x571   :  { %v3169_v16 = vmax.f32 %v3046_v63, 0.0  ;;  %4244 = vmatmul.bf16.gmra.mxu2 %v8855_v61 }
 0x572   :  { %4155 = vmatmul.bf16.gmra.mxu1 %v10501_v29  ;;  %4333 = vmatmul.bf16.gmra.mxu3 %v8986_v19  ;;  %v7147_v19 = vld [vmem:[#allocation4 + $0x170] sm:$0xf0] }
 0x573   :  { %v9042_v35 = vpack.c.bf16 %v3169_v16, %v3165_v32  ;;  %4655 = vmatpush.bf16.msra.mxu3 %v7406_v48  ;;  %v7651_v16 = vld [vmem:[#allocation4 + $0x164] sm:$0xf]  ;;  %v9056_v48 = vld [vmem:[%s10207_s6] sm:$0xf] }
 0x574   :  { %v2959_v5 = vpop.f32.mrf.mxu2  ;;  %v7150_v61 = vor.u32 %v7651_v16, %v7147_v19  ;;  %10506 = vst [vmem:[#allocation18_spill] sm:$0xff] %v9056_v48 }
 0x575   :  { %10502 = vst [vmem:[#allocation16_spill] sm:$0xff] %v9042_v35  ;;  %v3048_v31 = vpop.f32.mrf.mxu3  ;;  %v2960_v43 = vadd.f32 %v2959_v5, %v2871_v27  ;;  %v2783_v33 = vpop.f32.mrf.mxu0 }
 0x576   :  { %v2784_v8 = vadd.f32 %v2783_v33, %v8923_v57  ;;  %4477 = vmatpush.bf16.msra.mxu1 %v7150_v61 }
 0x577   :  { %v2872_v50 = vpop.f32.mrf.mxu1  ;;  %v3049_v63 = vadd.f32 %v3048_v31, %v2960_v43 }
 0x578   :  { %v2873_v32 = vadd.f32 %v2872_v50, %v2784_v8 }
 0x579   :  { %v3173_v31 = vmax.f32 %v3049_v63, 0.0  ;;  %v9059_v63 = vperm.slane %v9056_v48, 0 }
 0x57c   :  { %v2961_v29 = vpop.f32.mrf.mxu2 }
 0x57d   :  { %v3050_v55 = vpop.f32.mrf.mxu3  ;;  %v2962_v7 = vadd.f32 %v2961_v29, %v2873_v32  ;;  %v2786_v6 = vpop.f32.mrf.mxu0 }
 0x57e   :  { %v2787_v5 = vadd.f32 %v2786_v6, %v8923_v57 }
 0x57f   :  { %v2875_v27 = vpop.f32.mrf.mxu1  ;;  %v3051_v38 = vadd.f32 %v3050_v55, %v2962_v7 }
 0x580   :  { %v2876_v1 = vadd.f32 %v2875_v27, %v2787_v5  ;;  %4071 = vmatmul.bf16.gmra.mxu0 %v10503_v49 }
 0x581   :  { %v3177_v56 = vmax.f32 %v3051_v38, 0.0  ;;  %4249 = vmatmul.bf16.gmra.mxu2 %v8863_v46 }
 0x582   :  { %4160 = vmatmul.bf16.gmra.mxu1 %v10504_v13  ;;  %4338 = vmatmul.bf16.gmra.mxu3 %v8994_v22 }
 0x583   :  { %v9050_v19 = vpack.c.bf16 %v3177_v56, %v3173_v31  ;;  %v10508_v31 = vld [vmem:[#allocation56_spill] sm:$0xff] }
 0x584   :  { %v2964_v61 = vpop.f32.mrf.mxu2 }
 0x585   :  { %10505 = vst [vmem:[#allocation17_spill] sm:$0xff] %v9050_v19  ;;  %v3053_v29 = vpop.f32.mrf.mxu3  ;;  %v2965_v43 = vadd.f32 %v2964_v61, %v2876_v1  ;;  %v2788_v33 = vpop.f32.mrf.mxu0 }
 0x586   :  { %v2789_v6 = vadd.f32 %v2788_v33, %v8923_v57  ;;  %v10507_v57 = vld [vmem:[#allocation8_spill] sm:$0xff] }
 0x587   :  { %v2877_v50 = vpop.f32.mrf.mxu1  ;;  %v3054_v40 = vadd.f32 %v3053_v29, %v2965_v43  ;;  %v7679_v29 = vld [vmem:[#allocation4 + $0x244] sm:$0xf]  ;;  %v7259_v43 = vld [vmem:[#allocation4 + $0x250] sm:$0xf0] }
 0x588   :  { %v2878_v8 = vadd.f32 %v2877_v50, %v2789_v6  ;;  %v7262_v33 = vor.u32 %v7679_v29, %v7259_v43  ;;  %v7615_v50 = vld [vmem:[#allocation4 + $0x44] sm:$0xf]  ;;  %v7003_v6 = vld [vmem:[#allocation4 + $0x50] sm:$0xf0] }
 0x589   :  { %v3181_v56 = vmax.f32 %v3054_v40, 0.0  ;;  %v7647_v43 = vld [vmem:[#allocation4 + $0x144] sm:$0xf] }
 0x58a   :  { %4567 = vmatpush.bf16.msra.mxu2 %v7262_v33 }
 0x58c   :  { %v2966_v32 = vpop.f32.mrf.mxu2 }
 0x58d   :  { %v3055_v16 = vpop.f32.mrf.mxu3  ;;  %v2967_v55 = vadd.f32 %v2966_v32, %v2878_v8  ;;  %v4037_v7 = vpop.f32.mrf.mxu0  ;;  %v7711_v8 = vld [vmem:[#allocation4 + $0x344] sm:$0xf] }
 0x58e   :  { %v4038_v5 = vadd.f32 %v4037_v7, %v9059_v63 }
 0x58f   :  { %v4126_v27 = vpop.f32.mrf.mxu1  ;;  %v3056_v38 = vadd.f32 %v3055_v16, %v2967_v55  ;;  %v7006_v16 = vor.u32 %v7615_v50, %v7003_v6  ;;  %v7387_v55 = vld [vmem:[#allocation4 + $0x350] sm:$0xf0] }
 0x590   :  { %v4127_v1 = vadd.f32 %v4126_v27, %v4038_v5  ;;  %4076 = vmatmul.bf16.gmra.mxu0 %v10507_v57  ;;  %v7390_v5 = vor.u32 %v7711_v8, %v7387_v55  ;;  %v7131_v57 = vld [vmem:[#allocation4 + $0x150] sm:$0xf0] }
 0x591   :  { %v3185_v61 = vmax.f32 %v3056_v38, 0.0  ;;  %4254 = vmatmul.bf16.gmra.mxu2 %v8871_v45  ;;  %4389 = vmatpush.bf16.msra.mxu0 %v7006_v16  ;;  %v7134_v48 = vor.u32 %v7647_v43, %v7131_v57  ;;  %v10509_v55 = vld [vmem:[#allocation42_spill] sm:$0xff]  ;;  %v10510_v16 = vld [vmem:[#allocation57_spill] sm:$0xff] }
 0x592   :  { %4165 = vmatmul.bf16.gmra.mxu1 %v10508_v31  ;;  %4343 = vmatmul.bf16.gmra.mxu3 %v9002_v52 }
 0x593   :  { %v9066_v32 = vpack.c.bf16 %v3185_v61, %v3181_v56  ;;  %4656 = vmatpush.bf16.msra.mxu3 %v7390_v5  ;;  %4478 = vmatpush.bf16.msra.mxu1 %v7134_v48 }
 0x594   :  { %v4215_v7 = vpop.f32.mrf.mxu2 }
 0x595   :  { %v4304_v27 = vpop.f32.mrf.mxu3  ;;  %v4216_v40 = vadd.f32 %v4215_v7, %v4127_v1  ;;  %v4039_v38 = vpop.f32.mrf.mxu0 }
 0x596   :  { %v4040_v52 = vadd.f32 %v4039_v38, %v9059_v63 }
 0x597   :  { %v4128_v31 = vpop.f32.mrf.mxu1  ;;  %v4305_v45 = vadd.f32 %v4304_v27, %v4216_v40 }
 0x598   :  { %v4129_v29 = vadd.f32 %v4128_v31, %v4040_v52 }
 0x599   :  { %v5452_v7 = vmax.f32 %v4305_v45, 0.0 }
 0x59c   :  { %v4217_v56 = vpop.f32.mrf.mxu2 }
 0x59d   :  { %v4306_v61 = vpop.f32.mrf.mxu3  ;;  %v4218_v50 = vadd.f32 %v4217_v56, %v4129_v29  ;;  %v4042_v6 = vpop.f32.mrf.mxu0 }
 0x59e   :  { %v4043_v33 = vadd.f32 %v4042_v6, %v9059_v63 }
 0x59f   :  { %v4131_v22 = vpop.f32.mrf.mxu1  ;;  %v4307_v1 = vadd.f32 %v4306_v61, %v4218_v50 }
 0x5a0   :  { %v4132_v8 = vadd.f32 %v4131_v22, %v4043_v33  ;;  %4081 = vmatmul.bf16.gmra.mxu0 %v10509_v55 }
 0x5a1   :  { %v5456_v27 = vmax.f32 %v4307_v1, 0.0  ;;  %4259 = vmatmul.bf16.gmra.mxu2 %v8879_v21 }
 0x5a2   :  { %4170 = vmatmul.bf16.gmra.mxu1 %v10510_v16  ;;  %4348 = vmatmul.bf16.gmra.mxu3 %v9010_v4 }
 0x5a3   :  { %v9074_v52 = vpack.c.bf16 %v5456_v27, %v5452_v7  ;;  %v10512_v7 = vld [vmem:[#allocation43_spill] sm:$0xff]  ;;  %v10513_v27 = vld [vmem:[#allocation58_spill] sm:$0xff] }
 0x5a4   :  { %v4220_v48 = vpop.f32.mrf.mxu2 }
 0x5a5   :  { %10511 = vst [vmem:[#allocation19_spill] sm:$0xff] %v9074_v52  ;;  %v4309_v57 = vpop.f32.mrf.mxu3  ;;  %v4221_v31 = vadd.f32 %v4220_v48, %v4132_v8  ;;  %v4044_v5 = vpop.f32.mrf.mxu0 }
 0x5a6   :  { %v4045_v38 = vadd.f32 %v4044_v5, %v9059_v63 }
 0x5a7   :  { %v4133_v40 = vpop.f32.mrf.mxu1  ;;  %v4310_v22 = vadd.f32 %v4309_v57, %v4221_v31  ;;  %v7675_v57 = vld [vmem:[#allocation4 + $0x224] sm:$0xf]  ;;  %v7243_v31 = vld [vmem:[#allocation4 + $0x230] sm:$0xf0] }
 0x5a8   :  { %v4134_v29 = vadd.f32 %v4133_v40, %v4045_v38  ;;  %v7246_v5 = vor.u32 %v7675_v57, %v7243_v31  ;;  %v7611_v40 = vld [vmem:[#allocation4 + $0x24] sm:$0xf]  ;;  %v6987_v38 = vld [vmem:[#allocation4 + $0x30] sm:$0xf0] }
 0x5a9   :  { %v5460_v8 = vmax.f32 %v4310_v22, 0.0  ;;  %v7643_v31 = vld [vmem:[#allocation4 + $0x124] sm:$0xf] }
 0x5aa   :  { %4568 = vmatpush.bf16.msra.mxu2 %v7246_v5 }
 0x5ac   :  { %v4222_v43 = vpop.f32.mrf.mxu2 }
 0x5ad   :  { %v4311_v56 = vpop.f32.mrf.mxu3  ;;  %v4223_v61 = vadd.f32 %v4222_v43, %v4134_v29  ;;  %v4047_v45 = vpop.f32.mrf.mxu0  ;;  %v7707_v29 = vld [vmem:[#allocation4 + $0x324] sm:$0xf]  ;;  %v6990_v43 = vor.u32 %v7611_v40, %v6987_v38 }
 0x5ae   :  { %v4048_v6 = vadd.f32 %v4047_v45, %v9059_v63  ;;  %v7371_v45 = vld [vmem:[#allocation4 + $0x330] sm:$0xf0] }
 0x5af   :  { %v4136_v50 = vpop.f32.mrf.mxu1  ;;  %v4312_v33 = vadd.f32 %v4311_v56, %v4223_v61  ;;  %4390 = vmatpush.bf16.msra.mxu0 %v6990_v43  ;;  %v10516_v43 = vld [vmem:[#allocation59_spill] sm:$0xff] }
 0x5b0   :  { %v4137_v1 = vadd.f32 %v4136_v50, %v4048_v6  ;;  %4086 = vmatmul.bf16.gmra.mxu0 %v10512_v7  ;;  %v7374_v6 = vor.u32 %v7707_v29, %v7371_v45  ;;  %v10515_v45 = vld [vmem:[#allocation44_spill] sm:$0xff] }
 0x5b1   :  { %v5464_v48 = vmax.f32 %v4312_v33, 0.0  ;;  %4264 = vmatmul.bf16.gmra.mxu2 %v8887_v53 }
 0x5b2   :  { %4175 = vmatmul.bf16.gmra.mxu1 %v10513_v27  ;;  %4353 = vmatmul.bf16.gmra.mxu3 %v9018_v18  ;;  %v7115_v27 = vld [vmem:[#allocation4 + $0x130] sm:$0xf0] }
 0x5b3   :  { %v9082_v56 = vpack.c.bf16 %v5464_v48, %v5460_v8  ;;  %4657 = vmatpush.bf16.msra.mxu3 %v7374_v6  ;;  %v7118_v7 = vor.u32 %v7643_v31, %v7115_v27 }
 0x5b4   :  { %v4225_v61 = vpop.f32.mrf.mxu2 }
 0x5b5   :  { %10514 = vst [vmem:[#allocation20_spill] sm:$0xff] %v9082_v56  ;;  %v4314_v50 = vpop.f32.mrf.mxu3  ;;  %v4226_v22 = vadd.f32 %v4225_v61, %v4137_v1  ;;  %v4049_v33 = vpop.f32.mrf.mxu0  ;;  %4479 = vmatpush.bf16.msra.mxu1 %v7118_v7 }
 0x5b6   :  { %v4050_v18 = vadd.f32 %v4049_v33, %v9059_v63 }
 0x5b7   :  { %v4138_v52 = vpop.f32.mrf.mxu1  ;;  %v4315_v53 = vadd.f32 %v4314_v50, %v4226_v22 }
 0x5b8   :  { %v4139_v57 = vadd.f32 %v4138_v52, %v4050_v18 }
 0x5b9   :  { %v5468_v61 = vmax.f32 %v4315_v53, 0.0 }
 0x5bc   :  { %v4227_v40 = vpop.f32.mrf.mxu2 }
 0x5bd   :  { %v4316_v38 = vpop.f32.mrf.mxu3  ;;  %v4228_v8 = vadd.f32 %v4227_v40, %v4139_v57  ;;  %v4052_v48 = vpop.f32.mrf.mxu0 }
 0x5be   :  { %v4053_v5 = vadd.f32 %v4052_v48, %v9059_v63 }
 0x5bf   :  { %v4141_v56 = vpop.f32.mrf.mxu1  ;;  %v4317_v1 = vadd.f32 %v4316_v38, %v4228_v8 }
 0x5c0   :  { %v4142_v29 = vadd.f32 %v4141_v56, %v4053_v5  ;;  %4091 = vmatmul.bf16.gmra.mxu0 %v10515_v45 }
 0x5c1   :  { %v5472_v50 = vmax.f32 %v4317_v1, 0.0  ;;  %4269 = vmatmul.bf16.gmra.mxu2 %v8895_v17 }
 0x5c2   :  { %4180 = vmatmul.bf16.gmra.mxu1 %v10516_v43  ;;  %4358 = vmatmul.bf16.gmra.mxu3 %v9026_v30 }
 0x5c3   :  { %v9090_v18 = vpack.c.bf16 %v5472_v50, %v5468_v61  ;;  %v10518_v61 = vld [vmem:[#allocation45_spill] sm:$0xff]  ;;  %v10519_v50 = vld [vmem:[#allocation60_spill] sm:$0xff] }
 0x5c4   :  { %v4230_v52 = vpop.f32.mrf.mxu2 }
 0x5c5   :  { %10517 = vst [vmem:[#allocation21_spill] sm:$0xff] %v9090_v18  ;;  %v4319_v7 = vpop.f32.mrf.mxu3  ;;  %v4231_v27 = vadd.f32 %v4230_v52, %v4142_v29  ;;  %v4054_v6 = vpop.f32.mrf.mxu0 }
 0x5c6   :  { %v4055_v33 = vadd.f32 %v4054_v6, %v9059_v63 }
 0x5c7   :  { %v4143_v22 = vpop.f32.mrf.mxu1  ;;  %v4320_v56 = vadd.f32 %v4319_v7, %v4231_v27  ;;  %v7671_v7 = vld [vmem:[#allocation4 + $0x204] sm:$0xf]  ;;  %v7227_v27 = vld [vmem:[#allocation4 + $0x210] sm:$0xf0] }
 0x5c8   :  { %v4144_v57 = vadd.f32 %v4143_v22, %v4055_v33  ;;  %v7230_v6 = vor.u32 %v7671_v7, %v7227_v27  ;;  %v7607_v22 = vld [vmem:[#allocation4 + $0x4] sm:$0xf]  ;;  %v6971_v33 = vld [vmem:[#allocation4 + $0x10] sm:$0xf0] }
 0x5c9   :  { %v5476_v29 = vmax.f32 %v4320_v56, 0.0  ;;  %v7639_v27 = vld [vmem:[#allocation4 + $0x104] sm:$0xf] }
 0x5ca   :  { %4569 = vmatpush.bf16.msra.mxu2 %v7230_v6 }
 0x5cc   :  { %v4232_v31 = vpop.f32.mrf.mxu2 }
 0x5cd   :  { %v4321_v40 = vpop.f32.mrf.mxu3  ;;  %v4233_v38 = vadd.f32 %v4232_v31, %v4144_v57  ;;  %v4057_v53 = vpop.f32.mrf.mxu0  ;;  %v7703_v57 = vld [vmem:[#allocation4 + $0x304] sm:$0xf]  ;;  %v6974_v31 = vor.u32 %v7607_v22, %v6971_v33 }
 0x5ce   :  { %v4058_v48 = vadd.f32 %v4057_v53, %v9059_v63  ;;  %v7355_v53 = vld [vmem:[#allocation4 + $0x310] sm:$0xf0] }
 0x5cf   :  { %v4146_v8 = vpop.f32.mrf.mxu1  ;;  %v4322_v5 = vadd.f32 %v4321_v40, %v4233_v38  ;;  %4391 = vmatpush.bf16.msra.mxu0 %v6974_v31  ;;  %v10522_v31 = vld [vmem:[#allocation61_spill] sm:$0xff] }
 0x5d0   :  { %v4147_v1 = vadd.f32 %v4146_v8, %v4058_v48  ;;  %4096 = vmatmul.bf16.gmra.mxu0 %v10518_v61  ;;  %v7358_v48 = vor.u32 %v7703_v57, %v7355_v53  ;;  %v10521_v53 = vld [vmem:[#allocation46_spill] sm:$0xff] }
 0x5d1   :  { %v5480_v52 = vmax.f32 %v4322_v5, 0.0  ;;  %4274 = vmatmul.bf16.gmra.mxu2 %v8903_v3 }
 0x5d2   :  { %4185 = vmatmul.bf16.gmra.mxu1 %v10519_v50  ;;  %4363 = vmatmul.bf16.gmra.mxu3 %v9034_v25  ;;  %v7099_v50 = vld [vmem:[#allocation4 + $0x110] sm:$0xf0] }
 0x5d3   :  { %v9098_v40 = vpack.c.bf16 %v5480_v52, %v5476_v29  ;;  %4658 = vmatpush.bf16.msra.mxu3 %v7358_v48  ;;  %v7102_v61 = vor.u32 %v7639_v27, %v7099_v50 }
 0x5d4   :  { %v4235_v38 = vpop.f32.mrf.mxu2 }
 0x5d5   :  { %10520 = vst [vmem:[#allocation22_spill] sm:$0xff] %v9098_v40  ;;  %v4324_v8 = vpop.f32.mrf.mxu3  ;;  %v4236_v56 = vadd.f32 %v4235_v38, %v4147_v1  ;;  %v4059_v5 = vpop.f32.mrf.mxu0  ;;  %4480 = vmatpush.bf16.msra.mxu1 %v7102_v61 }
 0x5d6   :  { %v4060_v25 = vadd.f32 %v4059_v5, %v9059_v63 }
 0x5d7   :  { %v4148_v18 = vpop.f32.mrf.mxu1  ;;  %v4325_v3 = vadd.f32 %v4324_v8, %v4236_v56 }
 0x5d8   :  { %v4149_v7 = vadd.f32 %v4148_v18, %v4060_v25 }
 0x5d9   :  { %v5484_v38 = vmax.f32 %v4325_v3, 0.0 }
 0x5dc   :  { %v4237_v22 = vpop.f32.mrf.mxu2 }
 0x5dd   :  { %v4326_v33 = vpop.f32.mrf.mxu3  ;;  %v4238_v29 = vadd.f32 %v4237_v22, %v4149_v7  ;;  %v4062_v52 = vpop.f32.mrf.mxu0 }
 0x5de   :  { %v4063_v6 = vadd.f32 %v4062_v52, %v9059_v63 }
 0x5df   :  { %v4151_v40 = vpop.f32.mrf.mxu1  ;;  %v4327_v1 = vadd.f32 %v4326_v33, %v4238_v29 }
 0x5e0   :  { %v4152_v57 = vadd.f32 %v4151_v40, %v4063_v6  ;;  %4101 = vmatmul.bf16.gmra.mxu0 %v10521_v53 }
 0x5e1   :  { %v5488_v8 = vmax.f32 %v4327_v1, 0.0  ;;  %4279 = vmatmul.bf16.gmra.mxu2 %v8911_v42 }
 0x5e2   :  { %4190 = vmatmul.bf16.gmra.mxu1 %v10522_v31  ;;  %4368 = vmatmul.bf16.gmra.mxu3 %v9042_v35 }
 0x5e3   :  { %v9106_v25 = vpack.c.bf16 %v5488_v8, %v5484_v38  ;;  %v10524_v38 = vld [vmem:[#allocation47_spill] sm:$0xff]  ;;  %v10525_v8 = vld [vmem:[#allocation62_spill] sm:$0xff] }
 0x5e4   :  { %v4240_v18 = vpop.f32.mrf.mxu2 }
 0x5e5   :  { %10523 = vst [vmem:[#allocation23_spill] sm:$0xff] %v9106_v25  ;;  %v4329_v61 = vpop.f32.mrf.mxu3  ;;  %v4241_v50 = vadd.f32 %v4240_v18, %v4152_v57  ;;  %v4064_v48 = vpop.f32.mrf.mxu0 }
 0x5e6   :  { %v4065_v5 = vadd.f32 %v4064_v48, %v9059_v63 }
 0x5e7   :  { %v4153_v56 = vpop.f32.mrf.mxu1  ;;  %v4330_v40 = vadd.f32 %v4329_v61, %v4241_v50  ;;  %v7345_v61 = vld [vmem:[#allocation4 + $0x2e8] sm:$0xf]  ;;  %v7702_v50 = vld [vmem:[#allocation4 + $0x2f4] sm:$0xf0] }
 0x5e8   :  { %v4154_v7 = vadd.f32 %v4153_v56, %v4065_v5  ;;  %v7346_v48 = vor.u32 %v7702_v50, %v7345_v61  ;;  %v7089_v56 = vld [vmem:[#allocation4 + $0xe8] sm:$0xf]  ;;  %v7638_v5 = vld [vmem:[#allocation4 + $0xf4] sm:$0xf0] }
 0x5e9   :  { %v5492_v57 = vmax.f32 %v4330_v40, 0.0  ;;  %v7217_v50 = vld [vmem:[#allocation4 + $0x1e8] sm:$0xf] }
 0x5ea   :  { %4918 = vmatpush.bf16.msrb.mxu2 %v7346_v48 }
 0x5ec   :  { %v4242_v27 = vpop.f32.mrf.mxu2 }
 0x5ed   :  { %v4331_v22 = vpop.f32.mrf.mxu3  ;;  %v4243_v33 = vadd.f32 %v4242_v27, %v4154_v7  ;;  %v4067_v3 = vpop.f32.mrf.mxu0  ;;  %v7473_v7 = vld [vmem:[#allocation4 + $0x3e8] sm:$0xf]  ;;  %v7090_v27 = vor.u32 %v7638_v5, %v7089_v56 }
 0x5ee   :  { %v4068_v52 = vadd.f32 %v4067_v3, %v9059_v63  ;;  %v7734_v3 = vld [vmem:[#allocation4 + $0x3f4] sm:$0xf0] }
 0x5ef   :  { %v4156_v29 = vpop.f32.mrf.mxu1  ;;  %v4332_v6 = vadd.f32 %v4331_v22, %v4243_v33  ;;  %4740 = vmatpush.bf16.msrb.mxu0 %v7090_v27  ;;  %v10528_v27 = vld [vmem:[#allocation64_spill] sm:$0xff] }
 0x5f0   :  { %v4157_v1 = vadd.f32 %v4156_v29, %v4068_v52  ;;  %4106 = vmatmul.bf16.gmra.mxu0 %v10524_v38  ;;  %v7474_v52 = vor.u32 %v7734_v3, %v7473_v7  ;;  %v10527_v3 = vld [vmem:[#allocation33_spill] sm:$0xff] }
 0x5f1   :  { %v5496_v18 = vmax.f32 %v4332_v6, 0.0  ;;  %4284 = vmatmul.bf16.gmra.mxu2 %v8919_v23 }
 0x5f2   :  { %4195 = vmatmul.bf16.gmra.mxu1 %v10525_v8  ;;  %4373 = vmatmul.bf16.gmra.mxu3 %v9050_v19  ;;  %v7670_v8 = vld [vmem:[#allocation4 + $0x1f4] sm:$0xf0] }
 0x5f3   :  { %v9114_v22 = vpack.c.bf16 %v5496_v18, %v5492_v57  ;;  %5007 = vmatpush.bf16.msrb.mxu3 %v7474_v52  ;;  %v7218_v38 = vor.u32 %v7670_v8, %v7217_v50 }
 0x5f4   :  { %v4245_v33 = vpop.f32.mrf.mxu2 }
 0x5f5   :  { %10526 = vst [vmem:[#allocation24_spill] sm:$0xff] %v9114_v22  ;;  %v4334_v29 = vpop.f32.mrf.mxu3  ;;  %v4246_v40 = vadd.f32 %v4245_v33, %v4157_v1  ;;  %v4069_v6 = vpop.f32.mrf.mxu0  ;;  %4829 = vmatpush.bf16.msrb.mxu1 %v7218_v38 }
 0x5f6   :  { %v4070_v19 = vadd.f32 %v4069_v6, %v9059_v63 }
 0x5f7   :  { %v4158_v25 = vpop.f32.mrf.mxu1  ;;  %v4335_v23 = vadd.f32 %v4334_v29, %v4246_v40 }
 0x5f8   :  { %v4159_v61 = vadd.f32 %v4158_v25, %v4070_v19 }
 0x5f9   :  { %v5500_v33 = vmax.f32 %v4335_v23, 0.0 }
 0x5fc   :  { %v4247_v56 = vpop.f32.mrf.mxu2 }
 0x5fd   :  { %v4336_v5 = vpop.f32.mrf.mxu3  ;;  %v4248_v57 = vadd.f32 %v4247_v56, %v4159_v61  ;;  %v4072_v18 = vpop.f32.mrf.mxu0 }
 0x5fe   :  { %v4073_v48 = vadd.f32 %v4072_v18, %v9059_v63 }
 0x5ff   :  { %v4161_v22 = vpop.f32.mrf.mxu1  ;;  %v4337_v1 = vadd.f32 %v4336_v5, %v4248_v57 }
 0x600   :  { %v4162_v7 = vadd.f32 %v4161_v22, %v4073_v48  ;;  %4111 = vmatmul.bf16.gmra.mxu0 %v10527_v3 }
 0x601   :  { %v5504_v29 = vmax.f32 %v4337_v1, 0.0  ;;  %4289 = vmatmul.bf16.gmra.mxu2 %v8930_v14 }
 0x602   :  { %4200 = vmatmul.bf16.gmra.mxu1 %v10528_v27  ;;  %4378 = vmatmul.bf16.gmra.mxu3 %v9066_v32 }
 0x603   :  { %v9122_v19 = vpack.c.bf16 %v5504_v29, %v5500_v33  ;;  %v7329_v29 = vld [vmem:[#allocation4 + $0x2c8] sm:$0xf] }
 0x604   :  { %v4250_v25 = vpop.f32.mrf.mxu2 }
 0x605   :  { %10529 = vst [vmem:[#allocation25_spill] sm:$0xff] %v9122_v19  ;;  %v4339_v38 = vpop.f32.mrf.mxu3  ;;  %v4251_v8 = vadd.f32 %v4250_v25, %v4162_v7  ;;  %v4074_v52 = vpop.f32.mrf.mxu0  ;;  %v7698_v25 = vld [vmem:[#allocation4 + $0x2d4] sm:$0xf0] }
 0x606   :  { %v4075_v6 = vadd.f32 %v4074_v52, %v9059_v63  ;;  %v7634_v52 = vld [vmem:[#allocation4 + $0xd4] sm:$0xf0] }
 0x607   :  { %v4163_v40 = vpop.f32.mrf.mxu1  ;;  %v4340_v22 = vadd.f32 %v4339_v38, %v4251_v8  ;;  %v7330_v38 = vor.u32 %v7698_v25, %v7329_v29  ;;  %v7073_v8 = vld [vmem:[#allocation4 + $0xc8] sm:$0xf] }
 0x608   :  { %v4164_v61 = vadd.f32 %v4163_v40, %v4075_v6  ;;  %v7457_v40 = vld [vmem:[#allocation4 + $0x3c8] sm:$0xf]  ;;  %v7074_v6 = vor.u32 %v7634_v52, %v7073_v8 }
 0x609   :  { %v5508_v7 = vmax.f32 %v4340_v22, 0.0  ;;  %4919 = vmatpush.bf16.msrb.mxu2 %v7330_v38  ;;  %v7201_v25 = vld [vmem:[#allocation4 + $0x1c8] sm:$0xf] }
 0x60a   :  { %4741 = vmatpush.bf16.msrb.mxu0 %v7074_v6 }
 0x60c   :  { %v4252_v50 = vpop.f32.mrf.mxu2 }
 0x60d   :  { %v4341_v56 = vpop.f32.mrf.mxu3  ;;  %v4253_v5 = vadd.f32 %v4252_v50, %v4164_v61  ;;  %v4077_v23 = vpop.f32.mrf.mxu0  ;;  %v7730_v61 = vld [vmem:[#allocation4 + $0x3d4] sm:$0xf0] }
 0x60e   :  { %v4078_v18 = vadd.f32 %v4077_v23, %v9059_v63  ;;  %v7458_v23 = vor.u32 %v7730_v61, %v7457_v40 }
 0x60f   :  { %v4166_v57 = vpop.f32.mrf.mxu1  ;;  %v4342_v48 = vadd.f32 %v4341_v56, %v4253_v5 }
 0x610   :  { %v4167_v1 = vadd.f32 %v4166_v57, %v4078_v18  ;;  %4392 = vmatmul.bf16.vlgmr.msra.gmra.mxu0 %v10478_v9  ;;  %5008 = vmatpush.bf16.msrb.mxu3 %v7458_v23 }
 0x611   :  { %v5512_v33 = vmax.f32 %v4342_v48, 0.0  ;;  %4570 = vmatmul.bf16.vlgmr.msra.gmra.mxu2 %v10480_v60 }
 0x612   :  { %4481 = vmatmul.bf16.vlgmr.msra.gmra.mxu1 %v10479_v20  ;;  %4659 = vmatmul.bf16.vlgmr.msra.gmra.mxu3 %v8938_v58  ;;  %v7666_v58 = vld [vmem:[#allocation4 + $0x1d4] sm:$0xf0] }
 0x613   :  { %v9130_v50 = vpack.c.bf16 %v5512_v33, %v5508_v7  ;;  %v7202_v60 = vor.u32 %v7666_v58, %v7201_v25 }
 0x614   :  { %v4255_v56 = vpop.f32.mrf.mxu2 }
 0x615   :  { %10530 = vst [vmem:[#allocation26_spill] sm:$0xff] %v9130_v50  ;;  %v4344_v5 = vpop.f32.mrf.mxu3  ;;  %v4256_v22 = vadd.f32 %v4255_v56, %v4167_v1  ;;  %v4079_v57 = vpop.f32.mrf.mxu0  ;;  %4830 = vmatpush.bf16.msrb.mxu1 %v7202_v60 }
 0x616   :  { %v4080_v48 = vadd.f32 %v4079_v57, %v9059_v63 }
 0x617   :  { %v4168_v18 = vpop.f32.mrf.mxu1  ;;  %v4345_v19 = vadd.f32 %v4344_v5, %v4256_v22 }
 0x618   :  { %v4169_v29 = vadd.f32 %v4168_v18, %v4080_v48 }
 0x619   :  { %v5516_v6 = vmax.f32 %v4345_v19, 0.0 }
 0x61c   :  { %v4257_v8 = vpop.f32.mrf.mxu2 }
 0x61d   :  { %v4346_v52 = vpop.f32.mrf.mxu3  ;;  %v4258_v7 = vadd.f32 %v4257_v8, %v4169_v29  ;;  %v4082_v33 = vpop.f32.mrf.mxu0 }
 0x61e   :  { %v4083_v38 = vadd.f32 %v4082_v33, %v9059_v63 }
 0x61f   :  { %v4171_v50 = vpop.f32.mrf.mxu1  ;;  %v4347_v1 = vadd.f32 %v4346_v52, %v4258_v7 }
 0x620   :  { %v4172_v40 = vadd.f32 %v4171_v50, %v4083_v38  ;;  %4397 = vmatmul.bf16.gmra.mxu0 %v10482_v2 }
 0x621   :  { %v5520_v61 = vmax.f32 %v4347_v1, 0.0  ;;  %4575 = vmatmul.bf16.gmra.mxu2 %v10484_v47 }
 0x622   :  { %4486 = vmatmul.bf16.gmra.mxu1 %v10483_v12  ;;  %4664 = vmatmul.bf16.gmra.mxu3 %v8946_v11 }
 0x623   :  { %v9138_v58 = vpack.c.bf16 %v5520_v61, %v5516_v6  ;;  %v7694_v6 = vld [vmem:[#allocation4 + $0x2b4] sm:$0xf0] }
 0x624   :  { %v4260_v60 = vpop.f32.mrf.mxu2 }
 0x625   :  { %10531 = vst [vmem:[#allocation63_spill] sm:$0xff] %v9138_v58  ;;  %v4349_v56 = vpop.f32.mrf.mxu3  ;;  %v4261_v5 = vadd.f32 %v4260_v60, %v4172_v40  ;;  %v4084_v23 = vpop.f32.mrf.mxu0  ;;  %v7313_v40 = vld [vmem:[#allocation4 + $0x2a8] sm:$0xf] }
 0x626   :  { %v4085_v57 = vadd.f32 %v4084_v23, %v9059_v63  ;;  %v7314_v61 = vor.u32 %v7694_v6, %v7313_v40  ;;  %v7057_v60 = vld [vmem:[#allocation4 + $0xa8] sm:$0xf]  ;;  %v7662_v6 = vld [vmem:[#allocation4 + $0x1b4] sm:$0xf0] }
 0x627   :  { %v4173_v22 = vpop.f32.mrf.mxu1  ;;  %v4350_v50 = vadd.f32 %v4349_v56, %v4261_v5  ;;  %v7630_v56 = vld [vmem:[#allocation4 + $0xb4] sm:$0xf0]  ;;  %v7441_v5 = vld [vmem:[#allocation4 + $0x3a8] sm:$0xf] }
 0x628   :  { %v4174_v18 = vadd.f32 %v4173_v22, %v4085_v57  ;;  %v7058_v23 = vor.u32 %v7630_v56, %v7057_v60  ;;  %v7726_v22 = vld [vmem:[#allocation4 + $0x3b4] sm:$0xf0]  ;;  %4920 = vmatpush.bf16.msrb.mxu2 %v7314_v61  ;;  %v7185_v40 = vld [vmem:[#allocation4 + $0x1a8] sm:$0xf] }
 0x629   :  { %v5524_v38 = vmax.f32 %v4350_v50, 0.0  ;;  %v7186_v58 = vor.u32 %v7662_v6, %v7185_v40 }
 0x62a   :  { %4742 = vmatpush.bf16.msrb.mxu0 %v7058_v23 }
 0x62b   :  { %4831 = vmatpush.bf16.msrb.mxu1 %v7186_v58 }
 0x62c   :  { %v4262_v48 = vpop.f32.mrf.mxu2 }
 0x62d   :  { %v4351_v29 = vpop.f32.mrf.mxu3  ;;  %v4263_v25 = vadd.f32 %v4262_v48, %v4174_v18  ;;  %v4087_v19 = vpop.f32.mrf.mxu0 }
 0x62e   :  { %v4088_v52 = vadd.f32 %v4087_v19, %v9059_v63 }
 0x62f   :  { %v4176_v8 = vpop.f32.mrf.mxu1  ;;  %v4352_v7 = vadd.f32 %v4351_v29, %v4263_v25  ;;  %v7442_v29 = vor.u32 %v7726_v22, %v7441_v5 }
 0x630   :  { %v4177_v33 = vadd.f32 %v4176_v8, %v4088_v52  ;;  %4402 = vmatmul.bf16.gmra.mxu0 %v10486_v15 }
 0x631   :  { %v5528_v1 = vmax.f32 %v4352_v7, 0.0  ;;  %4580 = vmatmul.bf16.gmra.mxu2 %v10488_v37  ;;  %5009 = vmatpush.bf16.msrb.mxu3 %v7442_v29 }
 0x632   :  { %4491 = vmatmul.bf16.gmra.mxu1 %v10487_v51  ;;  %4669 = vmatmul.bf16.gmra.mxu3 %v8954_v44 }
 0x633   :  { %v9146_v57 = vpack.c.bf16 %v5528_v1, %v5524_v38 }
 0x634   :  { %v4265_v18 = vpop.f32.mrf.mxu2 }
 0x635   :  { %10532 = vst [vmem:[#allocation27_spill] sm:$0xff] %v9146_v57  ;;  %v4354_v48 = vpop.f32.mrf.mxu3  ;;  %v4266_v50 = vadd.f32 %v4265_v18, %v4177_v33  ;;  %v4089_v25 = vpop.f32.mrf.mxu0 }
 0x636   :  { %v4090_v8 = vadd.f32 %v4089_v25, %v9059_v63 }
 0x637   :  { %v4178_v19 = vpop.f32.mrf.mxu1  ;;  %v4355_v52 = vadd.f32 %v4354_v48, %v4266_v50 }
 0x638   :  { %v4179_v7 = vadd.f32 %v4178_v19, %v4090_v8 }
 0x639   :  { %v5532_v23 = vmax.f32 %v4355_v52, 0.0 }
 0x63c   :  { %v4267_v60 = vpop.f32.mrf.mxu2 }
 0x63d   :  { %v4356_v56 = vpop.f32.mrf.mxu3  ;;  %v4268_v38 = vadd.f32 %v4267_v60, %v4179_v7  ;;  %v4092_v1 = vpop.f32.mrf.mxu0 }
 0x63e   :  { %v4093_v61 = vadd.f32 %v4092_v1, %v9059_v63 }
 0x63f   :  { %v4181_v57 = vpop.f32.mrf.mxu1  ;;  %v4357_v33 = vadd.f32 %v4356_v56, %v4268_v38 }
 0x640   :  { %v4182_v5 = vadd.f32 %v4181_v57, %v4093_v61  ;;  %4407 = vmatmul.bf16.gmra.mxu0 %v10489_v39 }
 0x641   :  { %v5536_v22 = vmax.f32 %v4357_v33, 0.0  ;;  %4585 = vmatmul.bf16.gmra.mxu2 %v10491_v24 }
 0x642   :  { %4496 = vmatmul.bf16.gmra.mxu1 %v10490_v41  ;;  %4674 = vmatmul.bf16.gmra.mxu3 %v8962_v10 }
 0x643   :  { %v9154_v18 = vpack.c.bf16 %v5536_v22, %v5532_v23  ;;  %v7690_v23 = vld [vmem:[#allocation4 + $0x294] sm:$0xf0] }
 0x644   :  { %v4270_v58 = vpop.f32.mrf.mxu2 }
 0x645   :  { %10533 = vst [vmem:[#allocation28_spill] sm:$0xff] %v9154_v18  ;;  %v4359_v48 = vpop.f32.mrf.mxu3  ;;  %v4271_v29 = vadd.f32 %v4270_v58, %v4182_v5  ;;  %v4094_v50 = vpop.f32.mrf.mxu0  ;;  %v7297_v5 = vld [vmem:[#allocation4 + $0x288] sm:$0xf] }
 0x646   :  { %v4095_v19 = vadd.f32 %v4094_v50, %v9059_v63  ;;  %v7298_v22 = vor.u32 %v7690_v23, %v7297_v5  ;;  %v7041_v58 = vld [vmem:[#allocation4 + $0x88] sm:$0xf]  ;;  %v7658_v23 = vld [vmem:[#allocation4 + $0x194] sm:$0xf0] }
 0x647   :  { %v4183_v25 = vpop.f32.mrf.mxu1  ;;  %v4360_v57 = vadd.f32 %v4359_v48, %v4271_v29  ;;  %v7626_v48 = vld [vmem:[#allocation4 + $0x94] sm:$0xf0]  ;;  %v7425_v29 = vld [vmem:[#allocation4 + $0x388] sm:$0xf] }
 0x648   :  { %v4184_v8 = vadd.f32 %v4183_v25, %v4095_v19  ;;  %v7042_v50 = vor.u32 %v7626_v48, %v7041_v58  ;;  %v7722_v25 = vld [vmem:[#allocation4 + $0x394] sm:$0xf0]  ;;  %4921 = vmatpush.bf16.msrb.mxu2 %v7298_v22  ;;  %v7169_v5 = vld [vmem:[#allocation4 + $0x188] sm:$0xf] }
 0x649   :  { %v5540_v61 = vmax.f32 %v4360_v57, 0.0  ;;  %v7170_v18 = vor.u32 %v7658_v23, %v7169_v5 }
 0x64a   :  { %4743 = vmatpush.bf16.msrb.mxu0 %v7042_v50 }
 0x64b   :  { %4832 = vmatpush.bf16.msrb.mxu1 %v7170_v18 }
 0x64c   :  { %v4272_v7 = vpop.f32.mrf.mxu2 }
 0x64d   :  { %v4361_v40 = vpop.f32.mrf.mxu3  ;;  %v4273_v6 = vadd.f32 %v4272_v7, %v4184_v8  ;;  %v4097_v52 = vpop.f32.mrf.mxu0 }
 0x64e   :  { %v4098_v56 = vadd.f32 %v4097_v52, %v9059_v63 }
 0x64f   :  { %v4186_v60 = vpop.f32.mrf.mxu1  ;;  %v4362_v38 = vadd.f32 %v4361_v40, %v4273_v6  ;;  %v7426_v40 = vor.u32 %v7722_v25, %v7425_v29 }
 0x650   :  { %v4187_v1 = vadd.f32 %v4186_v60, %v4098_v56  ;;  %4412 = vmatmul.bf16.gmra.mxu0 %v10493_v54 }
 0x651   :  { %v5544_v33 = vmax.f32 %v4362_v38, 0.0  ;;  %4590 = vmatmul.bf16.gmra.mxu2 %v10495_v36  ;;  %5010 = vmatpush.bf16.msrb.mxu3 %v7426_v40 }
 0x652   :  { %4501 = vmatmul.bf16.gmra.mxu1 %v10494_v28  ;;  %4679 = vmatmul.bf16.gmra.mxu3 %v8970_v62 }
 0x653   :  { %v9162_v19 = vpack.c.bf16 %v5544_v33, %v5540_v61 }
 0x654   :  { %v4275_v8 = vpop.f32.mrf.mxu2 }
 0x655   :  { %10534 = vst [vmem:[#allocation29_spill] sm:$0xff] %v9162_v19  ;;  %v4364_v7 = vpop.f32.mrf.mxu3  ;;  %v4276_v57 = vadd.f32 %v4275_v8, %v4187_v1  ;;  %v4099_v6 = vpop.f32.mrf.mxu0 }
 0x656   :  { %v4100_v60 = vadd.f32 %v4099_v6, %v9059_v63 }
 0x657   :  { %v4188_v52 = vpop.f32.mrf.mxu1  ;;  %v4365_v56 = vadd.f32 %v4364_v7, %v4276_v57 }
 0x658   :  { %v4189_v38 = vadd.f32 %v4188_v52, %v4100_v60 }
 0x659   :  { %v5548_v50 = vmax.f32 %v4365_v56, 0.0 }
 0x65c   :  { %v4277_v58 = vpop.f32.mrf.mxu2 }
 0x65d   :  { %v4366_v48 = vpop.f32.mrf.mxu3  ;;  %v4278_v61 = vadd.f32 %v4277_v58, %v4189_v38  ;;  %v4102_v33 = vpop.f32.mrf.mxu0 }
 0x65e   :  { %v4103_v22 = vadd.f32 %v4102_v33, %v9059_v63 }
 0x65f   :  { %v4191_v19 = vpop.f32.mrf.mxu1  ;;  %v4367_v1 = vadd.f32 %v4366_v48, %v4278_v61 }
 0x660   :  { %v4192_v29 = vadd.f32 %v4191_v19, %v4103_v22  ;;  %4417 = vmatmul.bf16.gmra.mxu0 %v10496_v59  ;;  %v10536_v22 = vld [vmem:[#allocation40_spill] sm:$0xff] }
 0x661   :  { %v5552_v25 = vmax.f32 %v4367_v1, 0.0  ;;  %4595 = vmatmul.bf16.gmra.mxu2 %v10498_v0  ;;  %v10537_v1 = vld [vmem:[#allocation54_spill] sm:$0xff] }
 0x662   :  { %4506 = vmatmul.bf16.gmra.mxu1 %v10497_v34  ;;  %4684 = vmatmul.bf16.gmra.mxu3 %v8978_v26 }
 0x663   :  { %v9170_v8 = vpack.c.bf16 %v5552_v25, %v5548_v50  ;;  %v10538_v25 = vld [vmem:[#allocation71_spill] sm:$0xff] }
 0x664   :  { %v4280_v18 = vpop.f32.mrf.mxu2 }
 0x665   :  { %10535 = vst [vmem:[#allocation30_spill] sm:$0xff] %v9170_v8  ;;  %v4369_v7 = vpop.f32.mrf.mxu3  ;;  %v4281_v40 = vadd.f32 %v4280_v18, %v4192_v29  ;;  %v4104_v57 = vpop.f32.mrf.mxu0  ;;  %v10539_v18 = vld [vmem:[#allocation11_spill] sm:$0xff] }
 0x666   :  { %v4105_v52 = vadd.f32 %v4104_v57, %v9059_v63 }
 0x667   :  { %v4193_v6 = vpop.f32.mrf.mxu1  ;;  %v4370_v19 = vadd.f32 %v4369_v7, %v4281_v40  ;;  %v7281_v7 = vld [vmem:[#allocation4 + $0x268] sm:$0xf]  ;;  %v7686_v40 = vld [vmem:[#allocation4 + $0x274] sm:$0xf0] }
 0x668   :  { %v4194_v60 = vadd.f32 %v4193_v6, %v4105_v52  ;;  %v7282_v57 = vor.u32 %v7686_v40, %v7281_v7  ;;  %v7025_v6 = vld [vmem:[#allocation4 + $0x68] sm:$0xf]  ;;  %v7622_v52 = vld [vmem:[#allocation4 + $0x74] sm:$0xf0] }
 0x669   :  { %v5556_v29 = vmax.f32 %v4370_v19, 0.0  ;;  %v7153_v40 = vld [vmem:[#allocation4 + $0x168] sm:$0xf] }
 0x66a   :  { %4922 = vmatpush.bf16.msrb.mxu2 %v7282_v57 }
 0x66c   :  { %v4282_v38 = vpop.f32.mrf.mxu2 }
 0x66d   :  { %v4371_v5 = vpop.f32.mrf.mxu3  ;;  %v4283_v23 = vadd.f32 %v4282_v38, %v4194_v60  ;;  %v4107_v56 = vpop.f32.mrf.mxu0  ;;  %v7409_v60 = vld [vmem:[#allocation4 + $0x368] sm:$0xf]  ;;  %v7026_v38 = vor.u32 %v7622_v52, %v7025_v6 }
 0x66e   :  { %v4108_v48 = vadd.f32 %v4107_v56, %v9059_v63  ;;  %v7718_v56 = vld [vmem:[#allocation4 + $0x374] sm:$0xf0] }
 0x66f   :  { %v4196_v58 = vpop.f32.mrf.mxu1  ;;  %v4372_v61 = vadd.f32 %v4371_v5, %v4283_v23  ;;  %4744 = vmatpush.bf16.msrb.mxu0 %v7026_v38 }
 0x670   :  { %v4197_v33 = vadd.f32 %v4196_v58, %v4108_v48  ;;  %4422 = vmatmul.bf16.gmra.mxu0 %v10536_v22  ;;  %v7410_v48 = vor.u32 %v7718_v56, %v7409_v60 }
 0x671   :  { %v5560_v50 = vmax.f32 %v4372_v61, 0.0  ;;  %4600 = vmatmul.bf16.gmra.mxu2 %v10538_v25 }
 0x672   :  { %4511 = vmatmul.bf16.gmra.mxu1 %v10537_v1  ;;  %4689 = vmatmul.bf16.gmra.mxu3 %v10539_v18  ;;  %v7654_v1 = vld [vmem:[#allocation4 + $0x174] sm:$0xf0] }
 0x673   :  { %v9178_v5 = vpack.c.bf16 %v5560_v50, %v5556_v29  ;;  %5011 = vmatpush.bf16.msrb.mxu3 %v7410_v48  ;;  %v7154_v22 = vor.u32 %v7654_v1, %v7153_v40 }
 0x674   :  { %v4285_v23 = vpop.f32.mrf.mxu2 }
 0x675   :  { %10540 = vst [vmem:[#allocation34_spill] sm:$0xff] %v9178_v5  ;;  %v4374_v58 = vpop.f32.mrf.mxu3  ;;  %v4286_v19 = vadd.f32 %v4285_v23, %v4197_v33  ;;  %v4109_v61 = vpop.f32.mrf.mxu0  ;;  %4833 = vmatpush.bf16.msrb.mxu1 %v7154_v22 }
 0x676   :  { %v4110_v18 = vadd.f32 %v4109_v61, %v9059_v63 }
 0x677   :  { %v4198_v8 = vpop.f32.mrf.mxu1  ;;  %v4375_v25 = vadd.f32 %v4374_v58, %v4286_v19 }
 0x678   :  { %v4199_v7 = vadd.f32 %v4198_v8, %v4110_v18  ;;  %v10541_v8 = vld [vmem:[#allocation12_spill] sm:$0xff] }
 0x679   :  { %v5564_v38 = vmax.f32 %v4375_v25, 0.0 }
 0x67c   :  { %v4287_v6 = vpop.f32.mrf.mxu2 }
 0x67d   :  { %v4376_v52 = vpop.f32.mrf.mxu3  ;;  %v4288_v29 = vadd.f32 %v4287_v6, %v4199_v7  ;;  %v4112_v50 = vpop.f32.mrf.mxu0  ;;  %v10543_v7 = vld [vmem:[#allocation18_spill] sm:$0xff] }
 0x67e   :  { %v4113_v57 = vadd.f32 %v4112_v50, %v9059_v63  ;;  %v9190_v40 = vperm.slane %v10543_v7, 1  ;;  %v7618_v7 = vld [vmem:[#allocation4 + $0x54] sm:$0xf0] }
 0x67f   :  { %v4201_v5 = vpop.f32.mrf.mxu1  ;;  %v4377_v33 = vadd.f32 %v4376_v52, %v4288_v29 }
 0x680   :  { %v4202_v60 = vadd.f32 %v4201_v5, %v4113_v57  ;;  %4427 = vmatmul.bf16.gmra.mxu0 %v10503_v49 }
 0x681   :  { %v5568_v56 = vmax.f32 %v4377_v33, 0.0  ;;  %4605 = vmatmul.bf16.gmra.mxu2 %v8863_v46 }
 0x682   :  { %4516 = vmatmul.bf16.gmra.mxu1 %v10504_v13  ;;  %4694 = vmatmul.bf16.gmra.mxu3 %v10541_v8 }
 0x683   :  { %v9186_v1 = vpack.c.bf16 %v5568_v56, %v5564_v38  ;;  %v10544_v56 = vld [vmem:[#allocation8_spill] sm:$0xff] }
 0x684   :  { %v4290_v22 = vpop.f32.mrf.mxu2 }
 0x685   :  { %10542 = vst [vmem:[#allocation48_spill] sm:$0xff] %v9186_v1  ;;  %v4379_v18 = vpop.f32.mrf.mxu3  ;;  %v4291_v23 = vadd.f32 %v4290_v22, %v4202_v60  ;;  %v4114_v58 = vpop.f32.mrf.mxu0  ;;  %v10545_v60 = vld [vmem:[#allocation56_spill] sm:$0xff] }
 0x686   :  { %v4115_v19 = vadd.f32 %v4114_v58, %v9059_v63  ;;  %v7265_v58 = vld [vmem:[#allocation4 + $0x248] sm:$0xf] }
 0x687   :  { %v4203_v48 = vpop.f32.mrf.mxu1  ;;  %v4380_v5 = vadd.f32 %v4379_v18, %v4291_v23  ;;  %v10546_v18 = vld [vmem:[#allocation72_spill] sm:$0xff]  ;;  %v10547_v23 = vld [vmem:[#allocation13_spill] sm:$0xff] }
 0x688   :  { %v4204_v61 = vadd.f32 %v4203_v48, %v4115_v19  ;;  %v7682_v48 = vld [vmem:[#allocation4 + $0x254] sm:$0xf0] }
 0x689   :  { %v5572_v22 = vmax.f32 %v4380_v5, 0.0  ;;  %v7266_v19 = vor.u32 %v7682_v48, %v7265_v58  ;;  %v7137_v48 = vld [vmem:[#allocation4 + $0x148] sm:$0xf] }
 0x68b   :  { %4923 = vmatpush.bf16.msrb.mxu2 %v7266_v19 }
 0x68c   :  { %v4292_v25 = vpop.f32.mrf.mxu2 }
 0x68d   :  { %v4381_v6 = vpop.f32.mrf.mxu3  ;;  %v4293_v52 = vadd.f32 %v4292_v25, %v4204_v61  ;;  %v4393_v29 = vpop.f32.mrf.mxu0  ;;  %v7009_v61 = vld [vmem:[#allocation4 + $0x48] sm:$0xf] }
 0x68e   :  { %v4394_v57 = vadd.f32 %v4393_v29, %v9190_v40  ;;  %v7393_v25 = vld [vmem:[#allocation4 + $0x348] sm:$0xf]  ;;  %v7010_v1 = vor.u32 %v7618_v7, %v7009_v61  ;;  %v7714_v29 = vld [vmem:[#allocation4 + $0x354] sm:$0xf0] }
 0x68f   :  { %v4482_v50 = vpop.f32.mrf.mxu1  ;;  %v4382_v33 = vadd.f32 %v4381_v6, %v4293_v52 }
 0x690   :  { %v4483_v38 = vadd.f32 %v4482_v50, %v4394_v57  ;;  %4432 = vmatmul.bf16.gmra.mxu0 %v10544_v56  ;;  %v7394_v57 = vor.u32 %v7714_v29, %v7393_v25  ;;  %v7650_v56 = vld [vmem:[#allocation4 + $0x154] sm:$0xf0] }
 0x691   :  { %v5576_v63 = vmax.f32 %v4382_v33, 0.0  ;;  %4610 = vmatmul.bf16.gmra.mxu2 %v10546_v18  ;;  %4745 = vmatpush.bf16.msrb.mxu0 %v7010_v1  ;;  %v7138_v8 = vor.u32 %v7650_v56, %v7137_v48 }
 0x692   :  { %4521 = vmatmul.bf16.gmra.mxu1 %v10545_v60  ;;  %4699 = vmatmul.bf16.gmra.mxu3 %v10547_v23 }
 0x693   :  { %v9197_v6 = vpack.c.bf16 %v5576_v63, %v5572_v22  ;;  %5012 = vmatpush.bf16.msrb.mxu3 %v7394_v57  ;;  %4834 = vmatpush.bf16.msrb.mxu1 %v7138_v8 }
 0x694   :  { %v4571_v52 = vpop.f32.mrf.mxu2 }
 0x695   :  { %10548 = vst [vmem:[#allocation35_spill] sm:$0xff] %v9197_v6  ;;  %v4660_v50 = vpop.f32.mrf.mxu3  ;;  %v4572_v5 = vadd.f32 %v4571_v52, %v4483_v38  ;;  %v4395_v33 = vpop.f32.mrf.mxu0 }
 0x696   :  { %v4396_v23 = vadd.f32 %v4395_v33, %v9190_v40 }
 0x697   :  { %v4484_v60 = vpop.f32.mrf.mxu1  ;;  %v4661_v18 = vadd.f32 %v4660_v50, %v4572_v5 }
 0x698   :  { %v4485_v58 = vadd.f32 %v4484_v60, %v4396_v23 }
 0x699   :  { %v5453_v1 = vmax.f32 %v4661_v18, 0.0 }
 0x69c   :  { %v4573_v61 = vpop.f32.mrf.mxu2 }
 0x69d   :  { %v4662_v7 = vpop.f32.mrf.mxu3  ;;  %v4574_v22 = vadd.f32 %v4573_v61, %v4485_v58  ;;  %v4398_v63 = vpop.f32.mrf.mxu0 }
 0x69e   :  { %v4399_v19 = vadd.f32 %v4398_v63, %v9190_v40 }
 0x69f   :  { %v4487_v6 = vpop.f32.mrf.mxu1  ;;  %v4663_v38 = vadd.f32 %v4662_v7, %v4574_v22 }
 0x6a0   :  { %v4488_v25 = vadd.f32 %v4487_v6, %v4399_v19  ;;  %4437 = vmatmul.bf16.gmra.mxu0 %v10509_v55  ;;  %v10550_v19 = vld [vmem:[#allocation43_spill] sm:$0xff] }
 0x6a1   :  { %v5457_v29 = vmax.f32 %v4663_v38, 0.0  ;;  %4615 = vmatmul.bf16.gmra.mxu2 %v8879_v21  ;;  %v10551_v38 = vld [vmem:[#allocation58_spill] sm:$0xff] }
 0x6a2   :  { %4526 = vmatmul.bf16.gmra.mxu1 %v10510_v16  ;;  %4704 = vmatmul.bf16.gmra.mxu3 %v9010_v4 }
 0x6a3   :  { %v9205_v56 = vpack.c.bf16 %v5457_v29, %v5453_v1  ;;  %v10552_v29 = vld [vmem:[#allocation31_spill] sm:$0xff] }
 0x6a4   :  { %v4576_v8 = vpop.f32.mrf.mxu2 }
 0x6a5   :  { %10549 = vst [vmem:[#allocation49_spill] sm:$0xff] %v9205_v56  ;;  %v4665_v60 = vpop.f32.mrf.mxu3  ;;  %v4577_v23 = vadd.f32 %v4576_v8, %v4488_v25  ;;  %v4400_v52 = vpop.f32.mrf.mxu0  ;;  %v10553_v8 = vld [vmem:[#allocation14_spill] sm:$0xff] }
 0x6a6   :  { %v4401_v57 = vadd.f32 %v4400_v52, %v9190_v40 }
 0x6a7   :  { %v4489_v50 = vpop.f32.mrf.mxu1  ;;  %v4666_v6 = vadd.f32 %v4665_v60, %v4577_v23  ;;  %v7249_v60 = vld [vmem:[#allocation4 + $0x228] sm:$0xf]  ;;  %v7678_v23 = vld [vmem:[#allocation4 + $0x234] sm:$0xf0] }
 0x6a8   :  { %v4490_v5 = vadd.f32 %v4489_v50, %v4401_v57  ;;  %v7250_v52 = vor.u32 %v7678_v23, %v7249_v60  ;;  %v6993_v50 = vld [vmem:[#allocation4 + $0x28] sm:$0xf]  ;;  %v7614_v57 = vld [vmem:[#allocation4 + $0x34] sm:$0xf0] }
 0x6a9   :  { %v5461_v25 = vmax.f32 %v4666_v6, 0.0  ;;  %v7121_v23 = vld [vmem:[#allocation4 + $0x128] sm:$0xf] }
 0x6aa   :  { %4924 = vmatpush.bf16.msrb.mxu2 %v7250_v52 }
 0x6ac   :  { %v4578_v33 = vpop.f32.mrf.mxu2 }
 0x6ad   :  { %v4667_v58 = vpop.f32.mrf.mxu3  ;;  %v4579_v48 = vadd.f32 %v4578_v33, %v4490_v5  ;;  %v4403_v18 = vpop.f32.mrf.mxu0  ;;  %v7377_v5 = vld [vmem:[#allocation4 + $0x328] sm:$0xf]  ;;  %v6994_v33 = vor.u32 %v7614_v57, %v6993_v50 }
 0x6ae   :  { %v4404_v7 = vadd.f32 %v4403_v18, %v9190_v40  ;;  %v7710_v18 = vld [vmem:[#allocation4 + $0x334] sm:$0xf0] }
 0x6af   :  { %v4492_v61 = vpop.f32.mrf.mxu1  ;;  %v4668_v22 = vadd.f32 %v4667_v58, %v4579_v48  ;;  %4746 = vmatpush.bf16.msrb.mxu0 %v6994_v33 }
 0x6b0   :  { %v4493_v63 = vadd.f32 %v4492_v61, %v4404_v7  ;;  %4442 = vmatmul.bf16.gmra.mxu0 %v10550_v19  ;;  %v7378_v7 = vor.u32 %v7710_v18, %v7377_v5 }
 0x6b1   :  { %v5465_v1 = vmax.f32 %v4668_v22, 0.0  ;;  %4620 = vmatmul.bf16.gmra.mxu2 %v10552_v29 }
 0x6b2   :  { %4531 = vmatmul.bf16.gmra.mxu1 %v10551_v38  ;;  %4709 = vmatmul.bf16.gmra.mxu3 %v10553_v8  ;;  %v7646_v38 = vld [vmem:[#allocation4 + $0x134] sm:$0xf0] }
 0x6b3   :  { %v9213_v58 = vpack.c.bf16 %v5465_v1, %v5461_v25  ;;  %5013 = vmatpush.bf16.msrb.mxu3 %v7378_v7  ;;  %v7122_v19 = vor.u32 %v7646_v38, %v7121_v23 }
 0x6b4   :  { %v4581_v48 = vpop.f32.mrf.mxu2 }
 0x6b5   :  { %10554 = vst [vmem:[#allocation66_spill] sm:$0xff] %v9213_v58  ;;  %v4670_v61 = vpop.f32.mrf.mxu3  ;;  %v4582_v6 = vadd.f32 %v4581_v48, %v4493_v63  ;;  %v4405_v22 = vpop.f32.mrf.mxu0  ;;  %4835 = vmatpush.bf16.msrb.mxu1 %v7122_v19 }
 0x6b6   :  { %v4406_v8 = vadd.f32 %v4405_v22, %v9190_v40 }
 0x6b7   :  { %v4494_v56 = vpop.f32.mrf.mxu1  ;;  %v4671_v29 = vadd.f32 %v4670_v61, %v4582_v6 }
 0x6b8   :  { %v4495_v60 = vadd.f32 %v4494_v56, %v4406_v8 }
 0x6b9   :  { %v5469_v33 = vmax.f32 %v4671_v29, 0.0 }
 0x6bc   :  { %v4583_v50 = vpop.f32.mrf.mxu2 }
 0x6bd   :  { %v4672_v57 = vpop.f32.mrf.mxu3  ;;  %v4584_v25 = vadd.f32 %v4583_v50, %v4495_v60  ;;  %v4408_v1 = vpop.f32.mrf.mxu0 }
 0x6be   :  { %v4409_v52 = vadd.f32 %v4408_v1, %v9190_v40 }
 0x6bf   :  { %v4497_v58 = vpop.f32.mrf.mxu1  ;;  %v4673_v63 = vadd.f32 %v4672_v57, %v4584_v25 }
 0x6c0   :  { %v4498_v5 = vadd.f32 %v4497_v58, %v4409_v52  ;;  %4447 = vmatmul.bf16.gmra.mxu0 %v10515_v45  ;;  %v10556_v52 = vld [vmem:[#allocation45_spill] sm:$0xff] }
 0x6c1   :  { %v5473_v18 = vmax.f32 %v4673_v63, 0.0  ;;  %4625 = vmatmul.bf16.gmra.mxu2 %v8895_v17  ;;  %v10557_v63 = vld [vmem:[#allocation60_spill] sm:$0xff] }
 0x6c2   :  { %4536 = vmatmul.bf16.gmra.mxu1 %v10516_v43  ;;  %4714 = vmatmul.bf16.gmra.mxu3 %v9026_v30 }
 0x6c3   :  { %v9221_v56 = vpack.c.bf16 %v5473_v18, %v5469_v33  ;;  %v10558_v18 = vld [vmem:[#allocation32_spill] sm:$0xff] }
 0x6c4   :  { %v4586_v19 = vpop.f32.mrf.mxu2 }
 0x6c5   :  { %10555 = vst [vmem:[#allocation36_spill] sm:$0xff] %v9221_v56  ;;  %v4675_v38 = vpop.f32.mrf.mxu3  ;;  %v4587_v8 = vadd.f32 %v4586_v19, %v4498_v5  ;;  %v4410_v48 = vpop.f32.mrf.mxu0  ;;  %v10559_v19 = vld [vmem:[#allocation15_spill] sm:$0xff] }
 0x6c6   :  { %v4411_v7 = vadd.f32 %v4410_v48, %v9190_v40 }
 0x6c7   :  { %v4499_v61 = vpop.f32.mrf.mxu1  ;;  %v4676_v58 = vadd.f32 %v4675_v38, %v4587_v8  ;;  %v7233_v38 = vld [vmem:[#allocation4 + $0x208] sm:$0xf]  ;;  %v7674_v8 = vld [vmem:[#allocation4 + $0x214] sm:$0xf0] }
 0x6c8   :  { %v4500_v6 = vadd.f32 %v4499_v61, %v4411_v7  ;;  %v7234_v48 = vor.u32 %v7674_v8, %v7233_v38  ;;  %v6977_v61 = vld [vmem:[#allocation4 + $0x8] sm:$0xf]  ;;  %v7610_v7 = vld [vmem:[#allocation4 + $0x14] sm:$0xf0] }
 0x6c9   :  { %v5477_v5 = vmax.f32 %v4676_v58, 0.0  ;;  %v7105_v8 = vld [vmem:[#allocation4 + $0x108] sm:$0xf] }
 0x6ca   :  { %4925 = vmatpush.bf16.msrb.mxu2 %v7234_v48 }
 0x6cc   :  { %v4588_v22 = vpop.f32.mrf.mxu2 }
 0x6cd   :  { %v4677_v60 = vpop.f32.mrf.mxu3  ;;  %v4589_v23 = vadd.f32 %v4588_v22, %v4500_v6  ;;  %v4413_v29 = vpop.f32.mrf.mxu0  ;;  %v7361_v6 = vld [vmem:[#allocation4 + $0x308] sm:$0xf]  ;;  %v6978_v22 = vor.u32 %v7610_v7, %v6977_v61 }
 0x6ce   :  { %v4414_v57 = vadd.f32 %v4413_v29, %v9190_v40  ;;  %v7706_v29 = vld [vmem:[#allocation4 + $0x314] sm:$0xf0] }
 0x6cf   :  { %v4502_v50 = vpop.f32.mrf.mxu1  ;;  %v4678_v25 = vadd.f32 %v4677_v60, %v4589_v23  ;;  %4747 = vmatpush.bf16.msrb.mxu0 %v6978_v22 }
 0x6d0   :  { %v4503_v1 = vadd.f32 %v4502_v50, %v4414_v57  ;;  %4452 = vmatmul.bf16.gmra.mxu0 %v10556_v52  ;;  %v7362_v57 = vor.u32 %v7706_v29, %v7361_v6 }
 0x6d1   :  { %v5481_v33 = vmax.f32 %v4678_v25, 0.0  ;;  %4630 = vmatmul.bf16.gmra.mxu2 %v10558_v18 }
 0x6d2   :  { %4541 = vmatmul.bf16.gmra.mxu1 %v10557_v63  ;;  %4719 = vmatmul.bf16.gmra.mxu3 %v10559_v19  ;;  %v7642_v63 = vld [vmem:[#allocation4 + $0x114] sm:$0xf0] }
 0x6d3   :  { %v9229_v60 = vpack.c.bf16 %v5481_v33, %v5477_v5  ;;  %5014 = vmatpush.bf16.msrb.mxu3 %v7362_v57  ;;  %v7106_v52 = vor.u32 %v7642_v63, %v7105_v8 }
 0x6d4   :  { %v4591_v23 = vpop.f32.mrf.mxu2 }
 0x6d5   :  { %10560 = vst [vmem:[#allocation50_spill] sm:$0xff] %v9229_v60  ;;  %v4680_v50 = vpop.f32.mrf.mxu3  ;;  %v4592_v58 = vadd.f32 %v4591_v23, %v4503_v1  ;;  %v4415_v25 = vpop.f32.mrf.mxu0  ;;  %4836 = vmatpush.bf16.msrb.mxu1 %v7106_v52 }
 0x6d6   :  { %v4416_v19 = vadd.f32 %v4415_v25, %v9190_v40 }
 0x6d7   :  { %v4504_v56 = vpop.f32.mrf.mxu1  ;;  %v4681_v18 = vadd.f32 %v4680_v50, %v4592_v58 }
 0x6d8   :  { %v4505_v38 = vadd.f32 %v4504_v56, %v4416_v19 }
 0x6d9   :  { %v5485_v22 = vmax.f32 %v4681_v18, 0.0 }
 0x6dc   :  { %v4593_v61 = vpop.f32.mrf.mxu2 }
 0x6dd   :  { %v4682_v7 = vpop.f32.mrf.mxu3  ;;  %v4594_v5 = vadd.f32 %v4593_v61, %v4505_v38  ;;  %v4418_v33 = vpop.f32.mrf.mxu0 }
 0x6de   :  { %v4419_v48 = vadd.f32 %v4418_v33, %v9190_v40 }
 0x6df   :  { %v4507_v60 = vpop.f32.mrf.mxu1  ;;  %v4683_v1 = vadd.f32 %v4682_v7, %v4594_v5 }
 0x6e0   :  { %v4508_v6 = vadd.f32 %v4507_v60, %v4419_v48  ;;  %4457 = vmatmul.bf16.gmra.mxu0 %v10521_v53  ;;  %v10562_v48 = vld [vmem:[#allocation47_spill] sm:$0xff] }
 0x6e1   :  { %v5489_v29 = vmax.f32 %v4683_v1, 0.0  ;;  %4635 = vmatmul.bf16.gmra.mxu2 %v8911_v42  ;;  %v10563_v1 = vld [vmem:[#allocation62_spill] sm:$0xff] }
 0x6e2   :  { %4546 = vmatmul.bf16.gmra.mxu1 %v10522_v31  ;;  %4724 = vmatmul.bf16.gmra.mxu3 %v9042_v35 }
 0x6e3   :  { %v9237_v56 = vpack.c.bf16 %v5489_v29, %v5485_v22  ;;  %v10564_v29 = vld [vmem:[#allocation9_spill] sm:$0xff] }
 0x6e4   :  { %v4596_v52 = vpop.f32.mrf.mxu2 }
 0x6e5   :  { %10561 = vst [vmem:[#allocation67_spill] sm:$0xff] %v9237_v56  ;;  %v4685_v63 = vpop.f32.mrf.mxu3  ;;  %v4597_v19 = vadd.f32 %v4596_v52, %v4508_v6  ;;  %v4420_v23 = vpop.f32.mrf.mxu0  ;;  %v10565_v52 = vld [vmem:[#allocation17_spill] sm:$0xff] }
 0x6e6   :  { %v4421_v57 = vadd.f32 %v4420_v23, %v9190_v40 }
 0x6e7   :  { %v4509_v50 = vpop.f32.mrf.mxu1  ;;  %v4686_v60 = vadd.f32 %v4685_v63, %v4597_v19  ;;  %v7700_v63 = vld [vmem:[#allocation4 + $0x2ec] sm:$0xf]  ;;  %v7347_v19 = vld [vmem:[#allocation4 + $0x2f8] sm:$0xf0] }
 0x6e8   :  { %v4510_v58 = vadd.f32 %v4509_v50, %v4421_v57  ;;  %v7350_v23 = vor.u32 %v7700_v63, %v7347_v19  ;;  %v7636_v50 = vld [vmem:[#allocation4 + $0xec] sm:$0xf]  ;;  %v7091_v57 = vld [vmem:[#allocation4 + $0xf8] sm:$0xf0] }
 0x6e9   :  { %v5493_v6 = vmax.f32 %v4686_v60, 0.0  ;;  %v7668_v19 = vld [vmem:[#allocation4 + $0x1ec] sm:$0xf] }
 0x6ea   :  { %5274 = vmatpush.bf16.msra.mxu2 %v7350_v23 }
 0x6ec   :  { %v4598_v25 = vpop.f32.mrf.mxu2 }
 0x6ed   :  { %v4687_v38 = vpop.f32.mrf.mxu3  ;;  %v4599_v8 = vadd.f32 %v4598_v25, %v4510_v58  ;;  %v4423_v18 = vpop.f32.mrf.mxu0  ;;  %v7732_v58 = vld [vmem:[#allocation4 + $0x3ec] sm:$0xf]  ;;  %v7094_v25 = vor.u32 %v7636_v50, %v7091_v57 }
 0x6ee   :  { %v4424_v7 = vadd.f32 %v4423_v18, %v9190_v40  ;;  %v7475_v18 = vld [vmem:[#allocation4 + $0x3f8] sm:$0xf0] }
 0x6ef   :  { %v4512_v61 = vpop.f32.mrf.mxu1  ;;  %v4688_v5 = vadd.f32 %v4687_v38, %v4599_v8  ;;  %5096 = vmatpush.bf16.msra.mxu0 %v7094_v25 }
 0x6f0   :  { %v4513_v33 = vadd.f32 %v4512_v61, %v4424_v7  ;;  %4462 = vmatmul.bf16.gmra.mxu0 %v10562_v48  ;;  %v7478_v7 = vor.u32 %v7732_v58, %v7475_v18 }
 0x6f1   :  { %v5497_v22 = vmax.f32 %v4688_v5, 0.0  ;;  %4640 = vmatmul.bf16.gmra.mxu2 %v10564_v29 }
 0x6f2   :  { %4551 = vmatmul.bf16.gmra.mxu1 %v10563_v1  ;;  %4729 = vmatmul.bf16.gmra.mxu3 %v10565_v52  ;;  %v7219_v1 = vld [vmem:[#allocation4 + $0x1f8] sm:$0xf0] }
 0x6f3   :  { %v9245_v38 = vpack.c.bf16 %v5497_v22, %v5493_v6  ;;  %5363 = vmatpush.bf16.msra.mxu3 %v7478_v7  ;;  %v7222_v48 = vor.u32 %v7668_v19, %v7219_v1 }
 0x6f4   :  { %v4601_v8 = vpop.f32.mrf.mxu2 }
 0x6f5   :  { %10566 = vst [vmem:[#allocation37_spill] sm:$0xff] %v9245_v38  ;;  %v4690_v61 = vpop.f32.mrf.mxu3  ;;  %v4602_v60 = vadd.f32 %v4601_v8, %v4513_v33  ;;  %v4425_v5 = vpop.f32.mrf.mxu0  ;;  %5185 = vmatpush.bf16.msra.mxu1 %v7222_v48 }
 0x6f6   :  { %v4426_v52 = vadd.f32 %v4425_v5, %v9190_v40 }
 0x6f7   :  { %v4514_v56 = vpop.f32.mrf.mxu1  ;;  %v4691_v29 = vadd.f32 %v4690_v61, %v4602_v60 }
 0x6f8   :  { %v4515_v63 = vadd.f32 %v4514_v56, %v4426_v52 }
 0x6f9   :  { %v5501_v25 = vmax.f32 %v4691_v29, 0.0 }
 0x6fc   :  { %v4603_v50 = vpop.f32.mrf.mxu2 }
 0x6fd   :  { %v4692_v57 = vpop.f32.mrf.mxu3  ;;  %v4604_v6 = vadd.f32 %v4603_v50, %v4515_v63  ;;  %v4428_v22 = vpop.f32.mrf.mxu0 }
 0x6fe   :  { %v4429_v23 = vadd.f32 %v4428_v22, %v9190_v40 }
 0x6ff   :  { %v4517_v38 = vpop.f32.mrf.mxu1  ;;  %v4693_v33 = vadd.f32 %v4692_v57, %v4604_v6 }
 0x700   :  { %v4518_v58 = vadd.f32 %v4517_v38, %v4429_v23  ;;  %4467 = vmatmul.bf16.gmra.mxu0 %v10527_v3 }
 0x701   :  { %v5505_v18 = vmax.f32 %v4693_v33, 0.0  ;;  %4645 = vmatmul.bf16.gmra.mxu2 %v8930_v14 }
 0x702   :  { %4556 = vmatmul.bf16.gmra.mxu1 %v10528_v27  ;;  %4734 = vmatmul.bf16.gmra.mxu3 %v9066_v32 }
 0x703   :  { %v9253_v56 = vpack.c.bf16 %v5505_v18, %v5501_v25  ;;  %v10569_v25 = vld [vmem:[#allocation10_spill] sm:$0xff]  ;;  %v7696_v18 = vld [vmem:[#allocation4 + $0x2cc] sm:$0xf] }
 0x704   :  { %v4606_v48 = vpop.f32.mrf.mxu2 }
 0x705   :  { %10567 = vst [vmem:[#allocation51_spill] sm:$0xff] %v9253_v56  ;;  %v4695_v1 = vpop.f32.mrf.mxu3  ;;  %v4607_v52 = vadd.f32 %v4606_v48, %v4518_v58  ;;  %v4430_v8 = vpop.f32.mrf.mxu0  ;;  %v10568_v58 = vld [vmem:[#allocation65_spill] sm:$0xff]  ;;  %v7331_v48 = vld [vmem:[#allocation4 + $0x2d8] sm:$0xf0] }
 0x706   :  { %v4431_v7 = vadd.f32 %v4430_v8, %v9190_v40  ;;  %v7075_v8 = vld [vmem:[#allocation4 + $0xd8] sm:$0xf0] }
 0x707   :  { %v4519_v61 = vpop.f32.mrf.mxu1  ;;  %v4696_v38 = vadd.f32 %v4695_v1, %v4607_v52  ;;  %v7334_v1 = vor.u32 %v7696_v18, %v7331_v48  ;;  %v7632_v52 = vld [vmem:[#allocation4 + $0xcc] sm:$0xf] }
 0x708   :  { %v4520_v60 = vadd.f32 %v4519_v61, %v4431_v7  ;;  %v7728_v61 = vld [vmem:[#allocation4 + $0x3cc] sm:$0xf]  ;;  %v7078_v7 = vor.u32 %v7632_v52, %v7075_v8 }
 0x709   :  { %v5509_v23 = vmax.f32 %v4696_v38, 0.0  ;;  %5275 = vmatpush.bf16.msra.mxu2 %v7334_v1  ;;  %v7664_v48 = vld [vmem:[#allocation4 + $0x1cc] sm:$0xf] }
 0x70a   :  { %5097 = vmatpush.bf16.msra.mxu0 %v7078_v7 }
 0x70c   :  { %v4608_v5 = vpop.f32.mrf.mxu2 }
 0x70d   :  { %v4697_v63 = vpop.f32.mrf.mxu3  ;;  %v4609_v19 = vadd.f32 %v4608_v5, %v4520_v60  ;;  %v4433_v29 = vpop.f32.mrf.mxu0  ;;  %v7459_v60 = vld [vmem:[#allocation4 + $0x3d8] sm:$0xf0] }
 0x70e   :  { %v4434_v57 = vadd.f32 %v4433_v29, %v9190_v40  ;;  %v7462_v29 = vor.u32 %v7728_v61, %v7459_v60 }
 0x70f   :  { %v4522_v50 = vpop.f32.mrf.mxu1  ;;  %v4698_v6 = vadd.f32 %v4697_v63, %v4609_v19 }
 0x710   :  { %v4523_v22 = vadd.f32 %v4522_v50, %v4434_v57  ;;  %4748 = vmatmul.bf16.vlgmr.msrb.gmra.mxu0 %v10478_v9  ;;  %5364 = vmatpush.bf16.msra.mxu3 %v7462_v29 }
 0x711   :  { %v5513_v33 = vmax.f32 %v4698_v6, 0.0  ;;  %4926 = vmatmul.bf16.vlgmr.msrb.gmra.mxu2 %v10568_v58 }
 0x712   :  { %4837 = vmatmul.bf16.vlgmr.msrb.gmra.mxu1 %v10479_v20  ;;  %5015 = vmatmul.bf16.vlgmr.msrb.gmra.mxu3 %v10569_v25  ;;  %v7203_v25 = vld [vmem:[#allocation4 + $0x1d8] sm:$0xf0] }
 0x713   :  { %v9261_v5 = vpack.c.bf16 %v5513_v33, %v5509_v23  ;;  %v7206_v58 = vor.u32 %v7664_v48, %v7203_v25 }
 0x714   :  { %v4611_v63 = vpop.f32.mrf.mxu2 }
 0x715   :  { %10570 = vst [vmem:[#allocation68_spill] sm:$0xff] %v9261_v5  ;;  %v4700_v19 = vpop.f32.mrf.mxu3  ;;  %v4612_v38 = vadd.f32 %v4611_v63, %v4523_v22  ;;  %v4435_v50 = vpop.f32.mrf.mxu0  ;;  %5186 = vmatpush.bf16.msra.mxu1 %v7206_v58 }
 0x716   :  { %v4436_v6 = vadd.f32 %v4435_v50, %v9190_v40 }
 0x717   :  { %v4524_v57 = vpop.f32.mrf.mxu1  ;;  %v4701_v56 = vadd.f32 %v4700_v19, %v4612_v38 }
 0x718   :  { %v4525_v18 = vadd.f32 %v4524_v57, %v4436_v6 }
 0x719   :  { %v5517_v7 = vmax.f32 %v4701_v56, 0.0 }
 0x71c   :  { %v4613_v52 = vpop.f32.mrf.mxu2 }
 0x71d   :  { %v4702_v8 = vpop.f32.mrf.mxu3  ;;  %v4614_v23 = vadd.f32 %v4613_v52, %v4525_v18  ;;  %v4438_v33 = vpop.f32.mrf.mxu0 }
 0x71e   :  { %v4439_v1 = vadd.f32 %v4438_v33, %v9190_v40 }
 0x71f   :  { %v4527_v5 = vpop.f32.mrf.mxu1  ;;  %v4703_v22 = vadd.f32 %v4702_v8, %v4614_v23 }
 0x720   :  { %v4528_v61 = vadd.f32 %v4527_v5, %v4439_v1  ;;  %4753 = vmatmul.bf16.gmra.mxu0 %v10482_v2 }
 0x721   :  { %v5521_v60 = vmax.f32 %v4703_v22, 0.0  ;;  %4931 = vmatmul.bf16.gmra.mxu2 %v10484_v47 }
 0x722   :  { %4842 = vmatmul.bf16.gmra.mxu1 %v10483_v12  ;;  %5020 = vmatmul.bf16.gmra.mxu3 %v8946_v11 }
 0x723   :  { %v9269_v25 = vpack.c.bf16 %v5521_v60, %v5517_v7  ;;  %v7315_v7 = vld [vmem:[#allocation4 + $0x2b8] sm:$0xf0] }
 0x724   :  { %v4616_v58 = vpop.f32.mrf.mxu2 }
 0x725   :  { %10571 = vst [vmem:[#allocation38_spill] sm:$0xff] %v9269_v25  ;;  %v4705_v63 = vpop.f32.mrf.mxu3  ;;  %v4617_v19 = vadd.f32 %v4616_v58, %v4528_v61  ;;  %v4440_v29 = vpop.f32.mrf.mxu0  ;;  %v7692_v61 = vld [vmem:[#allocation4 + $0x2ac] sm:$0xf] }
 0x726   :  { %v4441_v50 = vadd.f32 %v4440_v29, %v9190_v40  ;;  %v7318_v60 = vor.u32 %v7692_v61, %v7315_v7  ;;  %v7628_v58 = vld [vmem:[#allocation4 + $0xac] sm:$0xf]  ;;  %v7187_v7 = vld [vmem:[#allocation4 + $0x1b8] sm:$0xf0] }
 0x727   :  { %v4529_v38 = vpop.f32.mrf.mxu1  ;;  %v4706_v5 = vadd.f32 %v4705_v63, %v4617_v19  ;;  %v7059_v63 = vld [vmem:[#allocation4 + $0xb8] sm:$0xf0]  ;;  %v7724_v19 = vld [vmem:[#allocation4 + $0x3ac] sm:$0xf] }
 0x728   :  { %v4530_v57 = vadd.f32 %v4529_v38, %v4441_v50  ;;  %v7062_v29 = vor.u32 %v7628_v58, %v7059_v63  ;;  %v7443_v38 = vld [vmem:[#allocation4 + $0x3b8] sm:$0xf0]  ;;  %5276 = vmatpush.bf16.msra.mxu2 %v7318_v60  ;;  %v7660_v61 = vld [vmem:[#allocation4 + $0x1ac] sm:$0xf] }
 0x729   :  { %v5525_v1 = vmax.f32 %v4706_v5, 0.0  ;;  %v7190_v25 = vor.u32 %v7660_v61, %v7187_v7 }
 0x72a   :  { %5098 = vmatpush.bf16.msra.mxu0 %v7062_v29 }
 0x72b   :  { %5187 = vmatpush.bf16.msra.mxu1 %v7190_v25 }
 0x72c   :  { %v4618_v6 = vpop.f32.mrf.mxu2 }
 0x72d   :  { %v4707_v18 = vpop.f32.mrf.mxu3  ;;  %v4619_v48 = vadd.f32 %v4618_v6, %v4530_v57  ;;  %v4443_v56 = vpop.f32.mrf.mxu0 }
 0x72e   :  { %v4444_v8 = vadd.f32 %v4443_v56, %v9190_v40 }
 0x72f   :  { %v4532_v52 = vpop.f32.mrf.mxu1  ;;  %v4708_v23 = vadd.f32 %v4707_v18, %v4619_v48  ;;  %v7446_v18 = vor.u32 %v7724_v19, %v7443_v38 }
 0x730   :  { %v4533_v33 = vadd.f32 %v4532_v52, %v4444_v8  ;;  %4758 = vmatmul.bf16.gmra.mxu0 %v10486_v15 }
 0x731   :  { %v5529_v22 = vmax.f32 %v4708_v23, 0.0  ;;  %4936 = vmatmul.bf16.gmra.mxu2 %v10488_v37  ;;  %5365 = vmatpush.bf16.msra.mxu3 %v7446_v18 }
 0x732   :  { %4847 = vmatmul.bf16.gmra.mxu1 %v10487_v51  ;;  %5025 = vmatmul.bf16.gmra.mxu3 %v8954_v44 }
 0x733   :  { %v9277_v50 = vpack.c.bf16 %v5529_v22, %v5525_v1 }
 0x734   :  { %v4621_v57 = vpop.f32.mrf.mxu2 }
 0x735   :  { %10572 = vst [vmem:[#allocation52_spill] sm:$0xff] %v9277_v50  ;;  %v4710_v6 = vpop.f32.mrf.mxu3  ;;  %v4622_v5 = vadd.f32 %v4621_v57, %v4533_v33  ;;  %v4445_v48 = vpop.f32.mrf.mxu0 }
 0x736   :  { %v4446_v52 = vadd.f32 %v4445_v48, %v9190_v40 }
 0x737   :  { %v4534_v56 = vpop.f32.mrf.mxu1  ;;  %v4711_v8 = vadd.f32 %v4710_v6, %v4622_v5 }
 0x738   :  { %v4535_v23 = vadd.f32 %v4534_v56, %v4446_v52 }
 0x739   :  { %v5533_v29 = vmax.f32 %v4711_v8, 0.0 }
 0x73c   :  { %v4623_v58 = vpop.f32.mrf.mxu2 }
 0x73d   :  { %v4712_v63 = vpop.f32.mrf.mxu3  ;;  %v4624_v1 = vadd.f32 %v4623_v58, %v4535_v23  ;;  %v4448_v22 = vpop.f32.mrf.mxu0 }
 0x73e   :  { %v4449_v60 = vadd.f32 %v4448_v22, %v9190_v40 }
 0x73f   :  { %v4537_v50 = vpop.f32.mrf.mxu1  ;;  %v4713_v33 = vadd.f32 %v4712_v63, %v4624_v1 }
 0x740   :  { %v4538_v19 = vadd.f32 %v4537_v50, %v4449_v60  ;;  %4763 = vmatmul.bf16.gmra.mxu0 %v10489_v39 }
 0x741   :  { %v5537_v38 = vmax.f32 %v4713_v33, 0.0  ;;  %4941 = vmatmul.bf16.gmra.mxu2 %v10491_v24 }
 0x742   :  { %4852 = vmatmul.bf16.gmra.mxu1 %v10490_v41  ;;  %5030 = vmatmul.bf16.gmra.mxu3 %v8962_v10 }
 0x743   :  { %v9285_v57 = vpack.c.bf16 %v5537_v38, %v5533_v29  ;;  %v7299_v29 = vld [vmem:[#allocation4 + $0x298] sm:$0xf0] }
 0x744   :  { %v4626_v25 = vpop.f32.mrf.mxu2 }
 0x745   :  { %10573 = vst [vmem:[#allocation69_spill] sm:$0xff] %v9285_v57  ;;  %v4715_v6 = vpop.f32.mrf.mxu3  ;;  %v4627_v18 = vadd.f32 %v4626_v25, %v4538_v19  ;;  %v4450_v5 = vpop.f32.mrf.mxu0  ;;  %v7688_v19 = vld [vmem:[#allocation4 + $0x28c] sm:$0xf] }
 0x746   :  { %v4451_v56 = vadd.f32 %v4450_v5, %v9190_v40  ;;  %v7302_v38 = vor.u32 %v7688_v19, %v7299_v29  ;;  %v7624_v25 = vld [vmem:[#allocation4 + $0x8c] sm:$0xf]  ;;  %v7171_v29 = vld [vmem:[#allocation4 + $0x198] sm:$0xf0] }
 0x747   :  { %v4539_v48 = vpop.f32.mrf.mxu1  ;;  %v4716_v50 = vadd.f32 %v4715_v6, %v4627_v18  ;;  %v7043_v6 = vld [vmem:[#allocation4 + $0x98] sm:$0xf0]  ;;  %v7720_v18 = vld [vmem:[#allocation4 + $0x38c] sm:$0xf] }
 0x748   :  { %v4540_v52 = vadd.f32 %v4539_v48, %v4451_v56  ;;  %v7046_v5 = vor.u32 %v7624_v25, %v7043_v6  ;;  %v7427_v48 = vld [vmem:[#allocation4 + $0x398] sm:$0xf0]  ;;  %5277 = vmatpush.bf16.msra.mxu2 %v7302_v38  ;;  %v7656_v19 = vld [vmem:[#allocation4 + $0x18c] sm:$0xf] }
 0x749   :  { %v5541_v60 = vmax.f32 %v4716_v50, 0.0  ;;  %v7174_v57 = vor.u32 %v7656_v19, %v7171_v29 }
 0x74a   :  { %5099 = vmatpush.bf16.msra.mxu0 %v7046_v5 }
 0x74b   :  { %5188 = vmatpush.bf16.msra.mxu1 %v7174_v57 }
 0x74c   :  { %v4628_v23 = vpop.f32.mrf.mxu2 }
 0x74d   :  { %v4717_v61 = vpop.f32.mrf.mxu3  ;;  %v4629_v7 = vadd.f32 %v4628_v23, %v4540_v52  ;;  %v4453_v8 = vpop.f32.mrf.mxu0 }
 0x74e   :  { %v4454_v63 = vadd.f32 %v4453_v8, %v9190_v40 }
 0x74f   :  { %v4542_v58 = vpop.f32.mrf.mxu1  ;;  %v4718_v1 = vadd.f32 %v4717_v61, %v4629_v7  ;;  %v7430_v61 = vor.u32 %v7720_v18, %v7427_v48 }
 0x750   :  { %v4543_v22 = vadd.f32 %v4542_v58, %v4454_v63  ;;  %4768 = vmatmul.bf16.gmra.mxu0 %v10493_v54 }
 0x751   :  { %v5545_v33 = vmax.f32 %v4718_v1, 0.0  ;;  %4946 = vmatmul.bf16.gmra.mxu2 %v10495_v36  ;;  %5366 = vmatpush.bf16.msra.mxu3 %v7430_v61 }
 0x752   :  { %4857 = vmatmul.bf16.gmra.mxu1 %v10494_v28  ;;  %5035 = vmatmul.bf16.gmra.mxu3 %v8970_v62 }
 0x753   :  { %v9293_v56 = vpack.c.bf16 %v5545_v33, %v5541_v60 }
 0x754   :  { %v4631_v52 = vpop.f32.mrf.mxu2 }
 0x755   :  { %10574 = vst [vmem:[#allocation39_spill] sm:$0xff] %v9293_v56  ;;  %v4720_v23 = vpop.f32.mrf.mxu3  ;;  %v4632_v50 = vadd.f32 %v4631_v52, %v4543_v22  ;;  %v4455_v7 = vpop.f32.mrf.mxu0 }
 0x756   :  { %v4456_v58 = vadd.f32 %v4455_v7, %v9190_v40 }
 0x757   :  { %v4544_v8 = vpop.f32.mrf.mxu1  ;;  %v4721_v63 = vadd.f32 %v4720_v23, %v4632_v50 }
 0x758   :  { %v4545_v1 = vadd.f32 %v4544_v8, %v4456_v58 }
 0x759   :  { %v5549_v5 = vmax.f32 %v4721_v63, 0.0 }
 0x75c   :  { %v4633_v25 = vpop.f32.mrf.mxu2 }
 0x75d   :  { %v4722_v6 = vpop.f32.mrf.mxu3  ;;  %v4634_v60 = vadd.f32 %v4633_v25, %v4545_v1  ;;  %v4458_v33 = vpop.f32.mrf.mxu0 }
 0x75e   :  { %v4459_v38 = vadd.f32 %v4458_v33, %v9190_v40 }
 0x75f   :  { %v4547_v56 = vpop.f32.mrf.mxu1  ;;  %v4723_v22 = vadd.f32 %v4722_v6, %v4634_v60 }
 0x760   :  { %v4548_v18 = vadd.f32 %v4547_v56, %v4459_v38  ;;  %4773 = vmatmul.bf16.gmra.mxu0 %v10496_v59  ;;  %v10576_v38 = vld [vmem:[#allocation40_spill] sm:$0xff] }
 0x761   :  { %v5553_v48 = vmax.f32 %v4723_v22, 0.0  ;;  %4951 = vmatmul.bf16.gmra.mxu2 %v10498_v0  ;;  %v10577_v22 = vld [vmem:[#allocation54_spill] sm:$0xff] }
 0x762   :  { %4862 = vmatmul.bf16.gmra.mxu1 %v10497_v34  ;;  %5040 = vmatmul.bf16.gmra.mxu3 %v8978_v26 }
 0x763   :  { %v9301_v52 = vpack.c.bf16 %v5553_v48, %v5549_v5  ;;  %v10578_v48 = vld [vmem:[#allocation71_spill] sm:$0xff] }
 0x764   :  { %v4636_v57 = vpop.f32.mrf.mxu2 }
 0x765   :  { %10575 = vst [vmem:[#allocation53_spill] sm:$0xff] %v9301_v52  ;;  %v4725_v23 = vpop.f32.mrf.mxu3  ;;  %v4637_v61 = vadd.f32 %v4636_v57, %v4548_v18  ;;  %v4460_v50 = vpop.f32.mrf.mxu0  ;;  %v10579_v57 = vld [vmem:[#allocation11_spill] sm:$0xff] }
 0x766   :  { %v4461_v8 = vadd.f32 %v4460_v50, %v9190_v40 }
 0x767   :  { %v4549_v7 = vpop.f32.mrf.mxu1  ;;  %v4726_v56 = vadd.f32 %v4725_v23, %v4637_v61  ;;  %v7684_v23 = vld [vmem:[#allocation4 + $0x26c] sm:$0xf]  ;;  %v7283_v61 = vld [vmem:[#allocation4 + $0x278] sm:$0xf0] }
 0x768   :  { %v4550_v58 = vadd.f32 %v4549_v7, %v4461_v8  ;;  %v7286_v50 = vor.u32 %v7684_v23, %v7283_v61  ;;  %v7620_v7 = vld [vmem:[#allocation4 + $0x6c] sm:$0xf]  ;;  %v7027_v8 = vld [vmem:[#allocation4 + $0x78] sm:$0xf0] }
 0x769   :  { %v5557_v18 = vmax.f32 %v4726_v56, 0.0  ;;  %v7652_v61 = vld [vmem:[#allocation4 + $0x16c] sm:$0xf] }
 0x76a   :  { %5278 = vmatpush.bf16.msra.mxu2 %v7286_v50 }
 0x76c   :  { %v4638_v1 = vpop.f32.mrf.mxu2 }
 0x76d   :  { %v4727_v19 = vpop.f32.mrf.mxu3  ;;  %v4639_v29 = vadd.f32 %v4638_v1, %v4550_v58  ;;  %v4463_v63 = vpop.f32.mrf.mxu0  ;;  %v7716_v58 = vld [vmem:[#allocation4 + $0x36c] sm:$0xf]  ;;  %v7030_v1 = vor.u32 %v7620_v7, %v7027_v8 }
 0x76e   :  { %v4464_v6 = vadd.f32 %v4463_v63, %v9190_v40  ;;  %v7411_v63 = vld [vmem:[#allocation4 + $0x378] sm:$0xf0] }
 0x76f   :  { %v4552_v25 = vpop.f32.mrf.mxu1  ;;  %v4728_v60 = vadd.f32 %v4727_v19, %v4639_v29  ;;  %5100 = vmatpush.bf16.msra.mxu0 %v7030_v1 }
 0x770   :  { %v4553_v33 = vadd.f32 %v4552_v25, %v4464_v6  ;;  %4778 = vmatmul.bf16.gmra.mxu0 %v10576_v38  ;;  %v7414_v6 = vor.u32 %v7716_v58, %v7411_v63 }
 0x771   :  { %v5561_v5 = vmax.f32 %v4728_v60, 0.0  ;;  %4956 = vmatmul.bf16.gmra.mxu2 %v10578_v48 }
 0x772   :  { %4867 = vmatmul.bf16.gmra.mxu1 %v10577_v22  ;;  %5045 = vmatmul.bf16.gmra.mxu3 %v10579_v57  ;;  %v7155_v22 = vld [vmem:[#allocation4 + $0x178] sm:$0xf0] }
 0x773   :  { %v9309_v19 = vpack.c.bf16 %v5561_v5, %v5557_v18  ;;  %5367 = vmatpush.bf16.msra.mxu3 %v7414_v6  ;;  %v7158_v38 = vor.u32 %v7652_v61, %v7155_v22 }
 0x774   :  { %v4641_v29 = vpop.f32.mrf.mxu2 }
 0x775   :  { %10580 = vst [vmem:[#allocation70_spill] sm:$0xff] %v9309_v19  ;;  %v4730_v25 = vpop.f32.mrf.mxu3  ;;  %v4642_v56 = vadd.f32 %v4641_v29, %v4553_v33  ;;  %v4465_v60 = vpop.f32.mrf.mxu0  ;;  %5189 = vmatpush.bf16.msra.mxu1 %v7158_v38 }
 0x776   :  { %v4466_v57 = vadd.f32 %v4465_v60, %v9190_v40 }
 0x777   :  { %v4554_v52 = vpop.f32.mrf.mxu1  ;;  %v4731_v48 = vadd.f32 %v4730_v25, %v4642_v56 }
 0x778   :  { %v4555_v23 = vadd.f32 %v4554_v52, %v4466_v57  ;;  %v10581_v52 = vld [vmem:[#allocation12_spill] sm:$0xff] }
 0x779   :  { %v5565_v1 = vmax.f32 %v4731_v48, 0.0  ;;  %v9323_v48 = vld [vmem:[%s10207_s6] sm:$0xf] }
 0x77a   :  { %10583 = vst [vmem:[#allocation55_spill] sm:$0xff] %v9323_v48 }
 0x77c   :  { %v4643_v7 = vpop.f32.mrf.mxu2 }
 0x77d   :  { %v4732_v8 = vpop.f32.mrf.mxu3  ;;  %v4644_v18 = vadd.f32 %v4643_v7, %v4555_v23  ;;  %v4468_v5 = vpop.f32.mrf.mxu0  ;;  %v9326_v23 = vperm.slane %v9323_v48, 2 }
 0x77e   :  { %v4469_v50 = vadd.f32 %v4468_v5, %v9190_v40 }
 0x77f   :  { %v4557_v19 = vpop.f32.mrf.mxu1  ;;  %v4733_v33 = vadd.f32 %v4732_v8, %v4644_v18 }
 0x780   :  { %v4558_v58 = vadd.f32 %v4557_v19, %v4469_v50  ;;  %4783 = vmatmul.bf16.gmra.mxu0 %v10503_v49 }
 0x781   :  { %v5569_v63 = vmax.f32 %v4733_v33, 0.0  ;;  %4961 = vmatmul.bf16.gmra.mxu2 %v8863_v46 }
 0x782   :  { %4872 = vmatmul.bf16.gmra.mxu1 %v10504_v13  ;;  %5050 = vmatmul.bf16.gmra.mxu3 %v10581_v52 }
 0x783   :  { %v9317_v22 = vpack.c.bf16 %v5569_v63, %v5565_v1  ;;  %v10585_v1 = vld [vmem:[#allocation56_spill] sm:$0xff] }
 0x784   :  { %v4646_v38 = vpop.f32.mrf.mxu2 }
 0x785   :  { %10582 = vst [vmem:[#allocation41_spill] sm:$0xff] %v9317_v22  ;;  %v4735_v57 = vpop.f32.mrf.mxu3  ;;  %v4647_v29 = vadd.f32 %v4646_v38, %v4558_v58  ;;  %v4470_v25 = vpop.f32.mrf.mxu0  ;;  %v7712_v22 = vld [vmem:[#allocation4 + $0x34c] sm:$0xf] }
 0x786   :  { %v4471_v56 = vadd.f32 %v4470_v25, %v9190_v40  ;;  %v10584_v40 = vld [vmem:[#allocation8_spill] sm:$0xff]  ;;  %v7680_v25 = vld [vmem:[#allocation4 + $0x24c] sm:$0xf] }
 0x787   :  { %v4559_v6 = vpop.f32.mrf.mxu1  ;;  %v4736_v19 = vadd.f32 %v4735_v57, %v4647_v29  ;;  %v10586_v57 = vld [vmem:[#allocation72_spill] sm:$0xff]  ;;  %v10587_v29 = vld [vmem:[#allocation13_spill] sm:$0xff] }
 0x788   :  { %v4560_v60 = vadd.f32 %v4559_v6, %v4471_v56  ;;  %v7267_v6 = vld [vmem:[#allocation4 + $0x258] sm:$0xf0] }
 0x789   :  { %v5573_v63 = vmax.f32 %v4736_v19, 0.0  ;;  %v7270_v56 = vor.u32 %v7680_v25, %v7267_v6  ;;  %v7648_v6 = vld [vmem:[#allocation4 + $0x14c] sm:$0xf] }
 0x78b   :  { %5279 = vmatpush.bf16.msra.mxu2 %v7270_v56 }
 0x78c   :  { %v4648_v61 = vpop.f32.mrf.mxu2 }
 0x78d   :  { %v4737_v7 = vpop.f32.mrf.mxu3  ;;  %v4649_v8 = vadd.f32 %v4648_v61, %v4560_v60  ;;  %v4749_v18 = vpop.f32.mrf.mxu0  ;;  %v7616_v60 = vld [vmem:[#allocation4 + $0x4c] sm:$0xf]  ;;  %v7011_v61 = vld [vmem:[#allocation4 + $0x58] sm:$0xf0] }
 0x78e   :  { %v4750_v50 = vadd.f32 %v4749_v18, %v9326_v23  ;;  %v7014_v48 = vor.u32 %v7616_v60, %v7011_v61  ;;  %v7395_v18 = vld [vmem:[#allocation4 + $0x358] sm:$0xf0] }
 0x78f   :  { %v4838_v5 = vpop.f32.mrf.mxu1  ;;  %v4738_v33 = vadd.f32 %v4737_v7, %v4649_v8 }
 0x790   :  { %v4839_v58 = vadd.f32 %v4838_v5, %v4750_v50  ;;  %4788 = vmatmul.bf16.gmra.mxu0 %v10584_v40  ;;  %v7398_v50 = vor.u32 %v7712_v22, %v7395_v18  ;;  %v7139_v40 = vld [vmem:[#allocation4 + $0x158] sm:$0xf0] }
 0x791   :  { %v5577_v38 = vmax.f32 %v4738_v33, 0.0  ;;  %4966 = vmatmul.bf16.gmra.mxu2 %v10586_v57  ;;  %5101 = vmatpush.bf16.msra.mxu0 %v7014_v48  ;;  %v7142_v52 = vor.u32 %v7648_v6, %v7139_v40 }
 0x792   :  { %4877 = vmatmul.bf16.gmra.mxu1 %v10585_v1  ;;  %5055 = vmatmul.bf16.gmra.mxu3 %v10587_v29 }
 0x793   :  { %v9333_v7 = vpack.c.bf16 %v5577_v38, %v5573_v63  ;;  %5368 = vmatpush.bf16.msra.mxu3 %v7398_v50  ;;  %5190 = vmatpush.bf16.msra.mxu1 %v7142_v52 }
 0x794   :  { %v4927_v8 = vpop.f32.mrf.mxu2 }
 0x795   :  { %10588 = vst [vmem:[#allocation42_spill] sm:$0xff] %v9333_v7  ;;  %v5016_v5 = vpop.f32.mrf.mxu3  ;;  %v4928_v19 = vadd.f32 %v4927_v8, %v4839_v58  ;;  %v4751_v33 = vpop.f32.mrf.mxu0 }
 0x796   :  { %v4752_v29 = vadd.f32 %v4751_v33, %v9326_v23 }
 0x797   :  { %v4840_v1 = vpop.f32.mrf.mxu1  ;;  %v5017_v57 = vadd.f32 %v5016_v5, %v4928_v19 }
 0x798   :  { %v4841_v25 = vadd.f32 %v4840_v1, %v4752_v29 }
 0x799   :  { %v5454_v48 = vmax.f32 %v5017_v57, 0.0 }
 0x79c   :  { %v4929_v60 = vpop.f32.mrf.mxu2 }
 0x79d   :  { %v5018_v61 = vpop.f32.mrf.mxu3  ;;  %v4930_v63 = vadd.f32 %v4929_v60, %v4841_v25  ;;  %v4754_v38 = vpop.f32.mrf.mxu0 }
 0x79e   :  { %v4755_v22 = vadd.f32 %v4754_v38, %v9326_v23 }
 0x79f   :  { %v4843_v7 = vpop.f32.mrf.mxu1  ;;  %v5019_v58 = vadd.f32 %v5018_v61, %v4930_v63 }
 0x7a0   :  { %v4844_v56 = vadd.f32 %v4843_v7, %v4755_v22  ;;  %4793 = vmatmul.bf16.gmra.mxu0 %v10509_v55  ;;  %v10590_v22 = vld [vmem:[#allocation43_spill] sm:$0xff] }
 0x7a1   :  { %v5458_v18 = vmax.f32 %v5019_v58, 0.0  ;;  %4971 = vmatmul.bf16.gmra.mxu2 %v8879_v21  ;;  %v10591_v58 = vld [vmem:[#allocation58_spill] sm:$0xff] }
 0x7a2   :  { %4882 = vmatmul.bf16.gmra.mxu1 %v10510_v16  ;;  %5060 = vmatmul.bf16.gmra.mxu3 %v9010_v4 }
 0x7a3   :  { %v9341_v40 = vpack.c.bf16 %v5458_v18, %v5454_v48  ;;  %v10592_v18 = vld [vmem:[#allocation31_spill] sm:$0xff] }
 0x7a4   :  { %v4932_v52 = vpop.f32.mrf.mxu2 }
 0x7a5   :  { %10589 = vst [vmem:[#allocation57_spill] sm:$0xff] %v9341_v40  ;;  %v5021_v1 = vpop.f32.mrf.mxu3  ;;  %v4933_v29 = vadd.f32 %v4932_v52, %v4844_v56  ;;  %v4756_v8 = vpop.f32.mrf.mxu0  ;;  %v10593_v52 = vld [vmem:[#allocation14_spill] sm:$0xff] }
 0x7a6   :  { %v4757_v50 = vadd.f32 %v4756_v8, %v9326_v23 }
 0x7a7   :  { %v4845_v5 = vpop.f32.mrf.mxu1  ;;  %v5022_v7 = vadd.f32 %v5021_v1, %v4933_v29  ;;  %v7676_v1 = vld [vmem:[#allocation4 + $0x22c] sm:$0xf]  ;;  %v7251_v29 = vld [vmem:[#allocation4 + $0x238] sm:$0xf0] }
 0x7a8   :  { %v4846_v19 = vadd.f32 %v4845_v5, %v4757_v50  ;;  %v7254_v8 = vor.u32 %v7676_v1, %v7251_v29  ;;  %v7612_v5 = vld [vmem:[#allocation4 + $0x2c] sm:$0xf]  ;;  %v6995_v50 = vld [vmem:[#allocation4 + $0x38] sm:$0xf0] }
 0x7a9   :  { %v5462_v56 = vmax.f32 %v5022_v7, 0.0  ;;  %v7644_v29 = vld [vmem:[#allocation4 + $0x12c] sm:$0xf] }
 0x7aa   :  { %5280 = vmatpush.bf16.msra.mxu2 %v7254_v8 }
 0x7ac   :  { %v4934_v33 = vpop.f32.mrf.mxu2 }
 0x7ad   :  { %v5023_v25 = vpop.f32.mrf.mxu3  ;;  %v4935_v6 = vadd.f32 %v4934_v33, %v4846_v19  ;;  %v4759_v57 = vpop.f32.mrf.mxu0  ;;  %v7708_v19 = vld [vmem:[#allocation4 + $0x32c] sm:$0xf]  ;;  %v6998_v33 = vor.u32 %v7612_v5, %v6995_v50 }
 0x7ae   :  { %v4760_v61 = vadd.f32 %v4759_v57, %v9326_v23  ;;  %v7379_v57 = vld [vmem:[#allocation4 + $0x338] sm:$0xf0] }
 0x7af   :  { %v4848_v60 = vpop.f32.mrf.mxu1  ;;  %v5024_v63 = vadd.f32 %v5023_v25, %v4935_v6  ;;  %5102 = vmatpush.bf16.msra.mxu0 %v6998_v33 }
 0x7b0   :  { %v4849_v38 = vadd.f32 %v4848_v60, %v4760_v61  ;;  %4798 = vmatmul.bf16.gmra.mxu0 %v10590_v22  ;;  %v7382_v61 = vor.u32 %v7708_v19, %v7379_v57 }
 0x7b1   :  { %v5466_v48 = vmax.f32 %v5024_v63, 0.0  ;;  %4976 = vmatmul.bf16.gmra.mxu2 %v10592_v18 }
 0x7b2   :  { %4887 = vmatmul.bf16.gmra.mxu1 %v10591_v58  ;;  %5065 = vmatmul.bf16.gmra.mxu3 %v10593_v52  ;;  %v7123_v58 = vld [vmem:[#allocation4 + $0x138] sm:$0xf0] }
 0x7b3   :  { %v9349_v25 = vpack.c.bf16 %v5466_v48, %v5462_v56  ;;  %5369 = vmatpush.bf16.msra.mxu3 %v7382_v61  ;;  %v7126_v22 = vor.u32 %v7644_v29, %v7123_v58 }
 0x7b4   :  { %v4937_v6 = vpop.f32.mrf.mxu2 }
 0x7b5   :  { %10594 = vst [vmem:[#allocation44_spill] sm:$0xff] %v9349_v25  ;;  %v5026_v60 = vpop.f32.mrf.mxu3  ;;  %v4938_v7 = vadd.f32 %v4937_v6, %v4849_v38  ;;  %v4761_v63 = vpop.f32.mrf.mxu0  ;;  %5191 = vmatpush.bf16.msra.mxu1 %v7126_v22 }
 0x7b6   :  { %v4762_v52 = vadd.f32 %v4761_v63, %v9326_v23 }
 0x7b7   :  { %v4850_v40 = vpop.f32.mrf.mxu1  ;;  %v5027_v18 = vadd.f32 %v5026_v60, %v4938_v7 }
 0x7b8   :  { %v4851_v1 = vadd.f32 %v4850_v40, %v4762_v52 }
 0x7b9   :  { %v5470_v33 = vmax.f32 %v5027_v18, 0.0 }
 0x7bc   :  { %v4939_v5 = vpop.f32.mrf.mxu2 }
 0x7bd   :  { %v5028_v50 = vpop.f32.mrf.mxu3  ;;  %v4940_v56 = vadd.f32 %v4939_v5, %v4851_v1  ;;  %v4764_v48 = vpop.f32.mrf.mxu0 }
 0x7be   :  { %v4765_v8 = vadd.f32 %v4764_v48, %v9326_v23 }
 0x7bf   :  { %v4853_v25 = vpop.f32.mrf.mxu1  ;;  %v5029_v38 = vadd.f32 %v5028_v50, %v4940_v56 }
 0x7c0   :  { %v4854_v19 = vadd.f32 %v4853_v25, %v4765_v8  ;;  %4803 = vmatmul.bf16.gmra.mxu0 %v10515_v45  ;;  %v10596_v8 = vld [vmem:[#allocation45_spill] sm:$0xff] }
 0x7c1   :  { %v5474_v57 = vmax.f32 %v5029_v38, 0.0  ;;  %4981 = vmatmul.bf16.gmra.mxu2 %v8895_v17  ;;  %v10597_v38 = vld [vmem:[#allocation60_spill] sm:$0xff] }
 0x7c2   :  { %4892 = vmatmul.bf16.gmra.mxu1 %v10516_v43  ;;  %5070 = vmatmul.bf16.gmra.mxu3 %v9026_v30 }
 0x7c3   :  { %v9357_v40 = vpack.c.bf16 %v5474_v57, %v5470_v33  ;;  %v10598_v57 = vld [vmem:[#allocation32_spill] sm:$0xff] }
 0x7c4   :  { %v4942_v22 = vpop.f32.mrf.mxu2 }
 0x7c5   :  { %10595 = vst [vmem:[#allocation59_spill] sm:$0xff] %v9357_v40  ;;  %v5031_v58 = vpop.f32.mrf.mxu3  ;;  %v4943_v52 = vadd.f32 %v4942_v22, %v4854_v19  ;;  %v4766_v6 = vpop.f32.mrf.mxu0  ;;  %v10599_v22 = vld [vmem:[#allocation15_spill] sm:$0xff] }
 0x7c6   :  { %v4767_v61 = vadd.f32 %v4766_v6, %v9326_v23 }
 0x7c7   :  { %v4855_v60 = vpop.f32.mrf.mxu1  ;;  %v5032_v25 = vadd.f32 %v5031_v58, %v4943_v52  ;;  %v7672_v58 = vld [vmem:[#allocation4 + $0x20c] sm:$0xf]  ;;  %v7235_v52 = vld [vmem:[#allocation4 + $0x218] sm:$0xf0] }
 0x7c8   :  { %v4856_v7 = vadd.f32 %v4855_v60, %v4767_v61  ;;  %v7238_v6 = vor.u32 %v7672_v58, %v7235_v52  ;;  %v7608_v60 = vld [vmem:[#allocation4 + $0xc] sm:$0xf]  ;;  %v6979_v61 = vld [vmem:[#allocation4 + $0x18] sm:$0xf0] }
 0x7c9   :  { %v5478_v19 = vmax.f32 %v5032_v25, 0.0  ;;  %v7640_v52 = vld [vmem:[#allocation4 + $0x10c] sm:$0xf] }
 0x7ca   :  { %5281 = vmatpush.bf16.msra.mxu2 %v7238_v6 }
 0x7cc   :  { %v4944_v63 = vpop.f32.mrf.mxu2 }
 0x7cd   :  { %v5033_v1 = vpop.f32.mrf.mxu3  ;;  %v4945_v29 = vadd.f32 %v4944_v63, %v4856_v7  ;;  %v4769_v18 = vpop.f32.mrf.mxu0  ;;  %v7704_v7 = vld [vmem:[#allocation4 + $0x30c] sm:$0xf]  ;;  %v6982_v63 = vor.u32 %v7608_v60, %v6979_v61 }
 0x7ce   :  { %v4770_v50 = vadd.f32 %v4769_v18, %v9326_v23  ;;  %v7363_v18 = vld [vmem:[#allocation4 + $0x318] sm:$0xf0] }
 0x7cf   :  { %v4858_v5 = vpop.f32.mrf.mxu1  ;;  %v5034_v56 = vadd.f32 %v5033_v1, %v4945_v29  ;;  %5103 = vmatpush.bf16.msra.mxu0 %v6982_v63 }
 0x7d0   :  { %v4859_v48 = vadd.f32 %v4858_v5, %v4770_v50  ;;  %4808 = vmatmul.bf16.gmra.mxu0 %v10596_v8  ;;  %v7366_v50 = vor.u32 %v7704_v7, %v7363_v18 }
 0x7d1   :  { %v5482_v33 = vmax.f32 %v5034_v56, 0.0  ;;  %4986 = vmatmul.bf16.gmra.mxu2 %v10598_v57 }
 0x7d2   :  { %4897 = vmatmul.bf16.gmra.mxu1 %v10597_v38  ;;  %5075 = vmatmul.bf16.gmra.mxu3 %v10599_v22  ;;  %v7107_v38 = vld [vmem:[#allocation4 + $0x118] sm:$0xf0] }
 0x7d3   :  { %v9365_v1 = vpack.c.bf16 %v5482_v33, %v5478_v19  ;;  %5370 = vmatpush.bf16.msra.mxu3 %v7366_v50  ;;  %v7110_v8 = vor.u32 %v7640_v52, %v7107_v38 }
 0x7d4   :  { %v4947_v29 = vpop.f32.mrf.mxu2 }
 0x7d5   :  { %10600 = vst [vmem:[#allocation46_spill] sm:$0xff] %v9365_v1  ;;  %v5036_v5 = vpop.f32.mrf.mxu3  ;;  %v4948_v25 = vadd.f32 %v4947_v29, %v4859_v48  ;;  %v4771_v56 = vpop.f32.mrf.mxu0  ;;  %5192 = vmatpush.bf16.msra.mxu1 %v7110_v8 }
 0x7d6   :  { %v4772_v22 = vadd.f32 %v4771_v56, %v9326_v23 }
 0x7d7   :  { %v4860_v40 = vpop.f32.mrf.mxu1  ;;  %v5037_v57 = vadd.f32 %v5036_v5, %v4948_v25 }
 0x7d8   :  { %v4861_v58 = vadd.f32 %v4860_v40, %v4772_v22 }
 0x7d9   :  { %v5486_v63 = vmax.f32 %v5037_v57, 0.0 }
 0x7dc   :  { %v4949_v60 = vpop.f32.mrf.mxu2 }
 0x7dd   :  { %v5038_v61 = vpop.f32.mrf.mxu3  ;;  %v4950_v19 = vadd.f32 %v4949_v60, %v4861_v58  ;;  %v4774_v33 = vpop.f32.mrf.mxu0 }
 0x7de   :  { %v4775_v6 = vadd.f32 %v4774_v33, %v9326_v23 }
 0x7df   :  { %v4863_v1 = vpop.f32.mrf.mxu1  ;;  %v5039_v48 = vadd.f32 %v5038_v61, %v4950_v19 }
 0x7e0   :  { %v4864_v7 = vadd.f32 %v4863_v1, %v4775_v6  ;;  %4813 = vmatmul.bf16.gmra.mxu0 %v10521_v53  ;;  %v10602_v6 = vld [vmem:[#allocation47_spill] sm:$0xff] }
 0x7e1   :  { %v5490_v18 = vmax.f32 %v5039_v48, 0.0  ;;  %4991 = vmatmul.bf16.gmra.mxu2 %v8911_v42  ;;  %v10603_v48 = vld [vmem:[#allocation62_spill] sm:$0xff] }
 0x7e2   :  { %4902 = vmatmul.bf16.gmra.mxu1 %v10522_v31  ;;  %5080 = vmatmul.bf16.gmra.mxu3 %v9042_v35 }
 0x7e3   :  { %v9373_v40 = vpack.c.bf16 %v5490_v18, %v5486_v63  ;;  %v10604_v18 = vld [vmem:[#allocation9_spill] sm:$0xff] }
 0x7e4   :  { %v4952_v8 = vpop.f32.mrf.mxu2 }
 0x7e5   :  { %10601 = vst [vmem:[#allocation61_spill] sm:$0xff] %v9373_v40  ;;  %v5041_v38 = vpop.f32.mrf.mxu3  ;;  %v4953_v22 = vadd.f32 %v4952_v8, %v4864_v7  ;;  %v4776_v29 = vpop.f32.mrf.mxu0  ;;  %v10605_v8 = vld [vmem:[#allocation17_spill] sm:$0xff] }
 0x7e6   :  { %v4777_v50 = vadd.f32 %v4776_v29, %v9326_v23 }
 0x7e7   :  { %v4865_v5 = vpop.f32.mrf.mxu1  ;;  %v5042_v1 = vadd.f32 %v5041_v38, %v4953_v22  ;;  %v5645_v38 = vld [vmem:[%s10208_s7 + $0x8] sm:$0xff]  ;;  %v5644_v22 = vld [vmem:[%s10208_s7] sm:$0xff] }
 0x7e8   :  { %v4866_v25 = vadd.f32 %v4865_v5, %v4777_v50  ;;  %v5654_v29 = vunpack.c.l.b16 %v5645_v38  ;;  %v5652_v5 = vunpack.c.l.b16 %v5644_v22  ;;  %v5655_v50 = vunpack.c.h.b16 %v5645_v38 }
 0x7e9   :  { %v5494_v7 = vmax.f32 %v5042_v1, 0.0 }
 0x7ec   :  { %v4954_v56 = vpop.f32.mrf.mxu2 }
 0x7ed   :  { %v5043_v58 = vpop.f32.mrf.mxu3  ;;  %v4955_v52 = vadd.f32 %v4954_v56, %v4866_v25  ;;  %v4779_v57 = vpop.f32.mrf.mxu0 }
 0x7ee   :  { %v4780_v61 = vadd.f32 %v4779_v57, %v9326_v23  ;;  %v5659_v57 = vpack.c.b16 %v5655_v50, %v5655_v50 }
 0x7ef   :  { %v4868_v60 = vpop.f32.mrf.mxu1  ;;  %v5044_v19 = vadd.f32 %v5043_v58, %v4955_v52  ;;  %v5658_v58 = vpack.c.b16 %v5654_v29, %v5654_v29  ;;  %v5656_v52 = vpack.c.b16 %v5652_v5, %v5652_v5 }
 0x7f0   :  { %v4869_v33 = vadd.f32 %v4868_v60, %v4780_v61  ;;  %4818 = vmatmul.bf16.gmra.mxu0 %v10602_v6  ;;  %5938 = vmatpush.bf16.xpose.msrb.mxu3 %v5659_v57 }
 0x7f1   :  { %v5498_v63 = vmax.f32 %v5044_v19, 0.0  ;;  %4996 = vmatmul.bf16.gmra.mxu2 %v10604_v18  ;;  %5671 = vmatpush.bf16.xpose.msrb.mxu0 %v5656_v52 }
 0x7f2   :  { %4907 = vmatmul.bf16.gmra.mxu1 %v10603_v48  ;;  %5085 = vmatmul.bf16.gmra.mxu3 %v10605_v8  ;;  %v5653_v48 = vunpack.c.h.b16 %v5644_v22 }
 0x7f3   :  { %v9387_v25 = vpack.c.bf16 %v5498_v63, %v5494_v7  ;;  %5849 = vmatpush.bf16.xpose.msrb.mxu2 %v5658_v58 }
 0x7f4   :  { %v4957_v56 = vpop.f32.mrf.mxu2  ;;  %v5657_v6 = vpack.c.b16 %v5653_v48, %v5653_v48 }
 0x7f5   :  { %10606 = vst [vmem:[#allocation33_spill] sm:$0xff] %v9387_v25  ;;  %v5046_v1 = vpop.f32.mrf.mxu3  ;;  %v4958_v60 = vadd.f32 %v4957_v56, %v4869_v33  ;;  %v4781_v61 = vpop.f32.mrf.mxu0 }
 0x7f6   :  { %v4782_v40 = vadd.f32 %v4781_v61, %v9326_v23  ;;  %5760 = vmatpush.bf16.xpose.msrb.mxu1 %v5657_v6 }
 0x7f7   :  { %v4870_v19 = vpop.f32.mrf.mxu1  ;;  %v5047_v8 = vadd.f32 %v5046_v1, %v4958_v60 }
 0x7f8   :  { %v4871_v18 = vadd.f32 %v4870_v19, %v4782_v40 }
 0x7f9   :  { %v5502_v50 = vmax.f32 %v5047_v8, 0.0 }
 0x7fc   :  { %v4959_v38 = vpop.f32.mrf.mxu2 }
 0x7fd   :  { %v5048_v7 = vpop.f32.mrf.mxu3  ;;  %v4960_v63 = vadd.f32 %v4959_v38, %v4871_v18  ;;  %v4784_v25 = vpop.f32.mrf.mxu0 }
 0x7fe   :  { %v4785_v29 = vadd.f32 %v4784_v25, %v9326_v23 }
 0x7ff   :  { %v4873_v35 = vpop.f32.mrf.mxu1  ;;  %v5049_v33 = vadd.f32 %v5048_v7, %v4960_v63 }
 0x800   :  { %v4874_v5 = vadd.f32 %v4873_v35, %v4785_v29  ;;  %4823 = vmatmul.bf16.gmra.mxu0 %v10527_v3 }
 0x801   :  { %v5506_v56 = vmax.f32 %v5049_v33, 0.0  ;;  %5001 = vmatmul.bf16.gmra.mxu2 %v8930_v14  ;;  %v10607_v33 = vld [vmem:[#allocation65_spill] sm:$0xff] }
 0x802   :  { %4912 = vmatmul.bf16.gmra.mxu1 %v10528_v27  ;;  %5090 = vmatmul.bf16.gmra.mxu3 %v9066_v32 }
 0x803   :  { %v9395_v40 = vpack.c.bf16 %v5506_v56, %v5502_v50 }
 0x804   :  { %v4962_v48 = vpop.f32.mrf.mxu2 }
 0x805   :  { %v5051_v18 = vpop.f32.mrf.mxu3  ;;  %v4963_v22 = vadd.f32 %v4962_v48, %v4874_v5  ;;  %v4786_v6 = vpop.f32.mrf.mxu0  ;;  %v10608_v5 = vld [vmem:[#allocation10_spill] sm:$0xff] }
 0x806   :  { %v4787_v25 = vadd.f32 %v4786_v6, %v9326_v23 }
 0x807   :  { %v4875_v1 = vpop.f32.mrf.mxu1  ;;  %v5052_v35 = vadd.f32 %v5051_v18, %v4963_v22 }
 0x808   :  { %v4876_v58 = vadd.f32 %v4875_v1, %v4787_v25 }
 0x809   :  { %v5510_v63 = vmax.f32 %v5052_v35, 0.0 }
 0x80c   :  { %v4964_v52 = vpop.f32.mrf.mxu2 }
 0x80d   :  { %v5053_v57 = vpop.f32.mrf.mxu3  ;;  %v4965_v60 = vadd.f32 %v4964_v52, %v4876_v58  ;;  %v4789_v8 = vpop.f32.mrf.mxu0 }
 0x80e   :  { %v4790_v19 = vadd.f32 %v4789_v8, %v9326_v23 }
 0x80f   :  { %v4878_v61 = vpop.f32.mrf.mxu1  ;;  %v5054_v38 = vadd.f32 %v5053_v57, %v4965_v60 }
 0x810   :  { %v4879_v7 = vadd.f32 %v4878_v61, %v4790_v19  ;;  %5104 = vmatmul.bf16.vlgmr.msra.gmra.mxu0 %v10478_v9 }
 0x811   :  { %v5514_v29 = vmax.f32 %v5054_v38, 0.0  ;;  %5282 = vmatmul.bf16.vlgmr.msra.gmra.mxu2 %v10607_v33 }
 0x812   :  { %5193 = vmatmul.bf16.vlgmr.msra.gmra.mxu1 %v10479_v20  ;;  %5371 = vmatmul.bf16.vlgmr.msra.gmra.mxu3 %v10608_v5 }
 0x813   :  { %v9403_v50 = vpack.c.bf16 %v5514_v29, %v5510_v63 }
 0x814   :  { %v4967_v56 = vpop.f32.mrf.mxu2 }
 0x815   :  { %v5056_v48 = vpop.f32.mrf.mxu3  ;;  %v4968_v18 = vadd.f32 %v4967_v56, %v4879_v7  ;;  %v4791_v22 = vpop.f32.mrf.mxu0 }
 0x816   :  { %v4792_v1 = vadd.f32 %v4791_v22, %v9326_v23 }
 0x817   :  { %v4880_v6 = vpop.f32.mrf.mxu1  ;;  %v5057_v25 = vadd.f32 %v5056_v48, %v4968_v18 }
 0x818   :  { %v4881_v58 = vadd.f32 %v4880_v6, %v4792_v1 }
 0x819   :  { %v5518_v19 = vmax.f32 %v5057_v25, 0.0 }
 0x81c   :  { %v4969_v9 = vpop.f32.mrf.mxu2 }
 0x81d   :  { %v5058_v52 = vpop.f32.mrf.mxu3  ;;  %v4970_v20 = vadd.f32 %v4969_v9, %v4881_v58  ;;  %v4794_v35 = vpop.f32.mrf.mxu0 }
 0x81e   :  { %v4795_v60 = vadd.f32 %v4794_v35, %v9326_v23 }
 0x81f   :  { %v4883_v57 = vpop.f32.mrf.mxu1  ;;  %v5059_v8 = vadd.f32 %v5058_v52, %v4970_v20 }
 0x820   :  { %v4884_v61 = vadd.f32 %v4883_v57, %v4795_v60  ;;  %5109 = vmatmul.bf16.gmra.mxu0 %v10482_v2 }
 0x821   :  { %v5522_v38 = vmax.f32 %v5059_v8, 0.0  ;;  %5287 = vmatmul.bf16.gmra.mxu2 %v10484_v47 }
 0x822   :  { %5198 = vmatmul.bf16.gmra.mxu1 %v10483_v12  ;;  %5376 = vmatmul.bf16.gmra.mxu3 %v8946_v11 }
 0x823   :  { %v9411_v7 = vpack.c.bf16 %v5522_v38, %v5518_v19 }
 0x824   :  { %v4972_v63 = vpop.f32.mrf.mxu2 }
 0x825   :  { %v5061_v29 = vpop.f32.mrf.mxu3  ;;  %v4973_v33 = vadd.f32 %v4972_v63, %v4884_v61  ;;  %v4796_v5 = vpop.f32.mrf.mxu0 }
 0x826   :  { %v4797_v48 = vadd.f32 %v4796_v5, %v9326_v23 }
 0x827   :  { %v4885_v56 = vpop.f32.mrf.mxu1  ;;  %v5062_v18 = vadd.f32 %v5061_v29, %v4973_v33 }
 0x828   :  { %v4886_v22 = vadd.f32 %v4885_v56, %v4797_v48 }
 0x829   :  { %v5526_v9 = vmax.f32 %v5062_v18, 0.0 }
 0x82c   :  { %v4974_v2 = vpop.f32.mrf.mxu2 }
 0x82d   :  { %v5063_v6 = vpop.f32.mrf.mxu3  ;;  %v4975_v12 = vadd.f32 %v4974_v2, %v4886_v22  ;;  %v4799_v1 = vpop.f32.mrf.mxu0 }
 0x82e   :  { %v4800_v47 = vadd.f32 %v4799_v1, %v9326_v23 }
 0x82f   :  { %v4888_v25 = vpop.f32.mrf.mxu1  ;;  %v5064_v58 = vadd.f32 %v5063_v6, %v4975_v12 }
 0x830   :  { %v4889_v11 = vadd.f32 %v4888_v25, %v4800_v47  ;;  %5114 = vmatmul.bf16.gmra.mxu0 %v10486_v15 }
 0x831   :  { %v5530_v52 = vmax.f32 %v5064_v58, 0.0  ;;  %5292 = vmatmul.bf16.gmra.mxu2 %v10488_v37 }
 0x832   :  { %5203 = vmatmul.bf16.gmra.mxu1 %v10487_v51  ;;  %5381 = vmatmul.bf16.gmra.mxu3 %v8954_v44 }
 0x833   :  { %v9419_v20 = vpack.c.bf16 %v5530_v52, %v5526_v9 }
 0x834   :  { %v4977_v35 = vpop.f32.mrf.mxu2 }
 0x835   :  { %v5066_v57 = vpop.f32.mrf.mxu3  ;;  %v4978_v60 = vadd.f32 %v4977_v35, %v4889_v11  ;;  %v4801_v8 = vpop.f32.mrf.mxu0 }
 0x836   :  { %v4802_v19 = vadd.f32 %v4801_v8, %v9326_v23 }
 0x837   :  { %v4890_v61 = vpop.f32.mrf.mxu1  ;;  %v5067_v38 = vadd.f32 %v5066_v57, %v4978_v60 }
 0x838   :  { %v4891_v63 = vadd.f32 %v4890_v61, %v4802_v19 }
 0x839   :  { %v5534_v48 = vmax.f32 %v5067_v38, 0.0 }
 0x83c   :  { %v4979_v15 = vpop.f32.mrf.mxu2 }
 0x83d   :  { %v5068_v29 = vpop.f32.mrf.mxu3  ;;  %v4980_v51 = vadd.f32 %v4979_v15, %v4891_v63  ;;  %v4804_v33 = vpop.f32.mrf.mxu0 }
 0x83e   :  { %v4805_v37 = vadd.f32 %v4804_v33, %v9326_v23 }
 0x83f   :  { %v4893_v5 = vpop.f32.mrf.mxu1  ;;  %v5069_v56 = vadd.f32 %v5068_v29, %v4980_v51 }
 0x840   :  { %v4894_v44 = vadd.f32 %v4893_v5, %v4805_v37  ;;  %5119 = vmatmul.bf16.gmra.mxu0 %v10489_v39 }
 0x841   :  { %v5538_v18 = vmax.f32 %v5069_v56, 0.0  ;;  %5297 = vmatmul.bf16.gmra.mxu2 %v10491_v24 }
 0x842   :  { %5208 = vmatmul.bf16.gmra.mxu1 %v10490_v41  ;;  %5386 = vmatmul.bf16.gmra.mxu3 %v8962_v10 }
 0x843   :  { %v9427_v22 = vpack.c.bf16 %v5538_v18, %v5534_v48 }
 0x844   :  { %v4982_v2 = vpop.f32.mrf.mxu2 }
 0x845   :  { %v5071_v6 = vpop.f32.mrf.mxu3  ;;  %v4983_v12 = vadd.f32 %v4982_v2, %v4894_v44  ;;  %v4806_v1 = vpop.f32.mrf.mxu0 }
 0x846   :  { %v4807_v47 = vadd.f32 %v4806_v1, %v9326_v23 }
 0x847   :  { %v4895_v25 = vpop.f32.mrf.mxu1  ;;  %v5072_v58 = vadd.f32 %v5071_v6, %v4983_v12 }
 0x848   :  { %v4896_v11 = vadd.f32 %v4895_v25, %v4807_v47 }
 0x849   :  { %v5542_v60 = vmax.f32 %v5072_v58, 0.0 }
 0x84c   :  { %v4984_v39 = vpop.f32.mrf.mxu2 }
 0x84d   :  { %v5073_v9 = vpop.f32.mrf.mxu3  ;;  %v4985_v41 = vadd.f32 %v4984_v39, %v4896_v11  ;;  %v4809_v52 = vpop.f32.mrf.mxu0 }
 0x84e   :  { %v4810_v24 = vadd.f32 %v4809_v52, %v9326_v23 }
 0x84f   :  { %v4898_v35 = vpop.f32.mrf.mxu1  ;;  %v5074_v57 = vadd.f32 %v5073_v9, %v4985_v41 }
 0x850   :  { %v4899_v10 = vadd.f32 %v4898_v35, %v4810_v24  ;;  %5124 = vmatmul.bf16.gmra.mxu0 %v10493_v54 }
 0x851   :  { %v5546_v8 = vmax.f32 %v5074_v57, 0.0  ;;  %5302 = vmatmul.bf16.gmra.mxu2 %v10495_v36  ;;  %v10609_v57 = vld [vmem:[#allocation40_spill] sm:$0xff] }
 0x852   :  { %5213 = vmatmul.bf16.gmra.mxu1 %v10494_v28  ;;  %5391 = vmatmul.bf16.gmra.mxu3 %v8970_v62 }
 0x853   :  { %v9435_v61 = vpack.c.bf16 %v5546_v8, %v5542_v60 }
 0x854   :  { %v4987_v19 = vpop.f32.mrf.mxu2 }
 0x855   :  { %v5076_v38 = vpop.f32.mrf.mxu3  ;;  %v4988_v63 = vadd.f32 %v4987_v19, %v4899_v10  ;;  %v4811_v15 = vpop.f32.mrf.mxu0  ;;  %v10610_v10 = vld [vmem:[#allocation54_spill] sm:$0xff]  ;;  %v10611_v19 = vld [vmem:[#allocation71_spill] sm:$0xff] }
 0x856   :  { %v4812_v51 = vadd.f32 %v4811_v15, %v9326_v23 }
 0x857   :  { %v4900_v29 = vpop.f32.mrf.mxu1  ;;  %v5077_v33 = vadd.f32 %v5076_v38, %v4988_v63  ;;  %v10612_v38 = vld [vmem:[#allocation11_spill] sm:$0xff] }
 0x858   :  { %v4901_v5 = vadd.f32 %v4900_v29, %v4812_v51 }
 0x859   :  { %v5550_v18 = vmax.f32 %v5077_v33, 0.0 }
 0x85c   :  { %v4989_v54 = vpop.f32.mrf.mxu2 }
 0x85d   :  { %v5078_v37 = vpop.f32.mrf.mxu3  ;;  %v4990_v28 = vadd.f32 %v4989_v54, %v4901_v5  ;;  %v4814_v56 = vpop.f32.mrf.mxu0 }
 0x85e   :  { %v4815_v36 = vadd.f32 %v4814_v56, %v9326_v23 }
 0x85f   :  { %v4903_v44 = vpop.f32.mrf.mxu1  ;;  %v5079_v48 = vadd.f32 %v5078_v37, %v4990_v28 }
 0x860   :  { %v4904_v62 = vadd.f32 %v4903_v44, %v4815_v36  ;;  %5129 = vmatmul.bf16.gmra.mxu0 %v10496_v59 }
 0x861   :  { %v5554_v2 = vmax.f32 %v5079_v48, 0.0  ;;  %5307 = vmatmul.bf16.gmra.mxu2 %v10498_v0 }
 0x862   :  { %5218 = vmatmul.bf16.gmra.mxu1 %v10497_v34  ;;  %5396 = vmatmul.bf16.gmra.mxu3 %v8978_v26 }
 0x863   :  { %v9443_v6 = vpack.c.bf16 %v5554_v2, %v5550_v18 }
 0x864   :  { %v4992_v12 = vpop.f32.mrf.mxu2 }
 0x865   :  { %v5081_v1 = vpop.f32.mrf.mxu3  ;;  %v4993_v25 = vadd.f32 %v4992_v12, %v4904_v62  ;;  %v4816_v47 = vpop.f32.mrf.mxu0 }
 0x866   :  { %v4817_v11 = vadd.f32 %v4816_v47, %v9326_v23  ;;  %v10613_v47 = vld [vmem:[#allocation12_spill] sm:$0xff] }
 0x867   :  { %v4905_v58 = vpop.f32.mrf.mxu1  ;;  %v5082_v39 = vadd.f32 %v5081_v1, %v4993_v25 }
 0x868   :  { %v4906_v9 = vadd.f32 %v4905_v58, %v4817_v11 }
 0x869   :  { %v5558_v60 = vmax.f32 %v5082_v39, 0.0 }
 0x86c   :  { %v4994_v59 = vpop.f32.mrf.mxu2 }
 0x86d   :  { %v5083_v41 = vpop.f32.mrf.mxu3  ;;  %v4995_v34 = vadd.f32 %v4994_v59, %v4906_v9  ;;  %v4819_v52 = vpop.f32.mrf.mxu0 }
 0x86e   :  { %v4820_v0 = vadd.f32 %v4819_v52, %v9326_v23 }
 0x86f   :  { %v4908_v35 = vpop.f32.mrf.mxu1  ;;  %v5084_v24 = vadd.f32 %v5083_v41, %v4995_v34 }
 0x870   :  { %v4909_v26 = vadd.f32 %v4908_v35, %v4820_v0  ;;  %5134 = vmatmul.bf16.gmra.mxu0 %v10609_v57 }
 0x871   :  { %v5562_v8 = vmax.f32 %v5084_v24, 0.0  ;;  %5312 = vmatmul.bf16.gmra.mxu2 %v10611_v19  ;;  %v10615_v19 = vld [vmem:[#allocation8_spill] sm:$0xff] }
 0x872   :  { %5223 = vmatmul.bf16.gmra.mxu1 %v10610_v10  ;;  %5401 = vmatmul.bf16.gmra.mxu3 %v10612_v38  ;;  %v10616_v38 = vld [vmem:[#allocation56_spill] sm:$0xff] }
 0x873   :  { %v9451_v63 = vpack.c.bf16 %v5562_v8, %v5558_v60 }
 0x874   :  { %v4997_v15 = vpop.f32.mrf.mxu2 }
 0x875   :  { %v5086_v29 = vpop.f32.mrf.mxu3  ;;  %v4998_v51 = vadd.f32 %v4997_v15, %v4909_v26  ;;  %v4821_v33 = vpop.f32.mrf.mxu0 }
 0x876   :  { %v4822_v54 = vadd.f32 %v4821_v33, %v9326_v23 }
 0x877   :  { %v4910_v5 = vpop.f32.mrf.mxu1  ;;  %v5087_v37 = vadd.f32 %v5086_v29, %v4998_v51  ;;  %v10617_v29 = vld [vmem:[#allocation72_spill] sm:$0xff]  ;;  %v10618_v51 = vld [vmem:[#allocation13_spill] sm:$0xff] }
 0x878   :  { %v4911_v28 = vadd.f32 %v4910_v5, %v4822_v54 }
 0x879   :  { %v5566_v1 = vmax.f32 %v5087_v37, 0.0 }
 0x87c   :  { %v4999_v56 = vpop.f32.mrf.mxu2 }
 0x87d   :  { %v5088_v44 = vpop.f32.mrf.mxu3  ;;  %v5000_v36 = vadd.f32 %v4999_v56, %v4911_v28  ;;  %v4824_v48 = vpop.f32.mrf.mxu0 }
 0x87e   :  { %v4825_v18 = vadd.f32 %v4824_v48, %v9326_v23 }
 0x87f   :  { %v4913_v62 = vpop.f32.mrf.mxu1  ;;  %v5089_v2 = vadd.f32 %v5088_v44, %v5000_v36 }
 0x880   :  { %v4914_v12 = vadd.f32 %v4913_v62, %v4825_v18  ;;  %5139 = vmatmul.bf16.gmra.mxu0 %v10503_v49  ;;  %v10614_v49 = vld [vmem:[#allocation55_spill] sm:$0xff] }
 0x881   :  { %v5570_v25 = vmax.f32 %v5089_v2, 0.0  ;;  %5317 = vmatmul.bf16.gmra.mxu2 %v8863_v46  ;;  %v9463_v0 = vperm.slane %v10614_v49, 3 }
 0x882   :  { %5228 = vmatmul.bf16.gmra.mxu1 %v10504_v13  ;;  %5406 = vmatmul.bf16.gmra.mxu3 %v10613_v47 }
 0x883   :  { %v9459_v58 = vpack.c.bf16 %v5570_v25, %v5566_v1 }
 0x884   :  { %v5002_v11 = vpop.f32.mrf.mxu2 }
 0x885   :  { %v5091_v39 = vpop.f32.mrf.mxu3  ;;  %v5003_v9 = vadd.f32 %v5002_v11, %v4914_v12  ;;  %v4826_v59 = vpop.f32.mrf.mxu0 }
 0x886   :  { %v4827_v34 = vadd.f32 %v4826_v59, %v9326_v23 }
 0x887   :  { %v4915_v41 = vpop.f32.mrf.mxu1  ;;  %v5092_v52 = vadd.f32 %v5091_v39, %v5003_v9 }
 0x888   :  { %v4916_v35 = vadd.f32 %v4915_v41, %v4827_v34 }
 0x889   :  { %v5574_v15 = vmax.f32 %v5092_v52, 0.0 }
 0x88c   :  { %v5004_v13 = vpop.f32.mrf.mxu2 }
 0x88d   :  { %v5093_v24 = vpop.f32.mrf.mxu3  ;;  %v5005_v26 = vadd.f32 %v5004_v13, %v4916_v35  ;;  %v5105_v46 = vpop.f32.mrf.mxu0 }
 0x88e   :  { %v5106_v10 = vadd.f32 %v5105_v46, %v9463_v0 }
 0x88f   :  { %v5194_v57 = vpop.f32.mrf.mxu1  ;;  %v5094_v60 = vadd.f32 %v5093_v24, %v5005_v26 }
 0x890   :  { %v5195_v8 = vadd.f32 %v5194_v57, %v5106_v10  ;;  %5144 = vmatmul.bf16.gmra.mxu0 %v10615_v19  ;;  %v10620_v19 = vld [vmem:[#allocation58_spill] sm:$0xff] }
 0x891   :  { %v5578_v23 = vmax.f32 %v5094_v60, 0.0  ;;  %5322 = vmatmul.bf16.gmra.mxu2 %v10617_v29  ;;  %v10622_v29 = vld [vmem:[#allocation14_spill] sm:$0xff] }
 0x892   :  { %5233 = vmatmul.bf16.gmra.mxu1 %v10616_v38  ;;  %5411 = vmatmul.bf16.gmra.mxu3 %v10618_v51 }
 0x893   :  { %v9470_v33 = vpack.c.bf16 %v5578_v23, %v5574_v15  ;;  %v10621_v23 = vld [vmem:[#allocation31_spill] sm:$0xff] }
 0x894   :  { %v5283_v5 = vpop.f32.mrf.mxu2 }
 0x895   :  { %v5372_v54 = vpop.f32.mrf.mxu3  ;;  %v5284_v37 = vadd.f32 %v5283_v5, %v5195_v8  ;;  %v5107_v28 = vpop.f32.mrf.mxu0  ;;  %v10619_v8 = vld [vmem:[#allocation43_spill] sm:$0xff] }
 0x896   :  { %v5108_v44 = vadd.f32 %v5107_v28, %v9463_v0 }
 0x897   :  { %v5196_v56 = vpop.f32.mrf.mxu1  ;;  %v5373_v36 = vadd.f32 %v5372_v54, %v5284_v37 }
 0x898   :  { %v5197_v48 = vadd.f32 %v5196_v56, %v5108_v44 }
 0x899   :  { %v5455_v39 = vmax.f32 %v5373_v36, 0.0 }
 0x89c   :  { %v5285_v62 = vpop.f32.mrf.mxu2 }
 0x89d   :  { %v5374_v18 = vpop.f32.mrf.mxu3  ;;  %v5286_v2 = vadd.f32 %v5285_v62, %v5197_v48  ;;  %v5110_v12 = vpop.f32.mrf.mxu0 }
 0x89e   :  { %v5111_v25 = vadd.f32 %v5110_v12, %v9463_v0 }
 0x89f   :  { %v5199_v1 = vpop.f32.mrf.mxu1  ;;  %v5375_v47 = vadd.f32 %v5374_v18, %v5286_v2 }
 0x8a0   :  { %v5200_v11 = vadd.f32 %v5199_v1, %v5111_v25  ;;  %5149 = vmatmul.bf16.gmra.mxu0 %v10509_v55 }
 0x8a1   :  { %v5459_v9 = vmax.f32 %v5375_v47, 0.0  ;;  %5327 = vmatmul.bf16.gmra.mxu2 %v8879_v21 }
 0x8a2   :  { %5238 = vmatmul.bf16.gmra.mxu1 %v10510_v16  ;;  %5416 = vmatmul.bf16.gmra.mxu3 %v9010_v4 }
 0x8a3   :  { %v9478_v59 = vpack.c.bf16 %v5459_v9, %v5455_v39 }
 0x8a4   :  { %v5288_v41 = vpop.f32.mrf.mxu2 }
 0x8a5   :  { %v5377_v34 = vpop.f32.mrf.mxu3  ;;  %v5289_v52 = vadd.f32 %v5288_v41, %v5200_v11  ;;  %v5112_v35 = vpop.f32.mrf.mxu0 }
 0x8a6   :  { %v5113_v13 = vadd.f32 %v5112_v35, %v9463_v0 }
 0x8a7   :  { %v5201_v49 = vpop.f32.mrf.mxu1  ;;  %v5378_v24 = vadd.f32 %v5377_v34, %v5289_v52 }
 0x8a8   :  { %v5202_v26 = vadd.f32 %v5201_v49, %v5113_v13 }
 0x8a9   :  { %v5463_v38 = vmax.f32 %v5378_v24, 0.0 }
 0x8ac   :  { %v5290_v55 = vpop.f32.mrf.mxu2 }
 0x8ad   :  { %v5379_v46 = vpop.f32.mrf.mxu3  ;;  %v5291_v16 = vadd.f32 %v5290_v55, %v5202_v26  ;;  %v5115_v57 = vpop.f32.mrf.mxu0 }
 0x8ae   :  { %v5116_v21 = vadd.f32 %v5115_v57, %v9463_v0 }
 0x8af   :  { %v5204_v10 = vpop.f32.mrf.mxu1  ;;  %v5380_v60 = vadd.f32 %v5379_v46, %v5291_v16 }
 0x8b0   :  { %v5205_v4 = vadd.f32 %v5204_v10, %v5116_v21  ;;  %5154 = vmatmul.bf16.gmra.mxu0 %v10619_v8  ;;  %v10623_v21 = vld [vmem:[#allocation45_spill] sm:$0xff] }
 0x8b1   :  { %v5467_v15 = vmax.f32 %v5380_v60, 0.0  ;;  %5332 = vmatmul.bf16.gmra.mxu2 %v10621_v23  ;;  %v10624_v60 = vld [vmem:[#allocation60_spill] sm:$0xff] }
 0x8b2   :  { %5243 = vmatmul.bf16.gmra.mxu1 %v10620_v19  ;;  %5421 = vmatmul.bf16.gmra.mxu3 %v10622_v29  ;;  %v10625_v19 = vld [vmem:[#allocation32_spill] sm:$0xff] }
 0x8b3   :  { %v9486_v51 = vpack.c.bf16 %v5467_v15, %v5463_v38  ;;  %v10626_v38 = vld [vmem:[#allocation15_spill] sm:$0xff] }
 0x8b4   :  { %v5293_v5 = vpop.f32.mrf.mxu2 }
 0x8b5   :  { %v5382_v54 = vpop.f32.mrf.mxu3  ;;  %v5294_v37 = vadd.f32 %v5293_v5, %v5205_v4  ;;  %v5117_v28 = vpop.f32.mrf.mxu0 }
 0x8b6   :  { %v5118_v44 = vadd.f32 %v5117_v28, %v9463_v0 }
 0x8b7   :  { %v5206_v56 = vpop.f32.mrf.mxu1  ;;  %v5383_v36 = vadd.f32 %v5382_v54, %v5294_v37 }
 0x8b8   :  { %v5207_v48 = vadd.f32 %v5206_v56, %v5118_v44 }
 0x8b9   :  { %v5471_v39 = vmax.f32 %v5383_v36, 0.0 }
 0x8bc   :  { %v5295_v62 = vpop.f32.mrf.mxu2 }
 0x8bd   :  { %v5384_v18 = vpop.f32.mrf.mxu3  ;;  %v5296_v2 = vadd.f32 %v5295_v62, %v5207_v48  ;;  %v5120_v12 = vpop.f32.mrf.mxu0 }
 0x8be   :  { %v5121_v25 = vadd.f32 %v5120_v12, %v9463_v0 }
 0x8bf   :  { %v5209_v1 = vpop.f32.mrf.mxu1  ;;  %v5385_v47 = vadd.f32 %v5384_v18, %v5296_v2 }
 0x8c0   :  { %v5210_v11 = vadd.f32 %v5209_v1, %v5121_v25  ;;  %5159 = vmatmul.bf16.gmra.mxu0 %v10515_v45 }
 0x8c1   :  { %v5475_v9 = vmax.f32 %v5385_v47, 0.0  ;;  %5337 = vmatmul.bf16.gmra.mxu2 %v8895_v17 }
 0x8c2   :  { %5248 = vmatmul.bf16.gmra.mxu1 %v10516_v43  ;;  %5426 = vmatmul.bf16.gmra.mxu3 %v9026_v30 }
 0x8c3   :  { %v9494_v41 = vpack.c.bf16 %v5475_v9, %v5471_v39  ;;  %v10627_v39 = vld [vmem:[#allocation16_spill] sm:$0xff] }
 0x8c4   :  { %v5298_v34 = vpop.f32.mrf.mxu2 }
 0x8c5   :  { %v5387_v52 = vpop.f32.mrf.mxu3  ;;  %v5299_v35 = vadd.f32 %v5298_v34, %v5210_v11  ;;  %v5122_v49 = vpop.f32.mrf.mxu0 }
 0x8c6   :  { %v5123_v24 = vadd.f32 %v5122_v49, %v9463_v0 }
 0x8c7   :  { %v5211_v13 = vpop.f32.mrf.mxu1  ;;  %v5388_v26 = vadd.f32 %v5387_v52, %v5299_v35 }
 0x8c8   :  { %v5212_v55 = vadd.f32 %v5211_v13, %v5123_v24 }
 0x8c9   :  { %v5479_v4 = vmax.f32 %v5388_v26, 0.0 }
 0x8cc   :  { %v5300_v45 = vpop.f32.mrf.mxu2 }
 0x8cd   :  { %v5389_v46 = vpop.f32.mrf.mxu3  ;;  %v5301_v43 = vadd.f32 %v5300_v45, %v5212_v55  ;;  %v5125_v16 = vpop.f32.mrf.mxu0 }
 0x8ce   :  { %v5126_v17 = vadd.f32 %v5125_v16, %v9463_v0 }
 0x8cf   :  { %v5214_v57 = vpop.f32.mrf.mxu1  ;;  %v5390_v10 = vadd.f32 %v5389_v46, %v5301_v43 }
 0x8d0   :  { %v5215_v30 = vadd.f32 %v5214_v57, %v5126_v17  ;;  %5164 = vmatmul.bf16.gmra.mxu0 %v10623_v21  ;;  %v10628_v17 = vld [vmem:[#allocation47_spill] sm:$0xff] }
 0x8d1   :  { %v5483_v8 = vmax.f32 %v5390_v10, 0.0  ;;  %5342 = vmatmul.bf16.gmra.mxu2 %v10625_v19  ;;  %v10629_v10 = vld [vmem:[#allocation62_spill] sm:$0xff] }
 0x8d2   :  { %5253 = vmatmul.bf16.gmra.mxu1 %v10624_v60  ;;  %5431 = vmatmul.bf16.gmra.mxu3 %v10626_v38  ;;  %v10630_v60 = vld [vmem:[#allocation9_spill] sm:$0xff] }
 0x8d3   :  { %v9502_v15 = vpack.c.bf16 %v5483_v8, %v5479_v4  ;;  %v10631_v4 = vld [vmem:[#allocation17_spill] sm:$0xff] }
 0x8d4   :  { %v5303_v23 = vpop.f32.mrf.mxu2 }
 0x8d5   :  { %v5392_v29 = vpop.f32.mrf.mxu3  ;;  %v5304_v5 = vadd.f32 %v5303_v23, %v5215_v30  ;;  %v5127_v54 = vpop.f32.mrf.mxu0 }
 0x8d6   :  { %v5128_v28 = vadd.f32 %v5127_v54, %v9463_v0 }
 0x8d7   :  { %v5216_v37 = vpop.f32.mrf.mxu1  ;;  %v5393_v56 = vadd.f32 %v5392_v29, %v5304_v5 }
 0x8d8   :  { %v5217_v44 = vadd.f32 %v5216_v37, %v5128_v28 }
 0x8d9   :  { %v5487_v47 = vmax.f32 %v5393_v56, 0.0 }
 0x8dc   :  { %v5305_v36 = vpop.f32.mrf.mxu2 }
 0x8dd   :  { %v5394_v48 = vpop.f32.mrf.mxu3  ;;  %v5306_v62 = vadd.f32 %v5305_v36, %v5217_v44  ;;  %v5130_v18 = vpop.f32.mrf.mxu0 }
 0x8de   :  { %v5131_v12 = vadd.f32 %v5130_v18, %v9463_v0 }
 0x8df   :  { %v5219_v2 = vpop.f32.mrf.mxu1  ;;  %v5395_v1 = vadd.f32 %v5394_v48, %v5306_v62 }
 0x8e0   :  { %v5220_v25 = vadd.f32 %v5219_v2, %v5131_v12  ;;  %5169 = vmatmul.bf16.gmra.mxu0 %v10521_v53 }
 0x8e1   :  { %v5491_v11 = vmax.f32 %v5395_v1, 0.0  ;;  %5347 = vmatmul.bf16.gmra.mxu2 %v8911_v42 }
 0x8e2   :  { %5258 = vmatmul.bf16.gmra.mxu1 %v10522_v31  ;;  %5436 = vmatmul.bf16.gmra.mxu3 %v10627_v39 }
 0x8e3   :  { %v9510_v9 = vpack.c.bf16 %v5491_v11, %v5487_v47 }
 0x8e4   :  { %v5308_v34 = vpop.f32.mrf.mxu2 }
 0x8e5   :  { %v5397_v52 = vpop.f32.mrf.mxu3  ;;  %v5309_v35 = vadd.f32 %v5308_v34, %v5220_v25  ;;  %v5132_v49 = vpop.f32.mrf.mxu0 }
 0x8e6   :  { %v5133_v24 = vadd.f32 %v5132_v49, %v9463_v0 }
 0x8e7   :  { %v5221_v13 = vpop.f32.mrf.mxu1  ;;  %v5398_v26 = vadd.f32 %v5397_v52, %v5309_v35 }
 0x8e8   :  { %v5222_v55 = vadd.f32 %v5221_v13, %v5133_v24 }
 0x8e9   :  { %v5495_v30 = vmax.f32 %v5398_v26, 0.0 }
 0x8ec   :  { %v5310_v53 = vpop.f32.mrf.mxu2 }
 0x8ed   :  { %v5399_v45 = vpop.f32.mrf.mxu3  ;;  %v5311_v31 = vadd.f32 %v5310_v53, %v5222_v55  ;;  %v5135_v46 = vpop.f32.mrf.mxu0 }
 0x8ee   :  { %v5136_v42 = vadd.f32 %v5135_v46, %v9463_v0  ;;  %v10633_v46 = vld [vmem:[#allocation49_spill] sm:$0xff] }
 0x8ef   :  { %v5224_v43 = vpop.f32.mrf.mxu1  ;;  %v5400_v16 = vadd.f32 %v5399_v45, %v5311_v31  ;;  %v10632_v31 = vld [vmem:[#allocation19_spill] sm:$0xff] }
 0x8f0   :  { %v5225_v57 = vadd.f32 %v5224_v43, %v5136_v42  ;;  %5174 = vmatmul.bf16.gmra.mxu0 %v10628_v17 }
 0x8f1   :  { %v5499_v21 = vmax.f32 %v5400_v16, 0.0  ;;  %5352 = vmatmul.bf16.gmra.mxu2 %v10630_v60  ;;  %v10634_v16 = vld [vmem:[#allocation57_spill] sm:$0xff] }
 0x8f2   :  { %5263 = vmatmul.bf16.gmra.mxu1 %v10629_v10  ;;  %5441 = vmatmul.bf16.gmra.mxu3 %v10631_v4 }
 0x8f3   :  { %v9518_v8 = vpack.c.bf16 %v5499_v21, %v5495_v30 }
 0x8f4   :  { %v5313_v19 = vpop.f32.mrf.mxu2 }
 0x8f5   :  { %v5402_v38 = vpop.f32.mrf.mxu3  ;;  %v5314_v23 = vadd.f32 %v5313_v19, %v5225_v57  ;;  %v5137_v29 = vpop.f32.mrf.mxu0 }
 0x8f6   :  { %v5138_v54 = vadd.f32 %v5137_v29, %v9463_v0 }
 0x8f7   :  { %v5226_v5 = vpop.f32.mrf.mxu1  ;;  %v5403_v37 = vadd.f32 %v5402_v38, %v5314_v23 }
 0x8f8   :  { %v5227_v28 = vadd.f32 %v5226_v5, %v5138_v54 }
 0x8f9   :  { %v5503_v1 = vmax.f32 %v5403_v37, 0.0 }
 0x8fc   :  { %v5315_v56 = vpop.f32.mrf.mxu2 }
 0x8fd   :  { %v5404_v44 = vpop.f32.mrf.mxu3  ;;  %v5316_v36 = vadd.f32 %v5315_v56, %v5227_v28  ;;  %v5140_v48 = vpop.f32.mrf.mxu0 }
 0x8fe   :  { %v5141_v18 = vadd.f32 %v5140_v48, %v9463_v0 }
 0x8ff   :  { %v5229_v62 = vpop.f32.mrf.mxu1  ;;  %v5405_v2 = vadd.f32 %v5404_v44, %v5316_v36  ;;  %v10635_v44 = vld [vmem:[#allocation20_spill] sm:$0xff]  ;;  %v10636_v36 = vld [vmem:[#allocation66_spill] sm:$0xff] }
 0x900   :  { %v5230_v12 = vadd.f32 %v5229_v62, %v5141_v18  ;;  %5179 = vmatmul.bf16.gmra.mxu0 %v10527_v3  ;;  %v10637_v18 = vld [vmem:[#allocation44_spill] sm:$0xff] }
 0x901   :  { %v5507_v25 = vmax.f32 %v5405_v2, 0.0  ;;  %5357 = vmatmul.bf16.gmra.mxu2 %v8930_v14 }
 0x902   :  { %5268 = vmatmul.bf16.gmra.mxu1 %v10528_v27  ;;  %5446 = vmatmul.bf16.gmra.mxu3 %v9066_v32 }
 0x903   :  { %v9526_v47 = vpack.c.bf16 %v5507_v25, %v5503_v1 }
 0x904   :  { %v5318_v11 = vpop.f32.mrf.mxu2 }
 0x905   :  { %v5407_v39 = vpop.f32.mrf.mxu3  ;;  %v5319_v34 = vadd.f32 %v5318_v11, %v5230_v12  ;;  %v5142_v52 = vpop.f32.mrf.mxu0 }
 0x906   :  { %v5143_v49 = vadd.f32 %v5142_v52, %v9463_v0 }
 0x907   :  { %v5231_v35 = vpop.f32.mrf.mxu1  ;;  %v5408_v13 = vadd.f32 %v5407_v39, %v5319_v34 }
 0x908   :  { %v5232_v24 = vadd.f32 %v5231_v35, %v5143_v49 }
 0x909   :  { %v5511_v43 = vmax.f32 %v5408_v13, 0.0 }
 0x90c   :  { %v5320_v3 = vpop.f32.mrf.mxu2 }
 0x90d   :  { %v5409_v26 = vpop.f32.mrf.mxu3  ;;  %v5321_v27 = vadd.f32 %v5320_v3, %v5232_v24  ;;  %v5145_v55 = vpop.f32.mrf.mxu0 }
 0x90e   :  { %v5146_v14 = vadd.f32 %v5145_v55, %v9463_v0 }
 0x90f   :  { %v5234_v53 = vpop.f32.mrf.mxu1  ;;  %v5410_v45 = vadd.f32 %v5409_v26, %v5321_v27 }
 0x910   :  { %v5235_v32 = vadd.f32 %v5234_v53, %v5146_v14  ;;  %5672 = vmatmul.bf16.vlgmr.msrb.gmra.mxu0 %v10632_v31  ;;  %v10638_v53 = vld [vmem:[#allocation21_spill] sm:$0xff]  ;;  %v10639_v14 = vld [vmem:[#allocation36_spill] sm:$0xff]  ;;  %v10640_v31 = vld [vmem:[#allocation59_spill] sm:$0xff] }
 0x911   :  { %v5515_v42 = vmax.f32 %v5410_v45, 0.0  ;;  %5850 = vmatmul.bf16.vlgmr.msrb.gmra.mxu2 %v10634_v16 }
 0x912   :  { %5761 = vmatmul.bf16.vlgmr.msrb.gmra.mxu1 %v10633_v46  ;;  %5939 = vmatmul.bf16.vlgmr.msrb.gmra.mxu3 %v9478_v59 }
 0x913   :  { %v9534_v57 = vpack.c.bf16 %v5515_v42, %v5511_v43 }
 0x914   :  { %v5323_v17 = vpop.f32.mrf.mxu2 }
 0x915   :  { %v5412_v10 = vpop.f32.mrf.mxu3  ;;  %v5324_v30 = vadd.f32 %v5323_v17, %v5235_v32  ;;  %v5147_v21 = vpop.f32.mrf.mxu0 }
 0x916   :  { %v5148_v4 = vadd.f32 %v5147_v21, %v9463_v0 }
 0x917   :  { %v5236_v60 = vpop.f32.mrf.mxu1  ;;  %v5413_v19 = vadd.f32 %v5412_v10, %v5324_v30 }
 0x918   :  { %v5237_v38 = vadd.f32 %v5236_v60, %v5148_v4 }
 0x919   :  { %v5519_v48 = vmax.f32 %v5413_v19, 0.0 }
 0x91c   :  { %v5325_v23 = vpop.f32.mrf.mxu2 }
 0x91d   :  { %v5414_v29 = vpop.f32.mrf.mxu3  ;;  %v5326_v5 = vadd.f32 %v5325_v23, %v5237_v38  ;;  %v5150_v54 = vpop.f32.mrf.mxu0 }
 0x91e   :  { %v5151_v28 = vadd.f32 %v5150_v54, %v9463_v0 }
 0x91f   :  { %v5239_v37 = vpop.f32.mrf.mxu1  ;;  %v5415_v56 = vadd.f32 %v5414_v29, %v5326_v5 }
 0x920   :  { %v5240_v59 = vadd.f32 %v5239_v37, %v5151_v28  ;;  %5677 = vmatmul.bf16.gmra.mxu0 %v10635_v44  ;;  %v10641_v37 = vld [vmem:[#allocation22_spill] sm:$0xff] }
 0x921   :  { %v5523_v62 = vmax.f32 %v5415_v56, 0.0  ;;  %5855 = vmatmul.bf16.gmra.mxu2 %v10637_v18  ;;  %v10642_v28 = vld [vmem:[#allocation50_spill] sm:$0xff] }
 0x922   :  { %5766 = vmatmul.bf16.gmra.mxu1 %v10636_v36  ;;  %5944 = vmatmul.bf16.gmra.mxu3 %v9486_v51  ;;  %v10643_v44 = vld [vmem:[#allocation46_spill] sm:$0xff] }
 0x923   :  { %v9542_v2 = vpack.c.bf16 %v5523_v62, %v5519_v48 }
 0x924   :  { %v5328_v12 = vpop.f32.mrf.mxu2 }
 0x925   :  { %v5417_v1 = vpop.f32.mrf.mxu3  ;;  %v5329_v25 = vadd.f32 %v5328_v12, %v5240_v59  ;;  %v5152_v11 = vpop.f32.mrf.mxu0 }
 0x926   :  { %v5153_v34 = vadd.f32 %v5152_v11, %v9463_v0 }
 0x927   :  { %v5241_v39 = vpop.f32.mrf.mxu1  ;;  %v5418_v52 = vadd.f32 %v5417_v1, %v5329_v25 }
 0x928   :  { %v5242_v35 = vadd.f32 %v5241_v39, %v5153_v34 }
 0x929   :  { %v5527_v45 = vmax.f32 %v5418_v52, 0.0 }
 0x92c   :  { %v5330_v49 = vpop.f32.mrf.mxu2 }
 0x92d   :  { %v5419_v13 = vpop.f32.mrf.mxu3  ;;  %v5331_v24 = vadd.f32 %v5330_v49, %v5242_v35  ;;  %v5155_v3 = vpop.f32.mrf.mxu0 }
 0x92e   :  { %v5156_v27 = vadd.f32 %v5155_v3, %v9463_v0 }
 0x92f   :  { %v5244_v26 = vpop.f32.mrf.mxu1  ;;  %v5420_v55 = vadd.f32 %v5419_v13, %v5331_v24 }
 0x930   :  { %v5245_v51 = vadd.f32 %v5244_v26, %v5156_v27  ;;  %5682 = vmatmul.bf16.gmra.mxu0 %v10638_v53  ;;  %v10644_v26 = vld [vmem:[#allocation23_spill] sm:$0xff]  ;;  %v10646_v53 = vld [vmem:[#allocation61_spill] sm:$0xff] }
 0x931   :  { %v5531_v32 = vmax.f32 %v5420_v55, 0.0  ;;  %5860 = vmatmul.bf16.gmra.mxu2 %v10640_v31  ;;  %v10645_v27 = vld [vmem:[#allocation67_spill] sm:$0xff] }
 0x932   :  { %5771 = vmatmul.bf16.gmra.mxu1 %v10639_v14  ;;  %5949 = vmatmul.bf16.gmra.mxu3 %v9494_v41 }
 0x933   :  { %v9550_v46 = vpack.c.bf16 %v5531_v32, %v5527_v45 }
 0x934   :  { %v5333_v43 = vpop.f32.mrf.mxu2 }
 0x935   :  { %v5422_v42 = vpop.f32.mrf.mxu3  ;;  %v5334_v16 = vadd.f32 %v5333_v43, %v5245_v51  ;;  %v5157_v17 = vpop.f32.mrf.mxu0 }
 0x936   :  { %v5158_v30 = vadd.f32 %v5157_v17, %v9463_v0 }
 0x937   :  { %v5246_v10 = vpop.f32.mrf.mxu1  ;;  %v5423_v21 = vadd.f32 %v5422_v42, %v5334_v16 }
 0x938   :  { %v5247_v60 = vadd.f32 %v5246_v10, %v5158_v30 }
 0x939   :  { %v5535_v56 = vmax.f32 %v5423_v21, 0.0 }
 0x93c   :  { %v5335_v4 = vpop.f32.mrf.mxu2 }
 0x93d   :  { %v5424_v19 = vpop.f32.mrf.mxu3  ;;  %v5336_v38 = vadd.f32 %v5335_v4, %v5247_v60  ;;  %v5160_v23 = vpop.f32.mrf.mxu0 }
 0x93e   :  { %v5161_v5 = vadd.f32 %v5160_v23, %v9463_v0 }
 0x93f   :  { %v5249_v29 = vpop.f32.mrf.mxu1  ;;  %v5425_v54 = vadd.f32 %v5424_v19, %v5336_v38 }
 0x940   :  { %v5250_v41 = vadd.f32 %v5249_v29, %v5161_v5  ;;  %5687 = vmatmul.bf16.gmra.mxu0 %v10641_v37  ;;  %v10647_v29 = vld [vmem:[#allocation24_spill] sm:$0xff]  ;;  %v10648_v5 = vld [vmem:[#allocation37_spill] sm:$0xff] }
 0x941   :  { %v5539_v59 = vmax.f32 %v5425_v54, 0.0  ;;  %5865 = vmatmul.bf16.gmra.mxu2 %v10643_v44  ;;  %v10649_v37 = vld [vmem:[#allocation33_spill] sm:$0xff] }
 0x942   :  { %5776 = vmatmul.bf16.gmra.mxu1 %v10642_v28  ;;  %5954 = vmatmul.bf16.gmra.mxu3 %v9502_v15 }
 0x943   :  { %v9558_v36 = vpack.c.bf16 %v5539_v59, %v5535_v56 }
 0x944   :  { %v5338_v48 = vpop.f32.mrf.mxu2 }
 0x945   :  { %v5427_v62 = vpop.f32.mrf.mxu3  ;;  %v5339_v18 = vadd.f32 %v5338_v48, %v5250_v41  ;;  %v5162_v12 = vpop.f32.mrf.mxu0 }
 0x946   :  { %v5163_v25 = vadd.f32 %v5162_v12, %v9463_v0 }
 0x947   :  { %v5251_v1 = vpop.f32.mrf.mxu1  ;;  %v5428_v11 = vadd.f32 %v5427_v62, %v5339_v18 }
 0x948   :  { %v5252_v39 = vadd.f32 %v5251_v1, %v5163_v25 }
 0x949   :  { %v5543_v55 = vmax.f32 %v5428_v11, 0.0 }
 0x94c   :  { %v5340_v34 = vpop.f32.mrf.mxu2 }
 0x94d   :  { %v5429_v52 = vpop.f32.mrf.mxu3  ;;  %v5341_v35 = vadd.f32 %v5340_v34, %v5252_v39  ;;  %v5165_v49 = vpop.f32.mrf.mxu0 }
 0x94e   :  { %v5166_v24 = vadd.f32 %v5165_v49, %v9463_v0 }
 0x94f   :  { %v5254_v13 = vpop.f32.mrf.mxu1  ;;  %v5430_v3 = vadd.f32 %v5429_v52, %v5341_v35 }
 0x950   :  { %v5255_v15 = vadd.f32 %v5254_v13, %v5166_v24  ;;  %5692 = vmatmul.bf16.gmra.mxu0 %v10644_v26  ;;  %v10650_v13 = vld [vmem:[#allocation25_spill] sm:$0xff]  ;;  %v10651_v24 = vld [vmem:[#allocation51_spill] sm:$0xff] }
 0x951   :  { %v5547_v51 = vmax.f32 %v5430_v3, 0.0  ;;  %5870 = vmatmul.bf16.gmra.mxu2 %v10646_v53 }
 0x952   :  { %5781 = vmatmul.bf16.gmra.mxu1 %v10645_v27  ;;  %5959 = vmatmul.bf16.gmra.mxu3 %v9510_v9 }
 0x953   :  { %v9566_v14 = vpack.c.bf16 %v5547_v51, %v5543_v55 }
 0x954   :  { %v5343_v45 = vpop.f32.mrf.mxu2 }
 0x955   :  { %v5432_v32 = vpop.f32.mrf.mxu3  ;;  %v5344_v31 = vadd.f32 %v5343_v45, %v5255_v15  ;;  %v5167_v43 = vpop.f32.mrf.mxu0 }
 0x956   :  { %v5168_v16 = vadd.f32 %v5167_v43, %v9463_v0 }
 0x957   :  { %v5256_v42 = vpop.f32.mrf.mxu1  ;;  %v5433_v17 = vadd.f32 %v5432_v32, %v5344_v31 }
 0x958   :  { %v5257_v10 = vadd.f32 %v5256_v42, %v5168_v16 }
 0x959   :  { %v5551_v54 = vmax.f32 %v5433_v17, 0.0 }
 0x95c   :  { %v5345_v30 = vpop.f32.mrf.mxu2 }
 0x95d   :  { %v5434_v21 = vpop.f32.mrf.mxu3  ;;  %v5346_v60 = vadd.f32 %v5345_v30, %v5257_v10  ;;  %v5170_v4 = vpop.f32.mrf.mxu0 }
 0x95e   :  { %v5171_v38 = vadd.f32 %v5170_v4, %v9463_v0  ;;  %v10653_v4 = vld [vmem:[#allocation68_spill] sm:$0xff] }
 0x95f   :  { %v5259_v19 = vpop.f32.mrf.mxu1  ;;  %v5435_v23 = vadd.f32 %v5434_v21, %v5346_v60  ;;  %v10652_v60 = vld [vmem:[#allocation26_spill] sm:$0xff] }
 0x960   :  { %v5260_v9 = vadd.f32 %v5259_v19, %v5171_v38  ;;  %5697 = vmatmul.bf16.gmra.mxu0 %v10647_v29 }
 0x961   :  { %v5555_v41 = vmax.f32 %v5435_v23, 0.0  ;;  %5875 = vmatmul.bf16.gmra.mxu2 %v10649_v37 }
 0x962   :  { %5786 = vmatmul.bf16.gmra.mxu1 %v10648_v5  ;;  %5964 = vmatmul.bf16.gmra.mxu3 %v9518_v8 }
 0x963   :  { %v9574_v28 = vpack.c.bf16 %v5555_v41, %v5551_v54 }
 0x964   :  { %v5348_v56 = vpop.f32.mrf.mxu2 }
 0x965   :  { %v5437_v59 = vpop.f32.mrf.mxu3  ;;  %v5349_v44 = vadd.f32 %v5348_v56, %v5260_v9  ;;  %v5172_v48 = vpop.f32.mrf.mxu0 }
 0x966   :  { %v5173_v18 = vadd.f32 %v5172_v48, %v9463_v0 }
 0x967   :  { %v5261_v62 = vpop.f32.mrf.mxu1  ;;  %v5438_v12 = vadd.f32 %v5437_v59, %v5349_v44  ;;  %v9596_v44 = vld [vmem:[%s10209_s8] ss:$0 sm:$0xff] }
 0x968   :  { %v5262_v1 = vadd.f32 %v5261_v62, %v5173_v18 }
 0x969   :  { %v5559_v3 = vmax.f32 %v5438_v12, 0.0 }
 0x96c   :  { %v5350_v25 = vpop.f32.mrf.mxu2 }
 0x96d   :  { %v5439_v11 = vpop.f32.mrf.mxu3  ;;  %v5351_v39 = vadd.f32 %v5350_v25, %v5262_v1  ;;  %v5175_v34 = vpop.f32.mrf.mxu0 }
 0x96e   :  { %v5176_v35 = vadd.f32 %v5175_v34, %v9463_v0 }
 0x96f   :  { %v5264_v52 = vpop.f32.mrf.mxu1  ;;  %v5440_v49 = vadd.f32 %v5439_v11, %v5351_v39  ;;  %v10654_v11 = vld [vmem:[#allocation63_spill] sm:$0xff]  ;;  %v10655_v39 = vld [vmem:[#allocation38_spill] sm:$0xff] }
 0x970   :  { %v5265_v8 = vadd.f32 %v5264_v52, %v5176_v35  ;;  %5702 = vmatmul.bf16.gmra.mxu0 %v10650_v13 }
 0x971   :  { %v5563_v15 = vmax.f32 %v5440_v49, 0.0  ;;  %5880 = vmatmul.bf16.gmra.mxu2 %v9395_v40 }
 0x972   :  { %5791 = vmatmul.bf16.gmra.mxu1 %v10651_v24  ;;  %5969 = vmatmul.bf16.gmra.mxu3 %v9526_v47 }
 0x973   :  { %v9582_v26 = vpack.c.bf16 %v5563_v15, %v5559_v3 }
 0x974   :  { %v5353_v27 = vpop.f32.mrf.mxu2 }
 0x975   :  { %v5442_v55 = vpop.f32.mrf.mxu3  ;;  %v5354_v51 = vadd.f32 %v5353_v27, %v5265_v8  ;;  %v5177_v53 = vpop.f32.mrf.mxu0 }
 0x976   :  { %v5178_v32 = vadd.f32 %v5177_v53, %v9463_v0 }
 0x977   :  { %v5266_v45 = vpop.f32.mrf.mxu1  ;;  %v5443_v31 = vadd.f32 %v5442_v55, %v5354_v51 }
 0x978   :  { %v5267_v43 = vadd.f32 %v5266_v45, %v5178_v32 }
 0x979   :  { %v5567_v19 = vmax.f32 %v5443_v31, 0.0 }
 0x97c   :  { %v5355_v42 = vpop.f32.mrf.mxu2 }
 0x97d   :  { %v5444_v16 = vpop.f32.mrf.mxu3  ;;  %v5356_v17 = vadd.f32 %v5355_v42, %v5267_v43  ;;  %v5180_v10 = vpop.f32.mrf.mxu0  ;;  %v10656_v43 = vld [vmem:[#allocation27_spill] sm:$0xff]  ;;  %v10657_v42 = vld [vmem:[#allocation52_spill] sm:$0xff] }
 0x97e   :  { %v5181_v40 = vadd.f32 %v5180_v10, %v9463_v0 }
 0x97f   :  { %v5269_v30 = vpop.f32.mrf.mxu1  ;;  %v5445_v21 = vadd.f32 %v5444_v16, %v5356_v17 }
 0x980   :  { %v5270_v47 = vadd.f32 %v5269_v30, %v5181_v40  ;;  %5707 = vmatmul.bf16.gmra.mxu0 %v10652_v60 }
 0x981   :  { %v5571_v38 = vmax.f32 %v5445_v21, 0.0  ;;  %5885 = vmatmul.bf16.gmra.mxu2 %v9403_v50 }
 0x982   :  { %5796 = vmatmul.bf16.gmra.mxu1 %v10653_v4  ;;  %5974 = vmatmul.bf16.gmra.mxu3 %v9534_v57 }
 0x983   :  { %v9590_v23 = vpack.c.bf16 %v5571_v38, %v5567_v19 }
 0x984   :  { %v5358_v9 = vpop.f32.mrf.mxu2 }
 0x985   :  { %v5447_v29 = vpop.f32.mrf.mxu3  ;;  %v5359_v5 = vadd.f32 %v5358_v9, %v5270_v47  ;;  %v5182_v54 = vpop.f32.mrf.mxu0 }
 0x986   :  { %v5183_v37 = vadd.f32 %v5182_v54, %v9463_v0  ;;  %v10658_v54 = vld [vmem:[#allocation28_spill] sm:$0xff] }
 0x987   :  { %v5271_v41 = vpop.f32.mrf.mxu1  ;;  %v5448_v56 = vadd.f32 %v5447_v29, %v5359_v5 }
 0x988   :  { %v5272_v59 = vadd.f32 %v5271_v41, %v5183_v37  ;;  %v10659_v41 = vld [vmem:[#allocation69_spill] sm:$0xff] }
 0x989   :  { %v5575_v0 = vmax.f32 %v5448_v56, 0.0 }
 0x98c   :  { %v5360_v48 = vpop.f32.mrf.mxu2 }
 0x98d   :  { %v5449_v50 = vpop.f32.mrf.mxu3  ;;  %v5361_v62 = vadd.f32 %v5360_v48, %v5272_v59  ;;  %v5673_v57 = vpop.f32.mrf.mxu0 }
 0x98e   :  { %v5674_v12 = vadd.f32 %v9596_v44, %v5673_v57 }
 0x98f   :  { %v5762_v18 = vpop.f32.mrf.mxu1  ;;  %v5450_v1 = vadd.f32 %v5449_v50, %v5361_v62 }
 0x990   :  { %v5763_v25 = vadd.f32 %v5762_v18, %v5674_v12  ;;  %5712 = vmatmul.bf16.gmra.mxu0 %v10654_v11 }
 0x991   :  { %v5579_v34 = vmax.f32 %v5450_v1, 0.0  ;;  %5890 = vmatmul.bf16.gmra.mxu2 %v9411_v7 }
 0x992   :  { %5801 = vmatmul.bf16.gmra.mxu1 %v10655_v39  ;;  %5979 = vmatmul.bf16.gmra.mxu3 %v9542_v2 }
 0x993   :  { %v9603_v52 = vpack.c.bf16 %v5579_v34, %v5575_v0 }
 0x994   :  { %v5851_v35 = vpop.f32.mrf.mxu2 }
 0x995   :  { %v5940_v49 = vpop.f32.mrf.mxu3  ;;  %v5852_v8 = vadd.f32 %v5851_v35, %v5763_v25  ;;  %v5675_v13 = vpop.f32.mrf.mxu0 }
 0x996   :  { %v5676_v3 = vadd.f32 %v9596_v44, %v5675_v13  ;;  %v10661_v13 = vld [vmem:[#allocation39_spill] sm:$0xff] }
 0x997   :  { %v5764_v24 = vpop.f32.mrf.mxu1  ;;  %v9606_v15 = vadd.f32 %v5940_v49, %v5852_v8  ;;  %v10660_v8 = vld [vmem:[#allocation29_spill] sm:$0xff] }
 0x998   :  { %v5765_v27 = vadd.f32 %v5764_v24, %v5676_v3 }
 0x999   :  { %v6021_v12 = vsel %vm6020_vm1, %v9606_v15, -inf }
 0x99c   :  { %v5853_v55 = vpop.f32.mrf.mxu2 }
 0x99d   :  { %v5942_v51 = vpop.f32.mrf.mxu3  ;;  %v5854_v53 = vadd.f32 %v5853_v55, %v5765_v27  ;;  %v5678_v45 = vpop.f32.mrf.mxu0 }
 0x99e   :  { %v5679_v7 = vadd.f32 %v9596_v44, %v5678_v45 }
 0x99f   :  { %v5767_v32 = vpop.f32.mrf.mxu1  ;;  %v9609_v2 = vadd.f32 %v5942_v51, %v5854_v53 }
 0x9a0   :  { %v5768_v31 = vadd.f32 %v5767_v32, %v5679_v7  ;;  %5717 = vmatmul.bf16.gmra.mxu0 %v10656_v43 }
 0x9a1   :  { %5895 = vmatmul.bf16.gmra.mxu2 %v9419_v20  ;;  %v6022_v24 = vsel %vm6020_vm1, %v9609_v2, -inf }
 0x9a2   :  { %5806 = vmatmul.bf16.gmra.mxu1 %v10657_v42  ;;  %5984 = vmatmul.bf16.gmra.mxu3 %v9550_v46 }
 0x9a4   :  { %v5856_v16 = vpop.f32.mrf.mxu2 }
 0x9a5   :  { %v5945_v17 = vpop.f32.mrf.mxu3  ;;  %v5857_v10 = vadd.f32 %v5856_v16, %v5768_v31  ;;  %v5680_v30 = vpop.f32.mrf.mxu0 }
 0x9a6   :  { %v5681_v21 = vadd.f32 %v9596_v44, %v5680_v30 }
 0x9a7   :  { %v5769_v40 = vpop.f32.mrf.mxu1  ;;  %v9616_v47 = vadd.f32 %v5945_v17, %v5857_v10 }
 0x9a8   :  { %v5770_v60 = vadd.f32 %v5769_v40, %v5681_v21 }
 0x9a9   :  { %v6023_v42 = vsel %vm6020_vm1, %v9616_v47, -inf }
 0x9ac   :  { %v5858_v4 = vpop.f32.mrf.mxu2 }
 0x9ad   :  { %v5947_v19 = vpop.f32.mrf.mxu3  ;;  %v5859_v38 = vadd.f32 %v5858_v4, %v5770_v60  ;;  %v5683_v9 = vpop.f32.mrf.mxu0 }
 0x9ae   :  { %v5684_v5 = vadd.f32 %v9596_v44, %v5683_v9 }
 0x9af   :  { %v5772_v29 = vpop.f32.mrf.mxu1  ;;  %v9619_v20 = vadd.f32 %v5947_v19, %v5859_v38  ;;  %v10662_v19 = vld [vmem:[#allocation30_spill] sm:$0xff]  ;;  %v10663_v38 = vld [vmem:[#allocation53_spill] sm:$0xff] }
 0x9b0   :  { %v5773_v46 = vadd.f32 %v5772_v29, %v5684_v5  ;;  %5722 = vmatmul.bf16.gmra.mxu0 %v10658_v54 }
 0x9b1   :  { %5900 = vmatmul.bf16.gmra.mxu2 %v9427_v22  ;;  %v6024_v9 = vsel %vm6020_vm1, %v9619_v20, -inf }
 0x9b2   :  { %5811 = vmatmul.bf16.gmra.mxu1 %v10659_v41  ;;  %5989 = vmatmul.bf16.gmra.mxu3 %v9558_v36 }
 0x9b4   :  { %v5861_v37 = vpop.f32.mrf.mxu2 }
 0x9b5   :  { %v5950_v56 = vpop.f32.mrf.mxu3  ;;  %v5862_v59 = vadd.f32 %v5861_v37, %v5773_v46  ;;  %v5685_v48 = vpop.f32.mrf.mxu0 }
 0x9b6   :  { %v5686_v62 = vadd.f32 %v9596_v44, %v5685_v48 }
 0x9b7   :  { %v5774_v50 = vpop.f32.mrf.mxu1  ;;  %v9626_v57 = vadd.f32 %v5950_v56, %v5862_v59 }
 0x9b8   :  { %v5775_v18 = vadd.f32 %v5774_v50, %v5686_v62 }
 0x9b9   :  { %v6025_v1 = vsel %vm6020_vm1, %v9626_v57, -inf }
 0x9ba   :  { %v6026_v22 = vmax.f32 %v6021_v12, %v6025_v1 }
 0x9bc   :  { %v5863_v25 = vpop.f32.mrf.mxu2 }
 0x9bd   :  { %v5952_v36 = vpop.f32.mrf.mxu3  ;;  %v5864_v11 = vadd.f32 %v5863_v25, %v5775_v18  ;;  %v5688_v39 = vpop.f32.mrf.mxu0 }
 0x9be   :  { %v5689_v34 = vadd.f32 %v9596_v44, %v5688_v39 }
 0x9bf   :  { %v5777_v0 = vpop.f32.mrf.mxu1  ;;  %v9633_v35 = vadd.f32 %v5952_v36, %v5864_v11 }
 0x9c0   :  { %v5778_v49 = vadd.f32 %v5777_v0, %v5689_v34  ;;  %5727 = vmatmul.bf16.gmra.mxu0 %v10660_v8  ;;  %v10664_v0 = vld [vmem:[#allocation34_spill] sm:$0xff] }
 0x9c1   :  { %v6027_v3 = vsel %vm6020_vm1, %v9633_v35, -inf  ;;  %5905 = vmatmul.bf16.gmra.mxu2 %v9435_v61  ;;  %v10665_v34 = vld [vmem:[#allocation70_spill] sm:$0xff] }
 0x9c2   :  { %5816 = vmatmul.bf16.gmra.mxu1 %v10661_v13  ;;  %5994 = vmatmul.bf16.gmra.mxu3 %v9566_v14  ;;  %v6028_v27 = vmax.f32 %v6022_v24, %v6027_v3 }
 0x9c4   :  { %v5866_v55 = vpop.f32.mrf.mxu2 }
 0x9c5   :  { %v5955_v51 = vpop.f32.mrf.mxu3  ;;  %v5867_v53 = vadd.f32 %v5866_v55, %v5778_v49  ;;  %v5690_v45 = vpop.f32.mrf.mxu0 }
 0x9c6   :  { %v5691_v7 = vadd.f32 %v9596_v44, %v5690_v45 }
 0x9c7   :  { %v5779_v32 = vpop.f32.mrf.mxu1  ;;  %v9644_v31 = vadd.f32 %v5955_v51, %v5867_v53 }
 0x9c8   :  { %v5780_v43 = vadd.f32 %v5779_v32, %v5691_v7 }
 0x9c9   :  { %v6029_v16 = vsel %vm6020_vm1, %v9644_v31, -inf }
 0x9ca   :  { %v6030_v61 = vmax.f32 %v6023_v42, %v6029_v16 }
 0x9cc   :  { %v5868_v17 = vpop.f32.mrf.mxu2 }
 0x9cd   :  { %v5957_v14 = vpop.f32.mrf.mxu3  ;;  %v5869_v10 = vadd.f32 %v5868_v17, %v5780_v43  ;;  %v5693_v30 = vpop.f32.mrf.mxu0 }
 0x9ce   :  { %v5694_v21 = vadd.f32 %v9596_v44, %v5693_v30  ;;  %v10667_v30 = vld [vmem:[#allocation41_spill] sm:$0xff] }
 0x9cf   :  { %v5782_v40 = vpop.f32.mrf.mxu1  ;;  %v9651_v60 = vadd.f32 %v5957_v14, %v5869_v10  ;;  %v10666_v10 = vld [vmem:[#allocation48_spill] sm:$0xff] }
 0x9d0   :  { %v5783_v4 = vadd.f32 %v5782_v40, %v5694_v21  ;;  %5732 = vmatmul.bf16.gmra.mxu0 %v10662_v19 }
 0x9d1   :  { %v6031_v29 = vsel %vm6020_vm1, %v9651_v60, -inf  ;;  %5910 = vmatmul.bf16.gmra.mxu2 %v9443_v6 }
 0x9d2   :  { %5821 = vmatmul.bf16.gmra.mxu1 %v10663_v38  ;;  %5999 = vmatmul.bf16.gmra.mxu3 %v9574_v28  ;;  %v6032_v5 = vmax.f32 %v6024_v9, %v6031_v29 }
 0x9d4   :  { %v5871_v46 = vpop.f32.mrf.mxu2 }
 0x9d5   :  { %v5960_v54 = vpop.f32.mrf.mxu3  ;;  %v5872_v41 = vadd.f32 %v5871_v46, %v5783_v4  ;;  %v5695_v37 = vpop.f32.mrf.mxu0 }
 0x9d6   :  { %v5696_v59 = vadd.f32 %v9596_v44, %v5695_v37 }
 0x9d7   :  { %v5784_v56 = vpop.f32.mrf.mxu1  ;;  %v9662_v48 = vadd.f32 %v5960_v54, %v5872_v41 }
 0x9d8   :  { %v5785_v50 = vadd.f32 %v5784_v56, %v5696_v59 }
 0x9d9   :  { %v6033_v62 = vsel %vm6020_vm1, %v9662_v48, -inf }
 0x9da   :  { %v9666_v18 = vmax.f32 %v6026_v22, %v6033_v62 }
 0x9dc   :  { %v5873_v12 = vpop.f32.mrf.mxu2 }
 0x9dd   :  { %v5962_v6 = vpop.f32.mrf.mxu3  ;;  %v5874_v1 = vadd.f32 %v5873_v12, %v5785_v50  ;;  %v5698_v28 = vpop.f32.mrf.mxu0 }
 0x9de   :  { %v5699_v36 = vadd.f32 %v9596_v44, %v5698_v28 }
 0x9df   :  { %v5787_v25 = vpop.f32.mrf.mxu1  ;;  %v9669_v11 = vadd.f32 %v5962_v6, %v5874_v1  ;;  %v10668_v6 = vld [vmem:[#allocation35_spill] sm:$0xff]  ;;  %v10669_v1 = vld [vmem:[#allocation42_spill] sm:$0xff] }
 0x9e0   :  { %v5788_v39 = vadd.f32 %v5787_v25, %v5699_v36  ;;  %5737 = vmatmul.bf16.gmra.mxu0 %v10664_v0 }
 0x9e1   :  { %v6035_v49 = vsel %vm6020_vm1, %v9669_v11, -inf  ;;  %5915 = vmatmul.bf16.gmra.mxu2 %v9451_v63 }
 0x9e2   :  { %5826 = vmatmul.bf16.gmra.mxu1 %v10665_v34  ;;  %6004 = vmatmul.bf16.gmra.mxu3 %v9582_v26  ;;  %v9677_v22 = vmax.f32 %v6028_v27, %v6035_v49 }
 0x9e4   :  { %v5876_v8 = vpop.f32.mrf.mxu2 }
 0x9e5   :  { %v5965_v13 = vpop.f32.mrf.mxu3  ;;  %v5877_v24 = vadd.f32 %v5876_v8, %v5788_v39  ;;  %v5700_v3 = vpop.f32.mrf.mxu0 }
 0x9e6   :  { %v5701_v51 = vadd.f32 %v9596_v44, %v5700_v3 }
 0x9e7   :  { %v5789_v55 = vpop.f32.mrf.mxu1  ;;  %v9680_v53 = vadd.f32 %v5965_v13, %v5877_v24 }
 0x9e8   :  { %v5790_v45 = vadd.f32 %v5789_v55, %v5701_v51 }
 0x9e9   :  { %v6037_v32 = vsel %vm6020_vm1, %v9680_v53, -inf }
 0x9ea   :  { %v9684_v7 = vmax.f32 %v6030_v61, %v6037_v32 }
 0x9ec   :  { %v5878_v63 = vpop.f32.mrf.mxu2 }
 0x9ed   :  { %v5967_v43 = vpop.f32.mrf.mxu3  ;;  %v5879_v26 = vadd.f32 %v5878_v63, %v5790_v45  ;;  %v5703_v27 = vpop.f32.mrf.mxu0 }
 0x9ee   :  { %v5704_v16 = vadd.f32 %v9596_v44, %v5703_v27 }
 0x9ef   :  { %v5792_v42 = vpop.f32.mrf.mxu1  ;;  %v9687_v17 = vadd.f32 %v5967_v43, %v5879_v26 }
 0x9f0   :  { %v5793_v14 = vadd.f32 %v5792_v42, %v5704_v16  ;;  %5742 = vmatmul.bf16.gmra.mxu0 %v10666_v10 }
 0x9f1   :  { %v6039_v40 = vsel %vm6020_vm1, %v9687_v17, -inf  ;;  %5920 = vmatmul.bf16.gmra.mxu2 %v9459_v58 }
 0x9f2   :  { %5831 = vmatmul.bf16.gmra.mxu1 %v10667_v30  ;;  %6009 = vmatmul.bf16.gmra.mxu3 %v9590_v23  ;;  %v9695_v61 = vmax.f32 %v6032_v5, %v6039_v40 }
 0x9f4   :  { %v5881_v21 = vpop.f32.mrf.mxu2 }
 0x9f5   :  { %v5970_v4 = vpop.f32.mrf.mxu3  ;;  %v5882_v19 = vadd.f32 %v5881_v21, %v5793_v14  ;;  %v5705_v38 = vpop.f32.mrf.mxu0 }
 0x9f6   :  { %v5706_v29 = vadd.f32 %v9596_v44, %v5705_v38 }
 0x9f7   :  { %v5794_v9 = vpop.f32.mrf.mxu1  ;;  %v9698_v46 = vadd.f32 %v5970_v4, %v5882_v19 }
 0x9f8   :  { %v5795_v54 = vadd.f32 %v5794_v9, %v5706_v29 }
 0x9f9   :  { %v6041_v41 = vsel %vm6020_vm1, %v9698_v46, -inf }
 0x9fa   :  { %v6042_v37 = vmax.f32 %v9666_v18, %v6041_v41 }
 0x9fc   :  { %v5883_v58 = vpop.f32.mrf.mxu2 }
 0x9fd   :  { %v5972_v56 = vpop.f32.mrf.mxu3  ;;  %v5884_v23 = vadd.f32 %v5883_v58, %v5795_v54  ;;  %v5708_v5 = vpop.f32.mrf.mxu0 }
 0x9fe   :  { %v5709_v50 = vadd.f32 %v9596_v44, %v5708_v5 }
 0x9ff   :  { %v5797_v59 = vpop.f32.mrf.mxu1  ;;  %v9704_v62 = vadd.f32 %v5972_v56, %v5884_v23 }
 0xa00   :  { %v5798_v12 = vadd.f32 %v5797_v59, %v5709_v50  ;;  %5747 = vmatmul.bf16.gmra.mxu0 %v10668_v6 }
 0xa01   :  { %v6043_v28 = vsel %vm6020_vm1, %v9704_v62, -inf  ;;  %5925 = vmatmul.bf16.gmra.mxu2 %v9470_v33 }
 0xa02   :  { %5836 = vmatmul.bf16.gmra.mxu1 %v10669_v1  ;;  %6014 = vmatmul.bf16.gmra.mxu3 %v9603_v52  ;;  %v6044_v18 = vmax.f32 %v9677_v22, %v6043_v28 }
 0xa04   :  { %v5886_v25 = vpop.f32.mrf.mxu2 }
 0xa05   :  { %v5975_v36 = vpop.f32.mrf.mxu3  ;;  %v5887_v39 = vadd.f32 %v5886_v25, %v5798_v12  ;;  %v5710_v0 = vpop.f32.mrf.mxu0 }
 0xa06   :  { %v5711_v49 = vadd.f32 %v9596_v44, %v5710_v0 }
 0xa07   :  { %v5799_v34 = vpop.f32.mrf.mxu1  ;;  %v9714_v8 = vadd.f32 %v5975_v36, %v5887_v39 }
 0xa08   :  { %v5800_v13 = vadd.f32 %v5799_v34, %v5711_v49 }
 0xa09   :  { %v6045_v24 = vsel %vm6020_vm1, %v9714_v8, -inf }
 0xa0a   :  { %v6046_v3 = vmax.f32 %v9684_v7, %v6045_v24 }
 0xa0c   :  { %v5888_v33 = vpop.f32.mrf.mxu2 }
 0xa0d   :  { %v5977_v55 = vpop.f32.mrf.mxu3  ;;  %v5889_v52 = vadd.f32 %v5888_v33, %v5800_v13  ;;  %v5713_v51 = vpop.f32.mrf.mxu0 }
 0xa0e   :  { %v5714_v45 = vadd.f32 %v9596_v44, %v5713_v51 }
 0xa0f   :  { %v5802_v22 = vpop.f32.mrf.mxu1  ;;  %v9720_v32 = vadd.f32 %v5977_v55, %v5889_v52 }
 0xa10   :  { %v5803_v63 = vadd.f32 %v5802_v22, %v5714_v45 }
 0xa11   :  { %v6047_v43 = vsel %vm6020_vm1, %v9720_v32, -inf }
 0xa12   :  { %v6048_v26 = vmax.f32 %v9695_v61, %v6047_v43 }
 0xa14   :  { %v5891_v27 = vpop.f32.mrf.mxu2 }
 0xa15   :  { %v5980_v42 = vpop.f32.mrf.mxu3  ;;  %v5892_v16 = vadd.f32 %v5891_v27, %v5803_v63  ;;  %v5715_v14 = vpop.f32.mrf.mxu0 }
 0xa16   :  { %v5716_v10 = vadd.f32 %v9596_v44, %v5715_v14 }
 0xa17   :  { %v5804_v7 = vpop.f32.mrf.mxu1  ;;  %v9726_v30 = vadd.f32 %v5980_v42, %v5892_v16 }
 0xa18   :  { %v5805_v40 = vadd.f32 %v5804_v7, %v5716_v10 }
 0xa19   :  { %v6049_v21 = vsel %vm6020_vm1, %v9726_v30, -inf }
 0xa1a   :  { %v9730_v4 = vmax.f32 %v6042_v37, %v6049_v21 }
 0xa1c   :  { %v5893_v19 = vpop.f32.mrf.mxu2 }
 0xa1d   :  { %v5982_v38 = vpop.f32.mrf.mxu3  ;;  %v5894_v9 = vadd.f32 %v5893_v19, %v5805_v40  ;;  %v5718_v29 = vpop.f32.mrf.mxu0 }
 0xa1e   :  { %v5719_v54 = vadd.f32 %v9596_v44, %v5718_v29 }
 0xa1f   :  { %v5807_v61 = vpop.f32.mrf.mxu1  ;;  %v9733_v41 = vadd.f32 %v5982_v38, %v5894_v9 }
 0xa20   :  { %v5808_v58 = vadd.f32 %v5807_v61, %v5719_v54 }
 0xa21   :  { %v6051_v56 = vsel %vm6020_vm1, %v9733_v41, -inf }
 0xa22   :  { %v9737_v23 = vmax.f32 %v6044_v18, %v6051_v56 }
 0xa24   :  { %v5896_v5 = vpop.f32.mrf.mxu2 }
 0xa25   :  { %v5985_v59 = vpop.f32.mrf.mxu3  ;;  %v5897_v50 = vadd.f32 %v5896_v5, %v5808_v58  ;;  %v5720_v37 = vpop.f32.mrf.mxu0 }
 0xa26   :  { %v5721_v6 = vadd.f32 %v9596_v44, %v5720_v37 }
 0xa27   :  { %v5809_v12 = vpop.f32.mrf.mxu1  ;;  %v9740_v1 = vadd.f32 %v5985_v59, %v5897_v50 }
 0xa28   :  { %v5810_v28 = vadd.f32 %v5809_v12, %v5721_v6 }
 0xa29   :  { %v6053_v25 = vsel %vm6020_vm1, %v9740_v1, -inf }
 0xa2a   :  { %v9744_v36 = vmax.f32 %v6046_v3, %v6053_v25 }
 0xa2c   :  { %v5898_v39 = vpop.f32.mrf.mxu2 }
 0xa2d   :  { %v5987_v0 = vpop.f32.mrf.mxu3  ;;  %v5899_v34 = vadd.f32 %v5898_v39, %v5810_v28  ;;  %v5723_v18 = vpop.f32.mrf.mxu0 }
 0xa2e   :  { %v5724_v13 = vadd.f32 %v9596_v44, %v5723_v18 }
 0xa2f   :  { %v5812_v49 = vpop.f32.mrf.mxu1  ;;  %v9747_v24 = vadd.f32 %v5987_v0, %v5899_v34 }
 0xa30   :  { %v5813_v33 = vadd.f32 %v5812_v49, %v5724_v13 }
 0xa31   :  { %10670 = vst [vmem:[#allocation64_spill] sm:$0xff] %v9747_v24  ;;  %v6055_v55 = vsel %vm6020_vm1, %v9747_v24, -inf }
 0xa32   :  { %v9751_v52 = vmax.f32 %v6048_v26, %v6055_v55 }
 0xa34   :  { %v5901_v51 = vpop.f32.mrf.mxu2 }
 0xa35   :  { %v5990_v22 = vpop.f32.mrf.mxu3  ;;  %v5902_v45 = vadd.f32 %v5901_v51, %v5813_v33  ;;  %v5725_v3 = vpop.f32.mrf.mxu0 }
 0xa36   :  { %v5726_v43 = vadd.f32 %v9596_v44, %v5725_v3 }
 0xa37   :  { %v5814_v63 = vpop.f32.mrf.mxu1  ;;  %v9754_v27 = vadd.f32 %v5990_v22, %v5902_v45 }
 0xa38   :  { %v5815_v42 = vadd.f32 %v5814_v63, %v5726_v43 }
 0xa39   :  { %10671 = vst [vmem:[#allocation18_spill] sm:$0xff] %v9754_v27  ;;  %v9758_v16 = vsel %vm6020_vm1, %v9754_v27, -inf }
 0xa3c   :  { %v5903_v7 = vpop.f32.mrf.mxu2 }
 0xa3d   :  { %v5992_v26 = vpop.f32.mrf.mxu3  ;;  %v5904_v10 = vadd.f32 %v5903_v7, %v5815_v42  ;;  %v5728_v40 = vpop.f32.mrf.mxu0 }
 0xa3e   :  { %v5729_v19 = vadd.f32 %v9596_v44, %v5728_v40 }
 0xa3f   :  { %v5817_v21 = vpop.f32.mrf.mxu1  ;;  %v9763_v38 = vadd.f32 %v5992_v26, %v5904_v10 }
 0xa40   :  { %v5818_v9 = vadd.f32 %v5817_v21, %v5729_v19 }
 0xa41   :  { %10672 = vst [vmem:[#allocation65_spill] sm:$0xff] %v9763_v38  ;;  %v6059_v29 = vsel %vm6020_vm1, %v9763_v38, -inf }
 0xa42   :  { %v6060_v61 = vmax.f32 %v9737_v23, %v6059_v29 }
 0xa44   :  { %v5906_v54 = vpop.f32.mrf.mxu2 }
 0xa45   :  { %v5995_v58 = vpop.f32.mrf.mxu3  ;;  %v5907_v56 = vadd.f32 %v5906_v54, %v5818_v9  ;;  %v5730_v5 = vpop.f32.mrf.mxu0 }
 0xa47   :  { %v5819_v59 = vpop.f32.mrf.mxu1  ;;  %v9768_v50 = vadd.f32 %v5995_v58, %v5907_v56 }
 0xa4c   :  { %v5908_v37 = vpop.f32.mrf.mxu2 }
 0xa4d   :  { %v9770_v12 = vpop.f32.mrf.mxu3  ;;  %v5733_v6 = vpop.f32.mrf.mxu0 }
 0xa4e   :  { %v5734_v42 = vadd.f32 %v9596_v44, %v5733_v6 }
 0xa4f   :  { %v5822_v28 = vpop.f32.mrf.mxu1 }
 0xa50   :  { %v5823_v10 = vadd.f32 %v5822_v28, %v5734_v42 }
 0xa54   :  { %v5911_v25 = vpop.f32.mrf.mxu2 }
 0xa55   :  { %v6000_v39 = vpop.f32.mrf.mxu3  ;;  %v5735_v0 = vpop.f32.mrf.mxu0  ;;  %v5912_v9 = vadd.f32 %v5911_v25, %v5823_v10 }
 0xa56   :  { %v5736_v7 = vadd.f32 %v9596_v44, %v5735_v0 }
 0xa57   :  { %v5824_v34 = vpop.f32.mrf.mxu1  ;;  %v9776_v27 = vadd.f32 %v6000_v39, %v5912_v9 }
 0xa58   :  { %v5825_v40 = vadd.f32 %v5824_v34, %v5736_v7  ;;  %v5731_v34 = vadd.f32 %v9596_v44, %v5730_v5  ;;  %v10673_v5 = vmax.f32 %v9730_v4, %v9758_v16 }
 0xa59   :  { %v6065_v25 = vsel %vm6020_vm1, %v9776_v27, -inf }
 0xa5a   :  { %v6066_v7 = vmax.f32 %v10673_v5, %v6065_v25 }
 0xa5c   :  { %v5913_v18 = vpop.f32.mrf.mxu2 }
 0xa5d   :  { %v6002_v49 = vpop.f32.mrf.mxu3  ;;  %v5738_v13 = vpop.f32.mrf.mxu0  ;;  %v5914_v29 = vadd.f32 %v5913_v18, %v5825_v40  ;;  %v5820_v40 = vadd.f32 %v5819_v59, %v5731_v34 }
 0xa5e   :  { %v5739_v39 = vadd.f32 %v9596_v44, %v5738_v13 }
 0xa5f   :  { %v5827_v23 = vpop.f32.mrf.mxu1  ;;  %v9778_v24 = vadd.f32 %v6002_v49, %v5914_v29 }
 0xa60   :  { %v5828_v29 = vadd.f32 %v5827_v23, %v5739_v39 }
 0xa61   :  { %v6067_v18 = vsel %vm6020_vm1, %v9778_v24, -inf }
 0xa64   :  { %v5916_v33 = vpop.f32.mrf.mxu2 }
 0xa65   :  { %v6005_v55 = vpop.f32.mrf.mxu3  ;;  %v5740_v51 = vpop.f32.mrf.mxu0 }
 0xa66   :  { %v5741_v49 = vadd.f32 %v9596_v44, %v5740_v51  ;;  %v5909_v51 = vadd.f32 %v5908_v37, %v5820_v40  ;;  %v6061_v37 = vsel %vm6020_vm1, %v9768_v50, -inf }
 0xa67   :  { %v5829_v22 = vpop.f32.mrf.mxu1 }
 0xa6c   :  { %v5918_v45 = vpop.f32.mrf.mxu2 }
 0xa6d   :  { %v6007_v3 = vpop.f32.mrf.mxu3  ;;  %v5743_v63 = vpop.f32.mrf.mxu0 }
 0xa6e   :  { %v5744_v26 = vadd.f32 %v9596_v44, %v5743_v63 }
 0xa6f   :  { %v5832_v43 = vpop.f32.mrf.mxu1 }
 0xa70   :  { %v5833_v54 = vadd.f32 %v5832_v43, %v5744_v26  ;;  %v6068_v26 = vmax.f32 %v6060_v61, %v6067_v18  ;;  %v9800_v61 = vadd.f32 %v9770_v12, %v5909_v51 }
 0xa72   :  { %v6063_v23 = vsel %vm6020_vm1, %v9800_v61, -inf }
 0xa74   :  { %v5921_v21 = vpop.f32.mrf.mxu2 }
 0xa75   :  { %v6010_v19 = vpop.f32.mrf.mxu3  ;;  %v5745_v58 = vpop.f32.mrf.mxu0  ;;  %v5922_v14 = vadd.f32 %v5921_v21, %v5833_v54  ;;  %v5830_v54 = vadd.f32 %v5829_v22, %v5741_v49 }
 0xa76   :  { %v5746_v38 = vadd.f32 %v9596_v44, %v5745_v58 }
 0xa77   :  { %v5834_v56 = vpop.f32.mrf.mxu1  ;;  %v9780_v6 = vadd.f32 %v6010_v19, %v5922_v14 }
 0xa78   :  { %v5835_v0 = vadd.f32 %v5834_v56, %v5746_v38 }
 0xa79   :  { %v6073_v14 = vsel %vm6020_vm1, %v9780_v6, -inf }
 0xa7a   :  { %v6074_v13 = vmax.f32 %v6066_v7, %v6073_v14 }
 0xa7c   :  { %v5923_v63 = vpop.f32.mrf.mxu2 }
 0xa7d   :  { %v6012_v28 = vpop.f32.mrf.mxu3  ;;  %v5924_v43 = vadd.f32 %v5923_v63, %v5835_v0  ;;  %v5748_v42 = vpop.f32.mrf.mxu0  ;;  %v5917_v63 = vadd.f32 %v5916_v33, %v5828_v29 }
 0xa7e   :  { %v5749_v19 = vadd.f32 %v9596_v44, %v5748_v42 }
 0xa7f   :  { %v9791_v38 = vadd.f32 %v6012_v28, %v5924_v43  ;;  %v5837_v10 = vpop.f32.mrf.mxu1  ;;  %v5919_v28 = vadd.f32 %v5918_v45, %v5830_v54  ;;  %v9803_v25 = vadd.f32 %v6005_v55, %v5917_v63  ;;  %v6064_v55 = vmax.f32 %v9751_v52, %v6063_v23 }
 0xa80   :  { %v5838_v4 = vadd.f32 %v5837_v10, %v5749_v19 }
 0xa81   :  { %v6075_v21 = vsel %vm6020_vm1, %v9791_v38, -inf  ;;  %v6008_v18 = vadd.f32 %v6007_v3, %v5919_v28  ;;  %v6069_v12 = vsel %vm6020_vm1, %v9803_v25, -inf  ;;  %v10674_v28 = vld [vmem:[#allocation64_spill] sm:$0xff] }
 0xa82   :  { %v6076_v9 = vmax.f32 %v6068_v26, %v6075_v21 }
 0xa83   :  { %v6071_v42 = vsel %vm6020_vm1, %v6008_v18, -inf }
 0xa84   :  { %v6081_v58 = vmax.f32 %v6074_v13, %v6076_v9  ;;  %v5926_v56 = vpop.f32.mrf.mxu2  ;;  %v6072_v7 = vmax.f32 %v6064_v55, %v6071_v42 }
 0xa85   :  { %v6015_v0 = vpop.f32.mrf.mxu3  ;;  %v5750_v16 = vpop.f32.mrf.mxu0  ;;  %v5927_v59 = vadd.f32 %v5926_v56, %v5838_v4  ;;  %v10675_v4 = vld [vmem:[#allocation18_spill] sm:$0xff] }
 0xa86   :  { %v5751_v34 = vadd.f32 %v9596_v44, %v5750_v16  ;;  %v6062_v44 = vmax.f32 %v9744_v36, %v6061_v37  ;;  %v10676_v16 = vld [vmem:[#allocation65_spill] sm:$0xff] }
 0xa87   :  { %v5839_v43 = vpop.f32.mrf.mxu1  ;;  %v6016_v33 = vadd.f32 %v6015_v0, %v5927_v59 }
 0xa88   :  { %v5840_v22 = vadd.f32 %v5839_v43, %v5751_v34  ;;  %v6070_v5 = vmax.f32 %v6062_v44, %v6069_v12 }
 0xa89   :  { %v6077_v49 = vsel %vm6020_vm1, %v6016_v33, -inf }
 0xa8a   :  { %v6078_v10 = vmax.f32 %v6070_v5, %v6077_v49 }
 0xa8c   :  { %v5928_v45 = vpop.f32.mrf.mxu2 }
 0xa8d   :  { %v5929_v39 = vadd.f32 %v5928_v45, %v5840_v22  ;;  %v6017_v3 = vpop.f32.mrf.mxu3 }
 0xa8f   :  { %v6018_v14 = vadd.f32 %v6017_v3, %v5929_v39 }
 0xa91   :  { %v6079_v26 = vsel %vm6020_vm1, %v6018_v14, -inf }
 0xa92   :  { %v6080_v40 = vmax.f32 %v6072_v7, %v6079_v26 }
 0xa94   :  { %v6082_v21 = vmax.f32 %v6078_v10, %v6080_v40 }
 0xa96   :  { %v6083_v19 = vmax.f32 %v6081_v58, %v6082_v21 }
 0xa98   :  { %v6084_v13 = vrot.slane %v6083_v19, 4 }
 0xa9a   :  { %v6085_v9 = vmax.f32 %v6083_v19, %v6084_v13 }
 0xa9c   :  { %v6086_v51 = vrot.slane %v6085_v9, 2 }
 0xa9e   :  { %v6087_v29 = vmax.f32 %v6085_v9, %v6086_v51 }
 0xaa0   :  { %v6088_v54 = vrot.slane %v6087_v29, 1 }
 0xaa2   :  { %v9816_v36 = vmax.f32 %v6087_v29, %v6088_v54 }
 0xaa4   :  { %v9820_v52 = vsub.f32 %v9606_v15, %v9816_v36  ;;  %v9824_v56 = vsub.f32 %v9609_v2, %v9816_v36  ;;  %v9828_v0 = vsub.f32 %v9616_v47, %v9816_v36  ;;  %v9832_v58 = vsub.f32 %v9619_v20, %v9816_v36 }
 0xaa5   :  { %v9836_v63 = vsub.f32 %v9626_v57, %v9816_v36  ;;  %v9840_v15 = vsub.f32 %v9633_v35, %v9816_v36  ;;  %v9844_v2 = vsub.f32 %v9644_v31, %v9816_v36  ;;  %v9848_v47 = vsub.f32 %v9651_v60, %v9816_v36 }
 0xaa6   :  { %v9852_v20 = vsub.f32 %v9662_v48, %v9816_v36  ;;  %v9856_v57 = vsub.f32 %v9669_v11, %v9816_v36  ;;  %v9860_v35 = vsub.f32 %v9680_v53, %v9816_v36  ;;  %v9864_v31 = vsub.f32 %v9687_v17, %v9816_v36 }
 0xaa7   :  { %v9868_v60 = vsub.f32 %v9698_v46, %v9816_v36  ;;  %v9872_v48 = vsub.f32 %v9704_v62, %v9816_v36  ;;  %v9876_v11 = vsub.f32 %v9714_v8, %v9816_v36  ;;  %v9880_v53 = vsub.f32 %v9720_v32, %v9816_v36 }
 0xaa8   :  { %v9884_v17 = vsub.f32 %v9726_v30, %v9816_v36  ;;  %v9888_v46 = vsub.f32 %v9733_v41, %v9816_v36  ;;  %v9892_v62 = vsub.f32 %v9740_v1, %v9816_v36  ;;  %v9896_v8 = vsub.f32 %v10674_v28, %v9816_v36 }
 0xaa9   :  { %v9900_v32 = vsub.f32 %v10675_v4, %v9816_v36  ;;  %v9904_v30 = vsub.f32 %v10676_v16, %v9816_v36  ;;  %v9907_v59 = vsub.f32 %v6008_v18, %v9816_v36  ;;  %v9911_v41 = vsub.f32 %v9780_v6, %v9816_v36 }
 0xaaa   :  { %v9915_v1 = vsub.f32 %v9791_v38, %v9816_v36  ;;  %v9918_v34 = vsub.f32 %v6016_v33, %v9816_v36  ;;  %v9921_v43 = vsub.f32 %v6018_v14, %v9816_v36  ;;  %v6122_v37 = vmul.f32 1.442695, %v9820_v52 }
 0xaab   :  { %v6124_v23 = vmul.f32 1.442695, %v9824_v56  ;;  %v6126_v18 = vmul.f32 1.442695, %v9828_v0  ;;  %v6128_v6 = vmul.f32 1.442695, %v9832_v58 }
 0xaac   :  { %7740 = vpow2.f32 %v6122_v37  ;;  %v6130_v38 = vmul.f32 1.442695, %v9836_v63  ;;  %v6132_v33 = vmul.f32 1.442695, %v9840_v15  ;;  %v6134_v45 = vmul.f32 1.442695, %v9844_v2 }
 0xaad   :  { %7742 = vpow2.f32 %v6124_v23  ;;  %v6136_v39 = vmul.f32 1.442695, %v9848_v47  ;;  %v6138_v49 = vmul.f32 1.442695, %v9852_v20  ;;  %v6140_v26 = vmul.f32 1.442695, %v9856_v57 }
 0xaae   :  { %7744 = vpow2.f32 %v6126_v18  ;;  %v6142_v19 = vmul.f32 1.442695, %v9860_v35  ;;  %v6144_v29 = vmul.f32 1.442695, %v9864_v31  ;;  %v6146_v16 = vmul.f32 1.442695, %v9868_v60 }
 0xaaf   :  { %7746 = vpow2.f32 %v6128_v6  ;;  %v6148_v6 = vmul.f32 1.442695, %v9872_v48 }
 0xab0   :  { %7748 = vpow2.f32 %v6130_v38 }
 0xab1   :  { %7750 = vpow2.f32 %v6132_v33 }
 0xab2   :  { %v7741_v22 = vpop.eup %7740  ;;  %7752 = vpow2.f32 %v6134_v45  ;;  %v6150_v45 = vmul.f32 1.442695, %v9876_v11 }
 0xab3   :  { %v7743_v12 = vpop.eup %7742  ;;  %v6186_v44 = vsel %vm6020_vm1, %v7741_v22, 0.0  ;;  %7754 = vpow2.f32 %v6136_v39 }
 0xab4   :  { %v7745_v42 = vpop.eup %7744  ;;  %v6187_v55 = vsel %vm6020_vm1, %v7743_v12, 0.0  ;;  %7756 = vpow2.f32 %v6138_v49 }
 0xab5   :  { %v7747_v3 = vpop.eup %7746  ;;  %v6188_v14 = vadd.f32 %v6187_v55, %v6186_v44  ;;  %v6189_v5 = vsel %vm6020_vm1, %v7745_v42, 0.0  ;;  %7758 = vpow2.f32 %v6140_v26  ;;  %v6152_v44 = vmul.f32 1.442695, %v9880_v53 }
 0xab6   :  { %v7749_v7 = vpop.eup %7748  ;;  %v6191_v40 = vsel %vm6020_vm1, %v7747_v3, 0.0  ;;  %7760 = vpow2.f32 %v6142_v19 }
 0xab7   :  { %v6190_v10 = vadd.f32 %v6189_v5, %v6188_v14  ;;  %v7751_v21 = vpop.eup %7750  ;;  %v6193_v9 = vsel %vm6020_vm1, %v7749_v7, 0.0  ;;  %7762 = vpow2.f32 %v6144_v29  ;;  %v6154_v14 = vmul.f32 1.442695, %v9884_v17 }
 0xab8   :  { %v7753_v51 = vpop.eup %7752  ;;  %v6195_v28 = vsel %vm6020_vm1, %v7751_v21, 0.0  ;;  %7764 = vpow2.f32 %v6146_v16 }
 0xab9   :  { %v6192_v13 = vadd.f32 %v6191_v40, %v6190_v10  ;;  %v7755_v4 = vpop.eup %7754  ;;  %v6197_v23 = vsel %vm6020_vm1, %v7753_v51, 0.0  ;;  %7766 = vpow2.f32 %v6148_v6  ;;  %v6156_v10 = vmul.f32 1.442695, %v9888_v46 }
 0xaba   :  { %v7757_v18 = vpop.eup %7756  ;;  %v6199_v33 = vsel %vm6020_vm1, %v7755_v4, 0.0  ;;  %7768 = vpow2.f32 %v6150_v45 }
 0xabb   :  { %v6194_v54 = vadd.f32 %v6193_v9, %v6192_v13  ;;  %v7759_v22 = vpop.eup %7758  ;;  %v6201_v42 = vsel %vm6020_vm1, %v7757_v18, 0.0  ;;  %7770 = vpow2.f32 %v6152_v44  ;;  %v6158_v13 = vmul.f32 1.442695, %v9892_v62 }
 0xabc   :  { %v7761_v39 = vpop.eup %7760  ;;  %v6203_v3 = vsel %vm6020_vm1, %v7759_v22, 0.0  ;;  %7772 = vpow2.f32 %v6154_v14  ;;  %v6164_v22 = vmul.f32 1.442695, %v9904_v30 }
 0xabd   :  { %v6196_v37 = vadd.f32 %v6195_v28, %v6194_v54  ;;  %v7763_v49 = vpop.eup %7762  ;;  %v6205_v7 = vsel %vm6020_vm1, %v7761_v39, 0.0  ;;  %7774 = vpow2.f32 %v6156_v10  ;;  %v6160_v54 = vmul.f32 1.442695, %v9896_v8 }
 0xabe   :  { %v7765_v26 = vpop.eup %7764  ;;  %v6207_v21 = vsel %vm6020_vm1, %v7763_v49, 0.0  ;;  %7776 = vpow2.f32 %v6158_v13 }
 0xabf   :  { %v6198_v38 = vadd.f32 %v6197_v23, %v6196_v37  ;;  %v7767_v19 = vpop.eup %7766  ;;  %v6209_v51 = vsel %vm6020_vm1, %v7765_v26, 0.0  ;;  %v9959_v37 = vsub.f32 %v9768_v50, %v9816_v36  ;;  %v6162_v23 = vmul.f32 1.442695, %v9900_v32 }
 0xac0   :  { %v7769_v29 = vpop.eup %7768  ;;  %v6211_v4 = vsel %vm6020_vm1, %v7767_v19, 0.0  ;;  %7778 = vpow2.f32 %v6160_v54  ;;  %v9971_v50 = vsub.f32 %v9776_v27, %v9816_v36  ;;  %v9983_v27 = vsub.f32 %v9803_v25, %v9816_v36 }
 0xac1   :  { %v6200_v12 = vadd.f32 %v6199_v33, %v6198_v38  ;;  %v7771_v16 = vpop.eup %7770  ;;  %v6213_v6 = vsel %vm6020_vm1, %v7769_v29, 0.0  ;;  %v9965_v33 = vsub.f32 %v9800_v61, %v9816_v36  ;;  %7780 = vpow2.f32 %v6162_v23 }
 0xac2   :  { %v7773_v38 = vpop.eup %7772  ;;  %v6166_v39 = vmul.f32 1.442695, %v9959_v37  ;;  %v9977_v61 = vsub.f32 %v9778_v24, %v9816_v36  ;;  %7782 = vpow2.f32 %v6164_v22  ;;  %v6170_v26 = vmul.f32 1.442695, %v9971_v50 }
 0xac3   :  { %v6202_v55 = vadd.f32 %v6201_v42, %v6200_v12  ;;  %v6215_v12 = vsel %vm6020_vm1, %v7771_v16, 0.0  ;;  %v7775_v42 = vpop.eup %7774  ;;  %v6168_v49 = vmul.f32 1.442695, %v9965_v33  ;;  %v6176_v54 = vmul.f32 1.442695, %v9907_v59 }
 0xac4   :  { %7784 = vpow2.f32 %v6166_v39  ;;  %v6172_v24 = vmul.f32 1.442695, %v9977_v61  ;;  %v6178_v23 = vmul.f32 1.442695, %v9911_v41  ;;  %v6180_v22 = vmul.f32 1.442695, %v9915_v1 }
 0xac5   :  { %v6204_v5 = vadd.f32 %v6203_v3, %v6202_v55  ;;  %v6217_v55 = vsel %vm6020_vm1, %v7773_v38, 0.0  ;;  %v7777_v3 = vpop.eup %7776  ;;  %7786 = vpow2.f32 %v6168_v49  ;;  %v6182_v39 = vmul.f32 1.442695, %v9918_v34 }
 0xac6   :  { %7788 = vpow2.f32 %v6170_v26  ;;  %v6184_v49 = vmul.f32 1.442695, %v9921_v43 }
 0xac7   :  { %v6206_v40 = vadd.f32 %v6205_v7, %v6204_v5  ;;  %v6219_v5 = vsel %vm6020_vm1, %v7775_v42, 0.0  ;;  %v7779_v7 = vpop.eup %7778  ;;  %7790 = vpow2.f32 %v6172_v24 }
 0xac8   :  { %v6223_v13 = vsel %vm6020_vm1, %v7779_v7, 0.0 }
 0xac9   :  { %v6208_v9 = vadd.f32 %v6207_v21, %v6206_v40  ;;  %v6221_v40 = vsel %vm6020_vm1, %v7777_v3, 0.0  ;;  %v7781_v21 = vpop.eup %7780 }
 0xaca   :  { %v6225_v25 = vsel %vm6020_vm1, %v7781_v21, 0.0 }
 0xacb   :  { %v6210_v28 = vadd.f32 %v6209_v51, %v6208_v9  ;;  %v7783_v9 = vpop.eup %7782  ;;  %v6174_v51 = vmul.f32 1.442695, %v9983_v27 }
 0xacc   :  { %v7785_v36 = vpop.eup %7784 }
 0xacd   :  { %v6212_v18 = vadd.f32 %v6211_v4, %v6210_v28  ;;  %v6227_v4 = vsel %vm6020_vm1, %v7783_v9, 0.0  ;;  %v7787_v16 = vpop.eup %7786  ;;  %7792 = vpow2.f32 %v6174_v51 }
 0xace   :  { %v7789_v38 = vpop.eup %7788  ;;  %7794 = vpow2.f32 %v6176_v54 }
 0xacf   :  { %v6214_v45 = vadd.f32 %v6213_v6, %v6212_v18  ;;  %v6229_v6 = vsel %vm6020_vm1, %v7785_v36, 0.0  ;;  %v7791_v42 = vpop.eup %7790  ;;  %7796 = vpow2.f32 %v6178_v23 }
 0xad0   :  { %7798 = vpow2.f32 %v6180_v22 }
 0xad1   :  { %v6216_v44 = vadd.f32 %v6215_v12, %v6214_v45  ;;  %v6231_v12 = vsel %vm6020_vm1, %v7787_v16, 0.0  ;;  %7800 = vpow2.f32 %v6182_v39 }
 0xad2   :  { %7802 = vpow2.f32 %v6184_v49 }
 0xad3   :  { %v6218_v14 = vadd.f32 %v6217_v55, %v6216_v44  ;;  %v6233_v55 = vsel %vm6020_vm1, %v7789_v38, 0.0  ;;  %v7793_v3 = vpop.eup %7792 }
 0xad4   :  { %v7795_v7 = vpop.eup %7794 }
 0xad5   :  { %v6220_v10 = vadd.f32 %v6219_v5, %v6218_v14  ;;  %v6235_v5 = vsel %vm6020_vm1, %v7791_v42, 0.0  ;;  %v6239_v24 = vsel %vm6020_vm1, %v7795_v7, 0.0 }
 0xad7   :  { %v6222_v19 = vadd.f32 %v6221_v40, %v6220_v10  ;;  %v6237_v10 = vsel %vm6020_vm1, %v7793_v3, 0.0  ;;  %v7797_v40 = vpop.eup %7796 }
 0xad8   :  { %v6241_v9 = vsel %vm6020_vm1, %v7797_v40, 0.0 }
 0xad9   :  { %v6224_v29 = vadd.f32 %v6223_v13, %v6222_v19  ;;  %v7799_v19 = vpop.eup %7798 }
 0xada   :  { %v7801_v51 = vpop.eup %7800 }
 0xadb   :  { %v6226_v28 = vadd.f32 %v6225_v25, %v6224_v29  ;;  %v6243_v25 = vsel %vm6020_vm1, %v7799_v19, 0.0  ;;  %v7803_v36 = vpop.eup %7802 }
 0xadc   :  { %v6247_v16 = vsel %vm6020_vm1, %v7803_v36, 0.0 }
 0xadd   :  { %v6228_v18 = vadd.f32 %v6227_v4, %v6226_v28  ;;  %v6245_v28 = vsel %vm6020_vm1, %v7801_v51, 0.0 }
 0xadf   :  { %v6230_v45 = vadd.f32 %v6229_v6, %v6228_v18 }
 0xae1   :  { %v6232_v44 = vadd.f32 %v6231_v12, %v6230_v45 }
 0xae3   :  { %v6234_v14 = vadd.f32 %v6233_v55, %v6232_v44 }
 0xae5   :  { %v6236_v26 = vadd.f32 %v6235_v5, %v6234_v14 }
 0xae7   :  { %v6238_v21 = vadd.f32 %v6237_v10, %v6236_v26 }
 0xae9   :  { %v6240_v13 = vadd.f32 %v6239_v24, %v6238_v21 }
 0xaeb   :  { %v6242_v29 = vadd.f32 %v6241_v9, %v6240_v13 }
 0xaed   :  { %v6244_v54 = vadd.f32 %v6243_v25, %v6242_v29 }
 0xaef   :  { %v6246_v4 = vadd.f32 %v6245_v28, %v6244_v54 }
 0xaf1   :  { %v6248_v23 = vadd.f32 %v6247_v16, %v6246_v4 }
 0xaf3   :  { %v6249_v18 = vrot.slane %v6248_v23, 4 }
 0xaf5   :  { %v6250_v6 = vadd.f32 %v6249_v18, %v6248_v23 }
 0xaf7   :  { %v6251_v38 = vrot.slane %v6250_v6, 2 }
 0xaf9   :  { %v6252_v22 = vadd.f32 %v6251_v38, %v6250_v6 }
 0xafb   :  { %v6253_v45 = vrot.slane %v6252_v22, 1 }
 0xafd   :  { %v6254_v12 = vadd.f32 %v6253_v45, %v6252_v22 }
 0xaff   :  { %7804 = vlog2.f32 %v6254_v12 }
 0xb05   :  { %v7805_v42 = vpop.eup %7804 }
 0xb06   :  { %v10007_v39 = vmul.f32 0.6931472, %v7805_v42 }
 0xb08   :  { %v6257_v44 = vsub.f32 %v9820_v52, %v10007_v39  ;;  %v6258_v55 = vsub.f32 %v9824_v56, %v10007_v39  ;;  %v6259_v3 = vsub.f32 %v9828_v0, %v10007_v39  ;;  %v6260_v49 = vsub.f32 %v9832_v58, %v10007_v39 }
 0xb09   :  { %v6261_v14 = vsub.f32 %v9836_v63, %v10007_v39  ;;  %v6262_v52 = vsub.f32 %v9840_v15, %v10007_v39  ;;  %v6263_v56 = vsub.f32 %v9844_v2, %v10007_v39  ;;  %v6264_v0 = vsub.f32 %v9848_v47, %v10007_v39 }
 0xb0a   :  { %6289 = vst.msk [vmem:[%s10210_s9] sm:$0xff] %vm6020_vm1, %v6257_v44  ;;  %v6265_v58 = vsub.f32 %v9852_v20, %v10007_v39  ;;  %v6266_v63 = vsub.f32 %v9856_v57, %v10007_v39  ;;  %v6267_v15 = vsub.f32 %v9860_v35, %v10007_v39  ;;  %v6268_v2 = vsub.f32 %v9864_v31, %v10007_v39 }
 0xb0b   :  { %6290 = vst.msk [vmem:[%s10210_s9 + $0x8] sm:$0xff] %vm6020_vm1, %v6258_v55  ;;  %v6269_v47 = vsub.f32 %v9868_v60, %v10007_v39  ;;  %v6270_v20 = vsub.f32 %v9872_v48, %v10007_v39  ;;  %v6271_v57 = vsub.f32 %v9876_v11, %v10007_v39  ;;  %v6272_v35 = vsub.f32 %v9880_v53, %v10007_v39 }
 0xb0c   :  { %6291 = vst.msk [vmem:[%s10210_s9 + $0x10] sm:$0xff] %vm6020_vm1, %v6259_v3  ;;  %v6273_v31 = vsub.f32 %v9884_v17, %v10007_v39  ;;  %v6274_v60 = vsub.f32 %v9888_v46, %v10007_v39  ;;  %v6275_v48 = vsub.f32 %v9892_v62, %v10007_v39  ;;  %v6276_v11 = vsub.f32 %v9896_v8, %v10007_v39 }
 0xb0d   :  { %6292 = vst.msk [vmem:[%s10210_s9 + $0x18] sm:$0xff] %vm6020_vm1, %v6260_v49  ;;  %v6277_v53 = vsub.f32 %v9900_v32, %v10007_v39  ;;  %v6278_v17 = vsub.f32 %v9904_v30, %v10007_v39  ;;  %v6279_v46 = vsub.f32 %v9959_v37, %v10007_v39  ;;  %v6280_v62 = vsub.f32 %v9965_v33, %v10007_v39 }
 0xb0e   :  { %6293 = vst.msk [vmem:[%s10210_s9 + $0x20] sm:$0xff] %vm6020_vm1, %v6261_v14  ;;  %v6281_v8 = vsub.f32 %v9971_v50, %v10007_v39  ;;  %v6282_v32 = vsub.f32 %v9977_v61, %v10007_v39  ;;  %v6283_v30 = vsub.f32 %v9983_v27, %v10007_v39  ;;  %v6284_v37 = vsub.f32 %v9907_v59, %v10007_v39 }
 0xb0f   :  { %6294 = vst.msk [vmem:[%s10210_s9 + $0x28] sm:$0xff] %vm6020_vm1, %v6262_v52  ;;  %v6285_v33 = vsub.f32 %v9911_v41, %v10007_v39  ;;  %v6286_v50 = vsub.f32 %v9915_v1, %v10007_v39  ;;  %v6287_v59 = vsub.f32 %v9918_v34, %v10007_v39  ;;  %v6288_v41 = vsub.f32 %v9921_v43, %v10007_v39 }
 0xb10   :  { %6295 = vst.msk [vmem:[%s10210_s9 + $0x30] sm:$0xff] %vm6020_vm1, %v6263_v56 }
 0xb11   :  { %6296 = vst.msk [vmem:[%s10210_s9 + $0x38] sm:$0xff] %vm6020_vm1, %v6264_v0 }
 0xb12   :  { %6297 = vst.msk [vmem:[%s10210_s9 + $0x40] sm:$0xff] %vm6020_vm1, %v6265_v58 }
 0xb13   :  { %6298 = vst.msk [vmem:[%s10210_s9 + $0x48] sm:$0xff] %vm6020_vm1, %v6266_v63 }
 0xb14   :  { %6299 = vst.msk [vmem:[%s10210_s9 + $0x50] sm:$0xff] %vm6020_vm1, %v6267_v15 }
 0xb15   :  { %6300 = vst.msk [vmem:[%s10210_s9 + $0x58] sm:$0xff] %vm6020_vm1, %v6268_v2 }
 0xb16   :  { %6301 = vst.msk [vmem:[%s10210_s9 + $0x60] sm:$0xff] %vm6020_vm1, %v6269_v47 }
 0xb17   :  { %6302 = vst.msk [vmem:[%s10210_s9 + $0x68] sm:$0xff] %vm6020_vm1, %v6270_v20 }
 0xb18   :  { %6303 = vst.msk [vmem:[%s10210_s9 + $0x70] sm:$0xff] %vm6020_vm1, %v6271_v57 }
 0xb19   :  { %6304 = vst.msk [vmem:[%s10210_s9 + $0x78] sm:$0xff] %vm6020_vm1, %v6272_v35 }
 0xb1a   :  { %6305 = vst.msk [vmem:[%s10210_s9 + $0x80] sm:$0xff] %vm6020_vm1, %v6273_v31 }
 0xb1b   :  { %6306 = vst.msk [vmem:[%s10210_s9 + $0x88] sm:$0xff] %vm6020_vm1, %v6274_v60 }
 0xb1c   :  { %6307 = vst.msk [vmem:[%s10210_s9 + $0x90] sm:$0xff] %vm6020_vm1, %v6275_v48 }
 0xb1d   :  { %6308 = vst.msk [vmem:[%s10210_s9 + $0x98] sm:$0xff] %vm6020_vm1, %v6276_v11 }
 0xb1e   :  { %6309 = vst.msk [vmem:[%s10210_s9 + $0xa0] sm:$0xff] %vm6020_vm1, %v6277_v53 }
 0xb1f   :  { %6310 = vst.msk [vmem:[%s10210_s9 + $0xa8] sm:$0xff] %vm6020_vm1, %v6278_v17 }
 0xb20   :  { %6311 = vst.msk [vmem:[%s10210_s9 + $0xb0] sm:$0xff] %vm6020_vm1, %v6279_v46 }
 0xb21   :  { %6312 = vst.msk [vmem:[%s10210_s9 + $0xb8] sm:$0xff] %vm6020_vm1, %v6280_v62 }
 0xb22   :  { %6313 = vst.msk [vmem:[%s10210_s9 + $0xc0] sm:$0xff] %vm6020_vm1, %v6281_v8 }
 0xb23   :  { %6314 = vst.msk [vmem:[%s10210_s9 + $0xc8] sm:$0xff] %vm6020_vm1, %v6282_v32 }
 0xb24   :  { %6315 = vst.msk [vmem:[%s10210_s9 + $0xd0] sm:$0xff] %vm6020_vm1, %v6283_v30 }
 0xb25   :  { %6316 = vst.msk [vmem:[%s10210_s9 + $0xd8] sm:$0xff] %vm6020_vm1, %v6284_v37 }
 0xb26   :  { %6317 = vst.msk [vmem:[%s10210_s9 + $0xe0] sm:$0xff] %vm6020_vm1, %v6285_v33 }
 0xb27   :  { %6318 = vst.msk [vmem:[%s10210_s9 + $0xe8] sm:$0xff] %vm6020_vm1, %v6286_v50 }
 0xb28   :  { %6319 = vst.msk [vmem:[%s10210_s9 + $0xf0] sm:$0xff] %vm6020_vm1, %v6287_v59 }
 0xb29   :  { %6320 = vst.msk [vmem:[%s10210_s9 + $0xf8] sm:$0xff] %vm6020_vm1, %v6288_v41 }
 0xb2a   :  { %6325 = vsyncpa [#allocation3], 1 }
 0xb2b   :  { %6326 = vsyncpa [#allocation5], 1 }

</bundles_post_ra>
